<compile_context>
chip_gen: v5e
topology: v5e:2x2
jax: 0.10.0
libtpu: 0.0.40
codegen_flags: <defaults>
</compile_context>

<pallas_src>
import functools

import jax
import jax.numpy as jnp
from jax.experimental import pallas as pl
from jax.experimental.pallas import tpu as pltpu

F32 = jnp.float32
N_NODES = 128
INPUT_LENGTH = 8
LEAKY_SLOPE = 0.01    # nn.LeakyReLU() default (act3)
GAT_SLOPE = 0.2       # GATConv internal negative_slope
HID = 64              # LSTM hidden size
NEG_INF = -1e30


def _leaky(x, slope):
    return jnp.where(x > 0, x, slope * x)


# ----------------------------------------------------------------------------
# Single fused kernel: whole forward pass, one grid point, everything in VMEM.
# ----------------------------------------------------------------------------
def _fused_kernel(*refs):
    (x_sec_ref, x_svi_ref, t_ref, mbias_ref,
     ws1, bs1, ws2, bs2, wv1, bv1, wv2, bv2, wa1s, wa1v, ba1, wa2, ba2,
     g1w, g1a, g1b, g2w, g2a, g2b, g3w, g3a, g3b,
     l0wi, l0wg, l0wo, l0bi, l0bg, l0bo,
     l1wi, l1wg, l1wo, l1bi, l1bg, l1bo,
     l2wi, l2wg, l2wo, l2bi, l2bg, l2bo,
     wt1, bt1, wt2, bt2,
     w1x, w1t, b1, w2, b2, w3, b3,
     out_ref) = refs

    def dot(a, b):
        return jnp.dot(a, b, preferred_element_type=F32)

    # ---- node feature encoder (sec branch: sigmoid, svi branch: leaky) ----
    s = jax.nn.sigmoid(dot(x_sec_ref[...], ws1[...]) + bs1[...])
    s = jax.nn.sigmoid(dot(s, ws2[...]) + bs2[...])
    v = _leaky(dot(x_svi_ref[...], wv1[...]) + bv1[...], LEAKY_SLOPE)
    v = _leaky(dot(v, wv2[...]) + bv2[...], LEAKY_SLOPE)
    # cat((sec, svi), 1) @ W_all1  ==  sec @ W_all1[:128] + svi @ W_all1[128:]
    z = dot(s, wa1s[...]) + dot(v, wa1v[...]) + ba1[...]
    z = _leaky(z, LEAKY_SLOPE)
    h = _leaky(dot(z, wa2[...]) + ba2[...], LEAKY_SLOPE)

    mbias = mbias_ref[...]                                      # (N, N) additive

    # ---- dense-mask GATConv (heads=1) with trailing LeakyReLU(0.01) fused ----
    def gat(h, w, att, bias):
        hp = dot(h, w[...])                                     # (N, Fout)
        av = dot(hp, att[...])                                  # (N, 2) on MXU
        e = av[:, 0:1] + jnp.transpose(av[:, 1:2])              # a_dst_i + a_src_j
        e = jnp.where(e > 0, e, GAT_SLOPE * e) + mbias          # leaky + mask bias
        e = e - jnp.max(e, axis=1, keepdims=True)
        p = jnp.exp(e)                                          # masked -> exactly 0
        alpha = p * pl.reciprocal(jnp.sum(p, axis=1, keepdims=True), approx=True)
        o = dot(alpha, hp) + bias[...]
        return _leaky(o, LEAKY_SLOPE)                           # act3 fused

    h = gat(h, g1w, g1a, g1b)                                   # (N, 128)
    h = gat(h, g2w, g2a, g2b)                                   # (N, 128)
    h = gat(h, g3w, g3a, g3b)                                   # (N, 64)

    # ---- 3-layer LSTM over a length-1 sequence with zero initial state ----
    # (forget gate and W_hh dropped in glue; per-gate weights avoid lane slices)
    def lstm_cell(x, wi, wg, wo, bi, bg, bo):
        i = jax.nn.sigmoid(dot(x, wi[...]) + bi[...])
        g = jnp.tanh(dot(x, wg[...]) + bg[...])
        o = jax.nn.sigmoid(dot(x, wo[...]) + bo[...])
        return o * jnp.tanh(i * g)

    hh = lstm_cell(t_ref[...], l0wi, l0wg, l0wo, l0bi, l0bg, l0bo)
    hh = lstm_cell(hh, l1wi, l1wg, l1wo, l1bi, l1bg, l1bo)
    hh = lstm_cell(hh, l2wi, l2wg, l2wo, l2bi, l2bg, l2bo)      # hn[2]
    t = _leaky(dot(hh, wt1[...]) + bt1[...], LEAKY_SLOPE)
    t = _leaky(dot(t, wt2[...]) + bt2[...], LEAKY_SLOPE)

    # ---- prediction head on cat((x_gat, t), 1) ----
    zz = jnp.maximum(dot(h, w1x[...]) + dot(t, w1t[...]) + b1[...], 0.0)
    zz = jnp.maximum(dot(zz, w2[...]) + b2[...], 0.0)
    out_ref[...] = dot(zz, w3[...]) + b3[...]                   # (N, 4)


def _fused_call(args, n):
    return pl.pallas_call(
        _fused_kernel,
        out_shape=jax.ShapeDtypeStruct((n, 4), F32),
        in_specs=[pl.BlockSpec(memory_space=pltpu.MemorySpace.VMEM)
                  for _ in range(len(args))],
        out_specs=pl.BlockSpec(memory_space=pltpu.MemorySpace.VMEM),
        compiler_params=pltpu.CompilerParams(vmem_limit_bytes=32 * 1024 * 1024),
    )(*args)


# ----------------------------------------------------------------------------
# Parameter init (deterministic, synthetic) in module-like (in, out) layout
# ----------------------------------------------------------------------------
def init_params(key, input_length):
    def lin(k, fin, fout):
        k1, k2 = jax.random.split(k)
        w = jax.random.normal(k1, (fin, fout), F32) / jnp.sqrt(jnp.float32(fin))
        b = jax.random.normal(k2, (1, fout), F32) * 0.01
        return w, b

    def gatp(k, fin, fout):
        k1, k2, k3, k4 = jax.random.split(k, 4)
        w = jax.random.normal(k1, (fin, fout), F32) / jnp.sqrt(jnp.float32(fin))
        a_dst = jax.random.normal(k2, (1, fout), F32) / jnp.sqrt(jnp.float32(fout))
        a_src = jax.random.normal(k3, (1, fout), F32) / jnp.sqrt(jnp.float32(fout))
        b = jax.random.normal(k4, (1, fout), F32) * 0.01
        return w, a_dst, a_src, b

    def lstm(k, fin):
        k1, k2, k3 = jax.random.split(k, 3)
        w_ih = jax.random.normal(k1, (fin, 4 * HID), F32) / jnp.sqrt(jnp.float32(fin))
        b_ih = jax.random.normal(k2, (1, 4 * HID), F32) * 0.01
        b_hh = jax.random.normal(k3, (1, 4 * HID), F32) * 0.01
        return w_ih, b_ih, b_hh

    ks = jax.random.split(key, 17)
    return {
        "sec1": lin(ks[0], 40, 128), "sec2": lin(ks[1], 128, 128),
        "svi1": lin(ks[2], 365, 128), "svi2": lin(ks[3], 128, 128),
        "all1": lin(ks[4], 256, 128), "all2": lin(ks[5], 128, 128),
        "gat1": gatp(ks[6], 128, 128), "gat2": gatp(ks[7], 128, 128),
        "gat3": gatp(ks[8], 128, 64),
        "lstm0": lstm(ks[9], input_length), "lstm1": lstm(ks[10], HID),
        "lstm2": lstm(ks[11], HID),
        "time1": lin(ks[12], 64, 64), "time2": lin(ks[13], 64, 64),
        "linear1": lin(ks[14], 128, 64), "linear2": lin(ks[15], 64, 64),
        "linear3": lin(ks[16], 64, 4),
    }


def prepare_kernel_params(params):
    """One-time glue: module params -> flat kernel-ready tuple."""
    out = []
    (ws1, bs1), (ws2, bs2) = params["sec1"], params["sec2"]
    (wv1, bv1), (wv2, bv2) = params["svi1"], params["svi2"]
    (wa1, ba1), (wa2, ba2) = params["all1"], params["all2"]
    out += [ws1, bs1, ws2, bs2, wv1, bv1, wv2, bv2,
            wa1[:128, :], wa1[128:, :], ba1, wa2, ba2]
    # GAT: pack (a_dst, a_src) as one (Fout, 2) matrix -> one MXU matmul.
    for name in ("gat1", "gat2", "gat3"):
        w, a_dst, a_src, b = params[name]
        att = jnp.concatenate([a_dst.T, a_src.T], axis=1)
        out += [w, att, b]
    # LSTM: drop forget gate (multiplies c0 == 0) and W_hh (h0 == 0, seq_len 1).
    # PyTorch gate order in w_ih columns is (i, f, g, o); combined bias b_ih+b_hh.
    for name in ("lstm0", "lstm1", "lstm2"):
        w_ih, b_ih, b_hh = params[name]
        b = b_ih + b_hh
        wi, wg, wo = (w_ih[:, 0:HID], w_ih[:, 2 * HID:3 * HID],
                      w_ih[:, 3 * HID:4 * HID])
        bi, bg, bo = (b[:, 0:HID], b[:, 2 * HID:3 * HID], b[:, 3 * HID:4 * HID])
        out += [wi, wg, wo, bi, bg, bo]
    (wt1, bt1), (wt2, bt2) = params["time1"], params["time2"]
    out += [wt1, bt1, wt2, bt2]
    (w1, b1), (w2, b2), (w3, b3) = (params["linear1"], params["linear2"],
                                    params["linear3"])
    out += [w1[:64, :], w1[64:, :], b1, w2, b2, w3, b3]
    return tuple(out)


def build_mask_bias(edge_index, n):
    """Additive attention mask: 0 where edge dst<-src exists (or diag), -1e30 else.

    Precomputed ONCE per static graph, outside the jitted forward.
    NOTE: duplicate edges collapse in this dense form (differs from PyG multigraph).
    """
    src, dst = edge_index[0], edge_index[1]
    adj = jnp.zeros((n, n), jnp.bool_).at[dst, src].set(True)
    adj = adj | jnp.eye(n, dtype=jnp.bool_)           # PyG add_self_loops
    return jnp.where(adj, 0.0, NEG_INF).astype(F32)


# ----------------------------------------------------------------------------
# Full forward: slice features in glue, run the single fused kernel.
# ----------------------------------------------------------------------------
@functools.partial(jax.jit, static_argnames=("input_length",))
def sfgat_forward(x_all, mask_bias, flat_params, *, input_length):
    n = x_all.shape[0]
    # x_phy = x[:,1:3] and x_poi = x[:,3:16] are unused, matching the PyTorch
    # forward of SFGAT_SCE_SE_LONG.
    x_sec = x_all[:, 16:56]                            # (N, 40)
    x_svi = x_all[:, 56:421]                           # (N, 365)
    t_in = x_all[:, 421:421 + input_length]            # (N, L): seq_len==1 LSTM input
    args = (x_sec, x_svi, t_in, mask_bias) + tuple(flat_params)
    return _fused_call(args, n)


if __name__ == "__main__":
    key = jax.random.PRNGKey(0)
    k_x, k_p = jax.random.split(key)

    n = N_NODES
    x_all = jax.random.normal(k_x, (n, 421 + INPUT_LENGTH), F32)

    # synthetic graph: bidirectional ring (no duplicate edges, no self loops)
    src = jnp.arange(n, dtype=jnp.int32)
    dst = (src + 1) % n
    edge_index = jnp.stack(
        [jnp.concatenate([src, dst]), jnp.concatenate([dst, src])], axis=0)

    params = init_params(k_p, INPUT_LENGTH)
    flat_params = prepare_kernel_params(params)        # once per checkpoint
    mask_bias = build_mask_bias(edge_index, n)         # once per graph

    out = sfgat_forward(x_all, mask_bias, flat_params, input_length=INPUT_LENGTH)
    jax.block_until_ready(out)
    assert out.shape == (n, 4) and out.dtype == F32
    print("KERNEL_OK")
</pallas_src>

<mosaic_0001>
module attributes {stable_mosaic.version = 11 : i64} {
  func.func @_fused_kernel(%arg0: memref<128x40xf32, #tpu.memory_space<vmem>>, %arg1: memref<128x365xf32, #tpu.memory_space<vmem>>, %arg2: memref<128x8xf32, #tpu.memory_space<vmem>>, %arg3: memref<128x128xf32, #tpu.memory_space<vmem>>, %arg4: memref<40x128xf32, #tpu.memory_space<vmem>>, %arg5: memref<1x128xf32, #tpu.memory_space<vmem>>, %arg6: memref<128x128xf32, #tpu.memory_space<vmem>>, %arg7: memref<1x128xf32, #tpu.memory_space<vmem>>, %arg8: memref<365x128xf32, #tpu.memory_space<vmem>>, %arg9: memref<1x128xf32, #tpu.memory_space<vmem>>, %arg10: memref<128x128xf32, #tpu.memory_space<vmem>>, %arg11: memref<1x128xf32, #tpu.memory_space<vmem>>, %arg12: memref<128x128xf32, #tpu.memory_space<vmem>>, %arg13: memref<128x128xf32, #tpu.memory_space<vmem>>, %arg14: memref<1x128xf32, #tpu.memory_space<vmem>>, %arg15: memref<128x128xf32, #tpu.memory_space<vmem>>, %arg16: memref<1x128xf32, #tpu.memory_space<vmem>>, %arg17: memref<128x128xf32, #tpu.memory_space<vmem>>, %arg18: memref<128x2xf32, #tpu.memory_space<vmem>>, %arg19: memref<1x128xf32, #tpu.memory_space<vmem>>, %arg20: memref<128x128xf32, #tpu.memory_space<vmem>>, %arg21: memref<128x2xf32, #tpu.memory_space<vmem>>, %arg22: memref<1x128xf32, #tpu.memory_space<vmem>>, %arg23: memref<128x64xf32, #tpu.memory_space<vmem>>, %arg24: memref<64x2xf32, #tpu.memory_space<vmem>>, %arg25: memref<1x64xf32, #tpu.memory_space<vmem>>, %arg26: memref<8x64xf32, #tpu.memory_space<vmem>>, %arg27: memref<8x64xf32, #tpu.memory_space<vmem>>, %arg28: memref<8x64xf32, #tpu.memory_space<vmem>>, %arg29: memref<1x64xf32, #tpu.memory_space<vmem>>, %arg30: memref<1x64xf32, #tpu.memory_space<vmem>>, %arg31: memref<1x64xf32, #tpu.memory_space<vmem>>, %arg32: memref<64x64xf32, #tpu.memory_space<vmem>>, %arg33: memref<64x64xf32, #tpu.memory_space<vmem>>, %arg34: memref<64x64xf32, #tpu.memory_space<vmem>>, %arg35: memref<1x64xf32, #tpu.memory_space<vmem>>, %arg36: memref<1x64xf32, #tpu.memory_space<vmem>>, %arg37: memref<1x64xf32, #tpu.memory_space<vmem>>, %arg38: memref<64x64xf32, #tpu.memory_space<vmem>>, %arg39: memref<64x64xf32, #tpu.memory_space<vmem>>, %arg40: memref<64x64xf32, #tpu.memory_space<vmem>>, %arg41: memref<1x64xf32, #tpu.memory_space<vmem>>, %arg42: memref<1x64xf32, #tpu.memory_space<vmem>>, %arg43: memref<1x64xf32, #tpu.memory_space<vmem>>, %arg44: memref<64x64xf32, #tpu.memory_space<vmem>>, %arg45: memref<1x64xf32, #tpu.memory_space<vmem>>, %arg46: memref<64x64xf32, #tpu.memory_space<vmem>>, %arg47: memref<1x64xf32, #tpu.memory_space<vmem>>, %arg48: memref<64x64xf32, #tpu.memory_space<vmem>>, %arg49: memref<64x64xf32, #tpu.memory_space<vmem>>, %arg50: memref<1x64xf32, #tpu.memory_space<vmem>>, %arg51: memref<64x64xf32, #tpu.memory_space<vmem>>, %arg52: memref<1x64xf32, #tpu.memory_space<vmem>>, %arg53: memref<64x4xf32, #tpu.memory_space<vmem>>, %arg54: memref<1x4xf32, #tpu.memory_space<vmem>>, %arg55: memref<128x4xf32, #tpu.memory_space<vmem>>) attributes {dimension_semantics = [], scalar_prefetch = 0 : i64, scratch_operands = 0 : i64, tpu.core_type = #tpu.core_type<tc>} {
    %c0 = arith.constant 0 : index
    %c0_0 = arith.constant 0 : index
    %0 = vector.load %arg0[%c0, %c0_0] : memref<128x40xf32, #tpu.memory_space<vmem>>, vector<128x40xf32>
    %c0_1 = arith.constant 0 : index
    %c0_2 = arith.constant 0 : index
    %1 = vector.load %arg4[%c0_1, %c0_2] : memref<40x128xf32, #tpu.memory_space<vmem>>, vector<40x128xf32>
    %cst = arith.constant dense<0.000000e+00> : vector<128x128xf32>
    %2 = tpu.matmul %0, %1, %cst {dimension_numbers = #tpu.dot_dimension_numbers<[1], [0], [0], [1], [0, 0, 1, 1], [], []>} : vector<128x40xf32>, vector<40x128xf32>, vector<128x128xf32> -> vector<128x128xf32>
    %c0_3 = arith.constant 0 : index
    %c0_4 = arith.constant 0 : index
    %3 = vector.load %arg5[%c0_3, %c0_4] : memref<1x128xf32, #tpu.memory_space<vmem>>, vector<1x128xf32>
    %4 = vector.broadcast %3 : vector<1x128xf32> to vector<128x128xf32>
    %5 = arith.addf %2, %4 : vector<128x128xf32>
    %6 = arith.negf %5 : vector<128x128xf32>
    %7 = math.exp %6 : vector<128x128xf32>
    %cst_5 = arith.constant 1.000000e+00 : f32
    %8 = vector.broadcast %cst_5 : f32 to vector<128x128xf32>
    %9 = arith.addf %8, %7 : vector<128x128xf32>
    %10 = arith.divf %8, %9 : vector<128x128xf32>
    %c0_6 = arith.constant 0 : index
    %c0_7 = arith.constant 0 : index
    %11 = vector.load %arg6[%c0_6, %c0_7] : memref<128x128xf32, #tpu.memory_space<vmem>>, vector<128x128xf32>
    %cst_8 = arith.constant dense<0.000000e+00> : vector<128x128xf32>
    %12 = tpu.matmul %10, %11, %cst_8 {dimension_numbers = #tpu.dot_dimension_numbers<[1], [0], [0], [1], [0, 0, 1, 1], [], []>} : vector<128x128xf32>, vector<128x128xf32>, vector<128x128xf32> -> vector<128x128xf32>
    %c0_9 = arith.constant 0 : index
    %c0_10 = arith.constant 0 : index
    %13 = vector.load %arg7[%c0_9, %c0_10] : memref<1x128xf32, #tpu.memory_space<vmem>>, vector<1x128xf32>
    %14 = vector.broadcast %13 : vector<1x128xf32> to vector<128x128xf32>
    %15 = arith.addf %12, %14 : vector<128x128xf32>
    %16 = arith.negf %15 : vector<128x128xf32>
    %17 = math.exp %16 : vector<128x128xf32>
    %cst_11 = arith.constant 1.000000e+00 : f32
    %18 = vector.broadcast %cst_11 : f32 to vector<128x128xf32>
    %19 = arith.addf %18, %17 : vector<128x128xf32>
    %20 = arith.divf %18, %19 : vector<128x128xf32>
    %c0_12 = arith.constant 0 : index
    %c0_13 = arith.constant 0 : index
    %21 = vector.load %arg1[%c0_12, %c0_13] : memref<128x365xf32, #tpu.memory_space<vmem>>, vector<128x365xf32>
    %c0_14 = arith.constant 0 : index
    %c0_15 = arith.constant 0 : index
    %22 = vector.load %arg8[%c0_14, %c0_15] : memref<365x128xf32, #tpu.memory_space<vmem>>, vector<365x128xf32>
    %cst_16 = arith.constant dense<0.000000e+00> : vector<128x128xf32>
    %23 = tpu.matmul %21, %22, %cst_16 {dimension_numbers = #tpu.dot_dimension_numbers<[1], [0], [0], [1], [0, 0, 1, 1], [], []>} : vector<128x365xf32>, vector<365x128xf32>, vector<128x128xf32> -> vector<128x128xf32>
    %c0_17 = arith.constant 0 : index
    %c0_18 = arith.constant 0 : index
    %24 = vector.load %arg9[%c0_17, %c0_18] : memref<1x128xf32, #tpu.memory_space<vmem>>, vector<1x128xf32>
    %25 = vector.broadcast %24 : vector<1x128xf32> to vector<128x128xf32>
    %26 = arith.addf %23, %25 : vector<128x128xf32>
    %cst_19 = arith.constant 0.000000e+00 : f32
    %27 = vector.broadcast %cst_19 : f32 to vector<128x128xf32>
    %28 = arith.cmpf ogt, %26, %27 : vector<128x128xf32>
    %cst_20 = arith.constant 0.00999999977 : f32
    %29 = vector.broadcast %cst_20 : f32 to vector<128x128xf32>
    %30 = arith.mulf %29, %26 : vector<128x128xf32>
    %31 = arith.select %28, %26, %30 : vector<128x128xi1>, vector<128x128xf32>
    %c0_21 = arith.constant 0 : index
    %c0_22 = arith.constant 0 : index
    %32 = vector.load %arg10[%c0_21, %c0_22] : memref<128x128xf32, #tpu.memory_space<vmem>>, vector<128x128xf32>
    %cst_23 = arith.constant dense<0.000000e+00> : vector<128x128xf32>
    %33 = tpu.matmul %31, %32, %cst_23 {dimension_numbers = #tpu.dot_dimension_numbers<[1], [0], [0], [1], [0, 0, 1, 1], [], []>} : vector<128x128xf32>, vector<128x128xf32>, vector<128x128xf32> -> vector<128x128xf32>
    %c0_24 = arith.constant 0 : index
    %c0_25 = arith.constant 0 : index
    %34 = vector.load %arg11[%c0_24, %c0_25] : memref<1x128xf32, #tpu.memory_space<vmem>>, vector<1x128xf32>
    %35 = vector.broadcast %34 : vector<1x128xf32> to vector<128x128xf32>
    %36 = arith.addf %33, %35 : vector<128x128xf32>
    %cst_26 = arith.constant 0.000000e+00 : f32
    %37 = vector.broadcast %cst_26 : f32 to vector<128x128xf32>
    %38 = arith.cmpf ogt, %36, %37 : vector<128x128xf32>
    %cst_27 = arith.constant 0.00999999977 : f32
    %39 = vector.broadcast %cst_27 : f32 to vector<128x128xf32>
    %40 = arith.mulf %39, %36 : vector<128x128xf32>
    %41 = arith.select %38, %36, %40 : vector<128x128xi1>, vector<128x128xf32>
    %c0_28 = arith.constant 0 : index
    %c0_29 = arith.constant 0 : index
    %42 = vector.load %arg12[%c0_28, %c0_29] : memref<128x128xf32, #tpu.memory_space<vmem>>, vector<128x128xf32>
    %cst_30 = arith.constant dense<0.000000e+00> : vector<128x128xf32>
    %43 = tpu.matmul %20, %42, %cst_30 {dimension_numbers = #tpu.dot_dimension_numbers<[1], [0], [0], [1], [0, 0, 1, 1], [], []>} : vector<128x128xf32>, vector<128x128xf32>, vector<128x128xf32> -> vector<128x128xf32>
    %c0_31 = arith.constant 0 : index
    %c0_32 = arith.constant 0 : index
    %44 = vector.load %arg13[%c0_31, %c0_32] : memref<128x128xf32, #tpu.memory_space<vmem>>, vector<128x128xf32>
    %cst_33 = arith.constant dense<0.000000e+00> : vector<128x128xf32>
    %45 = tpu.matmul %41, %44, %cst_33 {dimension_numbers = #tpu.dot_dimension_numbers<[1], [0], [0], [1], [0, 0, 1, 1], [], []>} : vector<128x128xf32>, vector<128x128xf32>, vector<128x128xf32> -> vector<128x128xf32>
    %46 = arith.addf %43, %45 : vector<128x128xf32>
    %c0_34 = arith.constant 0 : index
    %c0_35 = arith.constant 0 : index
    %47 = vector.load %arg14[%c0_34, %c0_35] : memref<1x128xf32, #tpu.memory_space<vmem>>, vector<1x128xf32>
    %48 = vector.broadcast %47 : vector<1x128xf32> to vector<128x128xf32>
    %49 = arith.addf %46, %48 : vector<128x128xf32>
    %cst_36 = arith.constant 0.000000e+00 : f32
    %50 = vector.broadcast %cst_36 : f32 to vector<128x128xf32>
    %51 = arith.cmpf ogt, %49, %50 : vector<128x128xf32>
    %cst_37 = arith.constant 0.00999999977 : f32
    %52 = vector.broadcast %cst_37 : f32 to vector<128x128xf32>
    %53 = arith.mulf %52, %49 : vector<128x128xf32>
    %54 = arith.select %51, %49, %53 : vector<128x128xi1>, vector<128x128xf32>
    %c0_38 = arith.constant 0 : index
    %c0_39 = arith.constant 0 : index
    %55 = vector.load %arg15[%c0_38, %c0_39] : memref<128x128xf32, #tpu.memory_space<vmem>>, vector<128x128xf32>
    %cst_40 = arith.constant dense<0.000000e+00> : vector<128x128xf32>
    %56 = tpu.matmul %54, %55, %cst_40 {dimension_numbers = #tpu.dot_dimension_numbers<[1], [0], [0], [1], [0, 0, 1, 1], [], []>} : vector<128x128xf32>, vector<128x128xf32>, vector<128x128xf32> -> vector<128x128xf32>
    %c0_41 = arith.constant 0 : index
    %c0_42 = arith.constant 0 : index
    %57 = vector.load %arg16[%c0_41, %c0_42] : memref<1x128xf32, #tpu.memory_space<vmem>>, vector<1x128xf32>
    %58 = vector.broadcast %57 : vector<1x128xf32> to vector<128x128xf32>
    %59 = arith.addf %56, %58 : vector<128x128xf32>
    %cst_43 = arith.constant 0.000000e+00 : f32
    %60 = vector.broadcast %cst_43 : f32 to vector<128x128xf32>
    %61 = arith.cmpf ogt, %59, %60 : vector<128x128xf32>
    %cst_44 = arith.constant 0.00999999977 : f32
    %62 = vector.broadcast %cst_44 : f32 to vector<128x128xf32>
    %63 = arith.mulf %62, %59 : vector<128x128xf32>
    %64 = arith.select %61, %59, %63 : vector<128x128xi1>, vector<128x128xf32>
    %c0_45 = arith.constant 0 : index
    %c0_46 = arith.constant 0 : index
    %65 = vector.load %arg3[%c0_45, %c0_46] : memref<128x128xf32, #tpu.memory_space<vmem>>, vector<128x128xf32>
    %c0_47 = arith.constant 0 : index
    %c0_48 = arith.constant 0 : index
    %66 = vector.load %arg17[%c0_47, %c0_48] : memref<128x128xf32, #tpu.memory_space<vmem>>, vector<128x128xf32>
    %cst_49 = arith.constant dense<0.000000e+00> : vector<128x128xf32>
    %67 = tpu.matmul %64, %66, %cst_49 {dimension_numbers = #tpu.dot_dimension_numbers<[1], [0], [0], [1], [0, 0, 1, 1], [], []>} : vector<128x128xf32>, vector<128x128xf32>, vector<128x128xf32> -> vector<128x128xf32>
    %c0_50 = arith.constant 0 : index
    %c0_51 = arith.constant 0 : index
    %68 = vector.load %arg18[%c0_50, %c0_51] : memref<128x2xf32, #tpu.memory_space<vmem>>, vector<128x2xf32>
    %cst_52 = arith.constant dense<0.000000e+00> : vector<128x2xf32>
    %69 = tpu.matmul %67, %68, %cst_52 {dimension_numbers = #tpu.dot_dimension_numbers<[1], [0], [0], [1], [0, 0, 1, 1], [], []>} : vector<128x128xf32>, vector<128x2xf32>, vector<128x2xf32> -> vector<128x2xf32>
    %70 = vector.extract_strided_slice %69 {offsets = [0, 0], sizes = [128, 1], strides = [1, 1]} : vector<128x2xf32> to vector<128x1xf32>
    %71 = vector.extract_strided_slice %69 {offsets = [0, 1], sizes = [128, 1], strides = [1, 1]} : vector<128x2xf32> to vector<128x1xf32>
    %72 = tpu.transpose %71, [1, 0] : vector<128x1xf32> -> vector<1x128xf32>
    %73 = vector.broadcast %70 : vector<128x1xf32> to vector<128x128xf32>
    %74 = vector.broadcast %72 : vector<1x128xf32> to vector<128x128xf32>
    %75 = arith.addf %73, %74 : vector<128x128xf32>
    %cst_53 = arith.constant 0.000000e+00 : f32
    %76 = vector.broadcast %cst_53 : f32 to vector<128x128xf32>
    %77 = arith.cmpf ogt, %75, %76 : vector<128x128xf32>
    %cst_54 = arith.constant 2.000000e-01 : f32
    %78 = vector.broadcast %cst_54 : f32 to vector<128x128xf32>
    %79 = arith.mulf %78, %75 : vector<128x128xf32>
    %80 = arith.select %77, %75, %79 : vector<128x128xi1>, vector<128x128xf32>
    %81 = arith.addf %80, %65 : vector<128x128xf32>
    %cst_55 = arith.constant dense<0xFF800000> : vector<128xf32>
    %82 = vector.multi_reduction <maximumf>, %81, %cst_55 [1] : vector<128x128xf32> to vector<128xf32>
    %83 = vector.shape_cast %82 : vector<128xf32> to vector<128x1xf32>
    %84 = vector.broadcast %83 : vector<128x1xf32> to vector<128x128xf32>
    %85 = arith.subf %81, %84 : vector<128x128xf32>
    %86 = math.exp %85 : vector<128x128xf32>
    %cst_56 = arith.constant dense<0.000000e+00> : vector<128xf32>
    %87 = vector.multi_reduction <add>, %86, %cst_56 [1] : vector<128x128xf32> to vector<128xf32>
    %88 = vector.shape_cast %87 : vector<128xf32> to vector<128x1xf32>
    %89 = tpu.reciprocal %88 {approx = true} : vector<128x1xf32> -> vector<128x1xf32>
    %90 = vector.broadcast %89 : vector<128x1xf32> to vector<128x128xf32>
    %91 = arith.mulf %86, %90 : vector<128x128xf32>
    %cst_57 = arith.constant dense<0.000000e+00> : vector<128x128xf32>
    %92 = tpu.matmul %91, %67, %cst_57 {dimension_numbers = #tpu.dot_dimension_numbers<[1], [0], [0], [1], [0, 0, 1, 1], [], []>} : vector<128x128xf32>, vector<128x128xf32>, vector<128x128xf32> -> vector<128x128xf32>
    %c0_58 = arith.constant 0 : index
    %c0_59 = arith.constant 0 : index
    %93 = vector.load %arg19[%c0_58, %c0_59] : memref<1x128xf32, #tpu.memory_space<vmem>>, vector<1x128xf32>
    %94 = vector.broadcast %93 : vector<1x128xf32> to vector<128x128xf32>
    %95 = arith.addf %92, %94 : vector<128x128xf32>
    %cst_60 = arith.constant 0.000000e+00 : f32
    %96 = vector.broadcast %cst_60 : f32 to vector<128x128xf32>
    %97 = arith.cmpf ogt, %95, %96 : vector<128x128xf32>
    %cst_61 = arith.constant 0.00999999977 : f32
    %98 = vector.broadcast %cst_61 : f32 to vector<128x128xf32>
    %99 = arith.mulf %98, %95 : vector<128x128xf32>
    %100 = arith.select %97, %95, %99 : vector<128x128xi1>, vector<128x128xf32>
    %c0_62 = arith.constant 0 : index
    %c0_63 = arith.constant 0 : index
    %101 = vector.load %arg20[%c0_62, %c0_63] : memref<128x128xf32, #tpu.memory_space<vmem>>, vector<128x128xf32>
    %cst_64 = arith.constant dense<0.000000e+00> : vector<128x128xf32>
    %102 = tpu.matmul %100, %101, %cst_64 {dimension_numbers = #tpu.dot_dimension_numbers<[1], [0], [0], [1], [0, 0, 1, 1], [], []>} : vector<128x128xf32>, vector<128x128xf32>, vector<128x128xf32> -> vector<128x128xf32>
    %c0_65 = arith.constant 0 : index
    %c0_66 = arith.constant 0 : index
    %103 = vector.load %arg21[%c0_65, %c0_66] : memref<128x2xf32, #tpu.memory_space<vmem>>, vector<128x2xf32>
    %cst_67 = arith.constant dense<0.000000e+00> : vector<128x2xf32>
    %104 = tpu.matmul %102, %103, %cst_67 {dimension_numbers = #tpu.dot_dimension_numbers<[1], [0], [0], [1], [0, 0, 1, 1], [], []>} : vector<128x128xf32>, vector<128x2xf32>, vector<128x2xf32> -> vector<128x2xf32>
    %105 = vector.extract_strided_slice %104 {offsets = [0, 0], sizes = [128, 1], strides = [1, 1]} : vector<128x2xf32> to vector<128x1xf32>
    %106 = vector.extract_strided_slice %104 {offsets = [0, 1], sizes = [128, 1], strides = [1, 1]} : vector<128x2xf32> to vector<128x1xf32>
    %107 = tpu.transpose %106, [1, 0] : vector<128x1xf32> -> vector<1x128xf32>
    %108 = vector.broadcast %105 : vector<128x1xf32> to vector<128x128xf32>
    %109 = vector.broadcast %107 : vector<1x128xf32> to vector<128x128xf32>
    %110 = arith.addf %108, %109 : vector<128x128xf32>
    %cst_68 = arith.constant 0.000000e+00 : f32
    %111 = vector.broadcast %cst_68 : f32 to vector<128x128xf32>
    %112 = arith.cmpf ogt, %110, %111 : vector<128x128xf32>
    %cst_69 = arith.constant 2.000000e-01 : f32
    %113 = vector.broadcast %cst_69 : f32 to vector<128x128xf32>
    %114 = arith.mulf %113, %110 : vector<128x128xf32>
    %115 = arith.select %112, %110, %114 : vector<128x128xi1>, vector<128x128xf32>
    %116 = arith.addf %115, %65 : vector<128x128xf32>
    %cst_70 = arith.constant dense<0xFF800000> : vector<128xf32>
    %117 = vector.multi_reduction <maximumf>, %116, %cst_70 [1] : vector<128x128xf32> to vector<128xf32>
    %118 = vector.shape_cast %117 : vector<128xf32> to vector<128x1xf32>
    %119 = vector.broadcast %118 : vector<128x1xf32> to vector<128x128xf32>
    %120 = arith.subf %116, %119 : vector<128x128xf32>
    %121 = math.exp %120 : vector<128x128xf32>
    %cst_71 = arith.constant dense<0.000000e+00> : vector<128xf32>
    %122 = vector.multi_reduction <add>, %121, %cst_71 [1] : vector<128x128xf32> to vector<128xf32>
    %123 = vector.shape_cast %122 : vector<128xf32> to vector<128x1xf32>
    %124 = tpu.reciprocal %123 {approx = true} : vector<128x1xf32> -> vector<128x1xf32>
    %125 = vector.broadcast %124 : vector<128x1xf32> to vector<128x128xf32>
    %126 = arith.mulf %121, %125 : vector<128x128xf32>
    %cst_72 = arith.constant dense<0.000000e+00> : vector<128x128xf32>
    %127 = tpu.matmul %126, %102, %cst_72 {dimension_numbers = #tpu.dot_dimension_numbers<[1], [0], [0], [1], [0, 0, 1, 1], [], []>} : vector<128x128xf32>, vector<128x128xf32>, vector<128x128xf32> -> vector<128x128xf32>
    %c0_73 = arith.constant 0 : index
    %c0_74 = arith.constant 0 : index
    %128 = vector.load %arg22[%c0_73, %c0_74] : memref<1x128xf32, #tpu.memory_space<vmem>>, vector<1x128xf32>
    %129 = vector.broadcast %128 : vector<1x128xf32> to vector<128x128xf32>
    %130 = arith.addf %127, %129 : vector<128x128xf32>
    %cst_75 = arith.constant 0.000000e+00 : f32
    %131 = vector.broadcast %cst_75 : f32 to vector<128x128xf32>
    %132 = arith.cmpf ogt, %130, %131 : vector<128x128xf32>
    %cst_76 = arith.constant 0.00999999977 : f32
    %133 = vector.broadcast %cst_76 : f32 to vector<128x128xf32>
    %134 = arith.mulf %133, %130 : vector<128x128xf32>
    %135 = arith.select %132, %130, %134 : vector<128x128xi1>, vector<128x128xf32>
    %c0_77 = arith.constant 0 : index
    %c0_78 = arith.constant 0 : index
    %136 = vector.load %arg23[%c0_77, %c0_78] : memref<128x64xf32, #tpu.memory_space<vmem>>, vector<128x64xf32>
    %cst_79 = arith.constant dense<0.000000e+00> : vector<128x64xf32>
    %137 = tpu.matmul %135, %136, %cst_79 {dimension_numbers = #tpu.dot_dimension_numbers<[1], [0], [0], [1], [0, 0, 1, 1], [], []>} : vector<128x128xf32>, vector<128x64xf32>, vector<128x64xf32> -> vector<128x64xf32>
    %c0_80 = arith.constant 0 : index
    %c0_81 = arith.constant 0 : index
    %138 = vector.load %arg24[%c0_80, %c0_81] : memref<64x2xf32, #tpu.memory_space<vmem>>, vector<64x2xf32>
    %cst_82 = arith.constant dense<0.000000e+00> : vector<128x2xf32>
    %139 = tpu.matmul %137, %138, %cst_82 {dimension_numbers = #tpu.dot_dimension_numbers<[1], [0], [0], [1], [0, 0, 1, 1], [], []>} : vector<128x64xf32>, vector<64x2xf32>, vector<128x2xf32> -> vector<128x2xf32>
    %140 = vector.extract_strided_slice %139 {offsets = [0, 0], sizes = [128, 1], strides = [1, 1]} : vector<128x2xf32> to vector<128x1xf32>
    %141 = vector.extract_strided_slice %139 {offsets = [0, 1], sizes = [128, 1], strides = [1, 1]} : vector<128x2xf32> to vector<128x1xf32>
    %142 = tpu.transpose %141, [1, 0] : vector<128x1xf32> -> vector<1x128xf32>
    %143 = vector.broadcast %140 : vector<128x1xf32> to vector<128x128xf32>
    %144 = vector.broadcast %142 : vector<1x128xf32> to vector<128x128xf32>
    %145 = arith.addf %143, %144 : vector<128x128xf32>
    %cst_83 = arith.constant 0.000000e+00 : f32
    %146 = vector.broadcast %cst_83 : f32 to vector<128x128xf32>
    %147 = arith.cmpf ogt, %145, %146 : vector<128x128xf32>
    %cst_84 = arith.constant 2.000000e-01 : f32
    %148 = vector.broadcast %cst_84 : f32 to vector<128x128xf32>
    %149 = arith.mulf %148, %145 : vector<128x128xf32>
    %150 = arith.select %147, %145, %149 : vector<128x128xi1>, vector<128x128xf32>
    %151 = arith.addf %150, %65 : vector<128x128xf32>
    %cst_85 = arith.constant dense<0xFF800000> : vector<128xf32>
    %152 = vector.multi_reduction <maximumf>, %151, %cst_85 [1] : vector<128x128xf32> to vector<128xf32>
    %153 = vector.shape_cast %152 : vector<128xf32> to vector<128x1xf32>
    %154 = vector.broadcast %153 : vector<128x1xf32> to vector<128x128xf32>
    %155 = arith.subf %151, %154 : vector<128x128xf32>
    %156 = math.exp %155 : vector<128x128xf32>
    %cst_86 = arith.constant dense<0.000000e+00> : vector<128xf32>
    %157 = vector.multi_reduction <add>, %156, %cst_86 [1] : vector<128x128xf32> to vector<128xf32>
    %158 = vector.shape_cast %157 : vector<128xf32> to vector<128x1xf32>
    %159 = tpu.reciprocal %158 {approx = true} : vector<128x1xf32> -> vector<128x1xf32>
    %160 = vector.broadcast %159 : vector<128x1xf32> to vector<128x128xf32>
    %161 = arith.mulf %156, %160 : vector<128x128xf32>
    %cst_87 = arith.constant dense<0.000000e+00> : vector<128x64xf32>
    %162 = tpu.matmul %161, %137, %cst_87 {dimension_numbers = #tpu.dot_dimension_numbers<[1], [0], [0], [1], [0, 0, 1, 1], [], []>} : vector<128x128xf32>, vector<128x64xf32>, vector<128x64xf32> -> vector<128x64xf32>
    %c0_88 = arith.constant 0 : index
    %c0_89 = arith.constant 0 : index
    %163 = vector.load %arg25[%c0_88, %c0_89] : memref<1x64xf32, #tpu.memory_space<vmem>>, vector<1x64xf32>
    %164 = vector.broadcast %163 : vector<1x64xf32> to vector<128x64xf32>
    %165 = arith.addf %162, %164 : vector<128x64xf32>
    %cst_90 = arith.constant 0.000000e+00 : f32
    %166 = vector.broadcast %cst_90 : f32 to vector<128x64xf32>
    %167 = arith.cmpf ogt, %165, %166 : vector<128x64xf32>
    %cst_91 = arith.constant 0.00999999977 : f32
    %168 = vector.broadcast %cst_91 : f32 to vector<128x64xf32>
    %169 = arith.mulf %168, %165 : vector<128x64xf32>
    %170 = arith.select %167, %165, %169 : vector<128x64xi1>, vector<128x64xf32>
    %c0_92 = arith.constant 0 : index
    %c0_93 = arith.constant 0 : index
    %171 = vector.load %arg2[%c0_92, %c0_93] : memref<128x8xf32, #tpu.memory_space<vmem>>, vector<128x8xf32>
    %c0_94 = arith.constant 0 : index
    %c0_95 = arith.constant 0 : index
    %172 = vector.load %arg26[%c0_94, %c0_95] : memref<8x64xf32, #tpu.memory_space<vmem>>, vector<8x64xf32>
    %cst_96 = arith.constant dense<0.000000e+00> : vector<128x64xf32>
    %173 = tpu.matmul %171, %172, %cst_96 {dimension_numbers = #tpu.dot_dimension_numbers<[1], [0], [0], [1], [0, 0, 1, 1], [], []>} : vector<128x8xf32>, vector<8x64xf32>, vector<128x64xf32> -> vector<128x64xf32>
    %c0_97 = arith.constant 0 : index
    %c0_98 = arith.constant 0 : index
    %174 = vector.load %arg29[%c0_97, %c0_98] : memref<1x64xf32, #tpu.memory_space<vmem>>, vector<1x64xf32>
    %175 = vector.broadcast %174 : vector<1x64xf32> to vector<128x64xf32>
    %176 = arith.addf %173, %175 : vector<128x64xf32>
    %177 = arith.negf %176 : vector<128x64xf32>
    %178 = math.exp %177 : vector<128x64xf32>
    %cst_99 = arith.constant 1.000000e+00 : f32
    %179 = vector.broadcast %cst_99 : f32 to vector<128x64xf32>
    %180 = arith.addf %179, %178 : vector<128x64xf32>
    %181 = arith.divf %179, %180 : vector<128x64xf32>
    %c0_100 = arith.constant 0 : index
    %c0_101 = arith.constant 0 : index
    %182 = vector.load %arg27[%c0_100, %c0_101] : memref<8x64xf32, #tpu.memory_space<vmem>>, vector<8x64xf32>
    %cst_102 = arith.constant dense<0.000000e+00> : vector<128x64xf32>
    %183 = tpu.matmul %171, %182, %cst_102 {dimension_numbers = #tpu.dot_dimension_numbers<[1], [0], [0], [1], [0, 0, 1, 1], [], []>} : vector<128x8xf32>, vector<8x64xf32>, vector<128x64xf32> -> vector<128x64xf32>
    %c0_103 = arith.constant 0 : index
    %c0_104 = arith.constant 0 : index
    %184 = vector.load %arg30[%c0_103, %c0_104] : memref<1x64xf32, #tpu.memory_space<vmem>>, vector<1x64xf32>
    %185 = vector.broadcast %184 : vector<1x64xf32> to vector<128x64xf32>
    %186 = arith.addf %183, %185 : vector<128x64xf32>
    %187 = math.tanh %186 : vector<128x64xf32>
    %c0_105 = arith.constant 0 : index
    %c0_106 = arith.constant 0 : index
    %188 = vector.load %arg28[%c0_105, %c0_106] : memref<8x64xf32, #tpu.memory_space<vmem>>, vector<8x64xf32>
    %cst_107 = arith.constant dense<0.000000e+00> : vector<128x64xf32>
    %189 = tpu.matmul %171, %188, %cst_107 {dimension_numbers = #tpu.dot_dimension_numbers<[1], [0], [0], [1], [0, 0, 1, 1], [], []>} : vector<128x8xf32>, vector<8x64xf32>, vector<128x64xf32> -> vector<128x64xf32>
    %c0_108 = arith.constant 0 : index
    %c0_109 = arith.constant 0 : index
    %190 = vector.load %arg31[%c0_108, %c0_109] : memref<1x64xf32, #tpu.memory_space<vmem>>, vector<1x64xf32>
    %191 = vector.broadcast %190 : vector<1x64xf32> to vector<128x64xf32>
    %192 = arith.addf %189, %191 : vector<128x64xf32>
    %193 = arith.negf %192 : vector<128x64xf32>
    %194 = math.exp %193 : vector<128x64xf32>
    %cst_110 = arith.constant 1.000000e+00 : f32
    %195 = vector.broadcast %cst_110 : f32 to vector<128x64xf32>
    %196 = arith.addf %195, %194 : vector<128x64xf32>
    %197 = arith.divf %195, %196 : vector<128x64xf32>
    %198 = arith.mulf %181, %187 : vector<128x64xf32>
    %199 = math.tanh %198 : vector<128x64xf32>
    %200 = arith.mulf %197, %199 : vector<128x64xf32>
    %c0_111 = arith.constant 0 : index
    %c0_112 = arith.constant 0 : index
    %201 = vector.load %arg32[%c0_111, %c0_112] : memref<64x64xf32, #tpu.memory_space<vmem>>, vector<64x64xf32>
    %cst_113 = arith.constant dense<0.000000e+00> : vector<128x64xf32>
    %202 = tpu.matmul %200, %201, %cst_113 {dimension_numbers = #tpu.dot_dimension_numbers<[1], [0], [0], [1], [0, 0, 1, 1], [], []>} : vector<128x64xf32>, vector<64x64xf32>, vector<128x64xf32> -> vector<128x64xf32>
    %c0_114 = arith.constant 0 : index
    %c0_115 = arith.constant 0 : index
    %203 = vector.load %arg35[%c0_114, %c0_115] : memref<1x64xf32, #tpu.memory_space<vmem>>, vector<1x64xf32>
    %204 = vector.broadcast %203 : vector<1x64xf32> to vector<128x64xf32>
    %205 = arith.addf %202, %204 : vector<128x64xf32>
    %206 = arith.negf %205 : vector<128x64xf32>
    %207 = math.exp %206 : vector<128x64xf32>
    %cst_116 = arith.constant 1.000000e+00 : f32
    %208 = vector.broadcast %cst_116 : f32 to vector<128x64xf32>
    %209 = arith.addf %208, %207 : vector<128x64xf32>
    %210 = arith.divf %208, %209 : vector<128x64xf32>
    %c0_117 = arith.constant 0 : index
    %c0_118 = arith.constant 0 : index
    %211 = vector.load %arg33[%c0_117, %c0_118] : memref<64x64xf32, #tpu.memory_space<vmem>>, vector<64x64xf32>
    %cst_119 = arith.constant dense<0.000000e+00> : vector<128x64xf32>
    %212 = tpu.matmul %200, %211, %cst_119 {dimension_numbers = #tpu.dot_dimension_numbers<[1], [0], [0], [1], [0, 0, 1, 1], [], []>} : vector<128x64xf32>, vector<64x64xf32>, vector<128x64xf32> -> vector<128x64xf32>
    %c0_120 = arith.constant 0 : index
    %c0_121 = arith.constant 0 : index
    %213 = vector.load %arg36[%c0_120, %c0_121] : memref<1x64xf32, #tpu.memory_space<vmem>>, vector<1x64xf32>
    %214 = vector.broadcast %213 : vector<1x64xf32> to vector<128x64xf32>
    %215 = arith.addf %212, %214 : vector<128x64xf32>
    %216 = math.tanh %215 : vector<128x64xf32>
    %c0_122 = arith.constant 0 : index
    %c0_123 = arith.constant 0 : index
    %217 = vector.load %arg34[%c0_122, %c0_123] : memref<64x64xf32, #tpu.memory_space<vmem>>, vector<64x64xf32>
    %cst_124 = arith.constant dense<0.000000e+00> : vector<128x64xf32>
    %218 = tpu.matmul %200, %217, %cst_124 {dimension_numbers = #tpu.dot_dimension_numbers<[1], [0], [0], [1], [0, 0, 1, 1], [], []>} : vector<128x64xf32>, vector<64x64xf32>, vector<128x64xf32> -> vector<128x64xf32>
    %c0_125 = arith.constant 0 : index
    %c0_126 = arith.constant 0 : index
    %219 = vector.load %arg37[%c0_125, %c0_126] : memref<1x64xf32, #tpu.memory_space<vmem>>, vector<1x64xf32>
    %220 = vector.broadcast %219 : vector<1x64xf32> to vector<128x64xf32>
    %221 = arith.addf %218, %220 : vector<128x64xf32>
    %222 = arith.negf %221 : vector<128x64xf32>
    %223 = math.exp %222 : vector<128x64xf32>
    %cst_127 = arith.constant 1.000000e+00 : f32
    %224 = vector.broadcast %cst_127 : f32 to vector<128x64xf32>
    %225 = arith.addf %224, %223 : vector<128x64xf32>
    %226 = arith.divf %224, %225 : vector<128x64xf32>
    %227 = arith.mulf %210, %216 : vector<128x64xf32>
    %228 = math.tanh %227 : vector<128x64xf32>
    %229 = arith.mulf %226, %228 : vector<128x64xf32>
    %c0_128 = arith.constant 0 : index
    %c0_129 = arith.constant 0 : index
    %230 = vector.load %arg38[%c0_128, %c0_129] : memref<64x64xf32, #tpu.memory_space<vmem>>, vector<64x64xf32>
    %cst_130 = arith.constant dense<0.000000e+00> : vector<128x64xf32>
    %231 = tpu.matmul %229, %230, %cst_130 {dimension_numbers = #tpu.dot_dimension_numbers<[1], [0], [0], [1], [0, 0, 1, 1], [], []>} : vector<128x64xf32>, vector<64x64xf32>, vector<128x64xf32> -> vector<128x64xf32>
    %c0_131 = arith.constant 0 : index
    %c0_132 = arith.constant 0 : index
    %232 = vector.load %arg41[%c0_131, %c0_132] : memref<1x64xf32, #tpu.memory_space<vmem>>, vector<1x64xf32>
    %233 = vector.broadcast %232 : vector<1x64xf32> to vector<128x64xf32>
    %234 = arith.addf %231, %233 : vector<128x64xf32>
    %235 = arith.negf %234 : vector<128x64xf32>
    %236 = math.exp %235 : vector<128x64xf32>
    %cst_133 = arith.constant 1.000000e+00 : f32
    %237 = vector.broadcast %cst_133 : f32 to vector<128x64xf32>
    %238 = arith.addf %237, %236 : vector<128x64xf32>
    %239 = arith.divf %237, %238 : vector<128x64xf32>
    %c0_134 = arith.constant 0 : index
    %c0_135 = arith.constant 0 : index
    %240 = vector.load %arg39[%c0_134, %c0_135] : memref<64x64xf32, #tpu.memory_space<vmem>>, vector<64x64xf32>
    %cst_136 = arith.constant dense<0.000000e+00> : vector<128x64xf32>
    %241 = tpu.matmul %229, %240, %cst_136 {dimension_numbers = #tpu.dot_dimension_numbers<[1], [0], [0], [1], [0, 0, 1, 1], [], []>} : vector<128x64xf32>, vector<64x64xf32>, vector<128x64xf32> -> vector<128x64xf32>
    %c0_137 = arith.constant 0 : index
    %c0_138 = arith.constant 0 : index
    %242 = vector.load %arg42[%c0_137, %c0_138] : memref<1x64xf32, #tpu.memory_space<vmem>>, vector<1x64xf32>
    %243 = vector.broadcast %242 : vector<1x64xf32> to vector<128x64xf32>
    %244 = arith.addf %241, %243 : vector<128x64xf32>
    %245 = math.tanh %244 : vector<128x64xf32>
    %c0_139 = arith.constant 0 : index
    %c0_140 = arith.constant 0 : index
    %246 = vector.load %arg40[%c0_139, %c0_140] : memref<64x64xf32, #tpu.memory_space<vmem>>, vector<64x64xf32>
    %cst_141 = arith.constant dense<0.000000e+00> : vector<128x64xf32>
    %247 = tpu.matmul %229, %246, %cst_141 {dimension_numbers = #tpu.dot_dimension_numbers<[1], [0], [0], [1], [0, 0, 1, 1], [], []>} : vector<128x64xf32>, vector<64x64xf32>, vector<128x64xf32> -> vector<128x64xf32>
    %c0_142 = arith.constant 0 : index
    %c0_143 = arith.constant 0 : index
    %248 = vector.load %arg43[%c0_142, %c0_143] : memref<1x64xf32, #tpu.memory_space<vmem>>, vector<1x64xf32>
    %249 = vector.broadcast %248 : vector<1x64xf32> to vector<128x64xf32>
    %250 = arith.addf %247, %249 : vector<128x64xf32>
    %251 = arith.negf %250 : vector<128x64xf32>
    %252 = math.exp %251 : vector<128x64xf32>
    %cst_144 = arith.constant 1.000000e+00 : f32
    %253 = vector.broadcast %cst_144 : f32 to vector<128x64xf32>
    %254 = arith.addf %253, %252 : vector<128x64xf32>
    %255 = arith.divf %253, %254 : vector<128x64xf32>
    %256 = arith.mulf %239, %245 : vector<128x64xf32>
    %257 = math.tanh %256 : vector<128x64xf32>
    %258 = arith.mulf %255, %257 : vector<128x64xf32>
    %c0_145 = arith.constant 0 : index
    %c0_146 = arith.constant 0 : index
    %259 = vector.load %arg44[%c0_145, %c0_146] : memref<64x64xf32, #tpu.memory_space<vmem>>, vector<64x64xf32>
    %cst_147 = arith.constant dense<0.000000e+00> : vector<128x64xf32>
    %260 = tpu.matmul %258, %259, %cst_147 {dimension_numbers = #tpu.dot_dimension_numbers<[1], [0], [0], [1], [0, 0, 1, 1], [], []>} : vector<128x64xf32>, vector<64x64xf32>, vector<128x64xf32> -> vector<128x64xf32>
    %c0_148 = arith.constant 0 : index
    %c0_149 = arith.constant 0 : index
    %261 = vector.load %arg45[%c0_148, %c0_149] : memref<1x64xf32, #tpu.memory_space<vmem>>, vector<1x64xf32>
    %262 = vector.broadcast %261 : vector<1x64xf32> to vector<128x64xf32>
    %263 = arith.addf %260, %262 : vector<128x64xf32>
    %cst_150 = arith.constant 0.000000e+00 : f32
    %264 = vector.broadcast %cst_150 : f32 to vector<128x64xf32>
    %265 = arith.cmpf ogt, %263, %264 : vector<128x64xf32>
    %cst_151 = arith.constant 0.00999999977 : f32
    %266 = vector.broadcast %cst_151 : f32 to vector<128x64xf32>
    %267 = arith.mulf %266, %263 : vector<128x64xf32>
    %268 = arith.select %265, %263, %267 : vector<128x64xi1>, vector<128x64xf32>
    %c0_152 = arith.constant 0 : index
    %c0_153 = arith.constant 0 : index
    %269 = vector.load %arg46[%c0_152, %c0_153] : memref<64x64xf32, #tpu.memory_space<vmem>>, vector<64x64xf32>
    %cst_154 = arith.constant dense<0.000000e+00> : vector<128x64xf32>
    %270 = tpu.matmul %268, %269, %cst_154 {dimension_numbers = #tpu.dot_dimension_numbers<[1], [0], [0], [1], [0, 0, 1, 1], [], []>} : vector<128x64xf32>, vector<64x64xf32>, vector<128x64xf32> -> vector<128x64xf32>
    %c0_155 = arith.constant 0 : index
    %c0_156 = arith.constant 0 : index
    %271 = vector.load %arg47[%c0_155, %c0_156] : memref<1x64xf32, #tpu.memory_space<vmem>>, vector<1x64xf32>
    %272 = vector.broadcast %271 : vector<1x64xf32> to vector<128x64xf32>
    %273 = arith.addf %270, %272 : vector<128x64xf32>
    %cst_157 = arith.constant 0.000000e+00 : f32
    %274 = vector.broadcast %cst_157 : f32 to vector<128x64xf32>
    %275 = arith.cmpf ogt, %273, %274 : vector<128x64xf32>
    %cst_158 = arith.constant 0.00999999977 : f32
    %276 = vector.broadcast %cst_158 : f32 to vector<128x64xf32>
    %277 = arith.mulf %276, %273 : vector<128x64xf32>
    %278 = arith.select %275, %273, %277 : vector<128x64xi1>, vector<128x64xf32>
    %c0_159 = arith.constant 0 : index
    %c0_160 = arith.constant 0 : index
    %279 = vector.load %arg48[%c0_159, %c0_160] : memref<64x64xf32, #tpu.memory_space<vmem>>, vector<64x64xf32>
    %cst_161 = arith.constant dense<0.000000e+00> : vector<128x64xf32>
    %280 = tpu.matmul %170, %279, %cst_161 {dimension_numbers = #tpu.dot_dimension_numbers<[1], [0], [0], [1], [0, 0, 1, 1], [], []>} : vector<128x64xf32>, vector<64x64xf32>, vector<128x64xf32> -> vector<128x64xf32>
    %c0_162 = arith.constant 0 : index
    %c0_163 = arith.constant 0 : index
    %281 = vector.load %arg49[%c0_162, %c0_163] : memref<64x64xf32, #tpu.memory_space<vmem>>, vector<64x64xf32>
    %cst_164 = arith.constant dense<0.000000e+00> : vector<128x64xf32>
    %282 = tpu.matmul %278, %281, %cst_164 {dimension_numbers = #tpu.dot_dimension_numbers<[1], [0], [0], [1], [0, 0, 1, 1], [], []>} : vector<128x64xf32>, vector<64x64xf32>, vector<128x64xf32> -> vector<128x64xf32>
    %283 = arith.addf %280, %282 : vector<128x64xf32>
    %c0_165 = arith.constant 0 : index
    %c0_166 = arith.constant 0 : index
    %284 = vector.load %arg50[%c0_165, %c0_166] : memref<1x64xf32, #tpu.memory_space<vmem>>, vector<1x64xf32>
    %285 = vector.broadcast %284 : vector<1x64xf32> to vector<128x64xf32>
    %286 = arith.addf %283, %285 : vector<128x64xf32>
    %cst_167 = arith.constant 0.000000e+00 : f32
    %287 = vector.broadcast %cst_167 : f32 to vector<128x64xf32>
    %288 = arith.maximumf %286, %287 : vector<128x64xf32>
    %c0_168 = arith.constant 0 : index
    %c0_169 = arith.constant 0 : index
    %289 = vector.load %arg51[%c0_168, %c0_169] : memref<64x64xf32, #tpu.memory_space<vmem>>, vector<64x64xf32>
    %cst_170 = arith.constant dense<0.000000e+00> : vector<128x64xf32>
    %290 = tpu.matmul %288, %289, %cst_170 {dimension_numbers = #tpu.dot_dimension_numbers<[1], [0], [0], [1], [0, 0, 1, 1], [], []>} : vector<128x64xf32>, vector<64x64xf32>, vector<128x64xf32> -> vector<128x64xf32>
    %c0_171 = arith.constant 0 : index
    %c0_172 = arith.constant 0 : index
    %291 = vector.load %arg52[%c0_171, %c0_172] : memref<1x64xf32, #tpu.memory_space<vmem>>, vector<1x64xf32>
    %292 = vector.broadcast %291 : vector<1x64xf32> to vector<128x64xf32>
    %293 = arith.addf %290, %292 : vector<128x64xf32>
    %cst_173 = arith.constant 0.000000e+00 : f32
    %294 = vector.broadcast %cst_173 : f32 to vector<128x64xf32>
    %295 = arith.maximumf %293, %294 : vector<128x64xf32>
    %c0_174 = arith.constant 0 : index
    %c0_175 = arith.constant 0 : index
    %296 = vector.load %arg53[%c0_174, %c0_175] : memref<64x4xf32, #tpu.memory_space<vmem>>, vector<64x4xf32>
    %cst_176 = arith.constant dense<0.000000e+00> : vector<128x4xf32>
    %297 = tpu.matmul %295, %296, %cst_176 {dimension_numbers = #tpu.dot_dimension_numbers<[1], [0], [0], [1], [0, 0, 1, 1], [], []>} : vector<128x64xf32>, vector<64x4xf32>, vector<128x4xf32> -> vector<128x4xf32>
    %c0_177 = arith.constant 0 : index
    %c0_178 = arith.constant 0 : index
    %298 = vector.load %arg54[%c0_177, %c0_178] : memref<1x4xf32, #tpu.memory_space<vmem>>, vector<1x4xf32>
    %299 = vector.broadcast %298 : vector<1x4xf32> to vector<128x4xf32>
    %300 = arith.addf %297, %299 : vector<128x4xf32>
    %c0_179 = arith.constant 0 : index
    %c0_180 = arith.constant 0 : index
    %301 = vector.load %arg55[%c0_179, %c0_180] : memref<128x4xf32, #tpu.memory_space<vmem>>, vector<128x4xf32>
    tpu.vector_store %arg55[%c0_179, %c0_180], %300 {strides = array<i32>} : memref<128x4xf32, #tpu.memory_space<vmem>>, vector<128x4xf32>,
    return
  }
}

</mosaic_0001>

<bundles_post_ra>
// kernel: sfgat_forward.1
= control target key start
LH: loop header
LB: loop body
LE: loop exit
PB: predicated region body
PF: predicated region fallthrough
CT: control target
= control target key end

     0   :  { %s9748_s6 = smov 1   ;;  %s9749_s10 = smov 2   ;;  %s14979_s0 = inlined_call_operand.smem [shape: u32[56], index: -1, kind: input, shape index: {}] }
   0x1   :  { %s9825_s5 = sld [smem:[%s14979_s0]]   ;;  %s9750_s14 = smov 3  }
   0x2   :  { %s9830_s9 = sld [smem:[%s14979_s0 + %s9748_s6]]   ;;  %s9751_s18 = smov 4  }
   0x3   :  { %s9835_s13 = sld [smem:[%s14979_s0 + %s9749_s10]]   ;;  %s9752_s22 = smov 5  }
   0x4   :  { %s9840_s17 = sld [smem:[%s14979_s0 + %s9750_s14]]   ;;  %s9753_s26 = smov 6  }
   0x5   :  { %s9845_s21 = sld [smem:[%s14979_s0 + %s9751_s18]]   ;;  %s9754_s30 = smov 7  }
   0x6   :  { %s9850_s25 = sld [smem:[%s14979_s0 + %s9752_s22]]   ;;  %s9755_s4 = smov 8  }
   0x7   :  { %s9855_s29 = sld [smem:[%s14979_s0 + %s9753_s26]]   ;;  %s9756_s10 = smov 9  }
   0x8   :  { %15006 = sst [smem:[#allocation28_spill]] %s9830_s9  ;;  %s9757_s15 = smov 10  }
   0x9   :  { %15007 = sst [smem:[#allocation29_spill]] %s9835_s13  ;;  %s9758_s20 = smov 11  }
   0xa   :  { %15008 = sst [smem:[#allocation30_spill]] %s9840_s17  ;;  %s9759_s26 = smov 12  }
   0xb   :  { %s9860_s3 = sld [smem:[%s14979_s0 + %s9754_s30]]   ;;  %s9760_s1 = smov 13  }
   0xc   :  { %15009 = sst [smem:[#allocation31_spill]] %s9850_s25  ;;  %s9761_s7 = smov 14  }
   0xd   :  { %s9865_s8 = sld [smem:[%s14979_s0 + %s9755_s4]]   ;;  %s9763_s22 = smov 16  }
   0xe   :  { %s9870_s14 = sld [smem:[%s14979_s0 + %s9756_s10]]   ;;  %s9764_s28 = smov 17  }
   0xf   :  { %s9875_s19 = sld [smem:[%s14979_s0 + %s9757_s15]]   ;;  %s9762_s15 = smov 15  }
  0x10   :  { %s9880_s24 = sld [smem:[%s14979_s0 + %s9758_s20]]  }
  0x11   :  { %15010 = sst [smem:[#allocation32_spill]] %s9860_s3 }
  0x12   :  { %s9885_s30 = sld [smem:[%s14979_s0 + %s9759_s26]]  }
  0x13   :  { %s9890_s6 = sld [smem:[%s14979_s0 + %s9760_s1]]  }
  0x14   :  { %15011 = sst [smem:[#allocation33_spill]] %s9870_s14 }
  0x15   :  { %15012 = sst [smem:[#allocation34_spill]] %s9875_s19 }
  0x16   :  { %15013 = sst [smem:[#allocation35_spill]] %s9880_s24 }
  0x17   :  { %s9895_s12 = sld [smem:[%s14979_s0 + %s9761_s7]]   ;;  %s9765_s7 = smov 18  }
  0x18   :  { %15014 = sst [smem:[#allocation36_spill]] %s9885_s30 }
  0x19   :  { %15015 = sst [smem:[#allocation37_spill]] %s9890_s6 }
  0x1a   :  { %s9900_s20 = sld [smem:[%s14979_s0 + %s9762_s15]]   ;;  %s9766_s15 = smov 19  }
  0x1b   :  { %s9905_s27 = sld [smem:[%s14979_s0 + %s9763_s22]]   ;;  %s9767_s22 = smov 20  }
  0x1c   :  { %s9910_s4 = sld [smem:[%s14979_s0 + %s9764_s28]]   ;;  %s9768_s28 = smov 21  }
  0x1d   :  { %15016 = sst [smem:[#allocation38_spill]] %s9895_s12 }
  0x1e   :  { %s9915_s13 = sld [smem:[%s14979_s0 + %s9765_s7]]   ;;  %s9769_s7 = smov 22  }
  0x1f   :  { %s9920_s17 = sld [smem:[%s14979_s0 + %s9766_s15]]   ;;  %s9770_s15 = smov 23  }
  0x20   :  { %15017 = sst [smem:[#allocation39_spill]] %s9900_s20 }
  0x21   :  { %15018 = sst [smem:[#allocation40_spill]] %s9905_s27 }
  0x22   :  { %15019 = sst [smem:[#allocation41_spill]] %s9910_s4 }
  0x23   :  { %s9925_s27 = sld [smem:[%s14979_s0 + %s9767_s22]]   ;;  %s9771_s22 = smov 24  }
  0x24   :  { %15020 = sst [smem:[#allocation42_spill]] %s9915_s13 }
  0x25   :  { %15021 = sst [smem:[#allocation43_spill]] %s9920_s17 }
  0x26   :  { %s9930_s12 = sld [smem:[%s14979_s0 + %s9768_s28]]   ;;  %s9772_s28 = smov 25  }
  0x27   :  { %s9935_s13 = sld [smem:[%s14979_s0 + %s9769_s7]]   ;;  %s9773_s7 = smov 26  }
  0x28   :  { %s9940_s17 = sld [smem:[%s14979_s0 + %s9770_s15]]   ;;  %s9774_s15 = smov 27  }
  0x29   :  { %15022 = sst [smem:[#allocation44_spill]] %s9925_s27 }
  0x2a   :  { %s9945_s27 = sld [smem:[%s14979_s0 + %s9771_s22]]   ;;  %s9775_s22 = smov 28  }
  0x2c   :  { %15023 = sst [smem:[#allocation45_spill]] %s9930_s12 }
  0x2d   :  { %15024 = sst [smem:[#allocation46_spill]] %s9935_s13 }
  0x2e   :  { %15025 = sst [smem:[#allocation47_spill]] %s9940_s17 }
  0x2f   :  { %s9950_s12 = sld [smem:[%s14979_s0 + %s9772_s28]]   ;;  %s9776_s28 = smov 29  }
  0x30   :  { %15026 = sst [smem:[#allocation48_spill]] %s9945_s27 }
  0x31   :  { %s9955_s13 = sld [smem:[%s14979_s0 + %s9773_s7]]   ;;  %s9777_s7 = smov 30  }
  0x32   :  { %s9960_s17 = sld [smem:[%s14979_s0 + %s9774_s15]]   ;;  %s9778_s15 = smov 31  }
  0x33   :  { %s9965_s27 = sld [smem:[%s14979_s0 + %s9775_s22]]   ;;  %s9779_s22 = smov 32  }
  0x35   :  { %15027 = sst [smem:[#allocation49_spill]] %s9950_s12 }
  0x36   :  { %s9970_s12 = sld [smem:[%s14979_s0 + %s9776_s28]]   ;;  %s9780_s28 = smov 33  }
  0x37   :  { %15028 = sst [smem:[#allocation50_spill]] %s9955_s13 }
  0x38   :  { %15029 = sst [smem:[#allocation51_spill]] %s9960_s17 }
  0x39   :  { %15030 = sst [smem:[#allocation52_spill]] %s9965_s27 }
  0x3a   :  { %s9975_s13 = sld [smem:[%s14979_s0 + %s9777_s7]]   ;;  %s9781_s7 = smov 34  }
  0x3b   :  { %s9980_s17 = sld [smem:[%s14979_s0 + %s9778_s15]]   ;;  %s9782_s15 = smov 35  }
  0x3c   :  { %15031 = sst [smem:[#allocation53_spill]] %s9970_s12 }
  0x3d   :  { %s9985_s27 = sld [smem:[%s14979_s0 + %s9779_s22]]   ;;  %s9783_s22 = smov 36  }
  0x3e   :  { %s9990_s12 = sld [smem:[%s14979_s0 + %s9780_s28]]   ;;  %s9784_s28 = smov 37  }
  0x3f   :  { %s10000_s4 = sld [smem:[%s14979_s0 + %s9782_s15]]   ;;  %s9786_s15 = smov 39  }
  0x40   :  { %15032 = sst [smem:[#allocation54_spill]] %s9975_s13 }
  0x41   :  { %s9995_s13 = sld [smem:[%s14979_s0 + %s9781_s7]]   ;;  %s9785_s7 = smov 38  }
  0x42   :  { %s10020_s24 = sld [smem:[%s14979_s0 + %s9786_s15]]   ;;  %s9790_s15 = smov 43  }
  0x43   :  { %15033 = sst [smem:[#allocation55_spill]] %s9985_s27 }
  0x44   :  { %15034 = sst [smem:[#allocation56_spill]] %s9990_s12 }
  0x45   :  { %s10005_s27 = sld [smem:[%s14979_s0 + %s9783_s22]]   ;;  %s9787_s22 = smov 40  }
  0x46   :  { %s10010_s12 = sld [smem:[%s14979_s0 + %s9784_s28]]   ;;  %s9788_s28 = smov 41  }
  0x47   :  { %15035 = sst [smem:[#allocation57_spill]] %s9995_s13 }
  0x48   :  { %s10015_s13 = sld [smem:[%s14979_s0 + %s9785_s7]]   ;;  %s9789_s7 = smov 42  }
  0x49   :  { %15037 = sst [smem:[#allocation59_spill]] %s10020_s24 }
  0x4a   :  { %s10025_s20 = sld [smem:[%s14979_s0 + %s9787_s22]]   ;;  %s9791_s22 = smov 44  }
  0x4b   :  { %s10030_s3 = sld [smem:[%s14979_s0 + %s9788_s28]]   ;;  %s9792_s28 = smov 45  }
  0x4c   :  { %s10040_s24 = sld [smem:[%s14979_s0 + %s9790_s15]]   ;;  %s9794_s15 = smov 47  }
  0x4d   :  { %s10050_s6 = sld [smem:[%s14979_s0 + %s9792_s28]]   ;;  %s9796_s28 = smov 49  }
  0x4e   :  { %15036 = sst [smem:[#allocation58_spill]] %s10015_s13 }
  0x4f   :  { %s10035_s13 = sld [smem:[%s14979_s0 + %s9789_s7]]   ;;  %s9793_s7 = smov 46  }
  0x50   :  { %15038 = sst [smem:[#allocation60_spill]] %s10025_s20 }
  0x51   :  { %s10045_s20 = sld [smem:[%s14979_s0 + %s9791_s22]]   ;;  %s9795_s22 = smov 48  }
  0x52   :  { %s10055_s14 = sld [smem:[%s14979_s0 + %s9793_s7]]   ;;  %s9797_s7 = smov 50  }
  0x53   :  { %s10060_s30 = sld [smem:[%s14979_s0 + %s9794_s15]]   ;;  %s9798_s15 = smov 51  }
  0x54   :  { %s10070_s19 = sld [smem:[%s14979_s0 + %s9796_s28]]   ;;  %s9800_s28 = smov 53  }
  0x55   :  { %s10080_s25 = sld [smem:[%s14979_s0 + %s9798_s15]]   ;;  %s9802_s15 = smov 55  }
  0x57   :  { %15039 = sst [smem:[#allocation61_spill]] %s10045_s20 }
  0x58   :  { %15040 = sst [smem:[#allocation62_spill]] %s10055_s14 }
  0x59   :  { %s10065_s20 = sld [smem:[%s14979_s0 + %s9795_s22]]   ;;  %s9799_s22 = smov 52  }
  0x5a   :  { %15042 = sst [smem:[#allocation64_spill]] %s10070_s19 }
  0x5b   :  { %s10075_s14 = sld [smem:[%s14979_s0 + %s9797_s7]]   ;;  %s9801_s7 = smov 54  }
  0x5c   :  { %15043 = sst [smem:[#allocation65_spill]] %s10080_s25 }
  0x5d   :  { %s10090_s19 = sld [smem:[%s14979_s0 + %s9800_s28]]  }
  0x5e   :  { %s10095_s9 = sld [smem:[%s14979_s0 + %s9801_s7]]  }
  0x5f   :  { %15041 = sst [smem:[#allocation63_spill]] %s10065_s20 }
  0x60   :  { %s10085_s20 = sld [smem:[%s14979_s0 + %s9799_s22]]  }
  0x61   :  { %s10100_s25 = sld [smem:[%s14979_s0 + %s9802_s15]]  }
  0x62   :  { %116 = vsyncpa [#allocation3], 0 }
  0x63   :  { %117 = vsyncpa [#allocation5], 0 }
  0x64   :  { %118 = vsyncpa [#allocation8], 0 }
  0x65   :  { %119 = vsyncpa [#allocation11], 0 }
  0x66   :  { %120 = vsyncpa [#allocation14], 0 }
  0x67   :  { %121 = vsyncpa [#allocation17], 0  ;;  %s207_s22 = sshll.u32 %s10000_s4, 4  ;;  %s208_s22 = int_to_ptr.hbm [resolvable:$true] %s207_s22 }
  0x68   :  { %122 = vsyncpa [#allocation20], 0  ;;  %s9803_s23 = smov [#allocation4]   ;;  %s229_s28 = sshll.u32 %s10010_s12, 4  ;;  %s230_s28 = int_to_ptr.hbm [resolvable:$true] %s229_s28 }
  0x69   :  { %s209_s26 = sshll.u32 %s9803_s23, 4  ;;  %s9446_s1 = sshra.s32 %s208_s22, 4  ;;  %s210_s26 = int_to_ptr.vmem [resolvable:$true] %s209_s26  ;;  %s9447_s1 = int_to_ptr.hbm [resolvable:$true] %s9446_s1 }
  0x6a   :  { %s9448_s0 = scalar_lea.hbm %s9447_s1, 1  ;;  %s9450_s2 = scalar_lea.hbm %s10000_s4, 1 }
  0x6b   :  { %p9449_p0 = scmp.ne.s32.totalorder %s9447_s1, %s9448_s0  ;;  %p9451_p1 = scmp.lt.s32.totalorder %s9447_s1, %s10000_s4 }
  0x6c   :  { %p9452_p2 = scmp.lt.s32.totalorder %s9450_s2, %s9448_s0 }
  0x6e   :  { %p9453_p3 = por %p9452_p2, %p9451_p1 }
  0x70   :  { %p9454_p4 = pnand %p9453_p3, %p9449_p0 }
  0x72   :  { %9457 = shalt.err (!%p9454_p4)
}
  0x73   :  { %212 = dma.hbm_to_vmem [thread:$0]  %s208_s22, 16, %s210_s26, [#allocation5]  }
  0x74   :  { %s9804_s7 = smov [#allocation7]   ;;  %s257_s11 = sshll.u32 %s10035_s13, 4  ;;  %s258_s11 = int_to_ptr.hbm [resolvable:$true] %s257_s11 }
  0x75   :  { %s231_s10 = sshll.u32 %s9804_s7, 4  ;;  %s9470_s15 = sshra.s32 %s230_s28, 4  ;;  %s232_s10 = int_to_ptr.vmem [resolvable:$true] %s231_s10  ;;  %s9471_s15 = int_to_ptr.hbm [resolvable:$true] %s9470_s15 }
  0x76   :  { %s9472_s16 = scalar_lea.hbm %s9471_s15, 1  ;;  %s9474_s18 = scalar_lea.hbm %s10010_s12, 1 }
  0x77   :  { %p9473_p5 = scmp.ne.s32.totalorder %s9471_s15, %s9472_s16  ;;  %p9475_p6 = scmp.lt.s32.totalorder %s9471_s15, %s10010_s12 }
  0x78   :  { %p9476_p7 = scmp.lt.s32.totalorder %s9474_s18, %s9472_s16 }
  0x7a   :  { %p9477_p8 = por %p9476_p7, %p9475_p6 }
  0x7c   :  { %p9478_p9 = pnand %p9477_p8, %p9473_p5 }
  0x7e   :  { %9481 = shalt.err (!%p9478_p9)
}
  0x7f   :  { %234 = dma.hbm_to_vmem [thread:$0]  %s230_s28, 16, %s232_s10, [#allocation8]  }
  0x80   :  { %s281_s4 = sshll.u32 %s10050_s6, 4  ;;  %s9805_s22 = smov [#allocation10]   ;;  %s282_s4 = int_to_ptr.hbm [resolvable:$true] %s281_s4 }
  0x81   :  { %s259_s23 = sshll.u32 %s9805_s22, 4  ;;  %s9494_s26 = sshra.s32 %s258_s11, 4  ;;  %s260_s23 = int_to_ptr.vmem [resolvable:$true] %s259_s23  ;;  %s9495_s26 = int_to_ptr.hbm [resolvable:$true] %s9494_s26 }
  0x82   :  { %s9496_s1 = scalar_lea.hbm %s9495_s26, 1  ;;  %s9498_s0 = scalar_lea.hbm %s10035_s13, 1 }
  0x83   :  { %p9497_p10 = scmp.ne.s32.totalorder %s9495_s26, %s9496_s1  ;;  %p9499_p11 = scmp.lt.s32.totalorder %s9495_s26, %s10035_s13 }
  0x84   :  { %p9500_p12 = scmp.lt.s32.totalorder %s9498_s0, %s9496_s1 }
  0x86   :  { %p9501_p13 = por %p9500_p12, %p9499_p11 }
  0x88   :  { %p9502_p0 = pnand %p9501_p13, %p9497_p10 }
  0x8a   :  { %9505 = shalt.err (!%p9502_p0)
}
  0x8b   :  { %262 = dma.hbm_to_vmem [thread:$0]  %s258_s11, 16, %s260_s23, [#allocation11]  }
  0x8c   :  { %s9806_s12 = smov [#allocation13]   ;;  %s309_s2 = sshll.u32 %s10075_s14, 4  ;;  %s310_s2 = int_to_ptr.hbm [resolvable:$true] %s309_s2 }
  0x8d   :  { %s283_s28 = sshll.u32 %s9806_s12, 4  ;;  %s9518_s7 = sshra.s32 %s282_s4, 4  ;;  %s284_s28 = int_to_ptr.vmem [resolvable:$true] %s283_s28  ;;  %s9519_s7 = int_to_ptr.hbm [resolvable:$true] %s9518_s7 }
  0x8e   :  { %s9520_s10 = scalar_lea.hbm %s9519_s7, 1  ;;  %s9522_s15 = scalar_lea.hbm %s10050_s6, 1 }
  0x8f   :  { %p9521_p1 = scmp.ne.s32.totalorder %s9519_s7, %s9520_s10  ;;  %p9523_p2 = scmp.lt.s32.totalorder %s9519_s7, %s10050_s6 }
  0x90   :  { %p9524_p3 = scmp.lt.s32.totalorder %s9522_s15, %s9520_s10 }
  0x92   :  { %p9525_p4 = por %p9524_p3, %p9523_p2 }
  0x94   :  { %p9526_p5 = pnand %p9525_p4, %p9521_p1 }
  0x96   :  { %9529 = shalt.err (!%p9526_p5)
}
  0x97   :  { %286 = dma.hbm_to_vmem [thread:$0]  %s282_s4, 16, %s284_s28, [#allocation14]  }
  0x98   :  { %s190_s13 = sshll.u32 %s9980_s17, 4  ;;  %s9807_s11 = smov [#allocation16]   ;;  %s191_s13 = int_to_ptr.hbm [resolvable:$true] %s190_s13 }
  0x99   :  { %s311_s16 = sshll.u32 %s9807_s11, 4  ;;  %s9542_s18 = sshra.s32 %s310_s2, 4  ;;  %s312_s16 = int_to_ptr.vmem [resolvable:$true] %s311_s16  ;;  %s9543_s18 = int_to_ptr.hbm [resolvable:$true] %s9542_s18 }
  0x9a   :  { %s9544_s22 = scalar_lea.hbm %s9543_s18, 1  ;;  %s9546_s23 = scalar_lea.hbm %s10075_s14, 1 }
  0x9b   :  { %p9545_p6 = scmp.ne.s32.totalorder %s9543_s18, %s9544_s22  ;;  %p9547_p7 = scmp.lt.s32.totalorder %s9543_s18, %s10075_s14 }
  0x9c   :  { %p9548_p8 = scmp.lt.s32.totalorder %s9546_s23, %s9544_s22 }
  0x9e   :  { %p9549_p9 = por %p9548_p8, %p9547_p7 }
  0xa0   :  { %p9550_p10 = pnand %p9549_p9, %p9545_p6 }
  0xa2   :  { %9553 = shalt.err (!%p9550_p10)
}
  0xa3   :  { %314 = dma.hbm_to_vmem [thread:$0]  %s310_s2, 16, %s312_s16, [#allocation17]  }
  0xa4   :  { %s9808_s6 = smov [#allocation2]   ;;  %s218_s26 = sshll.u32 %s10005_s27, 4  ;;  %s219_s26 = int_to_ptr.hbm [resolvable:$true] %s218_s26 }
  0xa5   :  { %s192_s4 = sshll.u32 %s9808_s6, 4  ;;  %s9566_s1 = sshra.s32 %s191_s13, 4  ;;  %s193_s4 = int_to_ptr.vmem [resolvable:$true] %s192_s4  ;;  %s9567_s1 = int_to_ptr.hbm [resolvable:$true] %s9566_s1 }
  0xa6   :  { %s9568_s0 = scalar_lea.hbm %s9567_s1, 1  ;;  %s9570_s12 = scalar_lea.hbm %s9980_s17, 1 }
  0xa7   :  { %p9569_p11 = scmp.ne.s32.totalorder %s9567_s1, %s9568_s0  ;;  %p9571_p12 = scmp.lt.s32.totalorder %s9567_s1, %s9980_s17 }
  0xa8   :  { %p9572_p13 = scmp.lt.s32.totalorder %s9570_s12, %s9568_s0 }
  0xaa   :  { %p9573_p0 = por %p9572_p13, %p9571_p12 }
  0xac   :  { %p9574_p1 = pnand %p9573_p0, %p9569_p11 }
  0xae   :  { %9577 = shalt.err (!%p9574_p1)
}
  0xaf   :  { %195 = dma.hbm_to_vmem [thread:$0]  %s191_s13, 16, %s193_s4, [#allocation3]  }
  0xb0   :  { %s246_s14 = sshll.u32 %s10030_s3, 4  ;;  %s9809_s28 = smov [#allocation6]   ;;  %s247_s14 = int_to_ptr.hbm [resolvable:$true] %s246_s14 }
  0xb1   :  { %s220_s2 = sshll.u32 %s9809_s28, 4  ;;  %s9590_s7 = sshra.s32 %s219_s26, 4  ;;  %s221_s2 = int_to_ptr.vmem [resolvable:$true] %s220_s2  ;;  %s9591_s7 = int_to_ptr.hbm [resolvable:$true] %s9590_s7 }
  0xb2   :  { %s9592_s10 = scalar_lea.hbm %s9591_s7, 1  ;;  %s9594_s15 = scalar_lea.hbm %s10005_s27, 1 }
  0xb3   :  { %p9593_p2 = scmp.ne.s32.totalorder %s9591_s7, %s9592_s10  ;;  %p9595_p3 = scmp.lt.s32.totalorder %s9591_s7, %s10005_s27 }
  0xb4   :  { %p9596_p4 = scmp.lt.s32.totalorder %s9594_s15, %s9592_s10 }
  0xb6   :  { %p9597_p5 = por %p9596_p4, %p9595_p3 }
  0xb8   :  { %p9598_p6 = pnand %p9597_p5, %p9593_p2 }
  0xba   :  { %9601 = shalt.err (!%p9598_p6)
}
  0xbb   :  { %223 = dma.hbm_to_vmem [thread:$0]  %s219_s26, 16, %s221_s2, [#allocation5]  }
  0xbc   :  { %s9810_s17 = smov [#allocation9]   ;;  %s268_s11 = sshll.u32 %s10040_s24, 4  ;;  %s269_s11 = int_to_ptr.hbm [resolvable:$true] %s268_s11 }
  0xbd   :  { %s248_s13 = sshll.u32 %s9810_s17, 4  ;;  %s9614_s16 = sshra.s32 %s247_s14, 4  ;;  %s249_s13 = int_to_ptr.vmem [resolvable:$true] %s248_s13  ;;  %s9615_s16 = int_to_ptr.hbm [resolvable:$true] %s9614_s16 }
  0xbe   :  { %s9616_s18 = scalar_lea.hbm %s9615_s16, 1  ;;  %s9618_s22 = scalar_lea.hbm %s10030_s3, 1 }
  0xbf   :  { %p9617_p7 = scmp.ne.s32.totalorder %s9615_s16, %s9616_s18  ;;  %p9619_p8 = scmp.lt.s32.totalorder %s9615_s16, %s10030_s3 }
  0xc0   :  { %p9620_p9 = scmp.lt.s32.totalorder %s9618_s22, %s9616_s18 }
  0xc2   :  { %p9621_p10 = por %p9620_p9, %p9619_p8 }
  0xc4   :  { %p9622_p11 = pnand %p9621_p10, %p9617_p7 }
  0xc6   :  { %9625 = shalt.err (!%p9622_p11)
}
  0xc7   :  { %251 = dma.hbm_to_vmem [thread:$0]  %s247_s14, 16, %s249_s13, [#allocation8]  }
  0xc8   :  { %s294_s27 = sshll.u32 %s10060_s30, 4  ;;  %s9811_s23 = smov [#allocation12]   ;;  %s295_s27 = int_to_ptr.hbm [resolvable:$true] %s294_s27 }
  0xc9   :  { %s270_s6 = sshll.u32 %s9811_s23, 4  ;;  %s9638_s4 = sshra.s32 %s269_s11, 4  ;;  %s271_s6 = int_to_ptr.vmem [resolvable:$true] %s270_s6  ;;  %s9639_s4 = int_to_ptr.hbm [resolvable:$true] %s9638_s4 }
  0xca   :  { %s9640_s26 = scalar_lea.hbm %s9639_s4, 1  ;;  %s9642_s1 = scalar_lea.hbm %s10040_s24, 1 }
  0xcb   :  { %p9641_p12 = scmp.ne.s32.totalorder %s9639_s4, %s9640_s26  ;;  %p9643_p13 = scmp.lt.s32.totalorder %s9639_s4, %s10040_s24 }
  0xcc   :  { %p9644_p0 = scmp.lt.s32.totalorder %s9642_s1, %s9640_s26 }
  0xce   :  { %p9645_p1 = por %p9644_p0, %p9643_p13 }
  0xd0   :  { %p9646_p2 = pnand %p9645_p1, %p9641_p12 }
  0xd2   :  { %9649 = shalt.err (!%p9646_p2)
}
  0xd3   :  { %273 = dma.hbm_to_vmem [thread:$0]  %s269_s11, 16, %s271_s6, [#allocation11]  }
  0xd4   :  { %s9812_s3 = smov [#allocation15]   ;;  %s322_s12 = sshll.u32 %s10085_s20, 4  ;;  %s323_s12 = int_to_ptr.hbm [resolvable:$true] %s322_s12 }
  0xd5   :  { %s296_s0 = sshll.u32 %s9812_s3, 4  ;;  %s9662_s14 = sshra.s32 %s295_s27, 4  ;;  %s297_s0 = int_to_ptr.vmem [resolvable:$true] %s296_s0  ;;  %s9663_s14 = int_to_ptr.hbm [resolvable:$true] %s9662_s14 }
  0xd6   :  { %s9664_s28 = scalar_lea.hbm %s9663_s14, 1  ;;  %s9666_s2 = scalar_lea.hbm %s10060_s30, 1 }
  0xd7   :  { %p9665_p3 = scmp.ne.s32.totalorder %s9663_s14, %s9664_s28  ;;  %p9667_p4 = scmp.lt.s32.totalorder %s9663_s14, %s10060_s30 }
  0xd8   :  { %p9668_p5 = scmp.lt.s32.totalorder %s9666_s2, %s9664_s28 }
  0xda   :  { %p9669_p6 = por %p9668_p5, %p9667_p4 }
  0xdc   :  { %p9670_p7 = pnand %p9669_p6, %p9665_p3 }
  0xde   :  { %9673 = shalt.err (!%p9670_p7)
}
  0xdf   :  { %299 = dma.hbm_to_vmem [thread:$0]  %s295_s27, 16, %s297_s0, [#allocation14]  }
  0xe0   :  { %s335_s24 = sshll.u32 %s10095_s9, 4  ;;  %s9813_s7 = smov [#allocation18]   ;;  %s336_s24 = int_to_ptr.hbm [resolvable:$true] %s335_s24 }
  0xe1   :  { %s324_s10 = sshll.u32 %s9813_s7, 4  ;;  %s9686_s15 = sshra.s32 %s323_s12, 4  ;;  %s325_s10 = int_to_ptr.vmem [resolvable:$true] %s324_s10  ;;  %s9687_s15 = int_to_ptr.hbm [resolvable:$true] %s9686_s15 }
  0xe2   :  { %s9688_s17 = scalar_lea.hbm %s9687_s15, 1  ;;  %s9690_s13 = scalar_lea.hbm %s10085_s20, 1 }
  0xe3   :  { %p9689_p8 = scmp.ne.s32.totalorder %s9687_s15, %s9688_s17  ;;  %p9691_p9 = scmp.lt.s32.totalorder %s9687_s15, %s10085_s20 }
  0xe4   :  { %p9692_p10 = scmp.lt.s32.totalorder %s9690_s13, %s9688_s17 }
  0xe6   :  { %p9693_p11 = por %p9692_p10, %p9691_p9 }
  0xe8   :  { %p9694_p12 = pnand %p9693_p11, %p9689_p8 }
  0xea   :  { %9697 = shalt.err (!%p9694_p12)
}
  0xeb   :  { %327 = dma.hbm_to_vmem [thread:$0]  %s323_s12, 16, %s325_s10, [#allocation17]  }
  0xec   :  { %s9814_s30 = smov [#allocation19]   ;;  %s9710_s16 = sshra.s32 %s336_s24, 4  ;;  %s9711_s16 = int_to_ptr.hbm [resolvable:$true] %s9710_s16 }
  0xed   :  { %s337_s11 = sshll.u32 %s9814_s30, 4  ;;  %s9712_s18 = scalar_lea.hbm %s9711_s16, 1  ;;  %s338_s11 = int_to_ptr.vmem [resolvable:$true] %s337_s11 }
  0xee   :  { %p9713_p13 = scmp.ne.s32.totalorder %s9711_s16, %s9712_s18  ;;  %s9714_s22 = scalar_lea.hbm %s10095_s9, 1 }
  0xef   :  { %p9715_p0 = scmp.lt.s32.totalorder %s9711_s16, %s10095_s9  ;;  %p9716_p1 = scmp.lt.s32.totalorder %s9714_s22, %s9712_s18 }
  0xf1   :  { %p9717_p2 = por %p9716_p1, %p9715_p0 }
  0xf3   :  { %p9718_p3 = pnand %p9717_p2, %p9713_p13 }
  0xf5   :  { %9721 = shalt.err (!%p9718_p3)
}
  0xf6   :  { %340 = dma.hbm_to_vmem [thread:$0]  %s336_s24, 16, %s338_s11, [#allocation20]  }
  0xf7   :  { %9734 = dma.done.wait [#allocation3], 16  }
  0xf8   :  { %9735 = vsyncadd [#allocation3], 4294967280 }
  0xf9   :  { %9736 = dma.done.wait [#allocation5], 32  }
  0xfa   :  { %9737 = vsyncadd [#allocation5], 4294967264 }
  0xfb   :  { %9738 = dma.done.wait [#allocation8], 32  }
  0xfc   :  { %9739 = vsyncadd [#allocation8], 4294967264 }
  0xfd   :  { %9740 = dma.done.wait [#allocation11], 32  }
  0xfe   :  { %9741 = vsyncadd [#allocation11], 4294967264 }
  0xff   :  { %9742 = dma.done.wait [#allocation14], 32  }
 0x100   :  { %9743 = vsyncadd [#allocation14], 4294967264 }
 0x101   :  { %9744 = dma.done.wait [#allocation17], 32  }
 0x102   :  { %9745 = vsyncadd [#allocation17], 4294967264 }
 0x103   :  { %9746 = dma.done.wait [#allocation20], 16  }
 0x104   :  { %9747 = vsyncadd [#allocation20], 4294967280  ;;  %v409_v0 = vld [vmem:[%s9845_s21 + $0x20] sm:$0xff]  ;;  %v408_v1 = vld [vmem:[%s9845_s21 + $0x18] sm:$0xff]  ;;  %vm414_vm0 = vcmask 326656   ;;  %vm1368_vm1 = vcmask 1044480  }
 0x105   :  { %474 = vmatpush.msra.mxu0 %v409_v0  ;;  %8399 = vmatpush.msra.mxu1 %v409_v0  ;;  %v407_v2 = vld [vmem:[%s9845_s21 + $0x10] sm:$0xff]  ;;  %v406_v3 = vld [vmem:[%s9845_s21 + $0x8] sm:$0xff]  ;;  %v405_v4 = vld [vmem:[%s9845_s21] sm:$0xff]  ;;  %s15045_s9 = sld [smem:[#allocation31_spill]]  ;;  %vm1319_vm2 = vcmask 891904   ;;  %s9816_s0 = smov 127  }
 0x106   :  { %8400 = vmatpush.msra.mxu2 %v409_v0  ;;  %8401 = vmatpush.msra.mxu3 %v409_v0  ;;  %v389_v5 = vld [vmem:[%s9825_s5] sm:$0xff]  ;;  %v398_v7 = vld [vmem:[%s9825_s5 + $0x48] sm:$0xff]  ;;  %v403_v8 = vld [vmem:[%s9825_s5 + $0x70] sm:$0xff]  ;;  %s15046_s21 = sld [smem:[#allocation34_spill]] }
 0x107   :  { %475 = vmatpush.msra.mxu0 %v408_v1  ;;  %8402 = vmatpush.msra.mxu1 %v408_v1  ;;  %v393_v6 = vld [vmem:[%s9825_s5 + $0x20] sm:$0xff]  ;;  %v1284_v9 = vld [vmem:[%s9865_s8 + $0x78] sm:$0xff]  ;;  %v1283_v10 = vld [vmem:[%s9865_s8 + $0x70] sm:$0xff]  ;;  %s15065_s20 = sld [smem:[#allocation37_spill]] }
 0x108   :  { %8403 = vmatpush.msra.mxu2 %v408_v1  ;;  %8404 = vmatpush.msra.mxu3 %v408_v1  ;;  %v1282_v11 = vld [vmem:[%s9865_s8 + $0x68] sm:$0xff]  ;;  %v1300_v12 = vld [vmem:[%s9865_s8 + $0xf8] sm:$0xff]  ;;  %v1299_v13 = vld [vmem:[%s9865_s8 + $0xf0] sm:$0xff]  ;;  %s15070_s27 = sld [smem:[#allocation32_spill]] }
 0x109   :  { %476 = vmatpush.msra.mxu0 %v407_v2  ;;  %8405 = vmatpush.msra.mxu1 %v407_v2  ;;  %v390_v14 = vld [vmem:[%s9825_s5 + $0x8] sm:$0xff]  ;;  %v847_v16 = vld [vmem:[%s9855_s29 + $0x78] sm:$0xff]  ;;  %v1281_v17 = vld [vmem:[%s9865_s8 + $0x60] sm:$0xff]  ;;  %s15071_s23 = sld [smem:[#allocation39_spill]] }
 0x10a   :  { %8406 = vmatpush.msra.mxu2 %v407_v2  ;;  %8407 = vmatpush.msra.mxu3 %v407_v2  ;;  %v394_v15 = vld [vmem:[%s9825_s5 + $0x28] sm:$0xff]  ;;  %v399_v19 = vld [vmem:[%s9825_s5 + $0x50] sm:$0xff]  ;;  %v404_v20 = vld [vmem:[%s9825_s5 + $0x78] sm:$0xff]  ;;  %s15072_s6 = sld [smem:[#allocation35_spill]] }
 0x10b   :  { %477 = vmatpush.msra.mxu0 %v406_v3  ;;  %8408 = vmatpush.msra.mxu1 %v406_v3  ;;  %v1298_v18 = vld [vmem:[%s9865_s8 + $0xe8] sm:$0xff]  ;;  %v846_v21 = vld [vmem:[%s9855_s29 + $0x70] sm:$0xff]  ;;  %v1280_v22 = vld [vmem:[%s9865_s8 + $0x58] sm:$0xff]  ;;  %s15073_s4 = sld [smem:[#allocation41_spill]] }
 0x10c   :  { %8409 = vmatpush.msra.mxu2 %v406_v3  ;;  %8410 = vmatpush.msra.mxu3 %v406_v3  ;;  %v1279_v23 = vld [vmem:[%s9865_s8 + $0x50] sm:$0xff]  ;;  %v1297_v24 = vld [vmem:[%s9865_s8 + $0xe0] sm:$0xff]  ;;  %v1296_v25 = vld [vmem:[%s9865_s8 + $0xd8] sm:$0xff]  ;;  %s15074_s26 = sld [smem:[#allocation38_spill]] }
 0x10d   :  { %478 = vmatpush.msra.mxu0 %v405_v4  ;;  %8411 = vmatpush.msra.mxu1 %v405_v4  ;;  %v845_v26 = vld [vmem:[%s9855_s29 + $0x68] sm:$0xff]  ;;  %v844_v28 = vld [vmem:[%s9855_s29 + $0x60] sm:$0xff]  ;;  %v391_v31 = vld [vmem:[%s9825_s5 + $0x10] sm:$0xff]  ;;  %s15075_s1 = sld [smem:[#allocation42_spill]] }
 0x10e   :  { %7982 = vmatmul.msk.f32.vlgmr.msra.gmra.mxu0 %vm414_vm0, %v389_v5  ;;  %7986 = vmatmul.msk.f32.vlgmr.msra.gmra.mxu1 %vm414_vm0, %v393_v6  ;;  %v1314_v27 = vld [vmem:[%s9865_s8 + $0x168] sm:$0x1f]  ;;  %v1313_v30 = vld [vmem:[%s9865_s8 + $0x160] sm:$0xff]  ;;  %v395_v32 = vld [vmem:[%s9825_s5 + $0x30] sm:$0xff]  ;;  %s15076_s3 = sld [smem:[#allocation40_spill]] }
 0x10f   :  { %8412 = vmatpush.msra.mxu2 %v405_v4  ;;  %8413 = vmatpush.msra.mxu3 %v405_v4  ;;  %v1278_v29 = vld [vmem:[%s9865_s8 + $0x48] sm:$0xff]  ;;  %v1277_v33 = vld [vmem:[%s9865_s8 + $0x40] sm:$0xff]  ;;  %v1295_v34 = vld [vmem:[%s9865_s8 + $0xd0] sm:$0xff]  ;;  %s15077_s12 = sld [smem:[#allocation30_spill]] }
 0x110   :  { %7991 = vmatmul.msk.f32.vlgmr.msra.gmra.mxu2 %vm414_vm0, %v398_v7  ;;  %7996 = vmatmul.msk.f32.vlgmr.msra.gmra.mxu3 %vm414_vm0, %v403_v8  ;;  %v400_v35 = vld [vmem:[%s9825_s5 + $0x58] sm:$0xff]  ;;  %v1294_v37 = vld [vmem:[%s9865_s8 + $0xc8] sm:$0xff]  ;;  %v401_v40 = vld [vmem:[%s9825_s5 + $0x60] sm:$0xff]  ;;  %s15078_s14 = sld [smem:[#allocation44_spill]] }
 0x111   :  { %1372 = vmatpush.msrb.mxu2 %v1284_v9  ;;  %1437 = vmatpush.msrb.mxu3 %v1300_v12  ;;  %v1276_v36 = vld [vmem:[%s9865_s8 + $0x38] sm:$0xff]  ;;  %v397_v41 = vld [vmem:[%s9825_s5 + $0x40] sm:$0xff]  ;;  %v402_v42 = vld [vmem:[%s9825_s5 + $0x68] sm:$0xff]  ;;  %s15079_s28 = sld [smem:[#allocation43_spill]] }
 0x112   :  { %852 = vmatpush.msrb.mxu1 %v847_v16  ;;  %8030 = vmatpush.msk.msrb.mxu0 %vm1368_vm1, %v1314_v27  ;;  %v392_v38 = vld [vmem:[%s9825_s5 + $0x18] sm:$0xff]  ;;  %v1293_v43 = vld [vmem:[%s9865_s8 + $0xc0] sm:$0xff]  ;;  %v1275_v44 = vld [vmem:[%s9865_s8 + $0x30] sm:$0xff]  ;;  %s15080_s2 = sld [smem:[#allocation45_spill]] }
 0x113   :  { %1373 = vmatpush.msrb.mxu2 %v1283_v10  ;;  %1438 = vmatpush.msrb.mxu3 %v1299_v13  ;;  %v396_v39 = vld [vmem:[%s9825_s5 + $0x38] sm:$0xff]  ;;  %v1274_v47 = vld [vmem:[%s9865_s8 + $0x28] sm:$0xff]  ;;  %v1311_v48 = vld [vmem:[%s9865_s8 + $0x150] sm:$0xff]  ;;  %s15044_s5 = sld [smem:[#allocation28_spill]] }
 0x114   :  { %853 = vmatpush.msrb.mxu1 %v846_v21  ;;  %1505 = vmatpush.msrb.mxu0 %v1313_v30  ;;  %v1312_v45 = vld [vmem:[%s9865_s8 + $0x158] sm:$0xff]  ;;  %v1291_v49 = vld [vmem:[%s9865_s8 + $0xb0] sm:$0xff]  ;;  %v1273_v50 = vld [vmem:[%s9865_s8 + $0x20] sm:$0xff]  ;;  %s15081_s24 = sld [smem:[#allocation47_spill]] }
 0x115   :  { %1374 = vmatpush.msrb.mxu2 %v1282_v11  ;;  %1439 = vmatpush.msrb.mxu3 %v1298_v18  ;;  %v1292_v46 = vld [vmem:[%s9865_s8 + $0xb8] sm:$0xff]  ;;  %v1310_v51 = vld [vmem:[%s9865_s8 + $0x148] sm:$0xff]  ;;  %v1309_v55 = vld [vmem:[%s9865_s8 + $0x140] sm:$0xff]  ;;  %s15082_s7 = sld [smem:[#allocation46_spill]] }
 0x116   :  { %7983 = vmatmul.msk.f32.gmra.mxu0 %vm414_vm0, %v390_v14  ;;  %7987 = vmatmul.msk.f32.gmra.mxu1 %vm414_vm0, %v394_v15  ;;  %v1290_v52 = vld [vmem:[%s9865_s8 + $0xa8] sm:$0xff]  ;;  %v843_v53 = vld [vmem:[%s9855_s29 + $0x58] sm:$0xff]  ;;  %v1289_v56 = vld [vmem:[%s9865_s8 + $0xa0] sm:$0xff]  ;;  %s15083_s10 = sld [smem:[#allocation48_spill]] }
 0x117   :  { %1375 = vmatpush.msrb.mxu2 %v1281_v17  ;;  %1440 = vmatpush.msrb.mxu3 %v1297_v24  ;;  %v1272_v54 = vld [vmem:[%s9865_s8 + $0x18] sm:$0xff]  ;;  %v842_v57 = vld [vmem:[%s9855_s29 + $0x50] sm:$0xff]  ;;  %v841_v61 = vld [vmem:[%s9855_s29 + $0x48] sm:$0xff]  ;;  %s15084_s15 = sld [smem:[#allocation50_spill]] }
 0x118   :  { %7992 = vmatmul.msk.f32.gmra.mxu2 %vm414_vm0, %v399_v19  ;;  %7997 = vmatmul.msk.f32.gmra.mxu3 %vm414_vm0, %v404_v20  ;;  %v1308_v58 = vld [vmem:[%s9865_s8 + $0x138] sm:$0xff]  ;;  %v1271_v59 = vld [vmem:[%s9865_s8 + $0x10] sm:$0xff]  ;;  %v1270_v63 = vld [vmem:[%s9865_s8 + $0x8] sm:$0xff]  ;;  %s15085_s17 = sld [smem:[#allocation52_spill]] }
 0x119   :  { %1376 = vmatpush.msrb.mxu2 %v1280_v22  ;;  %854 = vmatpush.msrb.mxu1 %v845_v26  ;;  %v1288_v60 = vld [vmem:[%s9865_s8 + $0x98] sm:$0xff]  ;;  %v1307_v62 = vld [vmem:[%s9865_s8 + $0x130] sm:$0xff]  ;;  %v840_v1 = vld [vmem:[%s9855_s29 + $0x40] sm:$0xff]  ;;  %s15086_s13 = sld [smem:[#allocation51_spill]] }
 0x11a   :  { %1441 = vmatpush.msrb.mxu3 %v1296_v25  ;;  %1506 = vmatpush.msrb.mxu0 %v1312_v45  ;;  %v1287_v0 = vld [vmem:[%s9865_s8 + $0x90] sm:$0xff]  ;;  %v1269_v2 = vld [vmem:[%s9865_s8] sm:$0xff]  ;;  %v1286_v3 = vld [vmem:[%s9865_s8 + $0x88] sm:$0xff]  ;;  %s15087_s30 = sld [smem:[#allocation29_spill]] }
 0x11b   :  { %1377 = vmatpush.msrb.mxu2 %v1279_v23  ;;  %855 = vmatpush.msrb.mxu1 %v844_v28  ;;  %v1306_v4 = vld [vmem:[%s9865_s8 + $0x128] sm:$0xff]  ;;  %v839_v5 = vld [vmem:[%s9855_s29 + $0x38] sm:$0xff]  ;;  %v1221_v6 = vld [vmem:[%s15044_s5] sm:$0xff]  ;;  %s15088_s11 = sld [smem:[#allocation55_spill]] }
 0x11c   :  { %1442 = vmatpush.msrb.mxu3 %v1295_v34  ;;  %1507 = vmatpush.msrb.mxu0 %v1311_v48  ;;  %v1285_v7 = vld [vmem:[%s9865_s8 + $0x80] sm:$0xff]  ;;  %v838_v9 = vld [vmem:[%s9855_s29 + $0x30] sm:$0xff]  ;;  %v1222_v10 = vld [vmem:[%s15044_s5 + $0x8] sm:$0xff]  ;;  %s15089_s16 = sld [smem:[#allocation57_spill]] }
 0x11d   :  { %1378 = vmatpush.msrb.mxu2 %v1278_v29  ;;  %856 = vmatpush.msrb.mxu1 %v843_v53  ;;  %v1305_v8 = vld [vmem:[%s9865_s8 + $0x120] sm:$0xff]  ;;  %v1304_v11 = vld [vmem:[%s9865_s8 + $0x118] sm:$0xff]  ;;  %v837_v12 = vld [vmem:[%s9855_s29 + $0x28] sm:$0xff]  ;;  %s15090_s18 = sld [smem:[#allocation56_spill]] }
 0x11e   :  { %7984 = vmatmul.msk.f32.gmra.mxu0 %vm414_vm0, %v391_v31  ;;  %7988 = vmatmul.msk.f32.gmra.mxu1 %vm414_vm0, %v395_v32  ;;  %v1303_v13 = vld [vmem:[%s9865_s8 + $0x110] sm:$0xff]  ;;  %v836_v14 = vld [vmem:[%s9855_s29 + $0x20] sm:$0xff]  ;;  %v1302_v15 = vld [vmem:[%s9865_s8 + $0x108] sm:$0xff]  ;;  %s15091_s22 = sld [smem:[#allocation53_spill]] }
 0x11f   :  { %1379 = vmatpush.msrb.mxu2 %v1277_v33  ;;  %1443 = vmatpush.msrb.mxu3 %v1294_v37  ;;  %v835_v16 = vld [vmem:[%s9855_s29 + $0x18] sm:$0xff]  ;;  %v1301_v18 = vld [vmem:[%s9865_s8 + $0x100] sm:$0xff]  ;;  %v834_v19 = vld [vmem:[%s9855_s29 + $0x10] sm:$0xff]  ;;  %s15064_s8 = sld [smem:[#allocation33_spill]] }
 0x120   :  { %7993 = vmatmul.msk.f32.gmra.mxu2 %vm414_vm0, %v400_v35  ;;  %1508 = vmatpush.msrb.mxu0 %v1310_v51  ;;  %v1224_v17 = vld [vmem:[%s15044_s5 + $0x18] sm:$0xff]  ;;  %v1225_v20 = vld [vmem:[%s15044_s5 + $0x20] sm:$0xff]  ;;  %v1223_v21 = vld [vmem:[%s15044_s5 + $0x10] sm:$0xff] }
 0x121   :  { %1380 = vmatpush.msrb.mxu2 %v1276_v36  ;;  %1444 = vmatpush.msrb.mxu3 %v1293_v43  ;;  %v833_v22 = vld [vmem:[%s9855_s29 + $0x8] sm:$0xff]  ;;  %v10243_v23 = vld [vmem:[%s15045_s9] ss:$0 sm:$0xff]  ;;  %v1227_v25 = vld [vmem:[%s15044_s5 + $0x30] sm:$0xff]  ;;  %s15143_s9 = sld [smem:[#allocation58_spill]] }
 0x122   :  { %1509 = vmatpush.msrb.mxu0 %v1309_v55  ;;  %857 = vmatpush.msrb.mxu1 %v842_v57  ;;  %v832_v24 = vld [vmem:[%s9855_s29] sm:$0xff]  ;;  %v1228_v28 = vld [vmem:[%s15044_s5 + $0x38] sm:$0xff]  ;;  %v1226_v29 = vld [vmem:[%s15044_s5 + $0x28] sm:$0xff]  ;;  %s15061_s29 = sld [smem:[#allocation36_spill]] }
 0x123   :  { %1381 = vmatpush.msrb.mxu2 %v1275_v44  ;;  %1445 = vmatpush.msrb.mxu3 %v1292_v46  ;;  %v1630_v32 = vld [vmem:[%s15046_s21 + $0x78] sm:$0xff]  ;;  %v1629_v33 = vld [vmem:[%s15046_s21 + $0x70] sm:$0xff]  ;;  %v1230_v34 = vld [vmem:[%s15044_s5 + $0x48] sm:$0xff] }
 0x124   :  { %1510 = vmatpush.msrb.mxu0 %v1308_v58  ;;  %858 = vmatpush.msrb.mxu1 %v841_v61  ;;  %v1231_v36 = vld [vmem:[%s15044_s5 + $0x50] sm:$0xff]  ;;  %v1229_v37 = vld [vmem:[%s15044_s5 + $0x40] sm:$0xff]  ;;  %v1628_v44 = vld [vmem:[%s15046_s21 + $0x68] sm:$0xff] }
 0x125   :  { %1382 = vmatpush.msrb.mxu2 %v1274_v47  ;;  %1446 = vmatpush.msrb.mxu3 %v1291_v49  ;;  %v1233_v45 = vld [vmem:[%s15044_s5 + $0x60] sm:$0xff]  ;;  %v1234_v48 = vld [vmem:[%s15044_s5 + $0x68] sm:$0xff]  ;;  %v1232_v49 = vld [vmem:[%s15044_s5 + $0x58] sm:$0xff] }
 0x126   :  { %7985 = vmatmul.msk.f32.gmra.mxu0 %vm414_vm0, %v392_v38  ;;  %7989 = vmatmul.msk.f32.gmra.mxu1 %vm414_vm0, %v396_v39  ;;  %v1236_v61 = vld [vmem:[%s15044_s5 + $0x78] sm:$0xff] }
 0x127   :  { %1383 = vmatpush.msrb.mxu2 %v1273_v50  ;;  %1447 = vmatpush.msrb.mxu3 %v1290_v52 }
 0x128   :  { %7994 = vmatmul.msk.f32.gmra.mxu2 %vm414_vm0, %v401_v40  ;;  %1511 = vmatpush.msrb.mxu0 %v1307_v62 }
 0x129   :  { %1384 = vmatpush.msrb.mxu2 %v1272_v54  ;;  %1448 = vmatpush.msrb.mxu3 %v1289_v56 }
 0x12a   :  { %859 = vmatpush.msrb.mxu1 %v840_v1  ;;  %1512 = vmatpush.msrb.mxu0 %v1306_v4  ;;  %v1237_v1 = vld [vmem:[%s15044_s5 + $0x80] sm:$0xff] }
 0x12b   :  { %1385 = vmatpush.msrb.mxu2 %v1271_v59  ;;  %1449 = vmatpush.msrb.mxu3 %v1288_v60  ;;  %v1627_v60 = vld [vmem:[%s15046_s21 + $0x60] sm:$0xff] }
 0x12c   :  { %860 = vmatpush.msrb.mxu1 %v839_v5  ;;  %1513 = vmatpush.msrb.mxu0 %v1305_v8 }
 0x12d   :  { %1386 = vmatpush.msrb.mxu2 %v1270_v63  ;;  %1450 = vmatpush.msrb.mxu3 %v1287_v0 }
 0x12e   :  { %7990 = vmatmul.msk.f32.gmra.mxu1 %vm414_vm0, %v397_v41  ;;  %1514 = vmatpush.msrb.mxu0 %v1304_v11 }
 0x12f   :  { %1387 = vmatpush.msrb.mxu2 %v1269_v2  ;;  %1451 = vmatpush.msrb.mxu3 %v1286_v3  ;;  %v1235_v2 = vld [vmem:[%s15044_s5 + $0x70] sm:$0xff] }
 0x130   :  { %7995 = vmatmul.msk.f32.gmra.mxu2 %vm414_vm0, %v402_v42  ;;  %861 = vmatpush.msrb.mxu1 %v838_v9 }
 0x131   :  { %1452 = vmatpush.msrb.mxu3 %v1285_v7  ;;  %1515 = vmatpush.msrb.mxu0 %v1303_v13 }
 0x132   :  { %1453 = vmatmul.f32.vlgmr.msrb.gmra.mxu3 %v1222_v10  ;;  %862 = vmatpush.msrb.mxu1 %v837_v12 }
 0x133   :  { %1516 = vmatpush.msrb.mxu0 %v1302_v15 }
 0x134   :  { %863 = vmatpush.msrb.mxu1 %v836_v14 }
 0x135   :  { %1517 = vmatpush.msrb.mxu0 %v1301_v18  ;;  %v1626_v18 = vld [vmem:[%s15046_s21 + $0x58] sm:$0xff] }
 0x136   :  { %864 = vmatpush.msrb.mxu1 %v835_v16  ;;  %8031 = vmatmul.msk.f32.vlgmr.msrb.gmra.mxu0 %vm1319_vm2, %v1223_v21 }
 0x138   :  { %1388 = vmatmul.f32.vlgmr.msrb.gmra.mxu2 %v1221_v6  ;;  %865 = vmatpush.msrb.mxu1 %v834_v19  ;;  %v1239_v19 = vld [vmem:[%s15044_s5 + $0x90] sm:$0xff] }
 0x13a   :  { %1456 = vmatmul.f32.gmra.mxu3 %v1225_v20  ;;  %866 = vmatpush.msrb.mxu1 %v833_v22  ;;  %v1240_v22 = vld [vmem:[%s15044_s5 + $0x98] sm:$0xff] }
 0x13c   :  { %867 = vmatpush.msrb.mxu1 %v832_v24  ;;  %v1238_v24 = vld [vmem:[%s15044_s5 + $0x88] sm:$0xff] }
 0x13e   :  { %8032 = vmatmul.msk.f32.gmra.mxu0 %vm1319_vm2, %v1226_v29  ;;  %1635 = vmatpush.msra.mxu1 %v1630_v32 }
 0x140   :  { %1391 = vmatmul.f32.gmra.mxu2 %v1224_v17  ;;  %1636 = vmatpush.msra.mxu1 %v1629_v33 }
 0x142   :  { %1459 = vmatmul.f32.gmra.mxu3 %v1228_v28  ;;  %1637 = vmatpush.msra.mxu1 %v1628_v44 }
 0x144   :  { %1638 = vmatpush.msra.mxu1 %v1627_v60 }
 0x146   :  { %8033 = vmatmul.msk.f32.gmra.mxu0 %vm1319_vm2, %v1229_v37  ;;  %1639 = vmatpush.msra.mxu1 %v1626_v18 }
 0x148   :  { %1394 = vmatmul.f32.gmra.mxu2 %v1227_v25 }
 0x14a   :  { %1462 = vmatmul.f32.gmra.mxu3 %v1231_v36 }
 0x14e   :  { %8034 = vmatmul.msk.f32.gmra.mxu0 %vm1319_vm2, %v1232_v49 }
 0x150   :  { %1397 = vmatmul.f32.gmra.mxu2 %v1230_v34 }
 0x152   :  { %1465 = vmatmul.f32.gmra.mxu3 %v1234_v48 }
 0x156   :  { %8035 = vmatmul.msk.f32.gmra.mxu0 %vm1319_vm2, %v1235_v2 }
 0x158   :  { %1400 = vmatmul.f32.gmra.mxu2 %v1233_v45  ;;  %v1243_v45 = vld [vmem:[%s15044_s5 + $0xb0] sm:$0xff] }
 0x15a   :  { %1468 = vmatmul.f32.gmra.mxu3 %v1237_v1 }
 0x15e   :  { %8036 = vmatmul.msk.f32.gmra.mxu0 %vm1319_vm2, %v1238_v24  ;;  %v1623_v24 = vld [vmem:[%s15046_s21 + $0x40] sm:$0xff] }
 0x160   :  { %1403 = vmatmul.f32.gmra.mxu2 %v1236_v61 }
 0x162   :  { %1471 = vmatmul.f32.gmra.mxu3 %v1240_v22 }
 0x168   :  { %1406 = vmatmul.f32.gmra.mxu2 %v1239_v19 }
 0x16a   :  { %1474 = vmatmul.f32.gmra.mxu3 %v1243_v45  ;;  %v1251_v45 = vld [vmem:[%s15044_s5 + $0xf0] sm:$0xff] }
 0x18b   :  { %v480_v26 = vpop.f32.mrf.mxu0  ;;  %v492_v30 = vpop.f32.mrf.mxu1 }
 0x18c   :  { %v481_v27 = vadd.f32 %v10243_v23, %v480_v26  ;;  %v493_v42 = vadd.f32 %v10243_v23, %v492_v30 }
 0x18e   :  { %v7998_v31 = vmul.f32 -1.442695, %v481_v27  ;;  %v8002_v47 = vmul.f32 -1.442695, %v493_v42 }
 0x190   :  { %8509 = vpow2.f32 %v7998_v31 }
 0x193   :  { %v483_v35 = vpop.f32.mrf.mxu0  ;;  %v495_v43 = vpop.f32.mrf.mxu1 }
 0x194   :  { %v484_v38 = vadd.f32 %v10243_v23, %v483_v35  ;;  %v496_v53 = vadd.f32 %v10243_v23, %v495_v43 }
 0x196   :  { %v8510_v39 = vpop.eup %8509  ;;  %v7999_v40 = vmul.f32 -1.442695, %v484_v38  ;;  %v8003_v58 = vmul.f32 -1.442695, %v496_v53 }
 0x197   :  { %v576_v41 = vadd.f32 1.0, %v8510_v39 }
 0x198   :  { %8511 = vpow2.f32 %v7999_v40  ;;  %v1625_v40 = vld [vmem:[%s15046_s21 + $0x50] sm:$0xff] }
 0x199   :  { %8513 = vrcp.f32 %v576_v41  ;;  %v601_v63 = vand.u32 2147483647, %v576_v41  ;;  %v603_v0 = vand.u32 2147483648, %v576_v41  ;;  %vm597_vm4 = vweird.f32 %v576_v41  ;;  %1640 = vmatpush.msra.mxu1 %v1625_v40 }
 0x19a   :  { %8515 = vpow2.f32 %v8002_v47 }
 0x19b   :  { %v486_v46 = vpop.f32.mrf.mxu0  ;;  %v498_v57 = vpop.f32.mrf.mxu1  ;;  %vm602_vm6 = vcmp.eq.f32.partialorder %v601_v63, 8.507059e+37  ;;  %v604_v11 = vor.u32 1.1754944e-38, %v603_v0  ;;  %v1624_v63 = vld [vmem:[%s15046_s21 + $0x48] sm:$0xff]  ;;  %v1245_v0 = vld [vmem:[%s15044_s5 + $0xc0] sm:$0xff] }
 0x19c   :  { %v487_v50 = vadd.f32 %v10243_v23, %v486_v46  ;;  %v499_v13 = vadd.f32 %v10243_v23, %v498_v57  ;;  %v1241_v46 = vld [vmem:[%s15044_s5 + $0xa0] sm:$0xff]  ;;  %1641 = vmatpush.msra.mxu1 %v1624_v63  ;;  %v1621_v63 = vld [vmem:[%s15046_s21 + $0x30] sm:$0xff] }
 0x19d   :  { %8037 = vmatmul.msk.f32.gmra.mxu0 %vm1319_vm2, %v1241_v46 }
 0x19e   :  { %v8512_v51 = vpop.eup %8511  ;;  %v8000_v52 = vmul.f32 -1.442695, %v487_v50  ;;  %v8004_v25 = vmul.f32 -1.442695, %v499_v13  ;;  %v507_v50 = vpop.f32.mrf.mxu2  ;;  %1642 = vmatpush.msra.mxu1 %v1623_v24 }
 0x19f   :  { %v8514_v54 = vpop.eup %8513  ;;  %v10266_v55 = vadd.f32 1.0, %v8512_v51  ;;  %v508_v13 = vadd.f32 %v10243_v23, %v507_v50 }
 0x1a0   :  { %8517 = vpow2.f32 %v8000_v52  ;;  %v593_v56 = vmul.f32 %v8514_v54, %v576_v41  ;;  %vm598_vm3 = vweird.f32 %v8514_v54  ;;  %v8516_v5 = vpop.eup %8515  ;;  %v1242_v41 = vld [vmem:[%s15044_s5 + $0xa8] sm:$0xff] }
 0x1a1   :  { %8519 = vrcp.f32 %v10266_v55  ;;  %vm599_vm5 = vmor %vm597_vm4, %vm598_vm3  ;;  %v10280_v15 = vadd.f32 1.0, %v8516_v5  ;;  %v618_v20 = vand.u32 2147483648, %v10266_v55  ;;  %v616_v27 = vand.u32 2147483647, %v10266_v55  ;;  %1409 = vmatmul.f32.gmra.mxu2 %v1242_v41 }
 0x1a2   :  { %v594_v59 = vsub.f32 1.0, %v593_v56  ;;  %8521 = vpow2.f32 %v8003_v58  ;;  %vm612_vm8 = vweird.f32 %v10266_v55 }
 0x1a3   :  { %v489_v62 = vpop.f32.mrf.mxu0  ;;  %v501_v21 = vpop.f32.mrf.mxu1  ;;  %v619_v33 = vor.u32 1.1754944e-38, %v618_v20  ;;  %vm617_vm10 = vcmp.eq.f32.partialorder %v616_v27, 8.507059e+37  ;;  %vm657_vm3 = vweird.f32 %v10280_v15  ;;  %v663_v19 = vand.u32 2147483648, %v10280_v15 }
 0x1a4   :  { %v490_v3 = vadd.f32 %v10243_v23, %v489_v62  ;;  %v595_v4 = vmul.f32 %v8514_v54, %v594_v59  ;;  %v502_v34 = vadd.f32 %v10243_v23, %v501_v21  ;;  %v661_v21 = vand.u32 2147483647, %v10280_v15 }
 0x1a6   :  { %v8518_v6 = vpop.eup %8517  ;;  %v8001_v7 = vmul.f32 -1.442695, %v490_v3  ;;  %v596_v8 = vadd.f32 %v8514_v54, %v595_v4  ;;  %v8005_v43 = vmul.f32 -1.442695, %v502_v34  ;;  %v1246_v3 = vld [vmem:[%s15044_s5 + $0xc8] sm:$0xff]  ;;  %v1244_v4 = vld [vmem:[%s15044_s5 + $0xb8] sm:$0xff] }
 0x1a7   :  { %v8520_v9 = vpop.eup %8519  ;;  %v10275_v10 = vadd.f32 1.0, %v8518_v6  ;;  %8038 = vmatmul.msk.f32.gmra.mxu0 %vm1319_vm2, %v1244_v4  ;;  %1477 = vmatmul.f32.gmra.mxu3 %v1246_v3  ;;  %v1255_v4 = vld [vmem:[%s15044_s5 + $0x110] sm:$0xff] }
 0x1a8   :  { %8523 = vpow2.f32 %v8001_v7  ;;  %v600_v12 = vsel %vm599_vm5, %v8514_v54, %v596_v8  ;;  %v608_v14 = vmul.f32 %v8520_v9, %v10266_v55  ;;  %vm613_vm7 = vweird.f32 %v8520_v9  ;;  %v8522_v28 = vpop.eup %8521 }
 0x1a9   :  { %8525 = vrcp.f32 %v10275_v10  ;;  %v605_v16 = vsel %vm602_vm6, %v604_v11, %v600_v12  ;;  %vm614_vm9 = vmor %vm612_vm8, %vm613_vm7  ;;  %v10296_v37 = vadd.f32 1.0, %v8522_v28  ;;  %v633_v44 = vand.u32 2147483648, %v10275_v10  ;;  %1412 = vmatmul.f32.gmra.mxu2 %v1245_v0  ;;  %v1249_v28 = vld [vmem:[%s15044_s5 + $0xe0] sm:$0xff]  ;;  %v1254_v0 = vld [vmem:[%s15044_s5 + $0x108] sm:$0xff] }
 0x1aa   :  { %868 = vmatmul.f32.vlgmr.msrb.gmra.mxu1 %v605_v16  ;;  %v609_v17 = vsub.f32 1.0, %v608_v14  ;;  %8527 = vrcp.f32 %v10280_v15  ;;  %v631_v48 = vand.u32 2147483647, %v10275_v10  ;;  %vm627_vm12 = vweird.f32 %v10275_v10  ;;  %v510_v14 = vpop.f32.mrf.mxu2 }
 0x1ab   :  { %8529 = vpow2.f32 %v8004_v25  ;;  %v504_v49 = vpop.f32.mrf.mxu1  ;;  %v634_v55 = vor.u32 1.1754944e-38, %v633_v44  ;;  %v1248_v25 = vld [vmem:[%s15044_s5 + $0xd8] sm:$0xff]  ;;  %vm662_vm7 = vcmp.eq.f32.partialorder %v661_v21, 8.507059e+37  ;;  %vm672_vm8 = vweird.f32 %v10296_v37  ;;  %v1257_v21 = vld [vmem:[%s15044_s5 + $0x120] sm:$0xff] }
 0x1ac   :  { %v610_v26 = vmul.f32 %v8520_v9, %v609_v17  ;;  %vm632_vm14 = vcmp.eq.f32.partialorder %v631_v48, 8.507059e+37  ;;  %v505_v57 = vadd.f32 %v10243_v23, %v504_v49  ;;  %v1622_v44 = vld [vmem:[%s15046_s21 + $0x38] sm:$0xff]  ;;  %v1250_v49 = vld [vmem:[%s15044_s5 + $0xe8] sm:$0xff] }
 0x1ad   :  { %1643 = vmatpush.msra.mxu1 %v1622_v44  ;;  %v1252_v48 = vld [vmem:[%s15044_s5 + $0xf8] sm:$0xff] }
 0x1ae   :  { %v8524_v29 = vpop.eup %8523  ;;  %v611_v30 = vadd.f32 %v8520_v9, %v610_v26  ;;  %v8006_v5 = vmul.f32 -1.442695, %v505_v57 }
 0x1af   :  { %v8526_v31 = vpop.eup %8525  ;;  %v10291_v32 = vadd.f32 1.0, %v8524_v29  ;;  %v1247_v29 = vld [vmem:[%s15044_s5 + $0xd0] sm:$0xff]  ;;  %1480 = vmatmul.f32.gmra.mxu3 %v1249_v28  ;;  %1644 = vmatpush.msra.mxu1 %v1621_v63  ;;  %v1262_v63 = vld [vmem:[%s15044_s5 + $0x148] sm:$0xff] }
 0x1b0   :  { %v615_v35 = vsel %vm614_vm9, %v8520_v9, %v611_v30  ;;  %v623_v36 = vmul.f32 %v8526_v31, %v10275_v10  ;;  %v10300_v42 = vpop.eup %8527  ;;  %vm628_vm11 = vweird.f32 %v8526_v31  ;;  %v8007_v30 = vmul.f32 -1.442695, %v508_v13  ;;  %8039 = vmatmul.msk.f32.gmra.mxu0 %vm1319_vm2, %v1247_v29 }
 0x1b1   :  { %8531 = vrcp.f32 %v10291_v32  ;;  %v620_v38 = vsel %vm617_vm10, %v619_v33, %v615_v35  ;;  %v8530_v51 = vpop.eup %8529  ;;  %v653_v53 = vmul.f32 %v10300_v42, %v10280_v15  ;;  %vm629_vm13 = vmor %vm627_vm12, %vm628_vm11  ;;  %v648_v2 = vand.u32 2147483648, %v10291_v32  ;;  %1415 = vmatmul.f32.gmra.mxu2 %v1248_v25  ;;  %v1258_v25 = vld [vmem:[%s15044_s5 + $0x128] sm:$0xff] }
 0x1b2   :  { %871 = vmatmul.f32.gmra.mxu1 %v620_v38  ;;  %v624_v39 = vsub.f32 1.0, %v623_v36  ;;  %8533 = vrcp.f32 %v10296_v37  ;;  %v10313_v59 = vadd.f32 1.0, %v8530_v51  ;;  %v646_v7 = vand.u32 2147483647, %v10291_v32  ;;  %v513_v40 = vpop.f32.mrf.mxu2 }
 0x1b3   :  { %8535 = vpow2.f32 %v8005_v43  ;;  %v654_v62 = vsub.f32 1.0, %v653_v53  ;;  %vm642_vm0 = vweird.f32 %v10291_v32  ;;  %v649_v12 = vor.u32 1.1754944e-38, %v648_v2  ;;  %v1264_v2 = vld [vmem:[%s15044_s5 + $0x158] sm:$0xff] }
 0x1b4   :  { %v625_v47 = vmul.f32 %v8526_v31, %v624_v39  ;;  %8537 = vrcp.f32 %v10313_v59  ;;  %vm647_vm4 = vcmp.eq.f32.partialorder %v646_v7, 8.507059e+37  ;;  %vm658_vm5 = vweird.f32 %v10300_v42 }
 0x1b5   :  { %v655_v10 = vmul.f32 %v10300_v42, %v654_v62  ;;  %8539 = vpow2.f32 %v8006_v5  ;;  %vm10343_vm6 = vmor %vm657_vm3, %vm658_vm5  ;;  %v511_v35 = vadd.f32 %v10243_v23, %v510_v14  ;;  %v678_v39 = vand.u32 2147483648, %v10296_v37  ;;  %v1253_v5 = vld [vmem:[%s15044_s5 + $0x100] sm:$0xff] }
 0x1b6   :  { %v626_v52 = vadd.f32 %v8526_v31, %v625_v47  ;;  %vm687_vm12 = vweird.f32 %v10313_v59  ;;  %v1259_v47 = vld [vmem:[%s15044_s5 + $0x130] sm:$0xff] }
 0x1b7   :  { %v8532_v54 = vpop.eup %8531  ;;  %v656_v20 = vadd.f32 %v10300_v42, %v655_v10  ;;  %v8008_v50 = vmul.f32 -1.442695, %v511_v35  ;;  %v679_v51 = vor.u32 1.1754944e-38, %v678_v39  ;;  %1483 = vmatmul.f32.gmra.mxu3 %v1252_v48 }
 0x1b8   :  { %v630_v56 = vsel %vm629_vm13, %v8526_v31, %v626_v52  ;;  %v638_v58 = vmul.f32 %v8532_v54, %v10291_v32  ;;  %v10317_v1 = vpop.eup %8533  ;;  %vm643_vm15 = vweird.f32 %v8532_v54  ;;  %v664_v31 = vor.u32 1.1754944e-38, %v663_v19  ;;  %8040 = vmatmul.msk.f32.gmra.mxu0 %vm1319_vm2, %v1250_v49 }
 0x1b9   :  { %v635_v60 = vsel %vm632_vm14, %v634_v55, %v630_v56  ;;  %v8536_v8 = vpop.eup %8535  ;;  %v668_v11 = vmul.f32 %v10317_v1, %v10296_v37  ;;  %vm644_vm1 = vmor %vm642_vm0, %vm643_vm15  ;;  %v660_v33 = vsel %vm10343_vm6, %v10300_v42, %v656_v20  ;;  %vm673_vm9 = vweird.f32 %v10317_v1  ;;  %1418 = vmatmul.f32.gmra.mxu2 %v1251_v45  ;;  %v1620_v20 = vld [vmem:[%s15046_s21 + $0x28] sm:$0xff]  ;;  %v522_v45 = vpop.f32.mrf.mxu3 }
 0x1ba   :  { %874 = vmatmul.f32.gmra.mxu1 %v635_v60  ;;  %v639_v61 = vsub.f32 1.0, %v638_v58  ;;  %v10332_v17 = vadd.f32 1.0, %v8536_v8  ;;  %v10339_v26 = vpop.eup %8537  ;;  %v665_v38 = vsel %vm662_vm7, %v664_v31, %v660_v33  ;;  %v676_v42 = vand.u32 2147483647, %v10296_v37  ;;  %vm10369_vm10 = vmor %vm672_vm8, %vm673_vm9  ;;  %v516_v3 = vpop.f32.mrf.mxu2 }
 0x1bb   :  { %v669_v22 = vsub.f32 1.0, %v668_v11  ;;  %v8540_v32 = vpop.eup %8539  ;;  %v683_v34 = vmul.f32 %v10339_v26, %v10313_v59  ;;  %v514_v55 = vadd.f32 %v10243_v23, %v513_v40  ;;  %vm688_vm13 = vweird.f32 %v10339_v26  ;;  %1645 = vmatpush.msra.mxu1 %v1620_v20 }
 0x1bc   :  { %v640_v6 = vmul.f32 %v8532_v54, %v639_v61  ;;  %8541 = vrcp.f32 %v10332_v17  ;;  %v10360_v36 = vadd.f32 1.0, %v8540_v32  ;;  %vm677_vm11 = vcmp.eq.f32.partialorder %v676_v42, 8.507059e+37  ;;  %vm10395_vm14 = vmor %vm687_vm12, %vm688_vm13  ;;  %v1260_v42 = vld [vmem:[%s15044_s5 + $0x138] sm:$0xff] }
 0x1bd   :  { %v670_v15 = vmul.f32 %v10317_v1, %v669_v22  ;;  %8543 = vpow2.f32 %v8007_v30  ;;  %v684_v43 = vsub.f32 1.0, %v683_v34  ;;  %v693_v58 = vand.u32 2147483648, %v10313_v59 }
 0x1be   :  { %v641_v9 = vadd.f32 %v8532_v54, %v640_v6  ;;  %8545 = vrcp.f32 %v10360_v36  ;;  %v691_v61 = vand.u32 2147483647, %v10313_v59  ;;  %v8009_v6 = vmul.f32 -1.442695, %v514_v55 }
 0x1bf   :  { %v671_v41 = vadd.f32 %v10317_v1, %v670_v15  ;;  %v685_v53 = vmul.f32 %v10339_v26, %v684_v43  ;;  %8547 = vpow2.f32 %v8008_v50  ;;  %v694_v7 = vor.u32 1.1754944e-38, %v693_v58  ;;  %1486 = vmatmul.f32.gmra.mxu3 %v1255_v4 }
 0x1c0   :  { %v645_v16 = vsel %vm644_vm1, %v8532_v54, %v641_v9  ;;  %8041 = vmatmul.msk.f32.gmra.mxu0 %vm1319_vm2, %v1253_v5  ;;  %vm692_vm15 = vcmp.eq.f32.partialorder %v691_v61, 8.507059e+37  ;;  %v517_v11 = vadd.f32 %v10243_v23, %v516_v3  ;;  %vm702_vm0 = vweird.f32 %v10332_v17  ;;  %v1618_v61 = vld [vmem:[%s15046_s21 + $0x18] sm:$0xff] }
 0x1c1   :  { %v650_v18 = vsel %vm647_vm4, %v649_v12, %v645_v16  ;;  %v675_v52 = vsel %vm10369_vm10, %v10317_v1, %v671_v41  ;;  %v686_v60 = vadd.f32 %v10339_v26, %v685_v53  ;;  %1421 = vmatmul.f32.gmra.mxu2 %v1254_v0  ;;  %v708_v14 = vand.u32 2147483648, %v10332_v17  ;;  %v1619_v41 = vld [vmem:[%s15046_s21 + $0x20] sm:$0xff]  ;;  %v525_v5 = vpop.f32.mrf.mxu3 }
 0x1c2   :  { %877 = vmatmul.f32.gmra.mxu1 %v650_v18  ;;  %v10367_v46 = vpop.eup %8541  ;;  %v680_v57 = vsel %vm677_vm11, %v679_v51, %v675_v52  ;;  %v706_v18 = vand.u32 2147483647, %v10332_v17  ;;  %v8010_v27 = vmul.f32 -1.442695, %v517_v11  ;;  %v519_v29 = vpop.f32.mrf.mxu2  ;;  %vm717_vm5 = vweird.f32 %v10360_v36 }
 0x1c3   :  { %v8544_v37 = vpop.eup %8543  ;;  %v698_v54 = vmul.f32 %v10367_v46, %v10332_v17  ;;  %v690_v8 = vsel %vm10395_vm14, %v10339_v26, %v686_v60  ;;  %vm703_vm1 = vweird.f32 %v10367_v46  ;;  %v1256_v26 = vld [vmem:[%s15044_s5 + $0x118] sm:$0xff]  ;;  %v709_v28 = vor.u32 1.1754944e-38, %v708_v14  ;;  %1646 = vmatpush.msra.mxu1 %v1619_v41 }
 0x1c4   :  { %v10386_v56 = vadd.f32 1.0, %v8544_v37  ;;  %v10393_v1 = vpop.eup %8545  ;;  %v695_v13 = vsel %vm692_vm15, %v694_v7, %v690_v8  ;;  %vm10421_vm3 = vmor %vm702_vm0, %vm703_vm1  ;;  %vm707_vm4 = vcmp.eq.f32.partialorder %v706_v18, 8.507059e+37  ;;  %v520_v33 = vadd.f32 %v10243_v23, %v519_v29  ;;  %v1617_v18 = vld [vmem:[%s15046_s21 + $0x10] sm:$0xff] }
 0x1c5   :  { %v699_v62 = vsub.f32 1.0, %v698_v54  ;;  %v8548_v59 = vpop.eup %8547  ;;  %v713_v10 = vmul.f32 %v10393_v1, %v10360_v36  ;;  %vm718_vm6 = vweird.f32 %v10393_v1  ;;  %v723_v35 = vand.u32 2147483648, %v10360_v36  ;;  %1647 = vmatpush.msra.mxu1 %v1618_v61 }
 0x1c6   :  { %8549 = vrcp.f32 %v10386_v56  ;;  %v10412_v12 = vadd.f32 1.0, %v8548_v59  ;;  %v721_v39 = vand.u32 2147483647, %v10360_v36  ;;  %vm10447_vm7 = vmor %vm717_vm5, %vm718_vm6  ;;  %v8011_v48 = vmul.f32 -1.442695, %v520_v33 }
 0x1c7   :  { %v700_v9 = vmul.f32 %v10367_v46, %v699_v62  ;;  %8551 = vpow2.f32 %v8009_v6  ;;  %v714_v19 = vsub.f32 1.0, %v713_v10  ;;  %1489 = vmatmul.f32.gmra.mxu3 %v1258_v25  ;;  %v724_v49 = vor.u32 1.1754944e-38, %v723_v35  ;;  %v1263_v62 = vld [vmem:[%s15044_s5 + $0x150] sm:$0xff]  ;;  %1648 = vmatpush.msra.mxu1 %v1617_v18  ;;  %v1268_v35 = vld [vmem:[%s15044_s5 + $0x178] sm:$0xff] }
 0x1c8   :  { %8553 = vrcp.f32 %v10412_v12  ;;  %8042 = vmatmul.msk.f32.gmra.mxu0 %vm1319_vm2, %v1256_v26  ;;  %vm722_vm8 = vcmp.eq.f32.partialorder %v721_v39, 8.507059e+37  ;;  %v523_v52 = vadd.f32 %v10243_v23, %v522_v45  ;;  %vm732_vm9 = vweird.f32 %v10386_v56  ;;  %v1758_v18 = vld [vmem:[%s15061_s29 + $0x50] sm:$0xff] }
 0x1c9   :  { %v701_v16 = vadd.f32 %v10367_v46, %v700_v9  ;;  %1424 = vmatmul.f32.gmra.mxu2 %v1257_v21  ;;  %v715_v31 = vmul.f32 %v10393_v1, %v714_v19  ;;  %8555 = vpow2.f32 %v8010_v27  ;;  %v738_v55 = vand.u32 2147483648, %v10386_v56  ;;  %v1266_v19 = vld [vmem:[%s15044_s5 + $0x168] sm:$0xff]  ;;  %v1267_v21 = vld [vmem:[%s15044_s5 + $0x170] sm:$0xff] }
 0x1ca   :  { %880 = vmatmul.f32.gmra.mxu1 %v665_v38  ;;  %v736_v58 = vand.u32 2147483647, %v10386_v56  ;;  %v8012_v3 = vmul.f32 -1.442695, %v523_v52  ;;  %v526_v8 = vadd.f32 %v10243_v23, %v525_v5  ;;  %vm747_vm13 = vweird.f32 %v10412_v12 }
 0x1cb   :  { %v705_v30 = vsel %vm10421_vm3, %v10367_v46, %v701_v16  ;;  %v716_v38 = vadd.f32 %v10393_v1, %v715_v31  ;;  %v1261_v46 = vld [vmem:[%s15044_s5 + $0x140] sm:$0xff]  ;;  %v739_v4 = vor.u32 1.1754944e-38, %v738_v55  ;;  %v753_v11 = vand.u32 2147483648, %v10412_v12 }
 0x1cc   :  { %v10419_v22 = vpop.eup %8549  ;;  %v710_v34 = vsel %vm707_vm4, %v709_v28, %v705_v30  ;;  %vm737_vm12 = vcmp.eq.f32.partialorder %v736_v58, 8.507059e+37  ;;  %v751_v14 = vand.u32 2147483647, %v10412_v12  ;;  %v8013_v24 = vmul.f32 -1.442695, %v526_v8  ;;  %v1763_v58 = vld [vmem:[%s15061_s29 + $0x78] sm:$0xff] }
 0x1cd   :  { %v8552_v17 = vpop.eup %8551  ;;  %v728_v32 = vmul.f32 %v10419_v22, %v10386_v56  ;;  %v720_v50 = vsel %vm10447_vm7, %v10393_v1, %v716_v38  ;;  %vm733_vm10 = vweird.f32 %v10419_v22  ;;  %v754_v25 = vor.u32 1.1754944e-38, %v753_v11  ;;  %1845 = vmatpush.msra.mxu3 %v1763_v58  ;;  %v1759_v11 = vld [vmem:[%s15061_s29 + $0x58] sm:$0xff] }
 0x1ce   :  { %v10438_v15 = vadd.f32 1.0, %v8552_v17  ;;  %v10445_v43 = vpop.eup %8553  ;;  %v725_v54 = vsel %vm722_vm8, %v724_v49, %v720_v50  ;;  %vm10474_vm11 = vmor %vm732_vm9, %vm733_vm10  ;;  %vm752_vm0 = vcmp.eq.f32.partialorder %v751_v14, 8.507059e+37  ;;  %v10541_v50 = vpop.f32.mrf.mxu0 }
 0x1cf   :  { %v729_v40 = vsub.f32 1.0, %v728_v32  ;;  %v8556_v36 = vpop.eup %8555  ;;  %v743_v37 = vmul.f32 %v10445_v43, %v10412_v12  ;;  %1492 = vmatmul.f32.gmra.mxu3 %v1261_v46  ;;  %vm748_vm14 = vweird.f32 %v10445_v43 }
 0x1d0   :  { %8557 = vrcp.f32 %v10438_v15  ;;  %8043 = vmatmul.msk.f32.gmra.mxu0 %vm1319_vm2, %v1259_v47  ;;  %v10464_v53 = vadd.f32 1.0, %v8556_v36  ;;  %vm10499_vm15 = vmor %vm747_vm13, %vm748_vm14  ;;  %vm762_vm1 = vweird.f32 %v10438_v15  ;;  %v768_v30 = vand.u32 2147483648, %v10438_v15  ;;  %v10537_v47 = vpop.f32.mrf.mxu3 }
 0x1d1   :  { %1427 = vmatmul.f32.gmra.mxu2 %v1260_v42  ;;  %v730_v51 = vmul.f32 %v10419_v22, %v729_v40  ;;  %8559 = vpow2.f32 %v8011_v48  ;;  %v744_v60 = vsub.f32 1.0, %v743_v37  ;;  %v766_v32 = vand.u32 2147483647, %v10438_v15 }
 0x1d2   :  { %883 = vmatmul.f32.gmra.mxu1 %v680_v57  ;;  %8561 = vrcp.f32 %v10464_v53  ;;  %v769_v39 = vor.u32 1.1754944e-38, %v768_v30  ;;  %vm777_vm6 = vweird.f32 %v10464_v53  ;;  %v783_v46 = vand.u32 2147483648, %v10464_v53  ;;  %v1755_v30 = vld [vmem:[%s15061_s29 + $0x38] sm:$0xff] }
 0x1d3   :  { %v731_v57 = vadd.f32 %v10419_v22, %v730_v51  ;;  %v745_v7 = vmul.f32 %v10445_v43, %v744_v60  ;;  %8563 = vpow2.f32 %v8012_v3  ;;  %vm767_vm5 = vcmp.eq.f32.partialorder %v766_v32, 8.507059e+37  ;;  %v1615_v51 = vld [vmem:[%s15046_s21] sm:$0xff] }
 0x1d4   :  { %v781_v49 = vand.u32 2147483647, %v10464_v53  ;;  %v784_v52 = vor.u32 1.1754944e-38, %v783_v46 }
 0x1d5   :  { %v735_v6 = vsel %vm10474_vm11, %v10419_v22, %v731_v57  ;;  %v1265_v22 = vld [vmem:[%s15044_s5 + $0x160] sm:$0xff]  ;;  %s15092_s5 = sld [smem:[#allocation54_spill]] }
 0x1d6   :  { %v10472_v0 = vpop.eup %8557  ;;  %v740_v10 = vsel %vm737_vm12, %v739_v4, %v735_v6  ;;  %vm782_vm8 = vcmp.eq.f32.partialorder %v781_v49, 8.507059e+37  ;;  %v10568_v5 = vpop.f32.mrf.mxu0 }
 0x1d7   :  { %v8560_v56 = vpop.eup %8559  ;;  %v758_v59 = vmul.f32 %v10472_v0, %v10438_v15  ;;  %1495 = vmatmul.f32.gmra.mxu3 %v1264_v2  ;;  %vm763_vm3 = vweird.f32 %v10472_v0 }
 0x1d8   :  { %8044 = vmatmul.msk.f32.gmra.mxu0 %vm1319_vm2, %v1262_v63  ;;  %v10490_v9 = vadd.f32 1.0, %v8560_v56  ;;  %v10497_v20 = vpop.eup %8561  ;;  %vm764_vm4 = vmor %vm762_vm1, %vm763_vm3  ;;  %v1762_v63 = vld [vmem:[%s15061_s29 + $0x70] sm:$0xff]  ;;  %v1761_v56 = vld [vmem:[%s15061_s29 + $0x68] sm:$0xff] }
 0x1d9   :  { %1430 = vmatmul.f32.gmra.mxu2 %v1263_v62  ;;  %v759_v16 = vsub.f32 1.0, %v758_v59  ;;  %v8564_v12 = vpop.eup %8563  ;;  %v773_v28 = vmul.f32 %v10497_v20, %v10464_v53  ;;  %vm778_vm7 = vweird.f32 %v10497_v20  ;;  %v10557_v62 = vpop.f32.mrf.mxu3  ;;  %1846 = vmatpush.msra.mxu3 %v1762_v63 }
 0x1da   :  { %886 = vmatmul.f32.gmra.mxu1 %v695_v13  ;;  %v746_v13 = vadd.f32 %v10445_v43, %v745_v7  ;;  %8565 = vrcp.f32 %v10490_v9  ;;  %v10515_v29 = vadd.f32 1.0, %v8564_v12  ;;  %vm792_vm9 = vweird.f32 %v10490_v9  ;;  %v1760_v7 = vld [vmem:[%s15061_s29 + $0x60] sm:$0xff] }
 0x1db   :  { %v760_v27 = vmul.f32 %v10472_v0, %v759_v16  ;;  %8567 = vpow2.f32 %v8013_v24  ;;  %v774_v33 = vsub.f32 1.0, %v773_v28  ;;  %v798_v61 = vand.u32 2147483648, %v10490_v9  ;;  %1847 = vmatpush.msra.mxu3 %v1761_v56  ;;  %v10597_v12 = vld [vmem:[%s15064_s8] ss:$0 sm:$0xff]  ;;  %s15230_s8 = sld [smem:[#allocation61_spill]] }
 0x1dc   :  { %v750_v26 = vsel %vm10499_vm15, %v10445_v43, %v746_v13  ;;  %8569 = vrcp.f32 %v10515_v29  ;;  %v10530_v43 = vpop.f32.mrf.mxu2  ;;  %v796_v1 = vand.u32 2147483647, %v10490_v9  ;;  %vm807_vm13 = vweird.f32 %v10515_v29 }
 0x1dd   :  { %v755_v17 = vsel %vm752_vm0, %v754_v25, %v750_v26  ;;  %v761_v31 = vadd.f32 %v10472_v0, %v760_v27  ;;  %v775_v42 = vmul.f32 %v10497_v20, %v774_v33  ;;  %v799_v6 = vor.u32 1.1754944e-38, %v798_v61  ;;  %1848 = vmatpush.msra.mxu3 %v1760_v7  ;;  %v1779_v26 = vld [vmem:[%s15065_s20 + $0x78] sm:$0xff]  ;;  %v1756_v27 = vld [vmem:[%s15061_s29 + $0x40] sm:$0xff] }
 0x1de   :  { %vm797_vm12 = vcmp.eq.f32.partialorder %v796_v1, 8.507059e+37  ;;  %v813_v14 = vand.u32 2147483648, %v10515_v29  ;;  %v10594_v24 = vpop.f32.mrf.mxu0  ;;  %1780 = vmatpush.msra.mxu2 %v1779_v26  ;;  %v1390_v32 = vadd.f32 %v10597_v12, %v10530_v43  ;;  %v1778_v43 = vld [vmem:[%s15065_s20 + $0x70] sm:$0xff]  ;;  %v1748_v61 = vld [vmem:[%s15061_s29] sm:$0xff] }
 0x1df   :  { %1498 = vmatmul.f32.gmra.mxu3 %v1267_v21  ;;  %v765_v41 = vsel %vm764_vm4, %v10472_v0, %v761_v31  ;;  %v776_v48 = vadd.f32 %v10497_v20, %v775_v42 }
 0x1e0   :  { %8045 = vmatmul.msk.f32.gmra.mxu0 %vm1319_vm2, %v1265_v22  ;;  %v10522_v38 = vpop.eup %8565  ;;  %v770_v45 = vsel %vm767_vm5, %v769_v39, %v765_v41  ;;  %1849 = vmatpush.msra.mxu3 %v1759_v11  ;;  %v1757_v22 = vld [vmem:[%s15061_s29 + $0x48] sm:$0xff]  ;;  %v814_v25 = vor.u32 1.1754944e-38, %v813_v14  ;;  %v1455_v42 = vadd.f32 %v10537_v47, %v1390_v32 }
 0x1e1   :  { %1433 = vmatmul.f32.gmra.mxu2 %v1266_v19  ;;  %v8568_v40 = vpop.eup %8567  ;;  %v788_v15 = vmul.f32 %v10522_v38, %v10490_v9  ;;  %vm793_vm10 = vweird.f32 %v10522_v38  ;;  %v10584_v16 = vpop.f32.mrf.mxu3  ;;  %v1753_v41 = vld [vmem:[%s15061_s29 + $0x28] sm:$0xff] }
 0x1e2   :  { %889 = vmatmul.f32.gmra.mxu1 %v710_v34  ;;  %v1616_v34 = vld [vmem:[%s15046_s21 + $0x8] sm:$0xff]  ;;  %v10534_v44 = vadd.f32 1.0, %v8568_v40  ;;  %v10544_v37 = vpop.eup %8569  ;;  %vm10564_vm11 = vmor %vm792_vm9, %vm793_vm10  ;;  %1850 = vmatpush.msra.mxu3 %v1758_v18  ;;  %v1520_v47 = vadd.f32 %v10541_v50, %v1455_v42  ;;  %s15144_s21 = sld [smem:[#allocation60_spill]] }
 0x1e3   :  { %1649 = vmatpush.msra.mxu1 %v1616_v34  ;;  %v789_v36 = vsub.f32 1.0, %v788_v15  ;;  %v803_v53 = vmul.f32 %v10544_v37, %v10515_v29  ;;  %vm808_vm14 = vweird.f32 %v10544_v37  ;;  %v1754_v34 = vld [vmem:[%s15061_s29 + $0x30] sm:$0xff]  ;;  %1781 = vmatpush.msra.mxu2 %v1778_v43 }
 0x1e4   :  { %8571 = vrcp.f32 %v10534_v44  ;;  %v10551_v57 = vpop.f32.mrf.mxu2  ;;  %vm10589_vm15 = vmor %vm807_vm13, %vm808_vm14  ;;  %1851 = vmatpush.msra.mxu3 %v1757_v22  ;;  %vm822_vm1 = vweird.f32 %v10534_v44  ;;  %v828_v33 = vand.u32 2147483648, %v10534_v44 }
 0x1e5   :  { %1650 = vmatpush.msra.mxu1 %v1615_v51  ;;  %v790_v55 = vmul.f32 %v10522_v38, %v789_v36  ;;  %v804_v2 = vsub.f32 1.0, %v803_v53  ;;  %v1393_v51 = vadd.f32 %v10597_v12, %v10551_v57  ;;  %v1583_v53 = vmul.f32 0.01, %v1520_v47 }
 0x1e6   :  { %1852 = vmatpush.msra.mxu3 %v1756_v27  ;;  %v829_v15 = vor.u32 1.1754944e-38, %v828_v33  ;;  %v1528_v46 = vpop.f32.mrf.mxu0 }
 0x1e7   :  { %v791_v0 = vadd.f32 %v10522_v38, %v790_v55  ;;  %v805_v8 = vmul.f32 %v10544_v37, %v804_v2  ;;  %v1458_v58 = vadd.f32 %v10557_v62, %v1393_v51 }
 0x1e8   :  { %8046 = vmatmul.msk.f32.gmra.mxu0 %vm1319_vm2, %v1268_v35  ;;  %vm779_vm2 = vmor %vm777_vm6, %vm778_vm7  ;;  %1853 = vmatpush.msra.mxu3 %v1755_v30  ;;  %vm1567_vm6 = vcmp.gt.f32.partialorder %v1520_v47, 0.0 }
 0x1e9   :  { %v795_v59 = vsel %vm10564_vm11, %v10522_v38, %v791_v0  ;;  %v806_v19 = vadd.f32 %v10544_v37, %v805_v8  ;;  %v826_v38 = vand.u32 2147483647, %v10534_v44  ;;  %v10616_v39 = vpop.f32.mrf.mxu3  ;;  %v1523_v0 = vadd.f32 %v10568_v5, %v1458_v58 }
 0x1ea   :  { %892 = vmatmul.f32.gmra.mxu1 %v725_v54  ;;  %v780_v54 = vsel %vm779_vm2, %v10497_v20, %v776_v48  ;;  %v10562_v3 = vpop.eup %8571  ;;  %v800_v13 = vsel %vm797_vm12, %v799_v6, %v795_v59  ;;  %v811_v20 = vand.u32 2147483647, %v10515_v29  ;;  %1854 = vmatpush.msra.mxu3 %v1754_v34  ;;  %v1751_v48 = vld [vmem:[%s15061_s29 + $0x18] sm:$0xff]  ;;  %v1599_v1 = vsel %vm1567_vm6, %v1520_v47, %v1583_v53  ;;  %v1776_v6 = vld [vmem:[%s15065_s20 + $0x60] sm:$0xff] }
 0x1eb   :  { %v785_v60 = vsel %vm782_vm8, %v784_v52, %v780_v54  ;;  %v818_v9 = vmul.f32 %v10562_v3, %v10534_v44  ;;  %v810_v28 = vsel %vm10589_vm15, %v10544_v37, %v806_v19  ;;  %vm823_vm3 = vweird.f32 %v10562_v3  ;;  %v1750_v37 = vld [vmem:[%s15061_s29 + $0x10] sm:$0xff]  ;;  %v1749_v52 = vld [vmem:[%s15061_s29 + $0x8] sm:$0xff]  ;;  %v10636_v54 = vld [vmem:[%s15070_s27] ss:$0 sm:$0xff]  ;;  %s15283_s27 = sld [smem:[#allocation49_spill]] }
 0x1ec   :  { %vm812_vm0 = vcmp.eq.f32.partialorder %v811_v20, 8.507059e+37  ;;  %vm10618_vm4 = vmor %vm822_vm1, %vm823_vm3  ;;  %1855 = vmatpush.msra.mxu3 %v1753_v41  ;;  %vm827_vm5 = vcmp.eq.f32.partialorder %v826_v38, 8.507059e+37  ;;  %v1584_v56 = vmul.f32 0.01, %v1523_v0  ;;  %vm1568_vm7 = vcmp.gt.f32.partialorder %v1523_v0, 0.0 }
 0x1ed   :  { %v819_v23 = vsub.f32 1.0, %v818_v9  ;;  %v815_v31 = vsel %vm812_vm0, %v814_v25, %v810_v28 }
 0x1ee   :  { %v1531_v63 = vpop.f32.mrf.mxu0  ;;  %v1600_v9 = vsel %vm1568_vm7, %v1523_v0, %v1584_v56 }
 0x1ef   :  { %v820_v29 = vmul.f32 %v10562_v3, %v819_v23  ;;  %v1775_v23 = vld [vmem:[%s15065_s20 + $0x58] sm:$0xff] }
 0x1f1   :  { %v821_v35 = vadd.f32 %v10562_v3, %v820_v29  ;;  %v1466_v55 = vpop.f32.mrf.mxu3 }
 0x1f2   :  { %895 = vmatmul.f32.gmra.mxu1 %v740_v10  ;;  %v10578_v10 = vpop.f32.mrf.mxu2 }
 0x1f3   :  { %v825_v44 = vsel %vm10618_vm4, %v10562_v3, %v821_v35  ;;  %v1396_v2 = vadd.f32 %v10597_v12, %v10578_v10  ;;  %v1774_v35 = vld [vmem:[%s15065_s20 + $0x50] sm:$0xff] }
 0x1f4   :  { %v830_v36 = vsel %vm827_vm5, %v829_v15, %v825_v44 }
 0x1f5   :  { %v1461_v62 = vadd.f32 %v10584_v16, %v1396_v2 }
 0x1f6   :  { %v10653_v14 = vpop.f32.mrf.mxu0 }
 0x1f7   :  { %v1526_v8 = vadd.f32 %v10594_v24, %v1461_v62 }
 0x1f9   :  { %v10647_v7 = vpop.f32.mrf.mxu3  ;;  %v1585_v20 = vmul.f32 0.01, %v1526_v8  ;;  %vm1569_vm2 = vcmp.gt.f32.partialorder %v1526_v8, 0.0 }
 0x1fa   :  { %898 = vmatmul.f32.gmra.mxu1 %v755_v17  ;;  %v10605_v17 = vpop.f32.mrf.mxu2 }
 0x1fb   :  { %v1399_v10 = vadd.f32 %v10597_v12, %v10605_v17  ;;  %v1601_v26 = vsel %vm1569_vm2, %v1526_v8, %v1585_v20 }
 0x1fd   :  { %v1464_v19 = vadd.f32 %v10616_v39, %v1399_v10 }
 0x1ff   :  { %v1529_v25 = vadd.f32 %v1528_v46, %v1464_v19 }
 0x201   :  { %v10660_v24 = vpop.f32.mrf.mxu3  ;;  %v1586_v34 = vmul.f32 0.01, %v1529_v25  ;;  %vm1570_vm8 = vcmp.gt.f32.partialorder %v1529_v25, 0.0 }
 0x202   :  { %901 = vmatmul.f32.gmra.mxu1 %v770_v45  ;;  %v1752_v45 = vld [vmem:[%s15061_s29 + $0x20] sm:$0xff]  ;;  %v1401_v49 = vpop.f32.mrf.mxu2  ;;  %s15159_s29 = sld [smem:[#allocation59_spill]] }
 0x203   :  { %1856 = vmatpush.msra.mxu3 %v1752_v45  ;;  %v1402_v27 = vadd.f32 %v10597_v12, %v1401_v49  ;;  %v1602_v44 = vsel %vm1570_vm8, %v1529_v25, %v1586_v34 }
 0x205   :  { %1857 = vmatpush.msra.mxu3 %v1751_v48  ;;  %v1467_v33 = vadd.f32 %v1466_v55, %v1402_v27 }
 0x207   :  { %1858 = vmatpush.msra.mxu3 %v1750_v37  ;;  %v1532_v45 = vadd.f32 %v1531_v63, %v1467_v33 }
 0x209   :  { %1859 = vmatpush.msra.mxu3 %v1749_v52  ;;  %v10673_v47 = vpop.f32.mrf.mxu3  ;;  %vm1571_vm13 = vcmp.gt.f32.partialorder %v1532_v45, 0.0 }
 0x20a   :  { %904 = vmatmul.f32.gmra.mxu1 %v785_v60  ;;  %v1777_v60 = vld [vmem:[%s15065_s20 + $0x68] sm:$0xff]  ;;  %v1404_v4 = vpop.f32.mrf.mxu2 }
 0x20b   :  { %1782 = vmatpush.msra.mxu2 %v1777_v60  ;;  %1860 = vmatpush.msra.mxu3 %v1748_v61  ;;  %v1405_v46 = vadd.f32 %v10597_v12, %v1404_v4  ;;  %v1587_v61 = vmul.f32 0.01, %v1532_v45 }
 0x20d   :  { %1783 = vmatpush.msra.mxu2 %v1776_v6  ;;  %v1470_v60 = vadd.f32 %v10647_v7, %v1405_v46  ;;  %v1603_v6 = vsel %vm1571_vm13, %v1532_v45, %v1587_v61  ;;  %v1771_v45 = vld [vmem:[%s15065_s20 + $0x38] sm:$0xff] }
 0x20f   :  { %1784 = vmatpush.msra.mxu2 %v1775_v23  ;;  %v1535_v56 = vadd.f32 %v10653_v14, %v1470_v60  ;;  %v1772_v23 = vld [vmem:[%s15065_s20 + $0x40] sm:$0xff] }
 0x211   :  { %1785 = vmatpush.msra.mxu2 %v1774_v35  ;;  %v1588_v20 = vmul.f32 0.01, %v1535_v56  ;;  %vm1572_vm3 = vcmp.gt.f32.partialorder %v1535_v56, 0.0 }
 0x212   :  { %907 = vmatmul.f32.gmra.mxu1 %v800_v13  ;;  %v10655_v18 = vpop.f32.mrf.mxu2 }
 0x213   :  { %v1408_v7 = vadd.f32 %v10597_v12, %v10655_v18 }
 0x215   :  { %v1473_v19 = vadd.f32 %v10660_v24, %v1408_v7  ;;  %v1604_v24 = vsel %vm1572_vm3, %v1535_v56, %v1588_v20  ;;  %v1770_v56 = vld [vmem:[%s15065_s20 + $0x30] sm:$0xff] }
 0x21a   :  { %910 = vmatmul.f32.gmra.mxu1 %v815_v31  ;;  %v10665_v32 = vpop.f32.mrf.mxu0 }
 0x222   :  { %913 = vmatmul.f32.gmra.mxu1 %v830_v36 }
 0x224   :  { %v10669_v39 = vpop.f32.mrf.mxu2  ;;  %v10681_v63 = vpop.f32.mrf.mxu0 }
 0x227   :  { %v869_v50 = vpop.f32.mrf.mxu1 }
 0x228   :  { %v870_v57 = vadd.f32 %v10636_v54, %v869_v50  ;;  %v1773_v50 = vld [vmem:[%s15065_s20 + $0x48] sm:$0xff] }
 0x229   :  { %1786 = vmatpush.msra.mxu2 %v1773_v50 }
 0x22a   :  { %v8014_v3 = vmul.f32 -1.442695, %v870_v57  ;;  %1651 = vmatmul.f32.vlgmr.msra.gmra.mxu1 %v1599_v1 }
 0x22b   :  { %1787 = vmatpush.msra.mxu2 %v1772_v23 }
 0x22c   :  { %8573 = vpow2.f32 %v8014_v3  ;;  %v10686_v62 = vpop.f32.mrf.mxu2 }
 0x22d   :  { %1788 = vmatpush.msra.mxu2 %v1771_v45 }
 0x22f   :  { %v872_v59 = vpop.f32.mrf.mxu1  ;;  %1789 = vmatpush.msra.mxu2 %v1770_v56 }
 0x230   :  { %v873_v5 = vadd.f32 %v10636_v54, %v872_v59 }
 0x232   :  { %v8574_v11 = vpop.eup %8573  ;;  %v8015_v13 = vmul.f32 -1.442695, %v873_v5  ;;  %1654 = vmatmul.f32.gmra.mxu1 %v1600_v9 }
 0x233   :  { %v965_v16 = vadd.f32 1.0, %v8574_v11 }
 0x234   :  { %8575 = vpow2.f32 %v8015_v13  ;;  %v1416_v35 = vpop.f32.mrf.mxu2 }
 0x235   :  { %8577 = vrcp.f32 %v965_v16  ;;  %v992_v41 = vand.u32 2147483648, %v965_v16  ;;  %v990_v43 = vand.u32 2147483647, %v965_v16  ;;  %vm986_vm10 = vweird.f32 %v965_v16 }
 0x237   :  { %v875_v21 = vpop.f32.mrf.mxu1  ;;  %v993_v52 = vor.u32 1.1754944e-38, %v992_v41  ;;  %vm991_vm12 = vcmp.eq.f32.partialorder %v990_v43, 8.507059e+37 }
 0x238   :  { %v876_v22 = vadd.f32 %v10636_v54, %v875_v21 }
 0x23a   :  { %v8576_v28 = vpop.eup %8575  ;;  %v8016_v29 = vmul.f32 -1.442695, %v876_v22  ;;  %1657 = vmatmul.f32.gmra.mxu1 %v1601_v26 }
 0x23b   :  { %v8578_v17 = vpop.eup %8577  ;;  %v10663_v30 = vadd.f32 1.0, %v8576_v28 }
 0x23c   :  { %8579 = vpow2.f32 %v8016_v29  ;;  %v982_v31 = vmul.f32 %v8578_v17, %v965_v16  ;;  %vm987_vm9 = vweird.f32 %v8578_v17  ;;  %v10695_v16 = vpop.f32.mrf.mxu3  ;;  %v10703_v29 = vpop.f32.mrf.mxu0 }
 0x23d   :  { %8581 = vrcp.f32 %v10663_v30  ;;  %vm988_vm11 = vmor %vm986_vm10, %vm987_vm9  ;;  %v1007_v1 = vand.u32 2147483648, %v10663_v30  ;;  %v1005_v4 = vand.u32 2147483647, %v10663_v30  ;;  %vm1001_vm15 = vweird.f32 %v10663_v30 }
 0x23e   :  { %v983_v38 = vsub.f32 1.0, %v982_v31 }
 0x23f   :  { %v878_v40 = vpop.f32.mrf.mxu1  ;;  %v1008_v11 = vor.u32 1.1754944e-38, %v1007_v1  ;;  %vm1006_vm1 = vcmp.eq.f32.partialorder %v1005_v4, 8.507059e+37 }
 0x240   :  { %v879_v42 = vadd.f32 %v10636_v54, %v878_v40  ;;  %v984_v15 = vmul.f32 %v8578_v17, %v983_v38 }
 0x242   :  { %v8580_v48 = vpop.eup %8579  ;;  %v8017_v49 = vmul.f32 -1.442695, %v879_v42  ;;  %1660 = vmatmul.f32.gmra.mxu1 %v1602_v44  ;;  %v985_v36 = vadd.f32 %v8578_v17, %v984_v15 }
 0x243   :  { %v8582_v51 = vpop.eup %8581  ;;  %v10675_v37 = vadd.f32 1.0, %v8580_v48 }
 0x244   :  { %8583 = vpow2.f32 %v8017_v49  ;;  %v989_v55 = vsel %vm988_vm11, %v8578_v17, %v985_v36  ;;  %v997_v53 = vmul.f32 %v8582_v51, %v10663_v30  ;;  %vm1002_vm14 = vweird.f32 %v8582_v51  ;;  %v1481_v46 = vpop.f32.mrf.mxu3  ;;  %v1546_v61 = vpop.f32.mrf.mxu0 }
 0x245   :  { %8585 = vrcp.f32 %v10675_v37  ;;  %v994_v58 = vsel %vm991_vm12, %v993_v52, %v989_v55  ;;  %vm1003_vm0 = vmor %vm1001_vm15, %vm1002_vm14  ;;  %v1022_v25 = vand.u32 2147483648, %v10675_v37  ;;  %v1020_v28 = vand.u32 2147483647, %v10675_v37 }
 0x246   :  { %1861 = vmatmul.f32.vlgmr.msra.gmra.mxu3 %v994_v58  ;;  %v998_v57 = vsub.f32 1.0, %v997_v53  ;;  %v1538_v17 = vadd.f32 %v10665_v32, %v1473_v19  ;;  %v1411_v30 = vadd.f32 %v10597_v12, %v10669_v39  ;;  %vm1016_vm5 = vweird.f32 %v10675_v37 }
 0x247   :  { %v881_v0 = vpop.f32.mrf.mxu1  ;;  %v1023_v41 = vor.u32 1.1754944e-38, %v1022_v25  ;;  %vm1021_vm7 = vcmp.eq.f32.partialorder %v1020_v28, 8.507059e+37 }
 0x248   :  { %v882_v2 = vadd.f32 %v10636_v54, %v881_v0  ;;  %v999_v3 = vmul.f32 %v8582_v51, %v998_v57  ;;  %v1476_v15 = vadd.f32 %v10673_v47, %v1411_v30  ;;  %v1589_v43 = vmul.f32 0.01, %v1538_v17 }
 0x249   :  { %vm1573_vm2 = vcmp.gt.f32.partialorder %v1538_v17, 0.0  ;;  %v1414_v47 = vadd.f32 %v10597_v12, %v10686_v62 }
 0x24a   :  { %v8584_v59 = vpop.eup %8583  ;;  %v8018_v5 = vmul.f32 -1.442695, %v882_v2  ;;  %1663 = vmatmul.f32.gmra.mxu1 %v1603_v6  ;;  %v1000_v8 = vadd.f32 %v8582_v51, %v999_v3  ;;  %v1541_v52 = vadd.f32 %v10681_v63, %v1476_v15  ;;  %v1605_v55 = vsel %vm1573_vm2, %v1538_v17, %v1589_v43  ;;  %v1419_v2 = vpop.f32.mrf.mxu2  ;;  %v1769_v17 = vld [vmem:[%s15065_s20 + $0x28] sm:$0xff] }
 0x24b   :  { %v8586_v9 = vpop.eup %8585  ;;  %v10692_v10 = vadd.f32 1.0, %v8584_v59  ;;  %v1479_v4 = vadd.f32 %v10695_v16, %v1414_v47  ;;  %1790 = vmatpush.msra.mxu2 %v1769_v17 }
 0x24c   :  { %8587 = vpow2.f32 %v8018_v5  ;;  %v1004_v13 = vsel %vm1003_vm0, %v8582_v51, %v1000_v8  ;;  %v1012_v14 = vmul.f32 %v8586_v9, %v10675_v37  ;;  %vm1017_vm4 = vweird.f32 %v8586_v9 }
 0x24d   :  { %8589 = vrcp.f32 %v10692_v10  ;;  %v1009_v18 = vsel %vm1006_vm1, %v1008_v11, %v1004_v13  ;;  %vm1018_vm6 = vmor %vm1016_vm5, %vm1017_vm4  ;;  %v1037_v49 = vand.u32 2147483648, %v10692_v10  ;;  %v1035_v37 = vand.u32 2147483647, %v10692_v10 }
 0x24e   :  { %1864 = vmatmul.f32.gmra.mxu3 %v1009_v18  ;;  %v1013_v21 = vsub.f32 1.0, %v1012_v14  ;;  %vm1031_vm9 = vweird.f32 %v10692_v10  ;;  %v1590_v62 = vmul.f32 0.01, %v1541_v52  ;;  %vm1574_vm12 = vcmp.gt.f32.partialorder %v1541_v52, 0.0 }
 0x24f   :  { %v884_v22 = vpop.f32.mrf.mxu1  ;;  %v1038_v0 = vor.u32 1.1754944e-38, %v1037_v49  ;;  %vm1036_vm11 = vcmp.eq.f32.partialorder %v1035_v37, 8.507059e+37  ;;  %v1544_v11 = vadd.f32 %v10703_v29, %v1479_v4  ;;  %v1417_v14 = vadd.f32 %v10597_v12, %v1416_v35 }
 0x250   :  { %v885_v26 = vadd.f32 %v10636_v54, %v884_v22  ;;  %v1014_v27 = vmul.f32 %v8586_v9, %v1013_v21  ;;  %v1606_v13 = vsel %vm1574_vm12, %v1541_v52, %v1590_v62  ;;  %v1768_v52 = vld [vmem:[%s15065_s20 + $0x20] sm:$0xff] }
 0x251   :  { %v1482_v28 = vadd.f32 %v1481_v46, %v1417_v14  ;;  %v1591_v29 = vmul.f32 0.01, %v1544_v11  ;;  %vm1575_vm1 = vcmp.gt.f32.partialorder %v1544_v11, 0.0  ;;  %1791 = vmatpush.msra.mxu2 %v1768_v52 }
 0x252   :  { %v8588_v31 = vpop.eup %8587  ;;  %v8019_v33 = vmul.f32 -1.442695, %v885_v26  ;;  %1666 = vmatmul.f32.gmra.mxu1 %v1604_v24  ;;  %v1015_v34 = vadd.f32 %v8586_v9, %v1014_v27  ;;  %v1549_v26 = vpop.f32.mrf.mxu0 }
 0x253   :  { %v8590_v38 = vpop.eup %8589  ;;  %v10709_v40 = vadd.f32 1.0, %v8588_v31  ;;  %v1422_v30 = vpop.f32.mrf.mxu2 }
 0x254   :  { %8591 = vpow2.f32 %v8019_v33  ;;  %v1019_v42 = vsel %vm1018_vm6, %v8586_v9, %v1015_v34  ;;  %v1027_v32 = vmul.f32 %v8590_v38, %v10692_v10  ;;  %vm1032_vm8 = vweird.f32 %v8590_v38  ;;  %v1484_v10 = vpop.f32.mrf.mxu3 }
 0x255   :  { %8593 = vrcp.f32 %v10709_v40  ;;  %v1024_v39 = vsel %vm1021_vm7, %v1023_v41, %v1019_v42  ;;  %vm1033_vm10 = vmor %vm1031_vm9, %vm1032_vm8  ;;  %v1052_v59 = vand.u32 2147483648, %v10709_v40  ;;  %v1050_v9 = vand.u32 2147483647, %v10709_v40 }
 0x256   :  { %1867 = vmatmul.f32.gmra.mxu3 %v1024_v39  ;;  %v1028_v44 = vsub.f32 1.0, %v1027_v32  ;;  %vm1046_vm14 = vweird.f32 %v10709_v40  ;;  %v1607_v41 = vsel %vm1575_vm1, %v1544_v11, %v1591_v29  ;;  %v1420_v42 = vadd.f32 %v10597_v12, %v1419_v2  ;;  %v1767_v11 = vld [vmem:[%s15065_s20 + $0x18] sm:$0xff] }
 0x257   :  { %v887_v48 = vpop.f32.mrf.mxu1  ;;  %v1053_v21 = vor.u32 1.1754944e-38, %v1052_v59  ;;  %vm1051_vm0 = vcmp.eq.f32.partialorder %v1050_v9, 8.507059e+37  ;;  %1792 = vmatpush.msra.mxu2 %v1767_v11 }
 0x258   :  { %v888_v36 = vadd.f32 %v10636_v54, %v887_v48  ;;  %v1029_v51 = vmul.f32 %v8590_v38, %v1028_v44 }
 0x25a   :  { %v8592_v53 = vpop.eup %8591  ;;  %v8020_v58 = vmul.f32 -1.442695, %v888_v36  ;;  %1669 = vmatmul.f32.gmra.mxu1 %v1605_v55  ;;  %v1030_v60 = vadd.f32 %v8590_v38, %v1029_v51  ;;  %v1485_v51 = vadd.f32 %v1484_v10, %v1420_v42  ;;  %v1552_v47 = vpop.f32.mrf.mxu0 }
 0x25b   :  { %v8594_v50 = vpop.eup %8593  ;;  %v10722_v57 = vadd.f32 1.0, %v8592_v53 }
 0x25c   :  { %8595 = vpow2.f32 %v8020_v58  ;;  %v1034_v1 = vsel %vm1033_vm10, %v8590_v38, %v1030_v60  ;;  %v1042_v63 = vmul.f32 %v8594_v50, %v10709_v40  ;;  %vm1047_vm13 = vweird.f32 %v8594_v50  ;;  %v1487_v43 = vpop.f32.mrf.mxu3 }
 0x25d   :  { %8597 = vrcp.f32 %v10722_v57  ;;  %v1039_v3 = vsel %vm1036_vm11, %v1038_v0, %v1034_v1  ;;  %vm1048_vm15 = vmor %vm1046_vm14, %vm1047_vm13  ;;  %v1067_v33 = vand.u32 2147483648, %v10722_v57  ;;  %v1065_v38 = vand.u32 2147483647, %v10722_v57 }
 0x25e   :  { %1870 = vmatmul.f32.gmra.mxu3 %v1039_v3  ;;  %v1043_v6 = vsub.f32 1.0, %v1042_v63  ;;  %v1547_v40 = vadd.f32 %v1546_v61, %v1482_v28  ;;  %vm1061_vm4 = vweird.f32 %v10722_v57  ;;  %v1550_v0 = vadd.f32 %v1549_v26, %v1485_v51 }
 0x25f   :  { %v890_v7 = vpop.f32.mrf.mxu1  ;;  %v1068_v46 = vor.u32 1.1754944e-38, %v1067_v33  ;;  %vm1066_vm6 = vcmp.eq.f32.partialorder %v1065_v38, 8.507059e+37  ;;  %v1423_v63 = vadd.f32 %v10597_v12, %v1422_v30 }
 0x260   :  { %v891_v5 = vadd.f32 %v10636_v54, %v890_v7  ;;  %v1044_v8 = vmul.f32 %v8594_v50, %v1043_v6  ;;  %v1592_v37 = vmul.f32 0.01, %v1547_v40  ;;  %vm1576_vm7 = vcmp.gt.f32.partialorder %v1547_v40, 0.0 }
 0x261   :  { %v1488_v9 = vadd.f32 %v1487_v43, %v1423_v63  ;;  %v1593_v10 = vmul.f32 0.01, %v1550_v0  ;;  %vm1577_vm11 = vcmp.gt.f32.partialorder %v1550_v0, 0.0 }
 0x262   :  { %v8596_v16 = vpop.eup %8595  ;;  %v8021_v18 = vmul.f32 -1.442695, %v891_v5  ;;  %1672 = vmatmul.f32.gmra.mxu1 %v1606_v13  ;;  %v1045_v19 = vadd.f32 %v8594_v50, %v1044_v8  ;;  %v1608_v1 = vsel %vm1576_vm7, %v1547_v40, %v1592_v37  ;;  %v1766_v40 = vld [vmem:[%s15065_s20 + $0x10] sm:$0xff] }
 0x263   :  { %v8598_v20 = vpop.eup %8597  ;;  %v10734_v23 = vadd.f32 1.0, %v8596_v16  ;;  %1793 = vmatpush.msra.mxu2 %v1766_v40 }
 0x264   :  { %8599 = vpow2.f32 %v8021_v18  ;;  %v1049_v22 = vsel %vm1048_vm15, %v8594_v50, %v1045_v19  ;;  %v1057_v25 = vmul.f32 %v8598_v20, %v10722_v57  ;;  %vm1062_vm3 = vweird.f32 %v8598_v20  ;;  %v1425_v57 = vpop.f32.mrf.mxu2  ;;  %v1490_v5 = vpop.f32.mrf.mxu3 }
 0x265   :  { %8601 = vrcp.f32 %v10734_v23  ;;  %v1054_v27 = vsel %vm1051_vm0, %v1053_v21, %v1049_v22  ;;  %vm1063_vm5 = vmor %vm1061_vm4, %vm1062_vm3  ;;  %v1082_v58 = vand.u32 2147483648, %v10734_v23  ;;  %v1080_v50 = vand.u32 2147483647, %v10734_v23 }
 0x266   :  { %1873 = vmatmul.f32.gmra.mxu3 %v1054_v27  ;;  %v1058_v24 = vsub.f32 1.0, %v1057_v25  ;;  %vm1076_vm8 = vweird.f32 %v10734_v23  ;;  %v1553_v21 = vadd.f32 %v1552_v47, %v1488_v9  ;;  %v1609_v22 = vsel %vm1577_vm11, %v1550_v0, %v1593_v10  ;;  %v1765_v0 = vld [vmem:[%s15065_s20 + $0x8] sm:$0xff] }
 0x267   :  { %v893_v31 = vpop.f32.mrf.mxu1  ;;  %v1083_v6 = vor.u32 1.1754944e-38, %v1082_v58  ;;  %vm1081_vm10 = vcmp.eq.f32.partialorder %v1080_v50, 8.507059e+37  ;;  %v1426_v25 = vadd.f32 %v10597_v12, %v1425_v57  ;;  %1794 = vmatpush.msra.mxu2 %v1765_v0 }
 0x268   :  { %v894_v34 = vadd.f32 %v10636_v54, %v893_v31  ;;  %v1059_v35 = vmul.f32 %v8598_v20, %v1058_v24  ;;  %v1594_v38 = vmul.f32 0.01, %v1553_v21  ;;  %vm1578_vm0 = vcmp.gt.f32.partialorder %v1553_v21, 0.0 }
 0x26a   :  { %v8600_v32 = vpop.eup %8599  ;;  %v8022_v39 = vmul.f32 -1.442695, %v894_v34  ;;  %1675 = vmatmul.f32.gmra.mxu1 %v1607_v41  ;;  %v1060_v15 = vadd.f32 %v8598_v20, %v1059_v35  ;;  %v1491_v35 = vadd.f32 %v1490_v5, %v1426_v25 }
 0x26b   :  { %v8602_v45 = vpop.eup %8601  ;;  %v10744_v44 = vadd.f32 1.0, %v8600_v32 }
 0x26c   :  { %8603 = vpow2.f32 %v8022_v39  ;;  %v1064_v48 = vsel %vm1063_vm5, %v8598_v20, %v1060_v15  ;;  %v1072_v49 = vmul.f32 %v8602_v45, %v10734_v23  ;;  %vm1077_vm2 = vweird.f32 %v8602_v45  ;;  %v1555_v23 = vpop.f32.mrf.mxu0  ;;  %v1428_v29 = vpop.f32.mrf.mxu2 }
 0x26d   :  { %8605 = vrcp.f32 %v10744_v44  ;;  %v1069_v36 = vsel %vm1066_vm6, %v1068_v46, %v1064_v48  ;;  %vm1078_vm9 = vmor %vm1076_vm8, %vm1077_vm2  ;;  %v1097_v16 = vand.u32 2147483648, %v10744_v44  ;;  %v1095_v20 = vand.u32 2147483647, %v10744_v44  ;;  %v1493_v42 = vpop.f32.mrf.mxu3 }
 0x26e   :  { %1876 = vmatmul.f32.gmra.mxu3 %v1069_v36  ;;  %v1073_v55 = vsub.f32 1.0, %v1072_v49  ;;  %vm1091_vm13 = vweird.f32 %v10744_v44  ;;  %v1610_v46 = vsel %vm1578_vm0, %v1553_v21, %v1594_v38  ;;  %v1429_v48 = vadd.f32 %v10597_v12, %v1428_v29 }
 0x26f   :  { %v896_v53 = vpop.f32.mrf.mxu1  ;;  %v1098_v30 = vor.u32 1.1754944e-38, %v1097_v16  ;;  %vm1096_vm15 = vcmp.eq.f32.partialorder %v1095_v20, 8.507059e+37 }
 0x270   :  { %v897_v60 = vadd.f32 %v10636_v54, %v896_v53  ;;  %v1074_v61 = vmul.f32 %v8602_v45, %v1073_v55  ;;  %v1494_v50 = vadd.f32 %v1493_v42, %v1429_v48 }
 0x272   :  { %v8604_v2 = vpop.eup %8603  ;;  %v8023_v3 = vmul.f32 -1.442695, %v897_v60  ;;  %1678 = vmatmul.f32.gmra.mxu1 %v1608_v1  ;;  %v1075_v4 = vadd.f32 %v8602_v45, %v1074_v61 }
 0x273   :  { %v8606_v62 = vpop.eup %8605  ;;  %v10754_v56 = vadd.f32 1.0, %v8604_v2 }
 0x274   :  { %8607 = vpow2.f32 %v8023_v3  ;;  %v1079_v7 = vsel %vm1078_vm9, %v8602_v45, %v1075_v4  ;;  %v1087_v59 = vmul.f32 %v8606_v62, %v10744_v44  ;;  %vm1092_vm12 = vweird.f32 %v8606_v62  ;;  %v1558_v37 = vpop.f32.mrf.mxu0  ;;  %v1431_v52 = vpop.f32.mrf.mxu2 }
 0x275   :  { %8609 = vrcp.f32 %v10754_v56  ;;  %v1084_v8 = vsel %vm1081_vm10, %v1083_v6, %v1079_v7  ;;  %vm1093_vm14 = vmor %vm1091_vm13, %vm1092_vm12  ;;  %v1112_v39 = vand.u32 2147483648, %v10754_v56  ;;  %v1110_v45 = vand.u32 2147483647, %v10754_v56  ;;  %v1496_v2 = vpop.f32.mrf.mxu3 }
 0x276   :  { %1879 = vmatmul.f32.gmra.mxu3 %v1084_v8  ;;  %v1088_v13 = vsub.f32 1.0, %v1087_v59  ;;  %v1556_v44 = vadd.f32 %v1555_v23, %v1491_v35  ;;  %vm1106_vm3 = vweird.f32 %v10754_v56  ;;  %v1432_v63 = vadd.f32 %v10597_v12, %v1431_v52  ;;  %v1764_v23 = vld [vmem:[%s15065_s20] sm:$0xff]  ;;  %s15270_s20 = sld [smem:[#allocation63_spill]] }
 0x277   :  { %v899_v14 = vpop.f32.mrf.mxu1  ;;  %v1113_v53 = vor.u32 1.1754944e-38, %v1112_v39  ;;  %vm1111_vm5 = vcmp.eq.f32.partialorder %v1110_v45, 8.507059e+37  ;;  %v1559_v7 = vadd.f32 %v1558_v37, %v1494_v50  ;;  %1795 = vmatpush.msra.mxu2 %v1764_v23 }
 0x278   :  { %v900_v18 = vadd.f32 %v10636_v54, %v899_v14  ;;  %v1089_v19 = vmul.f32 %v8606_v62, %v1088_v13  ;;  %v1595_v57 = vmul.f32 0.01, %v1556_v44  ;;  %vm1579_vm6 = vcmp.gt.f32.partialorder %v1556_v44, 0.0 }
 0x279   :  { %v1497_v10 = vadd.f32 %v1496_v2, %v1432_v63  ;;  %vm1580_vm10 = vcmp.gt.f32.partialorder %v1559_v7, 0.0 }
 0x27a   :  { %v8608_v26 = vpop.eup %8607  ;;  %v8024_v27 = vmul.f32 -1.442695, %v900_v18  ;;  %1681 = vmatmul.f32.gmra.mxu1 %v1609_v22  ;;  %v1090_v28 = vadd.f32 %v8606_v62, %v1089_v19  ;;  %v1611_v59 = vsel %vm1579_vm6, %v1556_v44, %v1595_v57  ;;  %v1596_v22 = vmul.f32 0.01, %v1559_v7 }
 0x27b   :  { %v8610_v17 = vpop.eup %8609  ;;  %v10764_v24 = vadd.f32 1.0, %v8608_v26 }
 0x27c   :  { %8611 = vpow2.f32 %v8024_v27  ;;  %v1094_v31 = vsel %vm1093_vm14, %v8606_v62, %v1090_v28  ;;  %v1102_v33 = vmul.f32 %v8610_v17, %v10754_v56  ;;  %vm1107_vm1 = vweird.f32 %v8610_v17  ;;  %v1561_v11 = vpop.f32.mrf.mxu0  ;;  %v1434_v20 = vpop.f32.mrf.mxu2 }
 0x27d   :  { %8613 = vrcp.f32 %v10764_v24  ;;  %v1099_v34 = vsel %vm1096_vm15, %v1098_v30, %v1094_v31  ;;  %vm1108_vm4 = vmor %vm1106_vm3, %vm1107_vm1  ;;  %v1127_v4 = vand.u32 2147483648, %v10764_v24  ;;  %v1125_v6 = vand.u32 2147483647, %v10764_v24  ;;  %v1499_v31 = vpop.f32.mrf.mxu3 }
 0x27e   :  { %1882 = vmatmul.f32.gmra.mxu3 %v1099_v34  ;;  %v1103_v41 = vsub.f32 1.0, %v1102_v33  ;;  %vm1121_vm2 = vweird.f32 %v10764_v24  ;;  %v1562_v25 = vadd.f32 %v1561_v11, %v1497_v10  ;;  %v1435_v29 = vadd.f32 %v10597_v12, %v1434_v20 }
 0x27f   :  { %v902_v32 = vpop.f32.mrf.mxu1  ;;  %v1128_v16 = vor.u32 1.1754944e-38, %v1127_v4  ;;  %vm1126_vm9 = vcmp.eq.f32.partialorder %v1125_v6, 8.507059e+37  ;;  %v1612_v33 = vsel %vm1580_vm10, %v1559_v7, %v1596_v22 }
 0x280   :  { %v903_v15 = vadd.f32 %v10636_v54, %v902_v32  ;;  %v1104_v43 = vmul.f32 %v8610_v17, %v1103_v41  ;;  %vm1581_vm13 = vcmp.gt.f32.partialorder %v1562_v25, 0.0  ;;  %v1500_v42 = vadd.f32 %v1499_v31, %v1435_v29 }
 0x281   :  { %v1597_v32 = vmul.f32 0.01, %v1562_v25 }
 0x282   :  { %v8612_v49 = vpop.eup %8611  ;;  %v8025_v36 = vmul.f32 -1.442695, %v903_v15  ;;  %1684 = vmatmul.f32.gmra.mxu1 %v1610_v46  ;;  %v1105_v51 = vadd.f32 %v8610_v17, %v1104_v43 }
 0x283   :  { %v8614_v55 = vpop.eup %8613  ;;  %v10774_v47 = vadd.f32 1.0, %v8612_v49  ;;  %v1613_v48 = vsel %vm1581_vm13, %v1562_v25, %v1597_v32 }
 0x284   :  { %8615 = vpow2.f32 %v8025_v36  ;;  %v1109_v58 = vsel %vm1108_vm4, %v8610_v17, %v1105_v51  ;;  %v1117_v60 = vmul.f32 %v8614_v55, %v10764_v24  ;;  %vm1122_vm7 = vweird.f32 %v8614_v55  ;;  %v1564_v15 = vpop.f32.mrf.mxu0 }
 0x285   :  { %8617 = vrcp.f32 %v10774_v47  ;;  %v1114_v61 = vsel %vm1111_vm5, %v1113_v53, %v1109_v58  ;;  %vm1123_vm8 = vmor %vm1121_vm2, %vm1122_vm7  ;;  %v1142_v28 = vand.u32 2147483648, %v10774_v47  ;;  %v1140_v30 = vand.u32 2147483647, %v10774_v47 }
 0x286   :  { %1885 = vmatmul.f32.gmra.mxu3 %v1114_v61  ;;  %v1118_v1 = vsub.f32 1.0, %v1117_v60  ;;  %vm1136_vm12 = vweird.f32 %v10774_v47  ;;  %v1565_v49 = vadd.f32 %v1564_v15, %v1500_v42 }
 0x287   :  { %v905_v3 = vpop.f32.mrf.mxu1  ;;  %v1143_v12 = vor.u32 1.1754944e-38, %v1142_v28  ;;  %vm1141_vm15 = vcmp.eq.f32.partialorder %v1140_v30, 8.507059e+37 }
 0x288   :  { %v906_v62 = vadd.f32 %v10636_v54, %v905_v3  ;;  %v1119_v56 = vmul.f32 %v8614_v55, %v1118_v1  ;;  %vm1582_vm4 = vcmp.gt.f32.partialorder %v1565_v49, 0.0  ;;  %v1598_v57 = vmul.f32 0.01, %v1565_v49 }
 0x28a   :  { %v8616_v5 = vpop.eup %8615  ;;  %v8026_v8 = vmul.f32 -1.442695, %v906_v62  ;;  %1687 = vmatmul.f32.gmra.mxu1 %v1611_v59  ;;  %v1120_v9 = vadd.f32 %v8614_v55, %v1119_v56  ;;  %v1614_v4 = vsel %vm1582_vm4, %v1565_v49, %v1598_v57  ;;  %v1992_v59 = vld [vmem:[%s15071_s23 + $0x70] sm:$0xff] }
 0x28b   :  { %v8618_v13 = vpop.eup %8617  ;;  %v10784_v14 = vadd.f32 1.0, %v8616_v5 }
 0x28c   :  { %8619 = vpow2.f32 %v8026_v8  ;;  %v1124_v18 = vsel %vm1123_vm8, %v8614_v55, %v1120_v9  ;;  %v1132_v19 = vmul.f32 %v8618_v13, %v10774_v47  ;;  %vm1137_vm11 = vweird.f32 %v8618_v13  ;;  %v1993_v55 = vld [vmem:[%s15071_s23 + $0x78] sm:$0xff] }
 0x28d   :  { %8621 = vrcp.f32 %v10784_v14  ;;  %v1129_v21 = vsel %vm1126_vm9, %v1128_v16, %v1124_v18  ;;  %vm1138_vm14 = vmor %vm1136_vm12, %vm1137_vm11  ;;  %v1157_v36 = vand.u32 2147483648, %v10784_v14  ;;  %v1155_v52 = vand.u32 2147483647, %v10784_v14  ;;  %1998 = vmatpush.msra.mxu0 %v1993_v55 }
 0x28e   :  { %1888 = vmatmul.f32.gmra.mxu3 %v1129_v21  ;;  %v1133_v26 = vsub.f32 1.0, %v1132_v19  ;;  %vm1151_vm1 = vweird.f32 %v10784_v14 }
 0x28f   :  { %v908_v27 = vpop.f32.mrf.mxu1  ;;  %v1158_v50 = vor.u32 1.1754944e-38, %v1157_v36  ;;  %vm1156_vm5 = vcmp.eq.f32.partialorder %v1155_v52, 8.507059e+37  ;;  %1999 = vmatpush.msra.mxu0 %v1992_v59 }
 0x290   :  { %v909_v17 = vadd.f32 %v10636_v54, %v908_v27  ;;  %v1134_v24 = vmul.f32 %v8618_v13, %v1133_v26  ;;  %v1991_v26 = vld [vmem:[%s15071_s23 + $0x68] sm:$0xff] }
 0x291   :  { %2000 = vmatpush.msra.mxu0 %v1991_v26 }
 0x292   :  { %v8620_v34 = vpop.eup %8619  ;;  %v8027_v35 = vmul.f32 -1.442695, %v909_v17  ;;  %1690 = vmatmul.f32.gmra.mxu1 %v1612_v33  ;;  %v1135_v38 = vadd.f32 %v8618_v13, %v1134_v24 }
 0x293   :  { %v8622_v40 = vpop.eup %8621  ;;  %v10794_v41 = vadd.f32 1.0, %v8620_v34 }
 0x294   :  { %8623 = vpow2.f32 %v8027_v35  ;;  %v1139_v39 = vsel %vm1138_vm14, %v8618_v13, %v1135_v38  ;;  %v1147_v43 = vmul.f32 %v8622_v40, %v10784_v14  ;;  %vm1152_vm0 = vweird.f32 %v8622_v40  ;;  %v10811_v14 = vld [vmem:[%s15072_s6] ss:$0 sm:$0xff]  ;;  %s15351_s6 = sld [smem:[#allocation64_spill]] }
 0x295   :  { %8625 = vrcp.f32 %v10794_v41  ;;  %v1144_v45 = vsel %vm1141_vm15, %v1143_v12, %v1139_v39  ;;  %vm1153_vm3 = vmor %vm1151_vm1, %vm1152_vm0  ;;  %v1172_v62 = vand.u32 2147483648, %v10794_v41  ;;  %v1170_v7 = vand.u32 2147483647, %v10794_v41  ;;  %v1990_v39 = vld [vmem:[%s15071_s23 + $0x60] sm:$0xff] }
 0x296   :  { %1891 = vmatmul.f32.gmra.mxu3 %v1144_v45  ;;  %v1148_v44 = vsub.f32 1.0, %v1147_v43  ;;  %vm1166_vm7 = vweird.f32 %v10794_v41  ;;  %2001 = vmatpush.msra.mxu0 %v1990_v39 }
 0x297   :  { %v911_v46 = vpop.f32.mrf.mxu1  ;;  %v1173_v13 = vor.u32 1.1754944e-38, %v1172_v62  ;;  %vm1171_vm8 = vcmp.eq.f32.partialorder %v1170_v7, 8.507059e+37  ;;  %v1987_v7 = vld [vmem:[%s15071_s23 + $0x48] sm:$0xff] }
 0x298   :  { %v912_v51 = vadd.f32 %v10636_v54, %v911_v46  ;;  %v1149_v37 = vmul.f32 %v8622_v40, %v1148_v44 }
 0x29a   :  { %v8624_v47 = vpop.eup %8623  ;;  %v8028_v53 = vmul.f32 -1.442695, %v912_v51  ;;  %1693 = vmatmul.f32.gmra.mxu1 %v1613_v48  ;;  %v1150_v58 = vadd.f32 %v8622_v40, %v1149_v37 }
 0x29b   :  { %v8626_v60 = vpop.eup %8625  ;;  %v978_v61 = vadd.f32 1.0, %v8624_v47 }
 0x29c   :  { %8627 = vpow2.f32 %v8028_v53  ;;  %v1154_v0 = vsel %vm1153_vm3, %v8622_v40, %v1150_v58  ;;  %v1162_v1 = vmul.f32 %v8626_v60, %v10794_v41  ;;  %vm1167_vm6 = vweird.f32 %v8626_v60  ;;  %v1989_v58 = vld [vmem:[%s15071_s23 + $0x58] sm:$0xff] }
 0x29d   :  { %8629 = vrcp.f32 %v978_v61  ;;  %v1159_v63 = vsel %vm1156_vm5, %v1158_v50, %v1154_v0  ;;  %vm1168_vm2 = vmor %vm1166_vm7, %vm1167_vm6  ;;  %v1187_v23 = vand.u32 2147483648, %v978_v61  ;;  %v1185_v25 = vand.u32 2147483647, %v978_v61  ;;  %2002 = vmatpush.msra.mxu0 %v1989_v58 }
 0x29e   :  { %1894 = vmatmul.f32.gmra.mxu3 %v1159_v63  ;;  %v1163_v2 = vsub.f32 1.0, %v1162_v1  ;;  %vm1181_vm11 = vweird.f32 %v978_v61 }
 0x29f   :  { %v914_v3 = vpop.f32.mrf.mxu1  ;;  %v1188_v30 = vor.u32 1.1754944e-38, %v1187_v23  ;;  %vm1186_vm13 = vcmp.eq.f32.partialorder %v1185_v25, 8.507059e+37 }
 0x2a0   :  { %v915_v56 = vadd.f32 %v10636_v54, %v914_v3  ;;  %v1164_v6 = vmul.f32 %v8626_v60, %v1163_v2  ;;  %v1988_v3 = vld [vmem:[%s15071_s23 + $0x50] sm:$0xff] }
 0x2a1   :  { %2003 = vmatpush.msra.mxu0 %v1988_v3  ;;  %v2141_v3 = vld [vmem:[%s15073_s4 + $0x70] sm:$0xff] }
 0x2a2   :  { %v8628_v5 = vpop.eup %8627  ;;  %v8029_v8 = vmul.f32 -1.442695, %v915_v56  ;;  %1696 = vmatmul.f32.gmra.mxu1 %v1614_v4  ;;  %v1165_v9 = vadd.f32 %v8626_v60, %v1164_v6 }
 0x2a3   :  { %v8630_v10 = vpop.eup %8629  ;;  %v979_v11 = vadd.f32 1.0, %v8628_v5  ;;  %2004 = vmatpush.msra.mxu0 %v1987_v7 }
 0x2a4   :  { %8631 = vpow2.f32 %v8029_v8  ;;  %v1169_v54 = vsel %vm1168_vm2, %v8626_v60, %v1165_v9  ;;  %v1177_v16 = vmul.f32 %v8630_v10, %v978_v61  ;;  %vm1182_vm9 = vweird.f32 %v8630_v10 }
 0x2a5   :  { %8633 = vrcp.f32 %v979_v11  ;;  %v1174_v18 = vsel %vm1171_vm8, %v1173_v13, %v1169_v54  ;;  %vm1183_vm12 = vmor %vm1181_vm11, %vm1182_vm9  ;;  %v1202_v41 = vand.u32 2147483648, %v979_v11  ;;  %v1200_v32 = vand.u32 2147483647, %v979_v11 }
 0x2a6   :  { %1897 = vmatmul.f32.gmra.mxu3 %v1174_v18  ;;  %v1178_v19 = vsub.f32 1.0, %v1177_v16  ;;  %vm1196_vm0 = vweird.f32 %v979_v11  ;;  %v1985_v18 = vld [vmem:[%s15071_s23 + $0x38] sm:$0xff] }
 0x2a7   :  { %v1652_v20 = vpop.f32.mrf.mxu1  ;;  %v1203_v44 = vor.u32 1.1754944e-38, %v1202_v41  ;;  %vm1201_vm3 = vcmp.eq.f32.partialorder %v1200_v32, 8.507059e+37  ;;  %v1981_v41 = vld [vmem:[%s15071_s23 + $0x18] sm:$0xff] }
 0x2a8   :  { %v1653_v21 = vadd.f32 %v10811_v14, %v1652_v20  ;;  %v1179_v22 = vmul.f32 %v8630_v10, %v1178_v19 }
 0x2aa   :  { %v8632_v27 = vpop.eup %8631  ;;  %v1716_v28 = vmul.f32 0.01, %v1653_v21  ;;  %vm1700_vm10 = vcmp.gt.f32.partialorder %v1653_v21, 0.0  ;;  %v1180_v29 = vadd.f32 %v8630_v10, %v1179_v22  ;;  %v1984_v22 = vld [vmem:[%s15071_s23 + $0x30] sm:$0xff] }
 0x2ab   :  { %v8634_v17 = vpop.eup %8633  ;;  %v980_v24 = vadd.f32 1.0, %v8632_v27 }
 0x2ac   :  { %v1732_v31 = vsel %vm1700_vm10, %v1653_v21, %v1716_v28  ;;  %v1184_v33 = vsel %vm1183_vm12, %v8630_v10, %v1180_v29  ;;  %v1192_v34 = vmul.f32 %v8634_v17, %v979_v11  ;;  %vm1197_vm14 = vweird.f32 %v8634_v17  ;;  %v1986_v10 = vld [vmem:[%s15071_s23 + $0x40] sm:$0xff]  ;;  %v1983_v29 = vld [vmem:[%s15071_s23 + $0x28] sm:$0xff] }
 0x2ad   :  { %8635 = vrcp.f32 %v980_v24  ;;  %1796 = vmatmul.f32.vlgmr.msra.gmra.mxu2 %v1732_v31  ;;  %v1189_v35 = vsel %vm1186_vm13, %v1188_v30, %v1184_v33  ;;  %vm1198_vm1 = vmor %vm1196_vm0, %vm1197_vm14  ;;  %v1217_v52 = vand.u32 2147483648, %v980_v24  ;;  %v1215_v53 = vand.u32 2147483647, %v980_v24  ;;  %2005 = vmatpush.msra.mxu0 %v1986_v10  ;;  %v1982_v33 = vld [vmem:[%s15071_s23 + $0x20] sm:$0xff] }
 0x2ae   :  { %1900 = vmatmul.f32.gmra.mxu3 %v1189_v35  ;;  %v1193_v38 = vsub.f32 1.0, %v1192_v34  ;;  %vm1211_vm6 = vweird.f32 %v980_v24 }
 0x2af   :  { %v1655_v40 = vpop.f32.mrf.mxu1  ;;  %v1218_v50 = vor.u32 1.1754944e-38, %v1217_v52  ;;  %vm1216_vm2 = vcmp.eq.f32.partialorder %v1215_v53, 8.507059e+37  ;;  %2006 = vmatpush.msra.mxu0 %v1985_v18  ;;  %v2138_v18 = vld [vmem:[%s15073_s4 + $0x58] sm:$0xff] }
 0x2b0   :  { %v1656_v12 = vadd.f32 %v10811_v14, %v1655_v40  ;;  %v1194_v42 = vmul.f32 %v8634_v17, %v1193_v38 }
 0x2b1   :  { %2007 = vmatpush.msra.mxu0 %v1984_v22 }
 0x2b2   :  { %vm1701_vm15 = vcmp.gt.f32.partialorder %v1656_v12, 0.0  ;;  %v1717_v15 = vmul.f32 0.01, %v1656_v12  ;;  %v1195_v43 = vadd.f32 %v8634_v17, %v1194_v42 }
 0x2b3   :  { %v8636_v45 = vpop.eup %8635  ;;  %2008 = vmatpush.msra.mxu0 %v1983_v29 }
 0x2b4   :  { %v1733_v46 = vsel %vm1701_vm15, %v1656_v12, %v1717_v15  ;;  %v1199_v48 = vsel %vm1198_vm1, %v8634_v17, %v1195_v43  ;;  %v1207_v49 = vmul.f32 %v8636_v45, %v980_v24  ;;  %vm1212_vm4 = vweird.f32 %v8636_v45  ;;  %v1980_v15 = vld [vmem:[%s15071_s23 + $0x10] sm:$0xff] }
 0x2b5   :  { %1799 = vmatmul.f32.gmra.mxu2 %v1733_v46  ;;  %v1204_v36 = vsel %vm1201_vm3, %v1203_v44, %v1199_v48  ;;  %vm1213_vm7 = vmor %vm1211_vm6, %vm1212_vm4  ;;  %2009 = vmatpush.msra.mxu0 %v1982_v33  ;;  %v1979_v44 = vld [vmem:[%s15071_s23 + $0x8] sm:$0xff] }
 0x2b6   :  { %1903 = vmatmul.f32.gmra.mxu3 %v1204_v36  ;;  %v1208_v51 = vsub.f32 1.0, %v1207_v49 }
 0x2b7   :  { %v1658_v37 = vpop.f32.mrf.mxu1  ;;  %2010 = vmatpush.msra.mxu0 %v1981_v41  ;;  %v2135_v41 = vld [vmem:[%s15073_s4 + $0x40] sm:$0xff] }
 0x2b8   :  { %v1659_v55 = vadd.f32 %v10811_v14, %v1658_v37  ;;  %v1209_v47 = vmul.f32 %v8636_v45, %v1208_v51 }
 0x2b9   :  { %2011 = vmatpush.msra.mxu0 %v1980_v15 }
 0x2ba   :  { %vm1702_vm5 = vcmp.gt.f32.partialorder %v1659_v55, 0.0  ;;  %v1718_v60 = vmul.f32 0.01, %v1659_v55  ;;  %v1210_v61 = vadd.f32 %v8636_v45, %v1209_v47  ;;  %v1978_v47 = vld [vmem:[%s15071_s23] sm:$0xff]  ;;  %s15298_s23 = sld [smem:[#allocation62_spill]] }
 0x2bb   :  { %2012 = vmatpush.msra.mxu0 %v1979_v44 }
 0x2bc   :  { %v1734_v57 = vsel %vm1702_vm5, %v1659_v55, %v1718_v60  ;;  %v1214_v0 = vsel %vm1213_vm7, %v8636_v45, %v1210_v61 }
 0x2bd   :  { %1802 = vmatmul.f32.gmra.mxu2 %v1734_v57  ;;  %v1219_v1 = vsel %vm1216_vm2, %v1218_v50, %v1214_v0  ;;  %2013 = vmatpush.msra.mxu0 %v1978_v47  ;;  %v2142_v50 = vld [vmem:[%s15073_s4 + $0x78] sm:$0xff] }
 0x2be   :  { %1906 = vmatmul.f32.gmra.mxu3 %v1219_v1  ;;  %2143 = vmatpush.msrb.mxu1 %v2142_v50 }
 0x2bf   :  { %v1661_v63 = vpop.f32.mrf.mxu1 }
 0x2c0   :  { %v1662_v2 = vadd.f32 %v10811_v14, %v1661_v63  ;;  %2144 = vmatpush.msrb.mxu1 %v2141_v3 }
 0x2c2   :  { %vm1703_vm8 = vcmp.gt.f32.partialorder %v1662_v2, 0.0  ;;  %v1719_v4 = vmul.f32 0.01, %v1662_v2 }
 0x2c4   :  { %v1735_v62 = vsel %vm1703_vm8, %v1662_v2, %v1719_v4 }
 0x2c5   :  { %1805 = vmatmul.f32.gmra.mxu2 %v1735_v62 }
 0x2c7   :  { %v1664_v56 = vpop.f32.mrf.mxu1 }
 0x2c8   :  { %v1665_v6 = vadd.f32 %v10811_v14, %v1664_v56  ;;  %v2140_v56 = vld [vmem:[%s15073_s4 + $0x68] sm:$0xff] }
 0x2c9   :  { %v1862_v52 = vpop.f32.mrf.mxu3  ;;  %2145 = vmatpush.msrb.mxu1 %v2140_v56 }
 0x2ca   :  { %vm1704_vm9 = vcmp.gt.f32.partialorder %v1665_v6, 0.0  ;;  %v1720_v59 = vmul.f32 0.01, %v1665_v6 }
 0x2cc   :  { %v1736_v5 = vsel %vm1704_vm9, %v1665_v6, %v1720_v59  ;;  %v10847_v6 = vld [vmem:[%s15074_s26] ss:$0 sm:$0xff] }
 0x2cd   :  { %1808 = vmatmul.f32.gmra.mxu2 %v1736_v5 }
 0x2cf   :  { %v1667_v8 = vpop.f32.mrf.mxu1 }
 0x2d0   :  { %v1668_v9 = vadd.f32 %v10811_v14, %v1667_v8 }
 0x2d1   :  { %v1865_v57 = vpop.f32.mrf.mxu3 }
 0x2d2   :  { %vm1705_vm10 = vcmp.gt.f32.partialorder %v1668_v9, 0.0  ;;  %v1721_v11 = vmul.f32 0.01, %v1668_v9 }
 0x2d4   :  { %v1737_v13 = vsel %vm1705_vm10, %v1668_v9, %v1721_v11  ;;  %v2139_v9 = vld [vmem:[%s15073_s4 + $0x60] sm:$0xff] }
 0x2d5   :  { %1811 = vmatmul.f32.gmra.mxu2 %v1737_v13  ;;  %2146 = vmatpush.msrb.mxu1 %v2139_v9 }
 0x2d7   :  { %v1670_v54 = vpop.f32.mrf.mxu1  ;;  %2147 = vmatpush.msrb.mxu1 %v2138_v18 }
 0x2d8   :  { %v1671_v16 = vadd.f32 %v10811_v14, %v1670_v54 }
 0x2d9   :  { %v1868_v62 = vpop.f32.mrf.mxu3 }
 0x2da   :  { %vm1706_vm11 = vcmp.gt.f32.partialorder %v1671_v16, 0.0  ;;  %v1722_v19 = vmul.f32 0.01, %v1671_v16 }
 0x2dc   :  { %v1738_v20 = vsel %vm1706_vm11, %v1671_v16, %v1722_v19 }
 0x2dd   :  { %1814 = vmatmul.f32.gmra.mxu2 %v1738_v20 }
 0x2df   :  { %v1673_v23 = vpop.f32.mrf.mxu1 }
 0x2e0   :  { %v1674_v21 = vadd.f32 %v10811_v14, %v1673_v23 }
 0x2e1   :  { %v1871_v7 = vpop.f32.mrf.mxu3 }
 0x2e2   :  { %vm1707_vm12 = vcmp.gt.f32.partialorder %v1674_v21, 0.0  ;;  %v1723_v25 = vmul.f32 0.01, %v1674_v21 }
 0x2e4   :  { %v1739_v26 = vsel %vm1707_vm12, %v1674_v21, %v1723_v25  ;;  %v2137_v25 = vld [vmem:[%s15073_s4 + $0x50] sm:$0xff] }
 0x2e5   :  { %1817 = vmatmul.f32.gmra.mxu2 %v1739_v26  ;;  %2148 = vmatpush.msrb.mxu1 %v2137_v25 }
 0x2e7   :  { %v1676_v27 = vpop.f32.mrf.mxu1 }
 0x2e8   :  { %v1677_v28 = vadd.f32 %v10811_v14, %v1676_v27 }
 0x2e9   :  { %v1874_v54 = vpop.f32.mrf.mxu3 }
 0x2ea   :  { %vm1708_vm13 = vcmp.gt.f32.partialorder %v1677_v28, 0.0  ;;  %v1724_v17 = vmul.f32 0.01, %v1677_v28 }
 0x2ec   :  { %v1740_v24 = vsel %vm1708_vm13, %v1677_v28, %v1724_v17 }
 0x2ed   :  { %1820 = vmatmul.f32.gmra.mxu2 %v1740_v24 }
 0x2ef   :  { %v1679_v30 = vpop.f32.mrf.mxu1 }
 0x2f0   :  { %v1680_v31 = vadd.f32 %v10811_v14, %v1679_v30  ;;  %v2136_v30 = vld [vmem:[%s15073_s4 + $0x48] sm:$0xff] }
 0x2f1   :  { %v1877_v26 = vpop.f32.mrf.mxu3  ;;  %2149 = vmatpush.msrb.mxu1 %v2136_v30 }
 0x2f2   :  { %vm1709_vm14 = vcmp.gt.f32.partialorder %v1680_v31, 0.0  ;;  %v1725_v34 = vmul.f32 0.01, %v1680_v31 }
 0x2f3   :  { %2150 = vmatpush.msrb.mxu1 %v2135_v41 }
 0x2f4   :  { %v1741_v35 = vsel %vm1709_vm14, %v1680_v31, %v1725_v34 }
 0x2f5   :  { %1823 = vmatmul.f32.gmra.mxu2 %v1741_v35 }
 0x2f7   :  { %v1682_v38 = vpop.f32.mrf.mxu1 }
 0x2f8   :  { %v1683_v40 = vadd.f32 %v10811_v14, %v1682_v38 }
 0x2f9   :  { %v1880_v33 = vpop.f32.mrf.mxu3 }
 0x2fa   :  { %vm1710_vm15 = vcmp.gt.f32.partialorder %v1683_v40, 0.0  ;;  %v1726_v12 = vmul.f32 0.01, %v1683_v40 }
 0x2fc   :  { %v1742_v42 = vsel %vm1710_vm15, %v1683_v40, %v1726_v12 }
 0x2fd   :  { %1826 = vmatmul.f32.gmra.mxu2 %v1742_v42 }
 0x2ff   :  { %v1685_v32 = vpop.f32.mrf.mxu1 }
 0x300   :  { %v1686_v39 = vadd.f32 %v10811_v14, %v1685_v32 }
 0x301   :  { %v1883_v32 = vpop.f32.mrf.mxu3 }
 0x302   :  { %vm1711_vm0 = vcmp.gt.f32.partialorder %v1686_v39, 0.0  ;;  %v1727_v43 = vmul.f32 0.01, %v1686_v39 }
 0x304   :  { %v1743_v45 = vsel %vm1711_vm0, %v1686_v39, %v1727_v43 }
 0x305   :  { %1829 = vmatmul.f32.gmra.mxu2 %v1743_v45  ;;  %v2134_v45 = vld [vmem:[%s15073_s4 + $0x38] sm:$0xff] }
 0x306   :  { %2151 = vmatpush.msrb.mxu1 %v2134_v45  ;;  %v2221_v45 = vld [vmem:[%s15075_s1 + $0x68] sm:$0xff] }
 0x307   :  { %v1688_v46 = vpop.f32.mrf.mxu1 }
 0x308   :  { %v1689_v48 = vadd.f32 %v10811_v14, %v1688_v46 }
 0x30a   :  { %vm1712_vm1 = vcmp.gt.f32.partialorder %v1689_v48, 0.0  ;;  %v1728_v49 = vmul.f32 0.01, %v1689_v48 }
 0x30c   :  { %v1744_v36 = vsel %vm1712_vm1, %v1689_v48, %v1728_v49 }
 0x30d   :  { %1832 = vmatmul.f32.gmra.mxu2 %v1744_v36  ;;  %v1886_v36 = vpop.f32.mrf.mxu3 }
 0x30f   :  { %v1691_v51 = vpop.f32.mrf.mxu1 }
 0x310   :  { %v1692_v37 = vadd.f32 %v10811_v14, %v1691_v51 }
 0x312   :  { %vm1713_vm3 = vcmp.gt.f32.partialorder %v1692_v37, 0.0  ;;  %v1729_v55 = vmul.f32 0.01, %v1692_v37 }
 0x314   :  { %v1745_v53 = vsel %vm1713_vm3, %v1692_v37, %v1729_v55  ;;  %v2133_v37 = vld [vmem:[%s15073_s4 + $0x30] sm:$0xff] }
 0x315   :  { %1835 = vmatmul.f32.gmra.mxu2 %v1745_v53  ;;  %2152 = vmatpush.msrb.mxu1 %v2133_v37  ;;  %v2220_v37 = vld [vmem:[%s15075_s1 + $0x60] sm:$0xff] }
 0x317   :  { %v1694_v58 = vpop.f32.mrf.mxu1 }
 0x318   :  { %v1695_v60 = vadd.f32 %v10811_v14, %v1694_v58 }
 0x31a   :  { %vm1714_vm4 = vcmp.gt.f32.partialorder %v1695_v60, 0.0  ;;  %v1730_v61 = vmul.f32 0.01, %v1695_v60 }
 0x31c   :  { %v1746_v0 = vsel %vm1714_vm4, %v1695_v60, %v1730_v61  ;;  %v2132_v60 = vld [vmem:[%s15073_s4 + $0x28] sm:$0xff]  ;;  %v1889_v61 = vpop.f32.mrf.mxu3 }
 0x31d   :  { %1838 = vmatmul.f32.gmra.mxu2 %v1746_v0  ;;  %2153 = vmatpush.msrb.mxu1 %v2132_v60 }
 0x31f   :  { %v1697_v1 = vpop.f32.mrf.mxu1 }
 0x320   :  { %v1698_v63 = vadd.f32 %v10811_v14, %v1697_v1 }
 0x322   :  { %vm1715_vm5 = vcmp.gt.f32.partialorder %v1698_v63, 0.0  ;;  %v1731_v2 = vmul.f32 0.01, %v1698_v63 }
 0x324   :  { %v1747_v4 = vsel %vm1715_vm5, %v1698_v63, %v1731_v2  ;;  %v2131_v2 = vld [vmem:[%s15073_s4 + $0x20] sm:$0xff] }
 0x325   :  { %1841 = vmatmul.f32.gmra.mxu2 %v1747_v4  ;;  %2154 = vmatpush.msrb.mxu1 %v2131_v2  ;;  %v1892_v4 = vpop.f32.mrf.mxu3 }
 0x330   :  { %v1797_v59 = vpop.f32.mrf.mxu2 }
 0x331   :  { %v1863_v5 = vadd.f32 %v1862_v52, %v1797_v59 }
 0x333   :  { %v1914_v8 = vadd.f32 %v10847_v6, %v1863_v5  ;;  %v2130_v5 = vld [vmem:[%s15073_s4 + $0x18] sm:$0xff] }
 0x334   :  { %2155 = vmatpush.msrb.mxu1 %v2130_v5 }
 0x335   :  { %vm1930_vm6 = vcmp.gt.f32.partialorder %v1914_v8, 0.0  ;;  %v1946_v14 = vmul.f32 0.01, %v1914_v8 }
 0x337   :  { %v1962_v10 = vsel %vm1930_vm6, %v1914_v8, %v1946_v14  ;;  %v1895_v14 = vpop.f32.mrf.mxu3 }
 0x338   :  { %v1800_v11 = vpop.f32.mrf.mxu2  ;;  %2014 = vmatmul.f32.vlgmr.msra.gmra.mxu0 %v1962_v10 }
 0x339   :  { %v1866_v13 = vadd.f32 %v1865_v57, %v1800_v11 }
 0x33b   :  { %v1915_v16 = vadd.f32 %v10847_v6, %v1866_v13 }
 0x33d   :  { %vm1931_vm7 = vcmp.gt.f32.partialorder %v1915_v16, 0.0  ;;  %v1947_v19 = vmul.f32 0.01, %v1915_v16 }
 0x33f   :  { %v1963_v20 = vsel %vm1931_vm7, %v1915_v16, %v1947_v19 }
 0x340   :  { %v1803_v23 = vpop.f32.mrf.mxu2  ;;  %2017 = vmatmul.f32.gmra.mxu0 %v1963_v20 }
 0x341   :  { %v1869_v21 = vadd.f32 %v1868_v62, %v1803_v23  ;;  %v1898_v23 = vpop.f32.mrf.mxu3 }
 0x343   :  { %v1916_v22 = vadd.f32 %v10847_v6, %v1869_v21 }
 0x345   :  { %vm1932_vm2 = vcmp.gt.f32.partialorder %v1916_v22, 0.0  ;;  %v1948_v27 = vmul.f32 0.01, %v1916_v22 }
 0x347   :  { %v1964_v28 = vsel %vm1932_vm2, %v1916_v22, %v1948_v27  ;;  %v2128_v22 = vld [vmem:[%s15073_s4 + $0x8] sm:$0xff] }
 0x348   :  { %v1806_v29 = vpop.f32.mrf.mxu2  ;;  %2020 = vmatmul.f32.gmra.mxu0 %v1964_v28  ;;  %v2127_v28 = vld [vmem:[%s15073_s4] sm:$0xff] }
 0x349   :  { %v1872_v17 = vadd.f32 %v1871_v7, %v1806_v29 }
 0x34b   :  { %v1917_v24 = vadd.f32 %v10847_v6, %v1872_v17 }
 0x34d   :  { %vm1933_vm8 = vcmp.gt.f32.partialorder %v1917_v24, 0.0  ;;  %v1949_v31 = vmul.f32 0.01, %v1917_v24 }
 0x34f   :  { %v1965_v34 = vsel %vm1933_vm8, %v1917_v24, %v1949_v31  ;;  %v1901_v24 = vpop.f32.mrf.mxu3 }
 0x350   :  { %v1809_v35 = vpop.f32.mrf.mxu2  ;;  %2023 = vmatmul.f32.gmra.mxu0 %v1965_v34  ;;  %v2223_v34 = vld [vmem:[%s15075_s1 + $0x78] sm:$0xff] }
 0x351   :  { %v1875_v38 = vadd.f32 %v1874_v54, %v1809_v35  ;;  %v2129_v54 = vld [vmem:[%s15073_s4 + $0x10] sm:$0xff]  ;;  %2224 = vmatpush.msrb.mxu2 %v2223_v34  ;;  %s15360_s4 = sld [smem:[#allocation65_spill]] }
 0x352   :  { %2156 = vmatpush.msrb.mxu1 %v2129_v54 }
 0x353   :  { %v1918_v40 = vadd.f32 %v10847_v6, %v1875_v38 }
 0x354   :  { %2157 = vmatpush.msrb.mxu1 %v2128_v22  ;;  %v2213_v22 = vld [vmem:[%s15075_s1 + $0x28] sm:$0xff] }
 0x355   :  { %vm1934_vm9 = vcmp.gt.f32.partialorder %v1918_v40, 0.0  ;;  %v1950_v12 = vmul.f32 0.01, %v1918_v40 }
 0x356   :  { %2158 = vmatpush.msrb.mxu1 %v2127_v28 }
 0x357   :  { %v1966_v42 = vsel %vm1934_vm9, %v1918_v40, %v1950_v12  ;;  %v1904_v41 = vpop.f32.mrf.mxu3  ;;  %v2222_v12 = vld [vmem:[%s15075_s1 + $0x70] sm:$0xff] }
 0x358   :  { %v1812_v39 = vpop.f32.mrf.mxu2  ;;  %2026 = vmatmul.f32.gmra.mxu0 %v1966_v42  ;;  %2225 = vmatpush.msrb.mxu2 %v2222_v12 }
 0x359   :  { %v1878_v15 = vadd.f32 %v1877_v26, %v1812_v39 }
 0x35a   :  { %2226 = vmatpush.msrb.mxu2 %v2221_v45 }
 0x35b   :  { %v1919_v43 = vadd.f32 %v10847_v6, %v1878_v15 }
 0x35c   :  { %2227 = vmatpush.msrb.mxu2 %v2220_v37 }
 0x35d   :  { %vm1935_vm10 = vcmp.gt.f32.partialorder %v1919_v43, 0.0  ;;  %v1951_v44 = vmul.f32 0.01, %v1919_v43 }
 0x35f   :  { %v1967_v46 = vsel %vm1935_vm10, %v1919_v43, %v1951_v44 }
 0x360   :  { %v1815_v48 = vpop.f32.mrf.mxu2  ;;  %2029 = vmatmul.f32.gmra.mxu0 %v1967_v46  ;;  %v1907_v46 = vpop.f32.mrf.mxu3 }
 0x361   :  { %v1881_v49 = vadd.f32 %v1880_v33, %v1815_v48 }
 0x363   :  { %v1920_v51 = vadd.f32 %v10847_v6, %v1881_v49 }
 0x365   :  { %vm1936_vm11 = vcmp.gt.f32.partialorder %v1920_v51, 0.0  ;;  %v1952_v52 = vmul.f32 0.01, %v1920_v51 }
 0x367   :  { %v1968_v55 = vsel %vm1936_vm11, %v1920_v51, %v1952_v52 }
 0x368   :  { %v1818_v47 = vpop.f32.mrf.mxu2  ;;  %2032 = vmatmul.f32.gmra.mxu0 %v1968_v55  ;;  %v10883_v55 = vld [vmem:[%s15076_s3] ss:$0 sm:$0xff] }
 0x369   :  { %v1884_v53 = vadd.f32 %v1883_v32, %v1818_v47 }
 0x36b   :  { %v1921_v58 = vadd.f32 %v10847_v6, %v1884_v53 }
 0x36d   :  { %vm1937_vm12 = vcmp.gt.f32.partialorder %v1921_v58, 0.0  ;;  %v1953_v50 = vmul.f32 0.01, %v1921_v58 }
 0x36f   :  { %v1969_v57 = vsel %vm1937_vm12, %v1921_v58, %v1953_v50  ;;  %v2219_v58 = vld [vmem:[%s15075_s1 + $0x58] sm:$0xff] }
 0x370   :  { %v1821_v0 = vpop.f32.mrf.mxu2  ;;  %2035 = vmatmul.f32.gmra.mxu0 %v1969_v57  ;;  %2228 = vmatpush.msrb.mxu2 %v2219_v58  ;;  %v2218_v57 = vld [vmem:[%s15075_s1 + $0x50] sm:$0xff] }
 0x371   :  { %v1887_v1 = vadd.f32 %v1886_v36, %v1821_v0 }
 0x372   :  { %2229 = vmatpush.msrb.mxu2 %v2218_v57 }
 0x373   :  { %v1922_v63 = vadd.f32 %v10847_v6, %v1887_v1 }
 0x375   :  { %vm1938_vm13 = vcmp.gt.f32.partialorder %v1922_v63, 0.0  ;;  %v1954_v3 = vmul.f32 0.01, %v1922_v63 }
 0x377   :  { %v1970_v62 = vsel %vm1938_vm13, %v1922_v63, %v1954_v3  ;;  %v2217_v3 = vld [vmem:[%s15075_s1 + $0x48] sm:$0xff] }
 0x378   :  { %v1824_v56 = vpop.f32.mrf.mxu2  ;;  %2038 = vmatmul.f32.gmra.mxu0 %v1970_v62  ;;  %2230 = vmatpush.msrb.mxu2 %v2217_v3 }
 0x379   :  { %v1890_v7 = vadd.f32 %v1889_v61, %v1824_v56 }
 0x37b   :  { %v1923_v59 = vadd.f32 %v10847_v6, %v1890_v7 }
 0x37d   :  { %vm1939_vm14 = vcmp.gt.f32.partialorder %v1923_v59, 0.0  ;;  %v1955_v8 = vmul.f32 0.01, %v1923_v59 }
 0x37f   :  { %v1971_v9 = vsel %vm1939_vm14, %v1923_v59, %v1955_v8  ;;  %v2216_v59 = vld [vmem:[%s15075_s1 + $0x40] sm:$0xff] }
 0x380   :  { %v1827_v10 = vpop.f32.mrf.mxu2  ;;  %2041 = vmatmul.f32.gmra.mxu0 %v1971_v9  ;;  %2231 = vmatpush.msrb.mxu2 %v2216_v59 }
 0x381   :  { %v1893_v11 = vadd.f32 %v1892_v4, %v1827_v10  ;;  %v2215_v10 = vld [vmem:[%s15075_s1 + $0x38] sm:$0xff] }
 0x382   :  { %2232 = vmatpush.msrb.mxu2 %v2215_v10 }
 0x383   :  { %v1924_v13 = vadd.f32 %v10847_v6, %v1893_v11 }
 0x385   :  { %vm1940_vm15 = vcmp.gt.f32.partialorder %v1924_v13, 0.0  ;;  %v1956_v16 = vmul.f32 0.01, %v1924_v13 }
 0x387   :  { %v1972_v18 = vsel %vm1940_vm15, %v1924_v13, %v1956_v16 }
 0x388   :  { %v1830_v19 = vpop.f32.mrf.mxu2  ;;  %2044 = vmatmul.f32.gmra.mxu0 %v1972_v18  ;;  %v2214_v18 = vld [vmem:[%s15075_s1 + $0x30] sm:$0xff] }
 0x389   :  { %v1896_v20 = vadd.f32 %v1895_v14, %v1830_v19  ;;  %2233 = vmatpush.msrb.mxu2 %v2214_v18 }
 0x38b   :  { %v1925_v21 = vadd.f32 %v10847_v6, %v1896_v20  ;;  %2234 = vmatpush.msrb.mxu2 %v2213_v22 }
 0x38d   :  { %vm1941_vm0 = vcmp.gt.f32.partialorder %v1925_v21, 0.0  ;;  %v1957_v25 = vmul.f32 0.01, %v1925_v21 }
 0x38f   :  { %v1973_v26 = vsel %vm1941_vm0, %v1925_v21, %v1957_v25 }
 0x390   :  { %v1833_v27 = vpop.f32.mrf.mxu2  ;;  %2047 = vmatmul.f32.gmra.mxu0 %v1973_v26 }
 0x391   :  { %v1899_v29 = vadd.f32 %v1898_v23, %v1833_v27 }
 0x393   :  { %v1926_v17 = vadd.f32 %v10847_v6, %v1899_v29  ;;  %v2212_v29 = vld [vmem:[%s15075_s1 + $0x20] sm:$0xff] }
 0x394   :  { %2235 = vmatpush.msrb.mxu2 %v2212_v29 }
 0x395   :  { %vm1942_vm1 = vcmp.gt.f32.partialorder %v1926_v17, 0.0  ;;  %v1958_v30 = vmul.f32 0.01, %v1926_v17 }
 0x397   :  { %v1974_v31 = vsel %vm1942_vm1, %v1926_v17, %v1958_v30 }
 0x398   :  { %v1836_v33 = vpop.f32.mrf.mxu2  ;;  %2050 = vmatmul.f32.gmra.mxu0 %v1974_v31 }
 0x399   :  { %v1902_v35 = vadd.f32 %v1901_v24, %v1836_v33  ;;  %v2211_v33 = vld [vmem:[%s15075_s1 + $0x18] sm:$0xff] }
 0x39a   :  { %2236 = vmatpush.msrb.mxu2 %v2211_v33 }
 0x39b   :  { %v1927_v38 = vadd.f32 %v10847_v6, %v1902_v35 }
 0x39d   :  { %vm1943_vm3 = vcmp.gt.f32.partialorder %v1927_v38, 0.0  ;;  %v1959_v40 = vmul.f32 0.01, %v1927_v38 }
 0x39f   :  { %v1975_v42 = vsel %vm1943_vm3, %v1927_v38, %v1959_v40 }
 0x3a0   :  { %v1839_v32 = vpop.f32.mrf.mxu2  ;;  %2053 = vmatmul.f32.gmra.mxu0 %v1975_v42 }
 0x3a1   :  { %v1905_v39 = vadd.f32 %v1904_v41, %v1839_v32  ;;  %v2210_v41 = vld [vmem:[%s15075_s1 + $0x10] sm:$0xff] }
 0x3a2   :  { %2237 = vmatpush.msrb.mxu2 %v2210_v41 }
 0x3a3   :  { %v1928_v15 = vadd.f32 %v10847_v6, %v1905_v39 }
 0x3a5   :  { %vm1944_vm4 = vcmp.gt.f32.partialorder %v1928_v15, 0.0  ;;  %v1960_v43 = vmul.f32 0.01, %v1928_v15 }
 0x3a7   :  { %v1976_v44 = vsel %vm1944_vm4, %v1928_v15, %v1960_v43  ;;  %v2209_v15 = vld [vmem:[%s15075_s1 + $0x8] sm:$0xff] }
 0x3a8   :  { %v1842_v48 = vpop.f32.mrf.mxu2  ;;  %2056 = vmatmul.f32.gmra.mxu0 %v1976_v44  ;;  %2238 = vmatpush.msrb.mxu2 %v2209_v15 }
 0x3a9   :  { %v1908_v49 = vadd.f32 %v1907_v46, %v1842_v48  ;;  %v2208_v48 = vld [vmem:[%s15075_s1] sm:$0xff] }
 0x3aa   :  { %2239 = vmatpush.msrb.mxu2 %v2208_v48 }
 0x3ab   :  { %v1929_v36 = vadd.f32 %v10847_v6, %v1908_v49 }
 0x3ad   :  { %vm1945_vm5 = vcmp.gt.f32.partialorder %v1929_v36, 0.0  ;;  %v1961_v51 = vmul.f32 0.01, %v1929_v36 }
 0x3af   :  { %v1977_v52 = vsel %vm1945_vm5, %v1929_v36, %v1961_v51 }
 0x3b0   :  { %2059 = vmatmul.f32.gmra.mxu0 %v1977_v52 }
 0x3b5   :  { %v2015_v47 = vpop.f32.mrf.mxu0 }
 0x3b6   :  { %v2016_v53 = vadd.f32 %v10883_v55, %v2015_v47 }
 0x3b8   :  { %vm2063_vm6 = vcmp.gt.f32.partialorder %v2016_v53, 0.0  ;;  %v2079_v60 = vmul.f32 0.01, %v2016_v53 }
 0x3ba   :  { %v2095_v61 = vsel %vm2063_vm6, %v2016_v53, %v2079_v60 }
 0x3bb   :  { %2159 = vmatmul.f32.vlgmr.msrb.gmra.mxu1 %v2095_v61 }
 0x3bd   :  { %v2018_v6 = vpop.f32.mrf.mxu0 }
 0x3be   :  { %v2019_v50 = vadd.f32 %v10883_v55, %v2018_v6 }
 0x3c0   :  { %vm2064_vm7 = vcmp.gt.f32.partialorder %v2019_v50, 0.0  ;;  %v2080_v0 = vmul.f32 0.01, %v2019_v50 }
 0x3c2   :  { %v2096_v1 = vsel %vm2064_vm7, %v2019_v50, %v2080_v0 }
 0x3c3   :  { %2162 = vmatmul.f32.gmra.mxu1 %v2096_v1 }
 0x3c5   :  { %v2021_v63 = vpop.f32.mrf.mxu0 }
 0x3c6   :  { %v2022_v2 = vadd.f32 %v10883_v55, %v2021_v63 }
 0x3c8   :  { %vm2065_vm2 = vcmp.gt.f32.partialorder %v2022_v2, 0.0  ;;  %v2081_v4 = vmul.f32 0.01, %v2022_v2 }
 0x3ca   :  { %v2097_v62 = vsel %vm2065_vm2, %v2022_v2, %v2081_v4 }
 0x3cb   :  { %2165 = vmatmul.f32.gmra.mxu1 %v2097_v62 }
 0x3cd   :  { %v2024_v56 = vpop.f32.mrf.mxu0 }
 0x3ce   :  { %v2025_v7 = vadd.f32 %v10883_v55, %v2024_v56 }
 0x3d0   :  { %vm2066_vm8 = vcmp.gt.f32.partialorder %v2025_v7, 0.0  ;;  %v2082_v5 = vmul.f32 0.01, %v2025_v7 }
 0x3d2   :  { %v2098_v8 = vsel %vm2066_vm8, %v2025_v7, %v2082_v5 }
 0x3d3   :  { %2168 = vmatmul.f32.gmra.mxu1 %v2098_v8 }
 0x3d5   :  { %v2027_v9 = vpop.f32.mrf.mxu0 }
 0x3d6   :  { %v2028_v14 = vadd.f32 %v10883_v55, %v2027_v9 }
 0x3d8   :  { %vm2067_vm9 = vcmp.gt.f32.partialorder %v2028_v14, 0.0  ;;  %v2083_v11 = vmul.f32 0.01, %v2028_v14 }
 0x3da   :  { %v2099_v13 = vsel %vm2067_vm9, %v2028_v14, %v2083_v11 }
 0x3db   :  { %2171 = vmatmul.f32.gmra.mxu1 %v2099_v13 }
 0x3dd   :  { %v2030_v54 = vpop.f32.mrf.mxu0 }
 0x3de   :  { %v2031_v16 = vadd.f32 %v10883_v55, %v2030_v54  ;;  %v9815_v54 = vmov 0  }
 0x3df   :  { %8483 = vset.pattern.permute.xlu1 %v9815_v54  ;;  %8484 = vset.pattern.permute.xlu2 %v9815_v54 }
 0x3e0   :  { %vm2068_vm10 = vcmp.gt.f32.partialorder %v2031_v16, 0.0  ;;  %v2084_v19 = vmul.f32 0.01, %v2031_v16  ;;  %8485 = vset.pattern.permute.xlu0 %v9815_v54  ;;  %v2114_v54 = vld [vmem:[%s15077_s12 + $0x18] sm:$0xff] }
 0x3e2   :  { %v2100_v20 = vsel %vm2068_vm10, %v2031_v16, %v2084_v19 }
 0x3e3   :  { %2174 = vmatmul.f32.gmra.mxu1 %v2100_v20 }
 0x3e5   :  { %v2033_v23 = vpop.f32.mrf.mxu0 }
 0x3e6   :  { %v2034_v21 = vadd.f32 %v10883_v55, %v2033_v23 }
 0x3e8   :  { %vm2069_vm11 = vcmp.gt.f32.partialorder %v2034_v21, 0.0  ;;  %v2085_v25 = vmul.f32 0.01, %v2034_v21 }
 0x3ea   :  { %v2101_v26 = vsel %vm2069_vm11, %v2034_v21, %v2085_v25 }
 0x3eb   :  { %2177 = vmatmul.f32.gmra.mxu1 %v2101_v26 }
 0x3ed   :  { %v2036_v27 = vpop.f32.mrf.mxu0 }
 0x3ee   :  { %v2037_v28 = vadd.f32 %v10883_v55, %v2036_v27 }
 0x3f0   :  { %vm2070_vm12 = vcmp.gt.f32.partialorder %v2037_v28, 0.0  ;;  %v2086_v17 = vmul.f32 0.01, %v2037_v28 }
 0x3f2   :  { %v2102_v24 = vsel %vm2070_vm12, %v2037_v28, %v2086_v17 }
 0x3f3   :  { %2180 = vmatmul.f32.gmra.mxu1 %v2102_v24 }
 0x3f5   :  { %v2039_v30 = vpop.f32.mrf.mxu0 }
 0x3f6   :  { %v2040_v31 = vadd.f32 %v10883_v55, %v2039_v30 }
 0x3f8   :  { %vm2071_vm13 = vcmp.gt.f32.partialorder %v2040_v31, 0.0  ;;  %v2087_v34 = vmul.f32 0.01, %v2040_v31 }
 0x3fa   :  { %v2103_v35 = vsel %vm2071_vm13, %v2040_v31, %v2087_v34 }
 0x3fb   :  { %2183 = vmatmul.f32.gmra.mxu1 %v2103_v35 }
 0x3fd   :  { %v2042_v38 = vpop.f32.mrf.mxu0 }
 0x3fe   :  { %v2043_v40 = vadd.f32 %v10883_v55, %v2042_v38 }
 0x400   :  { %vm2072_vm14 = vcmp.gt.f32.partialorder %v2043_v40, 0.0  ;;  %v2088_v12 = vmul.f32 0.01, %v2043_v40 }
 0x402   :  { %v2104_v42 = vsel %vm2072_vm14, %v2043_v40, %v2088_v12 }
 0x403   :  { %2186 = vmatmul.f32.gmra.mxu1 %v2104_v42 }
 0x405   :  { %v2045_v32 = vpop.f32.mrf.mxu0 }
 0x406   :  { %v2046_v39 = vadd.f32 %v10883_v55, %v2045_v32 }
 0x408   :  { %vm2073_vm15 = vcmp.gt.f32.partialorder %v2046_v39, 0.0  ;;  %v2089_v43 = vmul.f32 0.01, %v2046_v39 }
 0x40a   :  { %v2105_v45 = vsel %vm2073_vm15, %v2046_v39, %v2089_v43 }
 0x40b   :  { %2189 = vmatmul.f32.gmra.mxu1 %v2105_v45 }
 0x40d   :  { %v2048_v44 = vpop.f32.mrf.mxu0 }
 0x40e   :  { %v2049_v46 = vadd.f32 %v10883_v55, %v2048_v44 }
 0x410   :  { %vm2074_vm0 = vcmp.gt.f32.partialorder %v2049_v46, 0.0  ;;  %v2090_v49 = vmul.f32 0.01, %v2049_v46 }
 0x412   :  { %v2106_v36 = vsel %vm2074_vm0, %v2049_v46, %v2090_v49 }
 0x413   :  { %2192 = vmatmul.f32.gmra.mxu1 %v2106_v36 }
 0x415   :  { %v2051_v51 = vpop.f32.mrf.mxu0 }
 0x416   :  { %v2052_v37 = vadd.f32 %v10883_v55, %v2051_v51 }
 0x418   :  { %vm2075_vm1 = vcmp.gt.f32.partialorder %v2052_v37, 0.0  ;;  %v2091_v52 = vmul.f32 0.01, %v2052_v37 }
 0x41a   :  { %v2107_v47 = vsel %vm2075_vm1, %v2052_v37, %v2091_v52 }
 0x41b   :  { %2195 = vmatmul.f32.gmra.mxu1 %v2107_v47 }
 0x41d   :  { %v2054_v53 = vpop.f32.mrf.mxu0 }
 0x41e   :  { %v2055_v58 = vadd.f32 %v10883_v55, %v2054_v53 }
 0x420   :  { %vm2076_vm3 = vcmp.gt.f32.partialorder %v2055_v58, 0.0  ;;  %v2092_v60 = vmul.f32 0.01, %v2055_v58 }
 0x422   :  { %v2108_v61 = vsel %vm2076_vm3, %v2055_v58, %v2092_v60 }
 0x423   :  { %2198 = vmatmul.f32.gmra.mxu1 %v2108_v61 }
 0x425   :  { %v2057_v6 = vpop.f32.mrf.mxu0 }
 0x426   :  { %v2058_v50 = vadd.f32 %v10883_v55, %v2057_v6 }
 0x428   :  { %vm2077_vm4 = vcmp.gt.f32.partialorder %v2058_v50, 0.0  ;;  %v2093_v57 = vmul.f32 0.01, %v2058_v50 }
 0x42a   :  { %v2109_v0 = vsel %vm2077_vm4, %v2058_v50, %v2093_v57 }
 0x42b   :  { %2201 = vmatmul.f32.gmra.mxu1 %v2109_v0 }
 0x42d   :  { %v2060_v1 = vpop.f32.mrf.mxu0 }
 0x42e   :  { %v2061_v63 = vadd.f32 %v10883_v55, %v2060_v1 }
 0x430   :  { %vm2078_vm5 = vcmp.gt.f32.partialorder %v2061_v63, 0.0  ;;  %v2094_v2 = vmul.f32 0.01, %v2061_v63 }
 0x432   :  { %v2110_v3 = vsel %vm2078_vm5, %v2061_v63, %v2094_v2  ;;  %v2112_v2 = vld [vmem:[%s15077_s12 + $0x8] sm:$0xff] }
 0x433   :  { %2204 = vmatmul.f32.gmra.mxu1 %v2110_v3  ;;  %v2111_v3 = vld [vmem:[%s15077_s12] sm:$0xff] }
 0x438   :  { %v2160_v4 = vpop.f32.mrf.mxu1 }
 0x439   :  { %2240 = vmatmul.f32.vlgmr.msrb.gmra.mxu2 %v2160_v4 }
 0x440   :  { %v2163_v62 = vpop.f32.mrf.mxu1 }
 0x441   :  { %2243 = vmatmul.f32.gmra.mxu2 %v2163_v62 }
 0x448   :  { %v2166_v56 = vpop.f32.mrf.mxu1 }
 0x449   :  { %2246 = vmatmul.f32.gmra.mxu2 %v2166_v56 }
 0x450   :  { %v2169_v7 = vpop.f32.mrf.mxu1 }
 0x451   :  { %2249 = vmatmul.f32.gmra.mxu2 %v2169_v7 }
 0x458   :  { %v2172_v59 = vpop.f32.mrf.mxu1 }
 0x459   :  { %2252 = vmatmul.f32.gmra.mxu2 %v2172_v59 }
 0x460   :  { %v2175_v5 = vpop.f32.mrf.mxu1 }
 0x461   :  { %2255 = vmatmul.f32.gmra.mxu2 %v2175_v5 }
 0x468   :  { %v2178_v8 = vpop.f32.mrf.mxu1 }
 0x469   :  { %2258 = vmatmul.f32.gmra.mxu2 %v2178_v8 }
 0x470   :  { %v2181_v9 = vpop.f32.mrf.mxu1 }
 0x471   :  { %2261 = vmatmul.f32.gmra.mxu2 %v2181_v9 }
 0x478   :  { %v2184_v55 = vpop.f32.mrf.mxu1 }
 0x479   :  { %2264 = vmatmul.f32.gmra.mxu2 %v2184_v55 }
 0x480   :  { %v2187_v14 = vpop.f32.mrf.mxu1 }
 0x481   :  { %2267 = vmatmul.f32.gmra.mxu2 %v2187_v14 }
 0x488   :  { %v2190_v10 = vpop.f32.mrf.mxu1 }
 0x489   :  { %2270 = vmatmul.f32.gmra.mxu2 %v2190_v10 }
 0x490   :  { %v2193_v11 = vpop.f32.mrf.mxu1 }
 0x491   :  { %2273 = vmatmul.f32.gmra.mxu2 %v2193_v11 }
 0x498   :  { %v2196_v13 = vpop.f32.mrf.mxu1 }
 0x499   :  { %2276 = vmatmul.f32.gmra.mxu2 %v2196_v13 }
 0x4a0   :  { %v2199_v16 = vpop.f32.mrf.mxu1 }
 0x4a1   :  { %2279 = vmatmul.f32.gmra.mxu2 %v2199_v16 }
 0x4a8   :  { %v2202_v18 = vpop.f32.mrf.mxu1 }
 0x4a9   :  { %2282 = vmatmul.f32.gmra.mxu2 %v2202_v18 }
 0x4b0   :  { %v2205_v19 = vpop.f32.mrf.mxu1 }
 0x4b1   :  { %2285 = vmatmul.f32.gmra.mxu2 %v2205_v19  ;;  %2678 = vmatpush.msrb.mxu3 %v2205_v19 }
 0x4b3   :  { %2679 = vmatpush.msrb.mxu3 %v2202_v18 }
 0x4b5   :  { %2680 = vmatpush.msrb.mxu3 %v2199_v16 }
 0x4b7   :  { %2681 = vmatpush.msrb.mxu3 %v2196_v13 }
 0x4b9   :  { %2682 = vmatpush.msrb.mxu3 %v2193_v11 }
 0x4bb   :  { %2683 = vmatpush.msrb.mxu3 %v2190_v10 }
 0x4bc   :  { %v2241_v20 = vpop.f32.mrf.mxu2 }
 0x4bd   :  { %2386 = vperm.xlu1 %8483, %v2241_v20   ;;  %2305 = vrot.lane.b32.xlu0 %v2241_v20, %s9816_s0 }
 0x4be   :  { %2684 = vmatpush.msrb.mxu3 %v2187_v14 }
 0x4c0   :  { %2685 = vmatpush.msrb.mxu3 %v2184_v55  ;;  %v2113_v55 = vld [vmem:[%s15077_s12 + $0x10] sm:$0xff] }
 0x4c2   :  { %2686 = vmatpush.msrb.mxu3 %v2181_v9 }
 0x4c4   :  { %2687 = vmatpush.msrb.mxu3 %v2178_v8  ;;  %v2244_v23 = vpop.f32.mrf.mxu2 }
 0x4c5   :  { %2390 = vperm.xlu2 %8484, %v2244_v23   ;;  %2307 = vrot.lane.b32.xlu0 %v2244_v23, %s9816_s0  ;;  %v2115_v23 = vld [vmem:[%s15077_s12 + $0x20] sm:$0xff] }
 0x4c6   :  { %2688 = vmatpush.msrb.mxu3 %v2175_v5 }
 0x4c8   :  { %2689 = vmatpush.msrb.mxu3 %v2172_v59 }
 0x4ca   :  { %2690 = vmatpush.msrb.mxu3 %v2169_v7 }
 0x4cc   :  { %2691 = vmatpush.msrb.mxu3 %v2166_v56  ;;  %v2247_v21 = vpop.f32.mrf.mxu2 }
 0x4cd   :  { %2394 = vperm.xlu0 %8485, %v2247_v21   ;;  %2309 = vrot.lane.b32.xlu1 %v2247_v21, %s9816_s0 }
 0x4ce   :  { %2692 = vmatpush.msrb.mxu3 %v2163_v62 }
 0x4d0   :  { %2693 = vmatpush.msrb.mxu3 %v2160_v4 }
 0x4d4   :  { %v2250_v22 = vpop.f32.mrf.mxu2 }
 0x4d5   :  { %2398 = vperm.xlu2 %8484, %v2250_v22   ;;  %2311 = vrot.lane.b32.xlu1 %v2250_v22, %s9816_s0 }
 0x4dc   :  { %v2253_v25 = vpop.f32.mrf.mxu2 }
 0x4dd   :  { %2313 = vrot.lane.b32.xlu2 %v2253_v25, %s9816_s0 }
 0x4e4   :  { %v2256_v26 = vpop.f32.mrf.mxu2 }
 0x4e5   :  { %2402 = vperm.xlu2 %8484, %v2253_v25   ;;  %2406 = vperm.xlu0 %8485, %v2256_v26  }
 0x4ec   :  { %v2259_v27 = vpop.f32.mrf.mxu2 }
 0x4ed   :  { %2315 = vrot.lane.b32.xlu2 %v2256_v26, %s9816_s0  ;;  %2317 = vrot.lane.b32.xlu0 %v2259_v27, %s9816_s0 }
 0x4f4   :  { %v2262_v28 = vpop.f32.mrf.mxu2 }
 0x4f5   :  { %2410 = vperm.xlu0 %8485, %v2259_v27   ;;  %2414 = vperm.xlu2 %8484, %v2262_v28   ;;  %v2116_v27 = vld [vmem:[%s15077_s12 + $0x28] sm:$0xff] }
 0x4f6   :  { %2319 = vrot.lane.b32.xlu1 %v2262_v28, %s9816_s0 }
 0x4fc   :  { %v2265_v29 = vpop.f32.mrf.mxu2 }
 0x4fd   :  { %2321 = vrot.lane.b32.xlu2 %v2265_v29, %s9816_s0 }
 0x504   :  { %v2268_v17 = vpop.f32.mrf.mxu2 }
 0x505   :  { %2418 = vperm.xlu2 %8484, %v2265_v29   ;;  %2323 = vrot.lane.b32.xlu0 %v2268_v17, %s9816_s0 }
 0x50c   :  { %v2271_v24 = vpop.f32.mrf.mxu2 }
 0x50d   :  { %2325 = vrot.lane.b32.xlu1 %v2271_v24, %s9816_s0 }
 0x514   :  { %v2274_v30 = vpop.f32.mrf.mxu2 }
 0x515   :  { %2327 = vrot.lane.b32.xlu2 %v2274_v30, %s9816_s0 }
 0x51c   :  { %v2277_v31 = vpop.f32.mrf.mxu2 }
 0x51d   :  { %2329 = vrot.lane.b32.xlu0 %v2277_v31, %s9816_s0 }
 0x51f   :  { %v2391_v40 = vpop.permute.xlu2 %2390 }
 0x524   :  { %v10926_v33 = vpop.f32.mrf.mxu2 }
 0x525   :  { %2331 = vrot.lane.b32.xlu1 %v10926_v33, %s9816_s0 }
 0x52c   :  { %v10930_v34 = vpop.f32.mrf.mxu2 }
 0x52d   :  { %2333 = vrot.lane.b32.xlu2 %v10930_v34, %s9816_s0 }
 0x52f   :  { %v2306_v38 = vpop.permute.xlu0 %2305  ;;  %v2387_v41 = vpop.permute.xlu1 %2386 }
 0x530   :  { %v2399_v42 = vpop.permute.xlu2 %2398 }
 0x534   :  { %v10934_v35 = vpop.f32.mrf.mxu2 }
 0x535   :  { %2422 = vperm.xlu2 %8484, %v2268_v17   ;;  %2335 = vrot.lane.b32.xlu0 %v10934_v35, %s9816_s0 }
 0x537   :  { %v2308_v12 = vpop.permute.xlu0 %2307 }
 0x538   :  { %v2314_v39 = vpop.permute.xlu2 %2313 }
 0x53d   :  { %2426 = vperm.xlu2 %8484, %v2271_v24  }
 0x53f   :  { %v2310_v32 = vpop.permute.xlu1 %2309  ;;  %v2395_v43 = vpop.permute.xlu0 %2394 }
 0x540   :  { %v2403_v45 = vpop.permute.xlu2 %2402 }
 0x545   :  { %2430 = vperm.xlu2 %8484, %v2274_v30   ;;  %v2117_v30 = vld [vmem:[%s15077_s12 + $0x30] sm:$0xff] }
 0x547   :  { %v2312_v15 = vpop.permute.xlu1 %2311 }
 0x548   :  { %v2316_v46 = vpop.permute.xlu2 %2315 }
 0x54d   :  { %2434 = vperm.xlu2 %8484, %v2277_v31  }
 0x550   :  { %v10938_v49 = vpop.permute.xlu2 %2414 }
 0x557   :  { %v2407_v44 = vpop.permute.xlu0 %2406 }
 0x558   :  { %v2322_v51 = vpop.permute.xlu2 %2321 }
 0x55a   :  { %2353 = vxpose.xlu1.b32.start [1/16] (narrow) %v2306_v38, 8 }
 0x55f   :  { %v2318_v48 = vpop.permute.xlu0 %2317 }
 0x560   :  { %v10940_v47 = vpop.permute.xlu2 %2418 }
 0x562   :  { %2354 = vxpose.xlu1.b32.cont [2/16] (narrow) %v2308_v12, 8 }
 0x567   :  { %v2411_v37 = vpop.permute.xlu0 %2410 }
 0x568   :  { %v2320_v36 = vpop.permute.xlu1 %2319 }
 0x56a   :  { %2355 = vxpose.xlu1.b32.cont [3/16] (narrow) %v2310_v32, 8 }
 0x56f   :  { %v2328_v58 = vpop.permute.xlu2 %2327 }
 0x572   :  { %2356 = vxpose.xlu1.b32.cont [4/16] (narrow) %v2312_v15, 8 }
 0x577   :  { %v2324_v52 = vpop.permute.xlu0 %2323 }
 0x57a   :  { %2357 = vxpose.xlu1.b32.cont [5/16] (narrow) %v2314_v39, 8 }
 0x57f   :  { %v2326_v53 = vpop.permute.xlu1 %2325 }
 0x582   :  { %2358 = vxpose.xlu1.b32.cont [6/16] (narrow) %v2316_v46, 8 }
 0x587   :  { %v2334_v6 = vpop.permute.xlu2 %2333 }
 0x58a   :  { %2359 = vxpose.xlu1.b32.cont [7/16] (narrow) %v2318_v48, 8 }
 0x58f   :  { %v2330_v60 = vpop.permute.xlu0 %2329 }
 0x592   :  { %2360 = vxpose.xlu1.b32.cont [8/16] (narrow) %v2320_v36, 8 }
 0x597   :  { %v2332_v61 = vpop.permute.xlu1 %2331 }
 0x59a   :  { %2361 = vxpose.xlu1.b32.cont [9/16] (narrow) %v2322_v51, 8  ;;  %v2122_v51 = vld [vmem:[%s15077_s12 + $0x58] sm:$0xff] }
 0x5a2   :  { %2362 = vxpose.xlu1.b32.cont [10/16] (narrow) %v2324_v52, 8 }
 0x5a7   :  { %v2336_v50 = vpop.permute.xlu0 %2335 }
 0x5aa   :  { %2363 = vxpose.xlu1.b32.cont [11/16] (narrow) %v2326_v53, 8 }
 0x5b2   :  { %2364 = vxpose.xlu1.b32.cont [12/16] (narrow) %v2328_v58, 8 }
 0x5ba   :  { %2365 = vxpose.xlu1.b32.cont [13/16] (narrow) %v2330_v60, 8 }
 0x5c2   :  { %2366 = vxpose.xlu1.b32.cont [14/16] (narrow) %v2332_v61, 8 }
 0x5ca   :  { %2367 = vxpose.xlu1.b32.cont [15/16] (narrow) %v2334_v6, 8 }
 0x5d2   :  { %2368 = vxpose.xlu1.b32.end [16/16] (narrow) %v2336_v50, 8 }
 0x5fe   :  { %v2369_v57 = vpop.trf.xlu1 }
 0x5ff   :  { %v10942_v0 = vperm.slane %v2369_v57, 0 }
 0x601   :  { %v2451_v1 = vadd.f32 %v10942_v0, %v2391_v40  ;;  %v2450_v63 = vadd.f32 %v10942_v0, %v2387_v41  ;;  %v2452_v4 = vadd.f32 %v10942_v0, %v2395_v43  ;;  %v2453_v10 = vadd.f32 %v10942_v0, %v2399_v42  ;;  %v2118_v42 = vld [vmem:[%s15077_s12 + $0x38] sm:$0xff] }
 0x602   :  { %v2454_v18 = vadd.f32 %v10942_v0, %v2403_v45  ;;  %v2455_v22 = vadd.f32 %v10942_v0, %v2407_v44  ;;  %v2456_v29 = vadd.f32 %v10942_v0, %v2411_v37  ;;  %v2457_v40 = vadd.f32 %v10942_v0, %v10938_v49  ;;  %v2119_v44 = vld [vmem:[%s15077_s12 + $0x40] sm:$0xff] }
 0x603   :  { %vm2467_vm6 = vcmp.gt.f32.partialorder %v2451_v1, 0.0  ;;  %v2483_v62 = vmul.f32 0.2, %v2451_v1  ;;  %vm2466_vm7 = vcmp.gt.f32.partialorder %v2450_v63, 0.0  ;;  %v2482_v56 = vmul.f32 0.2, %v2450_v63 }
 0x604   :  { %v2484_v9 = vmul.f32 0.2, %v2452_v4  ;;  %vm2468_vm2 = vcmp.gt.f32.partialorder %v2452_v4, 0.0  ;;  %v2485_v13 = vmul.f32 0.2, %v2453_v10  ;;  %vm2469_vm8 = vcmp.gt.f32.partialorder %v2453_v10, 0.0 }
 0x605   :  { %v2499_v7 = vsel %vm2467_vm6, %v2451_v1, %v2483_v62  ;;  %v2498_v59 = vsel %vm2466_vm7, %v2450_v63, %v2482_v56  ;;  %v2486_v20 = vmul.f32 0.2, %v2454_v18  ;;  %vm2470_vm9 = vcmp.gt.f32.partialorder %v2454_v18, 0.0 }
 0x606   :  { %v10949_v5 = vadd.f32 %v2499_v7, %v2112_v2  ;;  %v10951_v8 = vadd.f32 %v2498_v59, %v2111_v3  ;;  %v2500_v14 = vsel %vm2468_vm2, %v2452_v4, %v2484_v9  ;;  %v2501_v16 = vsel %vm2469_vm8, %v2453_v10, %v2485_v13  ;;  %v2120_v13 = vld [vmem:[%s15077_s12 + $0x48] sm:$0xff] }
 0x607   :  { %v10957_v11 = vadd.f32 %v2500_v14, %v2113_v55  ;;  %v10962_v19 = vadd.f32 %v2501_v16, %v2114_v54  ;;  %v2502_v21 = vsel %vm2470_vm9, %v2454_v18, %v2486_v20  ;;  %v2487_v26 = vmul.f32 0.2, %v2455_v22  ;;  %v2125_v14 = vld [vmem:[%s15077_s12 + $0x70] sm:$0xff] }
 0x608   :  { %2532 = vmax.xlane.f32.xlu0 %v10949_v5  ;;  %2530 = vmax.xlane.f32.xlu2 %v10951_v8  ;;  %v10967_v25 = vadd.f32 %v2502_v21, %v2115_v23  ;;  %vm2471_vm10 = vcmp.gt.f32.partialorder %v2455_v22, 0.0  ;;  %v2488_v24 = vmul.f32 0.2, %v2456_v29  ;;  %vm2472_vm11 = vcmp.gt.f32.partialorder %v2456_v29, 0.0 }
 0x609   :  { %v2503_v28 = vsel %vm2471_vm10, %v2455_v22, %v2487_v26  ;;  %v2489_v41 = vmul.f32 0.2, %v2457_v40  ;;  %vm2473_vm12 = vcmp.gt.f32.partialorder %v2457_v40, 0.0  ;;  %v2458_v39 = vadd.f32 %v10942_v0, %v10940_v47 }
 0x60a   :  { %v10973_v17 = vadd.f32 %v2503_v28, %v2116_v27  ;;  %v2504_v31 = vsel %vm2472_vm11, %v2456_v29, %v2488_v24 }
 0x60b   :  { %v10977_v38 = vadd.f32 %v2504_v31, %v2117_v30  ;;  %v2505_v32 = vsel %vm2473_vm12, %v2457_v40, %v2489_v41  ;;  %v2490_v43 = vmul.f32 0.2, %v2458_v39  ;;  %vm2474_vm13 = vcmp.gt.f32.partialorder %v2458_v39, 0.0  ;;  %v2121_v41 = vld [vmem:[%s15077_s12 + $0x50] sm:$0xff] }
 0x60c   :  { %v10987_v15 = vadd.f32 %v2505_v32, %v2118_v42 }
 0x60d   :  { %v2506_v46 = vsel %vm2474_vm13, %v2458_v39, %v2490_v43 }
 0x60e   :  { %v10992_v49 = vadd.f32 %v2506_v46, %v2119_v44 }
 0x610   :  { %2534 = vmax.xlane.f32.xlu0 %v10957_v11 }
 0x618   :  { %2536 = vmax.xlane.f32.xlu0 %v10962_v19 }
 0x620   :  { %2538 = vmax.xlane.f32.xlu0 %v10967_v25  ;;  %2442 = vperm.xlu2 %8484, %v10930_v34   ;;  %v2423_v34 = vpop.permute.xlu2 %2422 }
 0x621   :  { %v2459_v56 = vadd.f32 %v10942_v0, %v2423_v34 }
 0x623   :  { %v2491_v55 = vmul.f32 0.2, %v2459_v56  ;;  %vm2475_vm0 = vcmp.gt.f32.partialorder %v2459_v56, 0.0 }
 0x625   :  { %v2507_v54 = vsel %vm2475_vm0, %v2459_v56, %v2491_v55 }
 0x626   :  { %v2523_v23 = vadd.f32 %v2507_v54, %v2120_v13 }
 0x628   :  { %2540 = vmax.xlane.f32.xlu0 %v10973_v17  ;;  %v10982_v12 = vpop.permute.xlu2 %2426 }
 0x629   :  { %v2460_v40 = vadd.f32 %v10942_v0, %v10982_v12 }
 0x62b   :  { %vm2476_vm1 = vcmp.gt.f32.partialorder %v2460_v40, 0.0 }
 0x630   :  { %2542 = vmax.xlane.f32.xlu0 %v10977_v38  ;;  %v2431_v45 = vpop.permute.xlu2 %2430 }
 0x631   :  { %v2461_v48 = vadd.f32 %v10942_v0, %v2431_v45 }
 0x633   :  { %v2493_v36 = vmul.f32 0.2, %v2461_v48  ;;  %vm2477_vm14 = vcmp.gt.f32.partialorder %v2461_v48, 0.0 }
 0x635   :  { %v2509_v37 = vsel %vm2477_vm14, %v2461_v48, %v2493_v36 }
 0x636   :  { %v10996_v52 = vadd.f32 %v2509_v37, %v2122_v51 }
 0x638   :  { %v10999_v47 = vpop.permute.xlu2 %2434 }
 0x649   :  { %2544 = vmax.xlane.f32.xlu2 %v10987_v15 }
 0x651   :  { %2546 = vmax.xlane.f32.xlu2 %v10992_v49 }
 0x659   :  { %2552 = vmax.xlane.f32.xlu2 %v10996_v52 }
 0x67b   :  { %v2533_v53 = vpop.xlane.xlu0 %2532  ;;  %v2531_v58 = vpop.xlane.xlu2 %2530 }
 0x67c   :  { %v2562_v60 = vsub.f32 %v10951_v8, %v2531_v58  ;;  %v2563_v6 = vsub.f32 %v10949_v5, %v2533_v53 }
 0x67e   :  { %v2578_v61 = vmul.f32 1.442695, %v2562_v60  ;;  %v2580_v1 = vmul.f32 1.442695, %v2563_v6 }
 0x680   :  { %8637 = vpow2.f32 %v2578_v61 }
 0x683   :  { %v2535_v50 = vpop.xlane.xlu0 %2534  ;;  %v2443_v3 = vpop.permute.xlu2 %2442 }
 0x684   :  { %v2564_v57 = vsub.f32 %v10957_v11, %v2535_v50  ;;  %v2464_v4 = vadd.f32 %v10942_v0, %v2443_v3 }
 0x686   :  { %v2582_v63 = vmul.f32 1.442695, %v2564_v57  ;;  %v11004_v2 = vpop.eup %8637  ;;  %v2496_v5 = vmul.f32 0.2, %v2464_v4  ;;  %vm2480_vm15 = vcmp.gt.f32.partialorder %v2464_v4, 0.0 }
 0x687   :  { %2610 = vadd.xlane.f32.xlu0 %v11004_v2 }
 0x688   :  { %8639 = vpow2.f32 %v2582_v63  ;;  %v2512_v10 = vsel %vm2480_vm15, %v2464_v4, %v2496_v5 }
 0x689   :  { %8641 = vpow2.f32 %v2580_v1  ;;  %v11019_v18 = vadd.f32 %v2512_v10, %v2125_v14 }
 0x68b   :  { %v2537_v62 = vpop.xlane.xlu0 %2536 }
 0x68c   :  { %v2565_v7 = vsub.f32 %v10962_v19, %v2537_v62 }
 0x68e   :  { %v11010_v59 = vpop.eup %8639  ;;  %v2584_v8 = vmul.f32 1.442695, %v2565_v7 }
 0x68f   :  { %v11012_v9 = vpop.eup %8641  ;;  %2614 = vadd.xlane.f32.xlu1 %v11010_v59 }
 0x690   :  { %8643 = vpow2.f32 %v2584_v8  ;;  %2612 = vadd.xlane.f32.xlu0 %v11012_v9 }
 0x693   :  { %v2539_v11 = vpop.xlane.xlu0 %2538 }
 0x694   :  { %v2566_v16 = vsub.f32 %v10967_v25, %v2539_v11 }
 0x696   :  { %v11021_v19 = vpop.eup %8643  ;;  %v2586_v20 = vmul.f32 1.442695, %v2566_v16 }
 0x697   :  { %2616 = vadd.xlane.f32.xlu2 %v11021_v19  ;;  %2558 = vmax.xlane.f32.xlu1 %v11019_v18 }
 0x698   :  { %8645 = vpow2.f32 %v2586_v20  ;;  %2548 = vmax.xlane.f32.xlu0 %v2523_v23  ;;  %v2126_v20 = vld [vmem:[%s15077_s12 + $0x78] sm:$0xff] }
 0x69b   :  { %v2541_v21 = vpop.xlane.xlu0 %2540 }
 0x69c   :  { %v2567_v22 = vsub.f32 %v10973_v17, %v2541_v21 }
 0x69e   :  { %v11026_v26 = vpop.eup %8645  ;;  %v2588_v27 = vmul.f32 1.442695, %v2567_v22 }
 0x69f   :  { %2618 = vadd.xlane.f32.xlu2 %v11026_v26 }
 0x6a0   :  { %8647 = vpow2.f32 %v2588_v27 }
 0x6a3   :  { %v2543_v25 = vpop.xlane.xlu0 %2542 }
 0x6a4   :  { %v2568_v28 = vsub.f32 %v10977_v38, %v2543_v25 }
 0x6a6   :  { %v11030_v29 = vpop.eup %8647  ;;  %v2590_v24 = vmul.f32 1.442695, %v2568_v28 }
 0x6a7   :  { %2620 = vadd.xlane.f32.xlu2 %v11030_v29 }
 0x6a8   :  { %8649 = vpow2.f32 %v2590_v24 }
 0x6ac   :  { %2438 = vperm.xlu0 %8485, %v10926_v33   ;;  %v2492_v33 = vmul.f32 0.2, %v2460_v40 }
 0x6ae   :  { %v11034_v30 = vpop.eup %8649  ;;  %v2508_v42 = vsel %vm2476_vm1, %v2460_v40, %v2492_v33  ;;  %v2805_v40 = vld [vmem:[%s15078_s14 + $0x70] sm:$0xff]  ;;  %v2804_v33 = vld [vmem:[%s15078_s14 + $0x68] sm:$0xff] }
 0x6af   :  { %2622 = vadd.xlane.f32.xlu2 %v11034_v30  ;;  %v11047_v32 = vadd.f32 %v2508_v42, %v2121_v41  ;;  %v2803_v41 = vld [vmem:[%s15078_s14 + $0x60] sm:$0xff]  ;;  %v2802_v42 = vld [vmem:[%s15078_s14 + $0x58] sm:$0xff] }
 0x6b4   :  { %2446 = vperm.xlu0 %8485, %v10934_v35   ;;  %v2462_v35 = vadd.f32 %v10942_v0, %v10999_v47 }
 0x6b6   :  { %v2494_v39 = vmul.f32 0.2, %v2462_v35  ;;  %vm2478_vm3 = vcmp.gt.f32.partialorder %v2462_v35, 0.0 }
 0x6b8   :  { %v2510_v43 = vsel %vm2478_vm3, %v2462_v35, %v2494_v39  ;;  %v2801_v35 = vld [vmem:[%s15078_s14 + $0x50] sm:$0xff]  ;;  %v2800_v39 = vld [vmem:[%s15078_s14 + $0x48] sm:$0xff] }
 0x6bc   :  { %v2545_v17 = vpop.xlane.xlu2 %2544 }
 0x6bd   :  { %v2569_v31 = vsub.f32 %v10987_v15, %v2545_v17  ;;  %v2123_v15 = vld [vmem:[%s15077_s12 + $0x60] sm:$0xff] }
 0x6be   :  { %v11051_v45 = vadd.f32 %v2510_v43, %v2123_v15  ;;  %v2799_v15 = vld [vmem:[%s15078_s14 + $0x40] sm:$0xff] }
 0x6bf   :  { %v2592_v38 = vmul.f32 1.442695, %v2569_v31 }
 0x6c1   :  { %8651 = vpow2.f32 %v2592_v38 }
 0x6c4   :  { %v2547_v12 = vpop.xlane.xlu2 %2546 }
 0x6c5   :  { %v2570_v56 = vsub.f32 %v10992_v49, %v2547_v12  ;;  %v2798_v12 = vld [vmem:[%s15078_s14 + $0x38] sm:$0xff] }
 0x6c7   :  { %v11039_v34 = vpop.eup %8651 }
 0x6c8   :  { %2624 = vadd.xlane.f32.xlu2 %v11039_v34 }
 0x6cc   :  { %v2553_v48 = vpop.xlane.xlu2 %2552 }
 0x6cd   :  { %v2573_v49 = vsub.f32 %v10996_v52, %v2553_v48  ;;  %v2796_v48 = vld [vmem:[%s15078_s14 + $0x28] sm:$0xff] }
 0x6de   :  { %2550 = vmax.xlane.f32.xlu0 %v11047_v32 }
 0x6e6   :  { %2554 = vmax.xlane.f32.xlu0 %v11051_v45 }
 0x6fa   :  { %v2611_v44 = vpop.xlane.xlu0 %2610 }
 0x6fb   :  { %8653 = vrcp.f32 %v2611_v44 }
 0x701   :  { %v8654_v46 = vpop.eup %8653 }
 0x702   :  { %v2658_v36 = vmul.f32 %v8654_v46, %v11004_v2  ;;  %v2615_v37 = vpop.xlane.xlu1 %2614  ;;  %v2797_v46 = vld [vmem:[%s15078_s14 + $0x30] sm:$0xff] }
 0x703   :  { %v2613_v51 = vpop.xlane.xlu0 %2612 }
 0x704   :  { %8655 = vrcp.f32 %v2613_v51  ;;  %2694 = vmatmul.f32.vlgmr.msrb.gmra.mxu3 %v2658_v36  ;;  %v2795_v51 = vld [vmem:[%s15078_s14 + $0x20] sm:$0xff] }
 0x705   :  { %8657 = vrcp.f32 %v2615_v37 }
 0x70a   :  { %v8656_v47 = vpop.eup %8655  ;;  %v2617_v53 = vpop.xlane.xlu2 %2616 }
 0x70b   :  { %v2549_v58 = vpop.xlane.xlu0 %2548  ;;  %v2659_v60 = vmul.f32 %v8656_v47, %v11012_v9  ;;  %v8658_v50 = vpop.eup %8657  ;;  %v2124_v9 = vld [vmem:[%s15077_s12 + $0x68] sm:$0xff]  ;;  %v2794_v47 = vld [vmem:[%s15078_s14 + $0x18] sm:$0xff] }
 0x70c   :  { %v2571_v61 = vsub.f32 %v2523_v23, %v2549_v58  ;;  %v2660_v1 = vmul.f32 %v8658_v50, %v11010_v59  ;;  %v2594_v59 = vmul.f32 1.442695, %v2570_v56  ;;  %v2600_v23 = vmul.f32 1.442695, %v2573_v49 }
 0x70d   :  { %2697 = vmatmul.f32.gmra.mxu3 %v2659_v60  ;;  %v2793_v60 = vld [vmem:[%s15078_s14 + $0x10] sm:$0xff] }
 0x70e   :  { %v2596_v6 = vmul.f32 1.442695, %v2571_v61  ;;  %v2792_v61 = vld [vmem:[%s15078_s14 + $0x8] sm:$0xff] }
 0x710   :  { %8659 = vpow2.f32 %v2596_v6  ;;  %v2791_v6 = vld [vmem:[%s15078_s14] sm:$0xff] }
 0x711   :  { %8661 = vrcp.f32 %v2617_v53 }
 0x712   :  { %v2619_v57 = vpop.xlane.xlu2 %2618 }
 0x713   :  { %8663 = vrcp.f32 %v2619_v57 }
 0x715   :  { %2700 = vmatmul.f32.gmra.mxu3 %v2660_v1 }
 0x716   :  { %v11057_v63 = vpop.eup %8659 }
 0x717   :  { %2628 = vadd.xlane.f32.xlu1 %v11057_v63  ;;  %v8662_v2 = vpop.eup %8661 }
 0x718   :  { %v2661_v3 = vmul.f32 %v8662_v2, %v11021_v19 }
 0x719   :  { %v8664_v5 = vpop.eup %8663 }
 0x71a   :  { %v2621_v4 = vpop.xlane.xlu2 %2620  ;;  %v2662_v55 = vmul.f32 %v8664_v5, %v11026_v26  ;;  %v2559_v26 = vpop.xlane.xlu1 %2558 }
 0x71b   :  { %8665 = vrcp.f32 %v2621_v4 }
 0x71c   :  { %8667 = vpow2.f32 %v2594_v59 }
 0x71d   :  { %2703 = vmatmul.f32.gmra.mxu3 %v2661_v3 }
 0x71e   :  { %v2439_v62 = vpop.permute.xlu0 %2438 }
 0x71f   :  { %v2463_v7 = vadd.f32 %v10942_v0, %v2439_v62 }
 0x721   :  { %v2495_v8 = vmul.f32 0.2, %v2463_v7  ;;  %vm2479_vm4 = vcmp.gt.f32.partialorder %v2463_v7, 0.0  ;;  %v8666_v16 = vpop.eup %8665 }
 0x722   :  { %v2623_v13 = vpop.xlane.xlu2 %2622  ;;  %v2663_v21 = vmul.f32 %v8666_v16, %v11030_v29  ;;  %v11074_v25 = vpop.eup %8667 }
 0x723   :  { %v2511_v14 = vsel %vm2479_vm4, %v2463_v7, %v2495_v8  ;;  %8669 = vrcp.f32 %v2623_v13 }
 0x724   :  { %v11065_v10 = vadd.f32 %v2511_v14, %v2124_v9  ;;  %8671 = vpow2.f32 %v2600_v23 }
 0x725   :  { %2706 = vmatmul.f32.gmra.mxu3 %v2662_v55 }
 0x726   :  { %2556 = vmax.xlane.f32.xlu0 %v11065_v10  ;;  %v2447_v11 = vpop.permute.xlu0 %2446 }
 0x727   :  { %v2465_v54 = vadd.f32 %v10942_v0, %v2447_v11  ;;  %v2576_v0 = vsub.f32 %v11019_v18, %v2559_v26 }
 0x729   :  { %v2497_v19 = vmul.f32 0.2, %v2465_v54  ;;  %vm2481_vm5 = vcmp.gt.f32.partialorder %v2465_v54, 0.0  ;;  %v8670_v52 = vpop.eup %8669  ;;  %v2606_v28 = vmul.f32 1.442695, %v2576_v0 }
 0x72a   :  { %v2664_v29 = vmul.f32 %v8670_v52, %v11034_v30  ;;  %v11080_v24 = vpop.eup %8671  ;;  %v2806_v30 = vld [vmem:[%s15078_s14 + $0x78] sm:$0xff] }
 0x72b   :  { %v2513_v22 = vsel %vm2481_vm5, %v2465_v54, %v2497_v19  ;;  %8673 = vpow2.f32 %v2606_v28  ;;  %2807 = vmatpush.msrb.mxu0 %v2806_v30 }
 0x72c   :  { %v11072_v27 = vadd.f32 %v2513_v22, %v2126_v20 }
 0x72d   :  { %2709 = vmatmul.f32.gmra.mxu3 %v2663_v21  ;;  %2808 = vmatpush.msrb.mxu0 %v2805_v40 }
 0x72e   :  { %2560 = vmax.xlane.f32.xlu2 %v11072_v27  ;;  %2626 = vadd.xlane.f32.xlu0 %v11074_v25 }
 0x72f   :  { %2809 = vmatpush.msrb.mxu0 %v2804_v33 }
 0x731   :  { %v11083_v31 = vpop.eup %8673  ;;  %2810 = vmatpush.msrb.mxu0 %v2803_v41 }
 0x733   :  { %2811 = vmatpush.msrb.mxu0 %v2802_v42 }
 0x735   :  { %2712 = vmatmul.f32.gmra.mxu3 %v2664_v29  ;;  %2812 = vmatpush.msrb.mxu0 %v2801_v35 }
 0x736   :  { %2632 = vadd.xlane.f32.xlu2 %v11080_v24 }
 0x737   :  { %2813 = vmatpush.msrb.mxu0 %v2800_v39 }
 0x739   :  { %2814 = vmatpush.msrb.mxu0 %v2799_v15  ;;  %v2886_v15 = vld [vmem:[%s15080_s2 + $0x70] sm:$0xff] }
 0x73b   :  { %v2625_v17 = vpop.xlane.xlu2 %2624  ;;  %2815 = vmatpush.msrb.mxu0 %v2798_v12  ;;  %v2885_v12 = vld [vmem:[%s15080_s2 + $0x68] sm:$0xff] }
 0x73c   :  { %8675 = vrcp.f32 %v2625_v17 }
 0x73d   :  { %2816 = vmatpush.msrb.mxu0 %v2797_v46  ;;  %v2884_v46 = vld [vmem:[%s15080_s2 + $0x60] sm:$0xff] }
 0x73e   :  { %2638 = vadd.xlane.f32.xlu2 %v11083_v31 }
 0x73f   :  { %2817 = vmatpush.msrb.mxu0 %v2796_v48 }
 0x741   :  { %2818 = vmatpush.msrb.mxu0 %v2795_v51  ;;  %v2882_v51 = vld [vmem:[%s15080_s2 + $0x50] sm:$0xff] }
 0x742   :  { %v8676_v18 = vpop.eup %8675 }
 0x743   :  { %v2665_v38 = vmul.f32 %v8676_v18, %v11039_v34  ;;  %2819 = vmatpush.msrb.mxu0 %v2794_v47  ;;  %v2881_v47 = vld [vmem:[%s15080_s2 + $0x48] sm:$0xff] }
 0x745   :  { %2715 = vmatmul.f32.gmra.mxu3 %v2665_v38  ;;  %2820 = vmatpush.msrb.mxu0 %v2793_v60 }
 0x747   :  { %2821 = vmatpush.msrb.mxu0 %v2792_v61 }
 0x749   :  { %2822 = vmatpush.msrb.mxu0 %v2791_v6  ;;  %v2879_v6 = vld [vmem:[%s15080_s2 + $0x38] sm:$0xff] }
 0x751   :  { %v2551_v34 = vpop.xlane.xlu0 %2550 }
 0x752   :  { %v2572_v43 = vsub.f32 %v11047_v32, %v2551_v34 }
 0x754   :  { %v2598_v44 = vmul.f32 1.442695, %v2572_v43 }
 0x756   :  { %8677 = vpow2.f32 %v2598_v44 }
 0x759   :  { %v2555_v36 = vpop.xlane.xlu0 %2554 }
 0x75a   :  { %v2574_v37 = vsub.f32 %v11051_v45, %v2555_v36  ;;  %v11112_v45 = vld [vmem:[%s15079_s28] ss:$0 sm:$0xff]  ;;  %v2883_v36 = vld [vmem:[%s15080_s2 + $0x58] sm:$0xff] }
 0x75c   :  { %v11102_v32 = vpop.eup %8677  ;;  %v2602_v53 = vmul.f32 1.442695, %v2574_v37 }
 0x75d   :  { %2630 = vadd.xlane.f32.xlu0 %v11102_v32 }
 0x75e   :  { %8679 = vpow2.f32 %v2602_v53  ;;  %v2880_v53 = vld [vmem:[%s15080_s2 + $0x40] sm:$0xff] }
 0x764   :  { %v11105_v58 = vpop.eup %8679 }
 0x765   :  { %2634 = vadd.xlane.f32.xlu1 %v11105_v58 }
 0x787   :  { %v2695_v50 = vpop.f32.mrf.mxu3 }
 0x788   :  { %v2696_v57 = vadd.f32 %v11112_v45, %v2695_v50  ;;  %v2878_v50 = vld [vmem:[%s15080_s2 + $0x30] sm:$0xff] }
 0x78a   :  { %vm2743_vm6 = vcmp.gt.f32.partialorder %v2696_v57, 0.0  ;;  %v2759_v1 = vmul.f32 0.01, %v2696_v57 }
 0x78c   :  { %v2775_v2 = vsel %vm2743_vm6, %v2696_v57, %v2759_v1  ;;  %v2877_v1 = vld [vmem:[%s15080_s2 + $0x28] sm:$0xff] }
 0x78d   :  { %2823 = vmatmul.f32.vlgmr.msrb.gmra.mxu0 %v2775_v2 }
 0x790   :  { %v2698_v3 = vpop.f32.mrf.mxu3 }
 0x791   :  { %v2699_v4 = vadd.f32 %v11112_v45, %v2698_v3  ;;  %v2876_v3 = vld [vmem:[%s15080_s2 + $0x20] sm:$0xff] }
 0x793   :  { %vm2744_vm7 = vcmp.gt.f32.partialorder %v2699_v4, 0.0  ;;  %v2760_v62 = vmul.f32 0.01, %v2699_v4 }
 0x795   :  { %v2776_v56 = vsel %vm2744_vm7, %v2699_v4, %v2760_v62  ;;  %v2875_v62 = vld [vmem:[%s15080_s2 + $0x18] sm:$0xff] }
 0x796   :  { %2826 = vmatmul.f32.gmra.mxu0 %v2776_v56  ;;  %v2873_v56 = vld [vmem:[%s15080_s2 + $0x8] sm:$0xff] }
 0x798   :  { %v2701_v7 = vpop.f32.mrf.mxu3 }
 0x799   :  { %v2702_v5 = vadd.f32 %v11112_v45, %v2701_v7  ;;  %v2557_v8 = vpop.xlane.xlu0 %2556 }
 0x79a   :  { %v2575_v9 = vsub.f32 %v11065_v10, %v2557_v8  ;;  %v2629_v10 = vpop.xlane.xlu1 %2628  ;;  %v2872_v8 = vld [vmem:[%s15080_s2] sm:$0xff] }
 0x79b   :  { %vm2745_vm2 = vcmp.gt.f32.partialorder %v2702_v5, 0.0  ;;  %v2761_v59 = vmul.f32 0.01, %v2702_v5 }
 0x79c   :  { %v2604_v55 = vmul.f32 1.442695, %v2575_v9 }
 0x79d   :  { %v2777_v14 = vsel %vm2745_vm2, %v2702_v5, %v2761_v59 }
 0x79e   :  { %8681 = vpow2.f32 %v2604_v55  ;;  %2829 = vmatmul.f32.gmra.mxu0 %v2777_v14 }
 0x7a0   :  { %v2704_v11 = vpop.f32.mrf.mxu3 }
 0x7a1   :  { %v2705_v49 = vadd.f32 %v11112_v45, %v2704_v11  ;;  %v2627_v13 = vpop.xlane.xlu0 %2626  ;;  %v2561_v54 = vpop.xlane.xlu2 %2560 }
 0x7a2   :  { %8683 = vrcp.f32 %v2627_v13  ;;  %v2577_v16 = vsub.f32 %v11072_v27, %v2561_v54 }
 0x7a3   :  { %vm2746_vm8 = vcmp.gt.f32.partialorder %v2705_v49, 0.0  ;;  %v2762_v19 = vmul.f32 0.01, %v2705_v49 }
 0x7a4   :  { %v11120_v20 = vpop.eup %8681  ;;  %v2608_v23 = vmul.f32 1.442695, %v2577_v16 }
 0x7a5   :  { %2636 = vadd.xlane.f32.xlu0 %v11120_v20  ;;  %v2778_v21 = vsel %vm2746_vm8, %v2705_v49, %v2762_v19 }
 0x7a6   :  { %8685 = vpow2.f32 %v2608_v23  ;;  %2832 = vmatmul.f32.gmra.mxu0 %v2778_v21 }
 0x7a7   :  { %8687 = vrcp.f32 %v2629_v10 }
 0x7a8   :  { %v8684_v22 = vpop.eup %8683  ;;  %v2707_v26 = vpop.f32.mrf.mxu3 }
 0x7a9   :  { %v2708_v0 = vadd.f32 %v11112_v45, %v2707_v26  ;;  %v2666_v52 = vmul.f32 %v8684_v22, %v11074_v25  ;;  %v2633_v37 = vpop.xlane.xlu2 %2632 }
 0x7ab   :  { %2718 = vmatmul.f32.gmra.mxu3 %v2666_v52  ;;  %vm2747_vm9 = vcmp.gt.f32.partialorder %v2708_v0, 0.0  ;;  %v2763_v27 = vmul.f32 0.01, %v2708_v0 }
 0x7ac   :  { %v11125_v28 = vpop.eup %8685 }
 0x7ad   :  { %2640 = vadd.xlane.f32.xlu1 %v11125_v28  ;;  %v2779_v29 = vsel %vm2747_vm9, %v2708_v0, %v2763_v27  ;;  %v8688_v17 = vpop.eup %8687 }
 0x7ae   :  { %2835 = vmatmul.f32.gmra.mxu0 %v2779_v29  ;;  %v2667_v30 = vmul.f32 %v8688_v17, %v11057_v63  ;;  %v2887_v63 = vld [vmem:[%s15080_s2 + $0x78] sm:$0xff] }
 0x7af   :  { %2888 = vmatpush.msra.mxu1 %v2887_v63 }
 0x7b0   :  { %v2710_v18 = vpop.f32.mrf.mxu3 }
 0x7b1   :  { %v2711_v38 = vadd.f32 %v11112_v45, %v2710_v18  ;;  %2889 = vmatpush.msra.mxu1 %v2886_v15  ;;  %v2639_v14 = vpop.xlane.xlu2 %2638 }
 0x7b3   :  { %2721 = vmatmul.f32.gmra.mxu3 %v2667_v30  ;;  %vm2748_vm10 = vcmp.gt.f32.partialorder %v2711_v38, 0.0  ;;  %v2764_v25 = vmul.f32 0.01, %v2711_v38  ;;  %2890 = vmatpush.msra.mxu1 %v2885_v12 }
 0x7b5   :  { %v2780_v40 = vsel %vm2748_vm10, %v2711_v38, %v2764_v25  ;;  %2891 = vmatpush.msra.mxu1 %v2884_v46 }
 0x7b6   :  { %2838 = vmatmul.f32.gmra.mxu0 %v2780_v40 }
 0x7b7   :  { %2892 = vmatpush.msra.mxu1 %v2883_v36 }
 0x7b8   :  { %v2713_v33 = vpop.f32.mrf.mxu3 }
 0x7b9   :  { %v2714_v41 = vadd.f32 %v11112_v45, %v2713_v33  ;;  %2893 = vmatpush.msra.mxu1 %v2882_v51 }
 0x7bb   :  { %vm2749_vm11 = vcmp.gt.f32.partialorder %v2714_v41, 0.0  ;;  %v2765_v42 = vmul.f32 0.01, %v2714_v41  ;;  %2894 = vmatpush.msra.mxu1 %v2881_v47 }
 0x7bd   :  { %v2781_v35 = vsel %vm2749_vm11, %v2714_v41, %v2765_v42  ;;  %2895 = vmatpush.msra.mxu1 %v2880_v53 }
 0x7be   :  { %2841 = vmatmul.f32.gmra.mxu0 %v2781_v35 }
 0x7bf   :  { %2896 = vmatpush.msra.mxu1 %v2879_v6 }
 0x7c1   :  { %2897 = vmatpush.msra.mxu1 %v2878_v50 }
 0x7c3   :  { %2898 = vmatpush.msra.mxu1 %v2877_v1 }
 0x7c5   :  { %2899 = vmatpush.msra.mxu1 %v2876_v3 }
 0x7c7   :  { %2900 = vmatpush.msra.mxu1 %v2875_v62 }
 0x7c8   :  { %v2716_v39 = vpop.f32.mrf.mxu3 }
 0x7c9   :  { %v2717_v34 = vadd.f32 %v11112_v45, %v2716_v39 }
 0x7cb   :  { %vm2750_vm12 = vcmp.gt.f32.partialorder %v2717_v34, 0.0  ;;  %v2766_v43 = vmul.f32 0.01, %v2717_v34 }
 0x7cd   :  { %v2782_v44 = vsel %vm2750_vm12, %v2717_v34, %v2766_v43 }
 0x7ce   :  { %2844 = vmatmul.f32.gmra.mxu0 %v2782_v44 }
 0x7d0   :  { %v2631_v48 = vpop.xlane.xlu0 %2630 }
 0x7d1   :  { %8689 = vrcp.f32 %v2631_v48 }
 0x7d2   :  { %8691 = vrcp.f32 %v2633_v37 }
 0x7d7   :  { %v8690_v60 = vpop.eup %8689 }
 0x7d8   :  { %v2668_v61 = vmul.f32 %v8690_v60, %v11102_v32  ;;  %v2635_v57 = vpop.xlane.xlu1 %2634  ;;  %v8692_v2 = vpop.eup %8691  ;;  %v2874_v32 = vld [vmem:[%s15080_s2 + $0x10] sm:$0xff] }
 0x7d9   :  { %8693 = vrcp.f32 %v2635_v57  ;;  %v2669_v4 = vmul.f32 %v8692_v2, %v11080_v24  ;;  %2901 = vmatpush.msra.mxu1 %v2874_v32 }
 0x7da   :  { %2724 = vmatmul.f32.gmra.mxu3 %v2668_v61 }
 0x7db   :  { %2902 = vmatpush.msra.mxu1 %v2873_v56 }
 0x7dd   :  { %2903 = vmatpush.msra.mxu1 %v2872_v8 }
 0x7df   :  { %v8694_v7 = vpop.eup %8693 }
 0x7e0   :  { %v2670_v5 = vmul.f32 %v8694_v7, %v11105_v58 }
 0x7e2   :  { %2727 = vmatmul.f32.gmra.mxu3 %v2669_v4 }
 0x7ea   :  { %2730 = vmatmul.f32.gmra.mxu3 %v2670_v5 }
 0x80a   :  { %v11151_v9 = vpop.f32.mrf.mxu0 }
 0x80b   :  { %2904 = vmatmul.f32.vlgmr.msra.gmra.mxu1 %v11151_v9 }
 0x813   :  { %v11154_v59 = vpop.f32.mrf.mxu0 }
 0x814   :  { %2907 = vmatmul.f32.gmra.mxu1 %v11154_v59 }
 0x818   :  { %v2637_v24 = vpop.xlane.xlu0 %2636 }
 0x819   :  { %8695 = vrcp.f32 %v2637_v24 }
 0x81a   :  { %8697 = vrcp.f32 %v2639_v14 }
 0x81b   :  { %v11157_v55 = vpop.f32.mrf.mxu0 }
 0x81c   :  { %2910 = vmatmul.f32.gmra.mxu1 %v11157_v55 }
 0x81f   :  { %v8696_v11 = vpop.eup %8695 }
 0x820   :  { %v2671_v58 = vmul.f32 %v8696_v11, %v11120_v20  ;;  %v2641_v13 = vpop.xlane.xlu1 %2640  ;;  %v8698_v54 = vpop.eup %8697 }
 0x821   :  { %8699 = vrcp.f32 %v2641_v13  ;;  %v2672_v16 = vmul.f32 %v8698_v54, %v11083_v31 }
 0x822   :  { %2733 = vmatmul.f32.gmra.mxu3 %v2671_v58 }
 0x823   :  { %v11161_v49 = vpop.f32.mrf.mxu0 }
 0x824   :  { %2913 = vmatmul.f32.gmra.mxu1 %v11161_v49 }
 0x827   :  { %v8700_v23 = vpop.eup %8699 }
 0x828   :  { %v2673_v20 = vmul.f32 %v8700_v23, %v11125_v28 }
 0x82a   :  { %2736 = vmatmul.f32.gmra.mxu3 %v2672_v16 }
 0x82b   :  { %v11165_v19 = vpop.f32.mrf.mxu0 }
 0x82c   :  { %2916 = vmatmul.f32.gmra.mxu1 %v11165_v19 }
 0x82e   :  { %v2719_v10 = vpop.f32.mrf.mxu3 }
 0x82f   :  { %v2720_v21 = vadd.f32 %v11112_v45, %v2719_v10 }
 0x831   :  { %vm2751_vm13 = vcmp.gt.f32.partialorder %v2720_v21, 0.0  ;;  %v2767_v22 = vmul.f32 0.01, %v2720_v21 }
 0x832   :  { %2739 = vmatmul.f32.gmra.mxu3 %v2673_v20 }
 0x833   :  { %v11170_v26 = vpop.f32.mrf.mxu0  ;;  %v2783_v0 = vsel %vm2751_vm13, %v2720_v21, %v2767_v22 }
 0x834   :  { %2847 = vmatmul.f32.gmra.mxu0 %v2783_v0  ;;  %2919 = vmatmul.f32.gmra.mxu1 %v11170_v26 }
 0x836   :  { %v2722_v31 = vpop.f32.mrf.mxu3 }
 0x837   :  { %v2723_v52 = vadd.f32 %v11112_v45, %v2722_v31 }
 0x839   :  { %vm2752_vm14 = vcmp.gt.f32.partialorder %v2723_v52, 0.0  ;;  %v2768_v27 = vmul.f32 0.01, %v2723_v52 }
 0x83b   :  { %v11174_v29 = vpop.f32.mrf.mxu0  ;;  %v2784_v17 = vsel %vm2752_vm14, %v2723_v52, %v2768_v27 }
 0x83c   :  { %2850 = vmatmul.f32.gmra.mxu0 %v2784_v17  ;;  %2922 = vmatmul.f32.gmra.mxu1 %v11174_v29 }
 0x84b   :  { %v11177_v28 = vpop.f32.mrf.mxu0 }
 0x84c   :  { %2925 = vmatmul.f32.gmra.mxu1 %v11177_v28 }
 0x85d   :  { %v2725_v18 = vpop.f32.mrf.mxu3 }
 0x85e   :  { %v2726_v38 = vadd.f32 %v11112_v45, %v2725_v18 }
 0x860   :  { %vm2753_vm15 = vcmp.gt.f32.partialorder %v2726_v38, 0.0  ;;  %v2769_v30 = vmul.f32 0.01, %v2726_v38 }
 0x862   :  { %v2785_v25 = vsel %vm2753_vm15, %v2726_v38, %v2769_v30 }
 0x863   :  { %2853 = vmatmul.f32.gmra.mxu0 %v2785_v25 }
 0x865   :  { %v2728_v40 = vpop.f32.mrf.mxu3 }
 0x866   :  { %v2729_v33 = vadd.f32 %v11112_v45, %v2728_v40 }
 0x868   :  { %vm2754_vm0 = vcmp.gt.f32.partialorder %v2729_v33, 0.0  ;;  %v2770_v41 = vmul.f32 0.01, %v2729_v33 }
 0x86a   :  { %v2786_v42 = vsel %vm2754_vm0, %v2729_v33, %v2770_v41 }
 0x86b   :  { %2856 = vmatmul.f32.gmra.mxu0 %v2786_v42 }
 0x86d   :  { %v2731_v35 = vpop.f32.mrf.mxu3 }
 0x86e   :  { %v2732_v39 = vadd.f32 %v11112_v45, %v2731_v35 }
 0x870   :  { %vm2755_vm1 = vcmp.gt.f32.partialorder %v2732_v39, 0.0  ;;  %v2771_v34 = vmul.f32 0.01, %v2732_v39 }
 0x872   :  { %v2787_v63 = vsel %vm2755_vm1, %v2732_v39, %v2771_v34 }
 0x873   :  { %2859 = vmatmul.f32.gmra.mxu0 %v2787_v63 }
 0x888   :  { %v2905_v15 = vpop.f32.mrf.mxu1 }
 0x889   :  { %2969 = vrot.lane.b32.xlu0 %v2905_v15, %s9816_s0 }
 0x891   :  { %v2908_v43 = vpop.f32.mrf.mxu1  ;;  %3050 = vperm.xlu0 %8485, %v2905_v15  }
 0x892   :  { %2971 = vrot.lane.b32.xlu2 %v2908_v43, %s9816_s0 }
 0x899   :  { %v2911_v12 = vpop.f32.mrf.mxu1 }
 0x89a   :  { %3054 = vperm.xlu2 %8484, %v2908_v43   ;;  %2973 = vrot.lane.b32.xlu1 %v2911_v12, %s9816_s0 }
 0x8a1   :  { %v2914_v44 = vpop.f32.mrf.mxu1 }
 0x8a2   :  { %3062 = vperm.xlu2 %8484, %v2914_v44   ;;  %2975 = vrot.lane.b32.xlu0 %v2914_v44, %s9816_s0 }
 0x8a3   :  { %3058 = vperm.xlu1 %8483, %v2911_v12  }
 0x8a5   :  { %v2734_v46 = vpop.f32.mrf.mxu3 }
 0x8a6   :  { %v2735_v48 = vadd.f32 %v11112_v45, %v2734_v46 }
 0x8a8   :  { %vm2756_vm3 = vcmp.gt.f32.partialorder %v2735_v48, 0.0  ;;  %v2772_v36 = vmul.f32 0.01, %v2735_v48 }
 0x8a9   :  { %v2917_v51 = vpop.f32.mrf.mxu1 }
 0x8aa   :  { %2977 = vrot.lane.b32.xlu0 %v2917_v51, %s9816_s0  ;;  %v2788_v37 = vsel %vm2756_vm3, %v2735_v48, %v2772_v36 }
 0x8ab   :  { %3066 = vperm.xlu1 %8483, %v2917_v51   ;;  %2862 = vmatmul.f32.gmra.mxu0 %v2788_v37  ;;  %v9405_v37 = vld [vmem:[%s15077_s12 + $0x8] sm:$0xff] }
 0x8ad   :  { %v2737_v47 = vpop.f32.mrf.mxu3 }
 0x8ae   :  { %v2738_v53 = vadd.f32 %v11112_v45, %v2737_v47 }
 0x8b0   :  { %vm2757_vm4 = vcmp.gt.f32.partialorder %v2738_v53, 0.0  ;;  %v2773_v60 = vmul.f32 0.01, %v2738_v53 }
 0x8b1   :  { %v2848_v61 = vpop.f32.mrf.mxu0  ;;  %v2920_v6 = vpop.f32.mrf.mxu1 }
 0x8b2   :  { %2979 = vrot.lane.b32.xlu2 %v2920_v6, %s9816_s0  ;;  %2928 = vmatmul.f32.gmra.mxu1 %v2848_v61  ;;  %v2789_v50 = vsel %vm2757_vm4, %v2738_v53, %v2773_v60  ;;  %v9406_v53 = vld [vmem:[%s15077_s12] sm:$0xff] }
 0x8b3   :  { %2865 = vmatmul.f32.gmra.mxu0 %v2789_v50 }
 0x8b5   :  { %v2740_v57 = vpop.f32.mrf.mxu3 }
 0x8b6   :  { %v2741_v1 = vadd.f32 %v11112_v45, %v2740_v57 }
 0x8b8   :  { %vm2758_vm5 = vcmp.gt.f32.partialorder %v2741_v1, 0.0  ;;  %v2774_v2 = vmul.f32 0.01, %v2741_v1 }
 0x8b9   :  { %v2851_v3 = vpop.f32.mrf.mxu0  ;;  %v2923_v4 = vpop.f32.mrf.mxu1 }
 0x8ba   :  { %3070 = vperm.xlu2 %8484, %v2920_v6   ;;  %2931 = vmatmul.f32.gmra.mxu1 %v2851_v3  ;;  %v2790_v62 = vsel %vm2758_vm5, %v2741_v1, %v2774_v2  ;;  %v9407_v2 = vld [vmem:[%s15077_s12 + $0x10] sm:$0xff] }
 0x8bb   :  { %2981 = vrot.lane.b32.xlu1 %v2923_v4, %s9816_s0  ;;  %2868 = vmatmul.f32.gmra.mxu0 %v2790_v62 }
 0x8c2   :  { %3074 = vperm.xlu2 %8484, %v2923_v4   ;;  %v9408_v4 = vld [vmem:[%s15077_s12 + $0x18] sm:$0xff] }
 0x8c9   :  { %v2926_v32 = vpop.f32.mrf.mxu1 }
 0x8ca   :  { %2983 = vrot.lane.b32.xlu0 %v2926_v32, %s9816_s0  ;;  %3078 = vperm.xlu1 %8483, %v2926_v32  }
 0x8e0   :  { %v2854_v56 = vpop.f32.mrf.mxu0 }
 0x8e1   :  { %2934 = vmatmul.f32.gmra.mxu1 %v2854_v56 }
 0x8e8   :  { %v2857_v7 = vpop.f32.mrf.mxu0 }
 0x8e9   :  { %2937 = vmatmul.f32.gmra.mxu1 %v2857_v7 }
 0x8f0   :  { %v2860_v45 = vpop.f32.mrf.mxu0 }
 0x8f1   :  { %2940 = vmatmul.f32.gmra.mxu1 %v2860_v45 }
 0x90c   :  { %v2974_v10 = vpop.permute.xlu1 %2973 }
 0x915   :  { %v3059_v22 = vpop.permute.xlu1 %3058 }
 0x91d   :  { %v3067_v31 = vpop.permute.xlu1 %3066 }
 0x928   :  { %v2863_v5 = vpop.f32.mrf.mxu0 }
 0x929   :  { %2943 = vmatmul.f32.gmra.mxu1 %v2863_v5 }
 0x92d   :  { %v2982_v27 = vpop.permute.xlu1 %2981 }
 0x92f   :  { %v2929_v8 = vpop.f32.mrf.mxu1 }
 0x930   :  { %2985 = vrot.lane.b32.xlu2 %v2929_v8, %s9816_s0  ;;  %v2866_v24 = vpop.f32.mrf.mxu0 }
 0x931   :  { %2946 = vmatmul.f32.gmra.mxu1 %v2866_v24 }
 0x937   :  { %v2932_v14 = vpop.f32.mrf.mxu1 }
 0x938   :  { %3082 = vperm.xlu2 %8484, %v2929_v8   ;;  %2987 = vrot.lane.b32.xlu1 %v2932_v14, %s9816_s0  ;;  %v2869_v11 = vpop.f32.mrf.mxu0 }
 0x939   :  { %2949 = vmatmul.f32.gmra.mxu1 %v2869_v11  ;;  %3342 = vmatpush.msra.mxu2 %v2869_v11 }
 0x93b   :  { %3343 = vmatpush.msra.mxu2 %v2866_v24 }
 0x93c   :  { %v11221_v18 = vpop.permute.xlu1 %3078 }
 0x93d   :  { %3344 = vmatpush.msra.mxu2 %v2863_v5 }
 0x93f   :  { %3345 = vmatpush.msra.mxu2 %v2860_v45 }
 0x940   :  { %3086 = vperm.xlu2 %8484, %v2932_v14   ;;  %v9410_v14 = vld [vmem:[%s15077_s12 + $0x30] sm:$0xff] }
 0x941   :  { %3346 = vmatpush.msra.mxu2 %v2857_v7  ;;  %v9409_v7 = vld [vmem:[%s15077_s12 + $0x20] sm:$0xff] }
 0x943   :  { %3347 = vmatpush.msra.mxu2 %v2854_v56 }
 0x945   :  { %3348 = vmatpush.msra.mxu2 %v2851_v3 }
 0x947   :  { %3349 = vmatpush.msra.mxu2 %v2848_v61 }
 0x949   :  { %3350 = vmatpush.msra.mxu2 %v11177_v28 }
 0x94b   :  { %3351 = vmatpush.msra.mxu2 %v11174_v29 }
 0x94d   :  { %3352 = vmatpush.msra.mxu2 %v11170_v26 }
 0x94f   :  { %3353 = vmatpush.msra.mxu2 %v11165_v19 }
 0x951   :  { %3354 = vmatpush.msra.mxu2 %v11161_v49 }
 0x953   :  { %3355 = vmatpush.msra.mxu2 %v11157_v55  ;;  %v2972_v55 = vpop.permute.xlu2 %2971 }
 0x955   :  { %3356 = vmatpush.msra.mxu2 %v11154_v59  ;;  %v2970_v59 = vpop.permute.xlu0 %2969 }
 0x957   :  { %3357 = vmatpush.msra.mxu2 %v11151_v9 }
 0x95b   :  { %v3055_v19 = vpop.permute.xlu2 %3054 }
 0x95d   :  { %v3051_v23 = vpop.permute.xlu0 %3050 }
 0x95e   :  { %v2935_v58 = vpop.f32.mrf.mxu1 }
 0x95f   :  { %2989 = vrot.lane.b32.xlu0 %v2935_v58, %s9816_s0 }
 0x963   :  { %v3063_v20 = vpop.permute.xlu2 %3062 }
 0x965   :  { %v2976_v21 = vpop.permute.xlu0 %2975 }
 0x966   :  { %v2938_v13 = vpop.f32.mrf.mxu1 }
 0x967   :  { %2991 = vrot.lane.b32.xlu2 %v2938_v13, %s9816_s0 }
 0x96b   :  { %v2980_v26 = vpop.permute.xlu2 %2979 }
 0x96d   :  { %v2978_v0 = vpop.permute.xlu0 %2977 }
 0x96e   :  { %v2941_v54 = vpop.f32.mrf.mxu1 }
 0x96f   :  { %2993 = vrot.lane.b32.xlu1 %v2941_v54, %s9816_s0 }
 0x973   :  { %v11219_v52 = vpop.permute.xlu2 %3070 }
 0x975   :  { %v2984_v17 = vpop.permute.xlu0 %2983 }
 0x97b   :  { %v3075_v29 = vpop.permute.xlu2 %3074 }
 0x98a   :  { %v2986_v28 = vpop.permute.xlu2 %2985 }
 0x992   :  { %v11223_v38 = vpop.permute.xlu2 %3082 }
 0x99a   :  { %v11225_v25 = vpop.permute.xlu2 %3086 }
 0x9a6   :  { %v11207_v16 = vpop.f32.mrf.mxu1 }
 0x9a7   :  { %2995 = vrot.lane.b32.xlu0 %v11207_v16, %s9816_s0 }
 0x9aa   :  { %v2988_v30 = vpop.permute.xlu1 %2987 }
 0x9ae   :  { %v11211_v49 = vpop.f32.mrf.mxu1 }
 0x9af   :  { %2997 = vrot.lane.b32.xlu2 %v11211_v49, %s9816_s0 }
 0x9b6   :  { %v11215_v9 = vpop.f32.mrf.mxu1 }
 0x9b7   :  { %3094 = vperm.xlu2 %8484, %v2938_v13   ;;  %2999 = vrot.lane.b32.xlu1 %v11215_v9, %s9816_s0 }
 0x9bf   :  { %3098 = vperm.xlu2 %8484, %v2941_v54   ;;  %3090 = vperm.xlu1 %8483, %v2935_v58  }
 0x9c1   :  { %v2992_v33 = vpop.permute.xlu2 %2991 }
 0x9c9   :  { %3017 = vxpose.xlu0.b32.start [1/16] (narrow) %v2970_v59, 8 }
 0x9d1   :  { %3018 = vxpose.xlu0.b32.cont [2/16] (narrow) %v2972_v55, 8  ;;  %v2990_v40 = vpop.permute.xlu0 %2989 }
 0x9d9   :  { %3019 = vxpose.xlu0.b32.cont [3/16] (narrow) %v2974_v10, 8  ;;  %v9412_v10 = vld [vmem:[%s15077_s12 + $0x38] sm:$0xff] }
 0x9e1   :  { %3020 = vxpose.xlu0.b32.cont [4/16] (narrow) %v2976_v21, 8  ;;  %v2994_v41 = vpop.permute.xlu1 %2993 }
 0x9e9   :  { %3021 = vxpose.xlu0.b32.cont [5/16] (narrow) %v2978_v0, 8  ;;  %v9413_v0 = vld [vmem:[%s15077_s12 + $0x40] sm:$0xff] }
 0x9f1   :  { %3022 = vxpose.xlu0.b32.cont [6/16] (narrow) %v2980_v26, 8 }
 0x9f9   :  { %3023 = vxpose.xlu0.b32.cont [7/16] (narrow) %v2982_v27, 8 }
 0xa01   :  { %3024 = vxpose.xlu0.b32.cont [8/16] (narrow) %v2984_v17, 8 }
 0xa09   :  { %3025 = vxpose.xlu0.b32.cont [9/16] (narrow) %v2986_v28, 8  ;;  %v2998_v35 = vpop.permute.xlu2 %2997 }
 0xa11   :  { %3026 = vxpose.xlu0.b32.cont [10/16] (narrow) %v2988_v30, 8 }
 0xa19   :  { %3027 = vxpose.xlu0.b32.cont [11/16] (narrow) %v2990_v40, 8  ;;  %v2996_v42 = vpop.permute.xlu0 %2995 }
 0xa21   :  { %3028 = vxpose.xlu0.b32.cont [12/16] (narrow) %v2992_v33, 8 }
 0xa29   :  { %3029 = vxpose.xlu0.b32.cont [13/16] (narrow) %v2994_v41, 8  ;;  %v3000_v39 = vpop.permute.xlu1 %2999 }
 0xa31   :  { %3030 = vxpose.xlu0.b32.cont [14/16] (narrow) %v2996_v42, 8 }
 0xa39   :  { %3031 = vxpose.xlu0.b32.cont [15/16] (narrow) %v2998_v35, 8 }
 0xa41   :  { %3032 = vxpose.xlu0.b32.end [16/16] (narrow) %v3000_v39, 8 }
 0xa6d   :  { %v3033_v34 = vpop.trf.xlu0 }
 0xa6e   :  { %v11227_v63 = vperm.slane %v3033_v34, 0 }
 0xa70   :  { %v3115_v15 = vadd.f32 %v11227_v63, %v3055_v19  ;;  %v3114_v43 = vadd.f32 %v11227_v63, %v3051_v23  ;;  %v3116_v12 = vadd.f32 %v11227_v63, %v3059_v22  ;;  %v3117_v44 = vadd.f32 %v11227_v63, %v3063_v20 }
 0xa71   :  { %v3118_v1 = vadd.f32 %v11227_v63, %v3067_v31  ;;  %v3120_v5 = vadd.f32 %v11227_v63, %v3075_v29  ;;  %v3119_v58 = vadd.f32 %v11227_v63, %v11219_v52  ;;  %v3122_v23 = vadd.f32 %v11227_v63, %v11223_v38  ;;  %v9414_v29 = vld [vmem:[%s15077_s12 + $0x48] sm:$0xff] }
 0xa72   :  { %vm3131_vm6 = vcmp.gt.f32.partialorder %v3115_v15, 0.0  ;;  %v3147_v46 = vmul.f32 0.2, %v3115_v15  ;;  %vm3130_vm7 = vcmp.gt.f32.partialorder %v3114_v43, 0.0  ;;  %v3146_v48 = vmul.f32 0.2, %v3114_v43 }
 0xa73   :  { %v3148_v61 = vmul.f32 0.2, %v3116_v12  ;;  %v3149_v6 = vmul.f32 0.2, %v3117_v44  ;;  %vm3132_vm2 = vcmp.gt.f32.partialorder %v3116_v12, 0.0  ;;  %vm3133_vm8 = vcmp.gt.f32.partialorder %v3117_v44, 0.0 }
 0xa74   :  { %v3163_v36 = vsel %vm3131_vm6, %v3115_v15, %v3147_v46  ;;  %v3162_v51 = vsel %vm3130_vm7, %v3114_v43, %v3146_v48  ;;  %v3150_v32 = vmul.f32 0.2, %v3118_v1  ;;  %vm3134_vm9 = vcmp.gt.f32.partialorder %v3118_v1, 0.0 }
 0xa75   :  { %v11234_v47 = vadd.f32 %v9405_v37, %v3163_v36  ;;  %v11237_v60 = vadd.f32 %v9406_v53, %v3162_v51  ;;  %v3164_v50 = vsel %vm3132_vm2, %v3116_v12, %v3148_v61  ;;  %v3165_v57 = vsel %vm3133_vm8, %v3117_v44, %v3149_v6  ;;  %v9415_v6 = vld [vmem:[%s15077_s12 + $0x50] sm:$0xff] }
 0xa76   :  { %v11243_v3 = vadd.f32 %v9407_v2, %v3164_v50  ;;  %v3181_v62 = vadd.f32 %v9408_v4, %v3165_v57  ;;  %v3166_v56 = vsel %vm3134_vm9, %v3118_v1, %v3150_v32  ;;  %v3152_v8 = vmul.f32 0.2, %v3120_v5  ;;  %v9416_v4 = vld [vmem:[%s15077_s12 + $0x58] sm:$0xff] }
 0xa77   :  { %3196 = vmax.xlane.f32.xlu2 %v11234_v47  ;;  %3194 = vmax.xlane.f32.xlu1 %v11237_v60  ;;  %v11248_v45 = vadd.f32 %v9409_v7, %v3166_v56  ;;  %vm3136_vm10 = vcmp.gt.f32.partialorder %v3120_v5, 0.0  ;;  %v3151_v13 = vmul.f32 0.2, %v3119_v58  ;;  %vm3135_vm11 = vcmp.gt.f32.partialorder %v3119_v58, 0.0 }
 0xa78   :  { %v3168_v24 = vsel %vm3136_vm10, %v3120_v5, %v3152_v8  ;;  %v3154_v20 = vmul.f32 0.2, %v3122_v23  ;;  %vm3138_vm13 = vcmp.gt.f32.partialorder %v3122_v23, 0.0  ;;  %v3123_v26 = vadd.f32 %v11227_v63, %v11225_v25  ;;  %v9417_v5 = vld [vmem:[%s15077_s12 + $0x60] sm:$0xff] }
 0xa79   :  { %v11255_v11 = vadd.f32 %v9410_v14, %v3168_v24  ;;  %v3167_v54 = vsel %vm3135_vm11, %v3119_v58, %v3151_v13 }
 0xa7a   :  { %v3170_v22 = vsel %vm3138_vm13, %v3122_v23, %v3154_v20  ;;  %v3155_v52 = vmul.f32 0.2, %v3123_v26  ;;  %vm3139_vm14 = vcmp.gt.f32.partialorder %v3123_v26, 0.0 }
 0xa7b   :  { %v11276_v31 = vadd.f32 %v9413_v0, %v3170_v22 }
 0xa7c   :  { %v3171_v27 = vsel %vm3139_vm14, %v3123_v26, %v3155_v52 }
 0xa7d   :  { %v11280_v17 = vadd.f32 %v9414_v29, %v3171_v27 }
 0xa7f   :  { %3198 = vmax.xlane.f32.xlu2 %v11243_v3  ;;  %3200 = vmax.xlane.f32.xlu1 %v3181_v62 }
 0xa87   :  { %3202 = vmax.xlane.f32.xlu2 %v11248_v45 }
 0xa98   :  { %3102 = vperm.xlu1 %8483, %v11207_v16   ;;  %v3121_v16 = vadd.f32 %v11227_v63, %v11221_v18  ;;  %v3091_v18 = vpop.permute.xlu1 %3090 }
 0xa99   :  { %v3124_v12 = vadd.f32 %v11227_v63, %v3091_v18 }
 0xa9a   :  { %v3153_v55 = vmul.f32 0.2, %v3121_v16  ;;  %vm3137_vm12 = vcmp.gt.f32.partialorder %v3121_v16, 0.0 }
 0xa9b   :  { %vm3140_vm15 = vcmp.gt.f32.partialorder %v3124_v12, 0.0 }
 0xa9c   :  { %v3169_v19 = vsel %vm3137_vm12, %v3121_v16, %v3153_v55 }
 0xa9d   :  { %v11270_v21 = vadd.f32 %v9412_v10, %v3169_v19  ;;  %v9419_v19 = vld [vmem:[%s15077_s12 + $0x70] sm:$0xff] }
 0xa9f   :  { %3106 = vperm.xlu2 %8484, %v11211_v49   ;;  %v9411_v49 = vld [vmem:[%s15077_s12 + $0x28] sm:$0xff] }
 0xaa0   :  { %v11263_v59 = vadd.f32 %v9411_v49, %v3167_v54  ;;  %v9418_v54 = vld [vmem:[%s15077_s12 + $0x68] sm:$0xff] }
 0xab2   :  { %3206 = vmax.xlane.f32.xlu0 %v11255_v11 }
 0xac2   :  { %3204 = vmax.xlane.f32.xlu1 %v11263_v59 }
 0xac6   :  { %3110 = vperm.xlu0 %8485, %v11215_v9   ;;  %v3095_v9 = vpop.permute.xlu2 %3094 }
 0xaca   :  { %3208 = vmax.xlane.f32.xlu1 %v11270_v21 }
 0xace   :  { %v3099_v28 = vpop.permute.xlu2 %3098 }
 0xad2   :  { %3210 = vmax.xlane.f32.xlu1 %v11276_v31 }
 0xada   :  { %3212 = vmax.xlane.f32.xlu1 %v11280_v17 }
 0xaea   :  { %v3195_v38 = vpop.xlane.xlu1 %3194  ;;  %v3197_v30 = vpop.xlane.xlu2 %3196 }
 0xaeb   :  { %v3226_v25 = vsub.f32 %v11237_v60, %v3195_v38  ;;  %v3227_v33 = vsub.f32 %v11234_v47, %v3197_v30  ;;  %v3156_v47 = vmul.f32 0.2, %v3124_v12  ;;  %v3125_v60 = vadd.f32 %v11227_v63, %v3095_v9  ;;  %v9420_v38 = vld [vmem:[%s15077_s12 + $0x78] sm:$0xff] }
 0xaed   :  { %v3242_v40 = vmul.f32 1.442695, %v3226_v25  ;;  %v3244_v41 = vmul.f32 1.442695, %v3227_v33  ;;  %v3172_v53 = vsel %vm3140_vm15, %v3124_v12, %v3156_v47  ;;  %v3157_v1 = vmul.f32 0.2, %v3125_v60 }
 0xaee   :  { %v11301_v50 = vadd.f32 %v9415_v6, %v3172_v53  ;;  %vm3141_vm0 = vcmp.gt.f32.partialorder %v3125_v60, 0.0  ;;  %vm3544_vm15 = vcmask 523264  }
 0xaef   :  { %8701 = vpow2.f32 %v3242_v40  ;;  %v3173_v2 = vsel %vm3141_vm0, %v3125_v60, %v3157_v1 }
 0xaf0   :  { %8703 = vpow2.f32 %v3244_v41 }
 0xaf2   :  { %v3201_v42 = vpop.xlane.xlu1 %3200  ;;  %v3199_v35 = vpop.xlane.xlu2 %3198 }
 0xaf3   :  { %v3229_v39 = vsub.f32 %v3181_v62, %v3201_v42  ;;  %v3228_v43 = vsub.f32 %v11243_v3, %v3199_v35  ;;  %v3126_v3 = vadd.f32 %v11227_v63, %v3099_v28  ;;  %v11310_v62 = vadd.f32 %v9416_v4, %v3173_v2 }
 0xaf5   :  { %v11285_v34 = vpop.eup %8701  ;;  %v3248_v15 = vmul.f32 1.442695, %v3229_v39  ;;  %v3246_v44 = vmul.f32 1.442695, %v3228_v43  ;;  %v3158_v32 = vmul.f32 0.2, %v3126_v3 }
 0xaf6   :  { %3274 = vadd.xlane.f32.xlu2 %v11285_v34  ;;  %v11291_v36 = vpop.eup %8703  ;;  %vm3142_vm1 = vcmp.gt.f32.partialorder %v3126_v3, 0.0 }
 0xaf7   :  { %8705 = vpow2.f32 %v3248_v15 }
 0xaf8   :  { %8707 = vpow2.f32 %v3246_v44 }
 0xafa   :  { %v3203_v46 = vpop.xlane.xlu2 %3202 }
 0xafb   :  { %v3230_v48 = vsub.f32 %v11248_v45, %v3203_v46  ;;  %v3174_v45 = vsel %vm3142_vm1, %v3126_v3, %v3158_v32 }
 0xafc   :  { %v11315_v8 = vadd.f32 %v9417_v5, %v3174_v45 }
 0xafd   :  { %v11293_v51 = vpop.eup %8705  ;;  %v3250_v37 = vmul.f32 1.442695, %v3230_v48 }
 0xafe   :  { %3280 = vadd.xlane.f32.xlu1 %v11293_v51  ;;  %3276 = vadd.xlane.f32.xlu2 %v11291_v36  ;;  %v11298_v61 = vpop.eup %8707 }
 0xaff   :  { %8709 = vpow2.f32 %v3250_v37 }
 0xb02   :  { %v3107_v14 = vpop.permute.xlu2 %3106 }
 0xb03   :  { %v3128_v58 = vadd.f32 %v11227_v63, %v3107_v14 }
 0xb05   :  { %v11303_v57 = vpop.eup %8709  ;;  %v3160_v49 = vmul.f32 0.2, %v3128_v58  ;;  %vm3144_vm4 = vcmp.gt.f32.partialorder %v3128_v58, 0.0 }
 0xb06   :  { %3214 = vmax.xlane.f32.xlu1 %v11301_v50  ;;  %3278 = vadd.xlane.f32.xlu2 %v11298_v61 }
 0xb07   :  { %3282 = vadd.xlane.f32.xlu0 %v11303_v57  ;;  %v3176_v55 = vsel %vm3144_vm4, %v3128_v58, %v3160_v49 }
 0xb08   :  { %v11324_v23 = vadd.f32 %v9419_v19, %v3176_v55 }
 0xb0a   :  { %v3103_v56 = vpop.permute.xlu1 %3102 }
 0xb0b   :  { %v3127_v7 = vadd.f32 %v11227_v63, %v3103_v56 }
 0xb0d   :  { %v3159_v24 = vmul.f32 0.2, %v3127_v7  ;;  %vm3143_vm3 = vcmp.gt.f32.partialorder %v3127_v7, 0.0 }
 0xb0e   :  { %3216 = vmax.xlane.f32.xlu1 %v11310_v62 }
 0xb0f   :  { %v3175_v13 = vsel %vm3143_vm3, %v3127_v7, %v3159_v24 }
 0xb10   :  { %v11320_v16 = vadd.f32 %v9418_v54, %v3175_v13 }
 0xb16   :  { %3218 = vmax.xlane.f32.xlu1 %v11315_v8 }
 0xb1e   :  { %3220 = vmax.xlane.f32.xlu1 %v11320_v16 }
 0xb25   :  { %v3207_v10 = vpop.xlane.xlu0 %3206 }
 0xb26   :  { %3222 = vmax.xlane.f32.xlu1 %v11324_v23  ;;  %v3232_v27 = vsub.f32 %v11255_v11, %v3207_v10  ;;  %v3468_v10 = vld [vmem:[%s15081_s24 + $0x68] sm:$0xff] }
 0xb28   :  { %v3254_v18 = vmul.f32 1.442695, %v3232_v27 }
 0xb35   :  { %v3205_v20 = vpop.xlane.xlu1 %3204 }
 0xb36   :  { %v3231_v22 = vsub.f32 %v11263_v59, %v3205_v20  ;;  %v3467_v20 = vld [vmem:[%s15081_s24 + $0x60] sm:$0xff] }
 0xb38   :  { %v3252_v26 = vmul.f32 1.442695, %v3231_v22  ;;  %v3111_v0 = vpop.permute.xlu0 %3110 }
 0xb39   :  { %v3129_v52 = vadd.f32 %v11227_v63, %v3111_v0 }
 0xb3a   :  { %8711 = vpow2.f32 %v3252_v26 }
 0xb3b   :  { %v3161_v9 = vmul.f32 0.2, %v3129_v52  ;;  %vm3145_vm5 = vcmp.gt.f32.partialorder %v3129_v52, 0.0  ;;  %8713 = vpow2.f32 %v3254_v18  ;;  %v3465_v18 = vld [vmem:[%s15081_s24 + $0x50] sm:$0xff] }
 0xb3d   :  { %v3209_v29 = vpop.xlane.xlu1 %3208  ;;  %v3177_v28 = vsel %vm3145_vm5, %v3129_v52, %v3161_v9  ;;  %v3466_v52 = vld [vmem:[%s15081_s24 + $0x58] sm:$0xff] }
 0xb3e   :  { %v11331_v30 = vadd.f32 %v9420_v38, %v3177_v28  ;;  %v3233_v63 = vsub.f32 %v11270_v21, %v3209_v29  ;;  %v3464_v38 = vld [vmem:[%s15081_s24 + $0x48] sm:$0xff] }
 0xb40   :  { %v11333_v25 = vpop.eup %8711  ;;  %3224 = vmax.xlane.f32.xlu1 %v11331_v30  ;;  %v3256_v11 = vmul.f32 1.442695, %v3233_v63  ;;  %v3462_v63 = vld [vmem:[%s15081_s24 + $0x38] sm:$0xff] }
 0xb41   :  { %3284 = vadd.xlane.f32.xlu2 %v11333_v25  ;;  %v11338_v40 = vpop.eup %8713 }
 0xb42   :  { %8715 = vpow2.f32 %v3256_v11 }
 0xb45   :  { %v3211_v59 = vpop.xlane.xlu1 %3210 }
 0xb46   :  { %v3234_v33 = vsub.f32 %v11276_v31, %v3211_v59 }
 0xb48   :  { %v3258_v41 = vmul.f32 1.442695, %v3234_v33  ;;  %v11342_v35 = vpop.eup %8715  ;;  %v3461_v33 = vld [vmem:[%s15081_s24 + $0x30] sm:$0xff] }
 0xb49   :  { %3286 = vadd.xlane.f32.xlu2 %v11338_v40 }
 0xb4a   :  { %8717 = vpow2.f32 %v3258_v41  ;;  %v3460_v41 = vld [vmem:[%s15081_s24 + $0x28] sm:$0xff] }
 0xb4d   :  { %v3213_v42 = vpop.xlane.xlu1 %3212 }
 0xb4e   :  { %v3235_v39 = vsub.f32 %v11280_v17, %v3213_v42  ;;  %v3459_v42 = vld [vmem:[%s15081_s24 + $0x20] sm:$0xff] }
 0xb50   :  { %v3260_v15 = vmul.f32 1.442695, %v3235_v39  ;;  %v11346_v21 = vpop.eup %8717  ;;  %v3458_v39 = vld [vmem:[%s15081_s24 + $0x18] sm:$0xff] }
 0xb51   :  { %3288 = vadd.xlane.f32.xlu2 %v11342_v35 }
 0xb52   :  { %8719 = vpow2.f32 %v3260_v15 }
 0xb58   :  { %v11349_v43 = vpop.eup %8719 }
 0xb59   :  { %3290 = vadd.xlane.f32.xlu2 %v11346_v21 }
 0xb61   :  { %3292 = vadd.xlane.f32.xlu2 %v11349_v43 }
 0xb69   :  { %v3275_v31 = vpop.xlane.xlu2 %3274 }
 0xb6a   :  { %8721 = vrcp.f32 %v3275_v31 }
 0xb70   :  { %v8722_v12 = vpop.eup %8721 }
 0xb71   :  { %v3322_v44 = vmul.f32 %v8722_v12, %v11285_v34  ;;  %v3281_v46 = vpop.xlane.xlu1 %3280  ;;  %v3277_v48 = vpop.xlane.xlu2 %3276 }
 0xb72   :  { %8723 = vrcp.f32 %v3277_v48  ;;  %v3457_v48 = vld [vmem:[%s15081_s24 + $0x10] sm:$0xff] }
 0xb73   :  { %3358 = vmatmul.f32.vlgmr.msra.gmra.mxu2 %v3322_v44 }
 0xb78   :  { %v8724_v17 = vpop.eup %8723 }
 0xb79   :  { %v3215_v37 = vpop.xlane.xlu1 %3214  ;;  %v3279_v47 = vpop.xlane.xlu2 %3278  ;;  %v3323_v60 = vmul.f32 %v8724_v17, %v11291_v36  ;;  %v3456_v17 = vld [vmem:[%s15081_s24 + $0x8] sm:$0xff] }
 0xb7a   :  { %v3236_v53 = vsub.f32 %v11301_v50, %v3215_v37  ;;  %8725 = vrcp.f32 %v3279_v47  ;;  %v3283_v50 = vpop.xlane.xlu0 %3282  ;;  %v3455_v47 = vld [vmem:[%s15081_s24] sm:$0xff] }
 0xb7b   :  { %3361 = vmatmul.f32.gmra.mxu2 %v3323_v60 }
 0xb7c   :  { %v3262_v6 = vmul.f32 1.442695, %v3236_v53 }
 0xb7e   :  { %8727 = vpow2.f32 %v3262_v6 }
 0xb7f   :  { %8729 = vrcp.f32 %v3281_v46 }
 0xb80   :  { %v8726_v1 = vpop.eup %8725 }
 0xb81   :  { %v3217_v2 = vpop.xlane.xlu1 %3216  ;;  %v3324_v34 = vmul.f32 %v8726_v1, %v11298_v61 }
 0xb82   :  { %v3237_v3 = vsub.f32 %v11310_v62, %v3217_v2 }
 0xb83   :  { %3364 = vmatmul.f32.gmra.mxu2 %v3324_v34 }
 0xb84   :  { %v11357_v4 = vpop.eup %8727  ;;  %v3264_v32 = vmul.f32 1.442695, %v3237_v3 }
 0xb85   :  { %3294 = vadd.xlane.f32.xlu1 %v11357_v4  ;;  %v8730_v56 = vpop.eup %8729 }
 0xb86   :  { %8731 = vpow2.f32 %v3264_v32  ;;  %v3325_v45 = vmul.f32 %v8730_v56, %v11293_v51  ;;  %v3470_v51 = vld [vmem:[%s15081_s24 + $0x78] sm:$0xff] }
 0xb87   :  { %8733 = vrcp.f32 %v3283_v50  ;;  %3471 = vmatpush.msra.mxu3 %v3470_v51 }
 0xb89   :  { %v3219_v36 = vpop.xlane.xlu1 %3218 }
 0xb8a   :  { %v3238_v7 = vsub.f32 %v11315_v8, %v3219_v36 }
 0xb8b   :  { %3367 = vmatmul.f32.gmra.mxu2 %v3325_v45 }
 0xb8c   :  { %v11362_v5 = vpop.eup %8731  ;;  %v3266_v61 = vmul.f32 1.442695, %v3238_v7 }
 0xb8d   :  { %3296 = vadd.xlane.f32.xlu0 %v11362_v5  ;;  %v8734_v62 = vpop.eup %8733 }
 0xb8e   :  { %8735 = vpow2.f32 %v3266_v61  ;;  %v3326_v58 = vmul.f32 %v8734_v62, %v11303_v57  ;;  %v3469_v57 = vld [vmem:[%s15081_s24 + $0x70] sm:$0xff] }
 0xb8f   :  { %3472 = vmatpush.msra.mxu3 %v3469_v57 }
 0xb91   :  { %v3221_v24 = vpop.xlane.xlu1 %3220  ;;  %3473 = vmatpush.msra.mxu3 %v3468_v10 }
 0xb92   :  { %v3239_v14 = vsub.f32 %v11320_v16, %v3221_v24 }
 0xb93   :  { %3370 = vmatmul.f32.gmra.mxu2 %v3326_v58  ;;  %3474 = vmatpush.msra.mxu3 %v3467_v20 }
 0xb94   :  { %v11367_v13 = vpop.eup %8735  ;;  %v3268_v8 = vmul.f32 1.442695, %v3239_v14 }
 0xb95   :  { %3298 = vadd.xlane.f32.xlu2 %v11367_v13  ;;  %3475 = vmatpush.msra.mxu3 %v3466_v52 }
 0xb96   :  { %8737 = vpow2.f32 %v3268_v8 }
 0xb97   :  { %3476 = vmatpush.msra.mxu3 %v3465_v18 }
 0xb99   :  { %v3223_v54 = vpop.xlane.xlu1 %3222  ;;  %3477 = vmatpush.msra.mxu3 %v3464_v38  ;;  %v3541_v38 = vld [vmem:[%s15083_s10 + $0x28] sm:$0xff] }
 0xb9a   :  { %v3240_v49 = vsub.f32 %v11324_v23, %v3223_v54 }
 0xb9c   :  { %v11372_v55 = vpop.eup %8737  ;;  %v3270_v19 = vmul.f32 1.442695, %v3240_v49 }
 0xb9d   :  { %3300 = vadd.xlane.f32.xlu1 %v11372_v55 }
 0xb9e   :  { %8739 = vpow2.f32 %v3270_v19 }
 0xba4   :  { %v11376_v16 = vpop.eup %8739 }
 0xba5   :  { %3302 = vadd.xlane.f32.xlu0 %v11376_v16 }
 0xbb3   :  { %v3225_v23 = vpop.xlane.xlu1 %3224 }
 0xbb4   :  { %v3241_v22 = vsub.f32 %v11331_v30, %v3225_v23  ;;  %v3285_v26 = vpop.xlane.xlu2 %3284  ;;  %v3463_v30 = vld [vmem:[%s15081_s24 + $0x40] sm:$0xff] }
 0xbb5   :  { %8741 = vrcp.f32 %v3285_v26  ;;  %3478 = vmatpush.msra.mxu3 %v3463_v30 }
 0xbb6   :  { %v3272_v0 = vmul.f32 1.442695, %v3241_v22 }
 0xbb7   :  { %3479 = vmatpush.msra.mxu3 %v3462_v63 }
 0xbb8   :  { %8743 = vpow2.f32 %v3272_v0  ;;  %v3543_v0 = vld [vmem:[%s15083_s10 + $0x38] sm:$0xff] }
 0xbb9   :  { %3480 = vmatpush.msra.mxu3 %v3461_v33  ;;  %3601 = vmatpush.msra.mxu0 %v3543_v0 }
 0xbbb   :  { %v8742_v27 = vpop.eup %8741  ;;  %3481 = vmatpush.msra.mxu3 %v3460_v41  ;;  %v3538_v41 = vld [vmem:[%s15083_s10 + $0x10] sm:$0xff] }
 0xbbc   :  { %v3287_v9 = vpop.xlane.xlu2 %3286  ;;  %v3327_v29 = vmul.f32 %v8742_v27, %v11333_v25 }
 0xbbd   :  { %8745 = vrcp.f32 %v3287_v9  ;;  %3482 = vmatpush.msra.mxu3 %v3459_v42  ;;  %v3542_v9 = vld [vmem:[%s15083_s10 + $0x30] sm:$0xff] }
 0xbbe   :  { %v11384_v28 = vpop.eup %8743  ;;  %3373 = vmatmul.f32.gmra.mxu2 %v3327_v29  ;;  %3602 = vmatpush.msra.mxu0 %v3542_v9 }
 0xbbf   :  { %3304 = vadd.xlane.f32.xlu2 %v11384_v28  ;;  %3483 = vmatpush.msra.mxu3 %v3458_v39 }
 0xbc0   :  { %3603 = vmatpush.msra.mxu0 %v3541_v38 }
 0xbc1   :  { %3484 = vmatpush.msra.mxu3 %v3457_v48 }
 0xbc3   :  { %v8746_v59 = vpop.eup %8745  ;;  %3485 = vmatpush.msra.mxu3 %v3456_v17 }
 0xbc4   :  { %v3289_v11 = vpop.xlane.xlu2 %3288  ;;  %v3328_v25 = vmul.f32 %v8746_v59, %v11338_v40 }
 0xbc5   :  { %8747 = vrcp.f32 %v3289_v11  ;;  %3486 = vmatpush.msra.mxu3 %v3455_v47  ;;  %v3540_v11 = vld [vmem:[%s15083_s10 + $0x20] sm:$0xff] }
 0xbc6   :  { %3376 = vmatmul.f32.gmra.mxu2 %v3328_v25  ;;  %v3539_v25 = vld [vmem:[%s15083_s10 + $0x18] sm:$0xff]  ;;  %3604 = vmatpush.msra.mxu0 %v3540_v11  ;;  %v3536_v47 = vld [vmem:[%s15083_s10] sm:$0xff] }
 0xbc8   :  { %3605 = vmatpush.msra.mxu0 %v3539_v25 }
 0xbca   :  { %3606 = vmatpush.msra.mxu0 %v3538_v41 }
 0xbcb   :  { %v8748_v15 = vpop.eup %8747 }
 0xbcc   :  { %v3291_v31 = vpop.xlane.xlu2 %3290  ;;  %v3329_v12 = vmul.f32 %v8748_v15, %v11342_v35  ;;  %v11403_v35 = vld [vmem:[%s15082_s7] ss:$0 sm:$0xff] }
 0xbcd   :  { %8749 = vrcp.f32 %v3291_v31 }
 0xbce   :  { %3379 = vmatmul.f32.gmra.mxu2 %v3329_v12 }
 0xbd3   :  { %v8750_v40 = vpop.eup %8749 }
 0xbd4   :  { %v3293_v44 = vpop.xlane.xlu2 %3292  ;;  %v3330_v46 = vmul.f32 %v8750_v40, %v11346_v21 }
 0xbd5   :  { %8751 = vrcp.f32 %v3293_v44 }
 0xbd6   :  { %3382 = vmatmul.f32.gmra.mxu2 %v3330_v46 }
 0xbdb   :  { %v8752_v37 = vpop.eup %8751 }
 0xbdc   :  { %v3331_v53 = vmul.f32 %v8752_v37, %v11349_v43 }
 0xbde   :  { %3385 = vmatmul.f32.gmra.mxu2 %v3331_v53 }
 0xbf6   :  { %v3359_v60 = vpop.f32.mrf.mxu2 }
 0xbf7   :  { %v3360_v6 = vadd.f32 %v11403_v35, %v3359_v60 }
 0xbf8   :  { %v3295_v1 = vpop.xlane.xlu1 %3294 }
 0xbf9   :  { %vm3407_vm6 = vcmp.gt.f32.partialorder %v3360_v6, 0.0  ;;  %v3423_v21 = vmul.f32 0.01, %v3360_v6  ;;  %8753 = vrcp.f32 %v3295_v1 }
 0xbfb   :  { %v3439_v2 = vsel %vm3407_vm6, %v3360_v6, %v3423_v21 }
 0xbfc   :  { %3487 = vmatmul.f32.vlgmr.msra.gmra.mxu3 %v3439_v2 }
 0xbfe   :  { %v3362_v3 = vpop.f32.mrf.mxu2 }
 0xbff   :  { %v8754_v34 = vpop.eup %8753  ;;  %v3363_v32 = vadd.f32 %v11403_v35, %v3362_v3 }
 0xc00   :  { %v3297_v50 = vpop.xlane.xlu0 %3296  ;;  %v3332_v43 = vmul.f32 %v8754_v34, %v11357_v4 }
 0xc01   :  { %8755 = vrcp.f32 %v3297_v50  ;;  %vm3408_vm7 = vcmp.gt.f32.partialorder %v3363_v32, 0.0  ;;  %v3424_v56 = vmul.f32 0.01, %v3363_v32 }
 0xc02   :  { %3388 = vmatmul.f32.gmra.mxu2 %v3332_v43 }
 0xc03   :  { %v3440_v36 = vsel %vm3408_vm7, %v3363_v32, %v3424_v56 }
 0xc04   :  { %3490 = vmatmul.f32.gmra.mxu3 %v3440_v36 }
 0xc06   :  { %v3365_v45 = vpop.f32.mrf.mxu2 }
 0xc07   :  { %v8756_v7 = vpop.eup %8755  ;;  %v3366_v61 = vadd.f32 %v11403_v35, %v3365_v45 }
 0xc08   :  { %v3299_v62 = vpop.xlane.xlu2 %3298  ;;  %v3333_v24 = vmul.f32 %v8756_v7, %v11362_v5 }
 0xc09   :  { %8757 = vrcp.f32 %v3299_v62  ;;  %vm3409_vm2 = vcmp.gt.f32.partialorder %v3366_v61, 0.0  ;;  %v3425_v14 = vmul.f32 0.01, %v3366_v61 }
 0xc0a   :  { %3391 = vmatmul.f32.gmra.mxu2 %v3333_v24 }
 0xc0b   :  { %v3441_v58 = vsel %vm3409_vm2, %v3366_v61, %v3425_v14 }
 0xc0c   :  { %3493 = vmatmul.f32.gmra.mxu3 %v3441_v58 }
 0xc0e   :  { %v3368_v8 = vpop.f32.mrf.mxu2 }
 0xc0f   :  { %v8758_v4 = vpop.eup %8757  ;;  %v3369_v51 = vadd.f32 %v11403_v35, %v3368_v8 }
 0xc10   :  { %v3301_v54 = vpop.xlane.xlu1 %3300  ;;  %v3334_v49 = vmul.f32 %v8758_v4, %v11367_v13 }
 0xc11   :  { %8759 = vrcp.f32 %v3301_v54  ;;  %vm3410_vm8 = vcmp.gt.f32.partialorder %v3369_v51, 0.0  ;;  %v3426_v19 = vmul.f32 0.01, %v3369_v51 }
 0xc12   :  { %3394 = vmatmul.f32.gmra.mxu2 %v3334_v49 }
 0xc13   :  { %v3442_v57 = vsel %vm3410_vm8, %v3369_v51, %v3426_v19 }
 0xc14   :  { %3496 = vmatmul.f32.gmra.mxu3 %v3442_v57 }
 0xc16   :  { %v3371_v10 = vpop.f32.mrf.mxu2 }
 0xc17   :  { %v8760_v5 = vpop.eup %8759  ;;  %v3372_v20 = vadd.f32 %v11403_v35, %v3371_v10 }
 0xc18   :  { %v3303_v23 = vpop.xlane.xlu0 %3302  ;;  %v3335_v22 = vmul.f32 %v8760_v5, %v11372_v55 }
 0xc19   :  { %8761 = vrcp.f32 %v3303_v23  ;;  %vm3411_vm9 = vcmp.gt.f32.partialorder %v3372_v20, 0.0  ;;  %v3427_v13 = vmul.f32 0.01, %v3372_v20 }
 0xc1a   :  { %3397 = vmatmul.f32.gmra.mxu2 %v3335_v22 }
 0xc1b   :  { %v3443_v26 = vsel %vm3411_vm9, %v3372_v20, %v3427_v13 }
 0xc1c   :  { %3499 = vmatmul.f32.gmra.mxu3 %v3443_v26 }
 0xc1f   :  { %v8762_v52 = vpop.eup %8761 }
 0xc20   :  { %v3336_v27 = vmul.f32 %v8762_v52, %v11376_v16 }
 0xc22   :  { %3400 = vmatmul.f32.gmra.mxu2 %v3336_v27 }
 0xc32   :  { %v3305_v29 = vpop.xlane.xlu2 %3304 }
 0xc33   :  { %8763 = vrcp.f32 %v3305_v29 }
 0xc39   :  { %v8764_v55 = vpop.eup %8763 }
 0xc3a   :  { %v3337_v18 = vmul.f32 %v8764_v55, %v11384_v28  ;;  %v3537_v28 = vld [vmem:[%s15083_s10 + $0x8] sm:$0xff] }
 0xc3b   :  { %3607 = vmatpush.msra.mxu0 %v3537_v28 }
 0xc3c   :  { %3403 = vmatmul.f32.gmra.mxu2 %v3337_v18 }
 0xc3d   :  { %3608 = vmatpush.msra.mxu0 %v3536_v47 }
 0xc41   :  { %v3374_v30 = vpop.f32.mrf.mxu2 }
 0xc42   :  { %v3375_v63 = vadd.f32 %v11403_v35, %v3374_v30 }
 0xc44   :  { %vm3412_vm10 = vcmp.gt.f32.partialorder %v3375_v63, 0.0  ;;  %v3428_v16 = vmul.f32 0.01, %v3375_v63 }
 0xc46   :  { %v3444_v59 = vsel %vm3412_vm10, %v3375_v63, %v3428_v16 }
 0xc47   :  { %3502 = vmatmul.f32.gmra.mxu3 %v3444_v59 }
 0xc49   :  { %v3377_v33 = vpop.f32.mrf.mxu2 }
 0xc4a   :  { %v3378_v42 = vadd.f32 %v11403_v35, %v3377_v33 }
 0xc4c   :  { %vm3413_vm11 = vcmp.gt.f32.partialorder %v3378_v42, 0.0  ;;  %v3429_v39 = vmul.f32 0.01, %v3378_v42 }
 0xc4e   :  { %v3445_v15 = vsel %vm3413_vm11, %v3378_v42, %v3429_v39 }
 0xc4f   :  { %3505 = vmatmul.f32.gmra.mxu3 %v3445_v15 }
 0xc51   :  { %v3380_v31 = vpop.f32.mrf.mxu2 }
 0xc52   :  { %v3381_v12 = vadd.f32 %v11403_v35, %v3380_v31 }
 0xc54   :  { %vm3414_vm12 = vcmp.gt.f32.partialorder %v3381_v12, 0.0  ;;  %v3430_v40 = vmul.f32 0.01, %v3381_v12 }
 0xc56   :  { %v3446_v44 = vsel %vm3414_vm12, %v3381_v12, %v3430_v40 }
 0xc57   :  { %3508 = vmatmul.f32.gmra.mxu3 %v3446_v44 }
 0xc59   :  { %v3383_v46 = vpop.f32.mrf.mxu2 }
 0xc5a   :  { %v3384_v48 = vadd.f32 %v11403_v35, %v3383_v46 }
 0xc5c   :  { %vm3415_vm13 = vcmp.gt.f32.partialorder %v3384_v48, 0.0  ;;  %v3431_v17 = vmul.f32 0.01, %v3384_v48 }
 0xc5e   :  { %v3447_v37 = vsel %vm3415_vm13, %v3384_v48, %v3431_v17 }
 0xc5f   :  { %3511 = vmatmul.f32.gmra.mxu3 %v3447_v37 }
 0xc61   :  { %v3386_v53 = vpop.f32.mrf.mxu2 }
 0xc62   :  { %v3387_v60 = vadd.f32 %v11403_v35, %v3386_v53 }
 0xc64   :  { %vm3416_vm14 = vcmp.gt.f32.partialorder %v3387_v60, 0.0  ;;  %v3432_v6 = vmul.f32 0.01, %v3387_v60 }
 0xc66   :  { %v3448_v1 = vsel %vm3416_vm14, %v3387_v60, %v3432_v6 }
 0xc67   :  { %3514 = vmatmul.f32.gmra.mxu3 %v3448_v1 }
 0xc7f   :  { %v11429_v21 = vpop.f32.mrf.mxu3 }
 0xc80   :  { %8047 = vmatmul.msk.f32.vlgmr.msra.gmra.mxu0 %vm3544_vm15, %v11429_v21 }
 0xc85   :  { %v3389_v2 = vpop.f32.mrf.mxu2 }
 0xc86   :  { %v3390_v34 = vadd.f32 %v11403_v35, %v3389_v2 }
 0xc87   :  { %v11434_v3 = vpop.f32.mrf.mxu3 }
 0xc88   :  { %vm3417_vm0 = vcmp.gt.f32.partialorder %v3390_v34, 0.0  ;;  %v3433_v32 = vmul.f32 0.01, %v3390_v34  ;;  %8048 = vmatmul.msk.f32.gmra.mxu0 %vm3544_vm15, %v11434_v3 }
 0xc8a   :  { %v3449_v50 = vsel %vm3417_vm0, %v3390_v34, %v3433_v32 }
 0xc8b   :  { %3517 = vmatmul.f32.gmra.mxu3 %v3449_v50 }
 0xc8d   :  { %v3392_v43 = vpop.f32.mrf.mxu2 }
 0xc8e   :  { %v3393_v56 = vadd.f32 %v11403_v35, %v3392_v43 }
 0xc8f   :  { %v11439_v36 = vpop.f32.mrf.mxu3 }
 0xc90   :  { %vm3418_vm1 = vcmp.gt.f32.partialorder %v3393_v56, 0.0  ;;  %v3434_v7 = vmul.f32 0.01, %v3393_v56  ;;  %8049 = vmatmul.msk.f32.gmra.mxu0 %vm3544_vm15, %v11439_v36 }
 0xc92   :  { %v3450_v45 = vsel %vm3418_vm1, %v3393_v56, %v3434_v7 }
 0xc93   :  { %3520 = vmatmul.f32.gmra.mxu3 %v3450_v45 }
 0xc95   :  { %v3395_v61 = vpop.f32.mrf.mxu2 }
 0xc96   :  { %v3396_v62 = vadd.f32 %v11403_v35, %v3395_v61 }
 0xc97   :  { %v11444_v24 = vpop.f32.mrf.mxu3 }
 0xc98   :  { %vm3419_vm3 = vcmp.gt.f32.partialorder %v3396_v62, 0.0  ;;  %v3435_v14 = vmul.f32 0.01, %v3396_v62  ;;  %8050 = vmatmul.msk.f32.gmra.mxu0 %vm3544_vm15, %v11444_v24 }
 0xc9a   :  { %v3451_v58 = vsel %vm3419_vm3, %v3396_v62, %v3435_v14 }
 0xc9b   :  { %3523 = vmatmul.f32.gmra.mxu3 %v3451_v58 }
 0xc9d   :  { %v3398_v4 = vpop.f32.mrf.mxu2 }
 0xc9e   :  { %v3399_v8 = vadd.f32 %v11403_v35, %v3398_v4 }
 0xc9f   :  { %v11449_v51 = vpop.f32.mrf.mxu3 }
 0xca0   :  { %vm3420_vm4 = vcmp.gt.f32.partialorder %v3399_v8, 0.0  ;;  %v3436_v54 = vmul.f32 0.01, %v3399_v8  ;;  %8051 = vmatmul.msk.f32.gmra.mxu0 %vm3544_vm15, %v11449_v51 }
 0xca2   :  { %v3452_v49 = vsel %vm3420_vm4, %v3399_v8, %v3436_v54 }
 0xca3   :  { %3526 = vmatmul.f32.gmra.mxu3 %v3452_v49 }
 0xca5   :  { %v3401_v19 = vpop.f32.mrf.mxu2 }
 0xca6   :  { %v3402_v57 = vadd.f32 %v11403_v35, %v3401_v19 }
 0xca8   :  { %vm3421_vm5 = vcmp.gt.f32.partialorder %v3402_v57, 0.0  ;;  %v3437_v5 = vmul.f32 0.01, %v3402_v57 }
 0xcaa   :  { %v3453_v10 = vsel %vm3421_vm5, %v3402_v57, %v3437_v5 }
 0xcab   :  { %3529 = vmatmul.f32.gmra.mxu3 %v3453_v10 }
 0xcbf   :  { %v3404_v20 = vpop.f32.mrf.mxu2 }
 0xcc0   :  { %v3405_v23 = vadd.f32 %v11403_v35, %v3404_v20 }
 0xcc2   :  { %vm3422_vm6 = vcmp.gt.f32.partialorder %v3405_v23, 0.0  ;;  %v3438_v22 = vmul.f32 0.01, %v3405_v23 }
 0xcc4   :  { %v3454_v13 = vsel %vm3422_vm6, %v3405_v23, %v3438_v22  ;;  %v9421_v23 = vld [vmem:[%s15077_s12 + $0x8] sm:$0xff] }
 0xcc5   :  { %3532 = vmatmul.f32.gmra.mxu3 %v3454_v13  ;;  %v9422_v13 = vld [vmem:[%s15077_s12] sm:$0xff] }
 0xcca   :  { %v3503_v26 = vpop.f32.mrf.mxu3 }
 0xccb   :  { %8052 = vmatmul.msk.f32.gmra.mxu0 %vm3544_vm15, %v3503_v26 }
 0xcd2   :  { %v3506_v0 = vpop.f32.mrf.mxu3 }
 0xcd3   :  { %8053 = vmatmul.msk.f32.gmra.mxu0 %vm3544_vm15, %v3506_v0 }
 0xcda   :  { %v3509_v52 = vpop.f32.mrf.mxu3 }
 0xcdb   :  { %8054 = vmatmul.msk.f32.gmra.mxu0 %vm3544_vm15, %v3509_v52 }
 0xce2   :  { %v3512_v27 = vpop.f32.mrf.mxu3 }
 0xce3   :  { %8055 = vmatmul.msk.f32.gmra.mxu0 %vm3544_vm15, %v3512_v27 }
 0xcea   :  { %v3515_v9 = vpop.f32.mrf.mxu3 }
 0xceb   :  { %8056 = vmatmul.msk.f32.gmra.mxu0 %vm3544_vm15, %v3515_v9 }
 0xcfd   :  { %v3610_v35 = vpop.f32.mrf.mxu0 }
 0xcfe   :  { %3674 = vrot.lane.b32.xlu1 %v3610_v35, %s9816_s0 }
 0xd05   :  { %v3613_v29 = vpop.f32.mrf.mxu0 }
 0xd06   :  { %3755 = vperm.xlu1 %8483, %v3610_v35   ;;  %3676 = vrot.lane.b32.xlu0 %v3613_v29, %s9816_s0 }
 0xd0d   :  { %v3616_v55 = vpop.f32.mrf.mxu0 }
 0xd0e   :  { %v3518_v18 = vpop.f32.mrf.mxu3  ;;  %3759 = vperm.xlu0 %8485, %v3613_v29   ;;  %3678 = vrot.lane.b32.xlu2 %v3616_v55, %s9816_s0 }
 0xd0f   :  { %8057 = vmatmul.msk.f32.gmra.mxu0 %vm3544_vm15, %v3518_v18 }
 0xd15   :  { %v3619_v38 = vpop.f32.mrf.mxu0 }
 0xd16   :  { %v3521_v30 = vpop.f32.mrf.mxu3  ;;  %3763 = vperm.xlu2 %8484, %v3616_v55   ;;  %3680 = vrot.lane.b32.xlu0 %v3619_v38, %s9816_s0 }
 0xd17   :  { %8058 = vmatmul.msk.f32.gmra.mxu0 %vm3544_vm15, %v3521_v30 }
 0xd1d   :  { %v3622_v63 = vpop.f32.mrf.mxu0 }
 0xd1e   :  { %v3524_v16 = vpop.f32.mrf.mxu3  ;;  %3767 = vperm.xlu0 %8485, %v3619_v38   ;;  %3771 = vperm.xlu2 %8484, %v3622_v63   ;;  %v9424_v38 = vld [vmem:[%s15077_s12 + $0x18] sm:$0xff] }
 0xd1f   :  { %3682 = vrot.lane.b32.xlu1 %v3622_v63, %s9816_s0  ;;  %8059 = vmatmul.msk.f32.gmra.mxu0 %vm3544_vm15, %v3524_v16 }
 0xd26   :  { %v3527_v59 = vpop.f32.mrf.mxu3 }
 0xd27   :  { %8060 = vmatmul.msk.f32.gmra.mxu0 %vm3544_vm15, %v3527_v59 }
 0xd2e   :  { %v3530_v11 = vpop.f32.mrf.mxu3 }
 0xd2f   :  { %8061 = vmatmul.msk.f32.gmra.mxu0 %vm3544_vm15, %v3530_v11 }
 0xd48   :  { %v3533_v25 = vpop.f32.mrf.mxu3  ;;  %v3625_v33 = vpop.f32.mrf.mxu0 }
 0xd49   :  { %3684 = vrot.lane.b32.xlu0 %v3625_v33, %s9816_s0  ;;  %8062 = vmatmul.msk.f32.gmra.mxu0 %vm3544_vm15, %v3533_v25 }
 0xd4a   :  { %4047 = vmatpush.msrb.mxu1 %v3533_v25 }
 0xd4c   :  { %4048 = vmatpush.msrb.mxu1 %v3530_v11  ;;  %v9425_v11 = vld [vmem:[%s15077_s12 + $0x20] sm:$0xff] }
 0xd4e   :  { %4049 = vmatpush.msrb.mxu1 %v3527_v59 }
 0xd50   :  { %4050 = vmatpush.msrb.mxu1 %v3524_v16  ;;  %v3628_v41 = vpop.f32.mrf.mxu0 }
 0xd51   :  { %3775 = vperm.xlu0 %8485, %v3625_v33   ;;  %3686 = vrot.lane.b32.xlu2 %v3628_v41, %s9816_s0 }
 0xd52   :  { %4051 = vmatpush.msrb.mxu1 %v3521_v30 }
 0xd54   :  { %4052 = vmatpush.msrb.mxu1 %v3518_v18 }
 0xd56   :  { %4053 = vmatpush.msrb.mxu1 %v3515_v9  ;;  %v9423_v9 = vld [vmem:[%s15077_s12 + $0x10] sm:$0xff] }
 0xd58   :  { %4054 = vmatpush.msrb.mxu1 %v3512_v27  ;;  %v3631_v42 = vpop.f32.mrf.mxu0 }
 0xd59   :  { %3779 = vperm.xlu0 %8485, %v3628_v41   ;;  %3783 = vperm.xlu2 %8484, %v3631_v42  }
 0xd5a   :  { %3688 = vrot.lane.b32.xlu1 %v3631_v42, %s9816_s0  ;;  %4055 = vmatpush.msrb.mxu1 %v3509_v52 }
 0xd5c   :  { %4056 = vmatpush.msrb.mxu1 %v3506_v0 }
 0xd5e   :  { %4057 = vmatpush.msrb.mxu1 %v3503_v26 }
 0xd60   :  { %4058 = vmatpush.msrb.mxu1 %v11449_v51  ;;  %v3634_v28 = vpop.f32.mrf.mxu0 }
 0xd61   :  { %3787 = vperm.xlu2 %8484, %v3634_v28   ;;  %3690 = vrot.lane.b32.xlu0 %v3634_v28, %s9816_s0  ;;  %v9426_v28 = vld [vmem:[%s15077_s12 + $0x28] sm:$0xff] }
 0xd62   :  { %4059 = vmatpush.msrb.mxu1 %v11444_v24 }
 0xd64   :  { %4060 = vmatpush.msrb.mxu1 %v11439_v36 }
 0xd66   :  { %4061 = vmatpush.msrb.mxu1 %v11434_v3 }
 0xd68   :  { %4062 = vmatpush.msrb.mxu1 %v11429_v21  ;;  %v3637_v39 = vpop.f32.mrf.mxu0  ;;  %v3679_v47 = vpop.permute.xlu2 %3678 }
 0xd69   :  { %3692 = vrot.lane.b32.xlu2 %v3637_v39, %s9816_s0 }
 0xd70   :  { %v3675_v17 = vpop.permute.xlu1 %3674  ;;  %v3764_v60 = vpop.permute.xlu2 %3763 }
 0xd78   :  { %v3677_v48 = vpop.permute.xlu0 %3676  ;;  %v3756_v6 = vpop.permute.xlu1 %3755 }
 0xd79   :  { %v3772_v2 = vpop.permute.xlu2 %3771 }
 0xd80   :  { %v3760_v37 = vpop.permute.xlu0 %3759 }
 0xd88   :  { %v3681_v53 = vpop.permute.xlu0 %3680 }
 0xd8c   :  { %v3640_v15 = vpop.f32.mrf.mxu0 }
 0xd8d   :  { %3694 = vrot.lane.b32.xlu1 %v3640_v15, %s9816_s0 }
 0xd90   :  { %v3768_v1 = vpop.permute.xlu0 %3767 }
 0xd91   :  { %v3683_v21 = vpop.permute.xlu1 %3682 }
 0xd94   :  { %v3643_v31 = vpop.f32.mrf.mxu0 }
 0xd95   :  { %3696 = vrot.lane.b32.xlu0 %v3643_v31, %s9816_s0 }
 0xd9c   :  { %v3646_v12 = vpop.f32.mrf.mxu0 }
 0xd9d   :  { %3698 = vrot.lane.b32.xlu2 %v3646_v12, %s9816_s0 }
 0xda4   :  { %v11484_v40 = vpop.f32.mrf.mxu0 }
 0xda5   :  { %3700 = vrot.lane.b32.xlu1 %v11484_v40, %s9816_s0 }
 0xdab   :  { %v3687_v3 = vpop.permute.xlu2 %3686 }
 0xdac   :  { %v11488_v44 = vpop.f32.mrf.mxu0 }
 0xdad   :  { %3702 = vrot.lane.b32.xlu0 %v11488_v44, %s9816_s0 }
 0xdb3   :  { %v11496_v50 = vpop.permute.xlu2 %3783 }
 0xdbb   :  { %v3685_v34 = vpop.permute.xlu0 %3684  ;;  %v11500_v36 = vpop.permute.xlu2 %3787 }
 0xdc3   :  { %v3776_v32 = vpop.permute.xlu0 %3775  ;;  %v3693_v45 = vpop.permute.xlu2 %3692 }
 0xdc6   :  { %v11492_v46 = vpop.f32.mrf.mxu0 }
 0xdc7   :  { %3704 = vrot.lane.b32.xlu2 %v11492_v46, %s9816_s0 }
 0xdcb   :  { %v11498_v43 = vpop.permute.xlu0 %3779 }
 0xdcc   :  { %v3689_v56 = vpop.permute.xlu1 %3688 }
 0xdcf   :  { %3791 = vperm.xlu2 %8484, %v3637_v39  }
 0xdd3   :  { %v3691_v7 = vpop.permute.xlu0 %3690 }
 0xdd7   :  { %3795 = vperm.xlu2 %8484, %v3640_v15  }
 0xdda   :  { %3722 = vxpose.xlu1.b32.start [1/16] (narrow) %v3675_v17, 8 }
 0xddf   :  { %3799 = vperm.xlu2 %8484, %v3643_v31  }
 0xde2   :  { %3723 = vxpose.xlu1.b32.cont [2/16] (narrow) %v3677_v48, 8 }
 0xde7   :  { %3803 = vperm.xlu2 %8484, %v3646_v12   ;;  %v9427_v12 = vld [vmem:[%s15077_s12 + $0x30] sm:$0xff] }
 0xdea   :  { %3724 = vxpose.xlu1.b32.cont [3/16] (narrow) %v3679_v47, 8 }
 0xdf2   :  { %3725 = vxpose.xlu1.b32.cont [4/16] (narrow) %v3681_v53, 8 }
 0xdf7   :  { %v3699_v24 = vpop.permute.xlu2 %3698 }
 0xdfa   :  { %3726 = vxpose.xlu1.b32.cont [5/16] (narrow) %v3683_v21, 8 }
 0xdff   :  { %v3695_v61 = vpop.permute.xlu1 %3694 }
 0xe02   :  { %3727 = vxpose.xlu1.b32.cont [6/16] (narrow) %v3685_v34, 8 }
 0xe07   :  { %v3697_v62 = vpop.permute.xlu0 %3696 }
 0xe0a   :  { %3728 = vxpose.xlu1.b32.cont [7/16] (narrow) %v3687_v3, 8 }
 0xe12   :  { %3729 = vxpose.xlu1.b32.cont [8/16] (narrow) %v3689_v56, 8 }
 0xe17   :  { %v3701_v14 = vpop.permute.xlu1 %3700 }
 0xe1a   :  { %3730 = vxpose.xlu1.b32.cont [9/16] (narrow) %v3691_v7, 8 }
 0xe1f   :  { %v3703_v58 = vpop.permute.xlu0 %3702 }
 0xe21   :  { %v3705_v4 = vpop.permute.xlu2 %3704 }
 0xe22   :  { %3731 = vxpose.xlu1.b32.cont [10/16] (narrow) %v3693_v45, 8 }
 0xe2a   :  { %3732 = vxpose.xlu1.b32.cont [11/16] (narrow) %v3695_v61, 8 }
 0xe32   :  { %3733 = vxpose.xlu1.b32.cont [12/16] (narrow) %v3697_v62, 8 }
 0xe3a   :  { %3734 = vxpose.xlu1.b32.cont [13/16] (narrow) %v3699_v24, 8 }
 0xe42   :  { %3735 = vxpose.xlu1.b32.cont [14/16] (narrow) %v3701_v14, 8 }
 0xe4a   :  { %3736 = vxpose.xlu1.b32.cont [15/16] (narrow) %v3703_v58, 8 }
 0xe52   :  { %3737 = vxpose.xlu1.b32.end [16/16] (narrow) %v3705_v4, 8 }
 0xe7e   :  { %v3738_v8 = vpop.trf.xlu1 }
 0xe7f   :  { %v11502_v51 = vperm.slane %v3738_v8, 0 }
 0xe81   :  { %v3820_v54 = vadd.f32 %v11502_v51, %v3760_v37  ;;  %v3819_v49 = vadd.f32 %v11502_v51, %v3756_v6  ;;  %v3821_v19 = vadd.f32 %v11502_v51, %v3764_v60  ;;  %v3822_v27 = vadd.f32 %v11502_v51, %v3768_v1  ;;  %v9428_v6 = vld [vmem:[%s15077_s12 + $0x38] sm:$0xff] }
 0xe82   :  { %v3823_v18 = vadd.f32 %v11502_v51, %v3772_v2  ;;  %v3824_v59 = vadd.f32 %v11502_v51, %v3776_v32  ;;  %v3825_v42 = vadd.f32 %v11502_v51, %v11498_v43  ;;  %v3826_v17 = vadd.f32 %v11502_v51, %v11496_v50  ;;  %v9429_v32 = vld [vmem:[%s15077_s12 + $0x40] sm:$0xff] }
 0xe83   :  { %vm3836_vm7 = vcmp.gt.f32.partialorder %v3820_v54, 0.0  ;;  %v3852_v57 = vmul.f32 0.2, %v3820_v54  ;;  %vm3835_vm2 = vcmp.gt.f32.partialorder %v3819_v49, 0.0  ;;  %v3851_v5 = vmul.f32 0.2, %v3819_v49 }
 0xe84   :  { %v3853_v0 = vmul.f32 0.2, %v3821_v19  ;;  %vm3837_vm8 = vcmp.gt.f32.partialorder %v3821_v19, 0.0  ;;  %v3854_v29 = vmul.f32 0.2, %v3822_v27  ;;  %vm3838_vm9 = vcmp.gt.f32.partialorder %v3822_v27, 0.0 }
 0xe85   :  { %v3868_v10 = vsel %vm3836_vm7, %v3820_v54, %v3852_v57  ;;  %v3867_v20 = vsel %vm3835_vm2, %v3819_v49, %v3851_v5  ;;  %v3855_v63 = vmul.f32 0.2, %v3823_v18  ;;  %vm3839_vm10 = vcmp.gt.f32.partialorder %v3823_v18, 0.0 }
 0xe86   :  { %v11508_v22 = vadd.f32 %v9421_v23, %v3868_v10  ;;  %v11511_v26 = vadd.f32 %v9422_v13, %v3867_v20  ;;  %v3869_v52 = vsel %vm3837_vm8, %v3821_v19, %v3853_v0  ;;  %v3870_v55 = vsel %vm3838_vm9, %v3822_v27, %v3854_v29 }
 0xe87   :  { %v11517_v35 = vadd.f32 %v9423_v9, %v3869_v52  ;;  %v11522_v30 = vadd.f32 %v9424_v38, %v3870_v55  ;;  %v3871_v16 = vsel %vm3839_vm10, %v3823_v18, %v3855_v63  ;;  %v3856_v33 = vmul.f32 0.2, %v3824_v59 }
 0xe88   :  { %3901 = vmax.xlane.f32.xlu0 %v11508_v22  ;;  %3899 = vmax.xlane.f32.xlu2 %v11511_v26  ;;  %v11527_v25 = vadd.f32 %v9425_v11, %v3871_v16  ;;  %vm3840_vm11 = vcmp.gt.f32.partialorder %v3824_v59, 0.0  ;;  %v3857_v15 = vmul.f32 0.2, %v3825_v42  ;;  %vm3841_vm12 = vcmp.gt.f32.partialorder %v3825_v42, 0.0 }
 0xe89   :  { %v3872_v41 = vsel %vm3840_vm11, %v3824_v59, %v3856_v33  ;;  %v3858_v37 = vmul.f32 0.2, %v3826_v17  ;;  %vm3842_vm13 = vcmp.gt.f32.partialorder %v3826_v17, 0.0  ;;  %v3827_v60 = vadd.f32 %v11502_v51, %v11500_v36  ;;  %v9430_v36 = vld [vmem:[%s15077_s12 + $0x58] sm:$0xff] }
 0xe8a   :  { %v11534_v39 = vadd.f32 %v9426_v28, %v3872_v41  ;;  %v3873_v31 = vsel %vm3841_vm12, %v3825_v42, %v3857_v15  ;;  %vm4181_vm2 = vcmask 64512  }
 0xe8b   :  { %v11538_v48 = vadd.f32 %v9427_v12, %v3873_v31  ;;  %v3874_v53 = vsel %vm3842_vm13, %v3826_v17, %v3858_v37  ;;  %v3859_v21 = vmul.f32 0.2, %v3827_v60  ;;  %vm3843_vm14 = vcmp.gt.f32.partialorder %v3827_v60, 0.0  ;;  %v9432_v37 = vld [vmem:[%s15077_s12 + $0x50] sm:$0xff] }
 0xe8c   :  { %v11548_v1 = vadd.f32 %v9428_v6, %v3874_v53 }
 0xe8d   :  { %v3875_v34 = vsel %vm3843_vm14, %v3827_v60, %v3859_v21 }
 0xe8e   :  { %v11553_v50 = vadd.f32 %v9429_v32, %v3875_v34  ;;  %v4685_v34 = vld [vmem:[%s15085_s17] sm:$0xff] }
 0xe8f   :  { %4705 = vmatpush.msrb.mxu0 %v4685_v34 }
 0xe90   :  { %3903 = vmax.xlane.f32.xlu0 %v11517_v35 }
 0xe98   :  { %3905 = vmax.xlane.f32.xlu0 %v11522_v30 }
 0xea0   :  { %3907 = vmax.xlane.f32.xlu0 %v11527_v25  ;;  %3811 = vperm.xlu2 %8484, %v11488_v44   ;;  %v3792_v44 = vpop.permute.xlu2 %3791 }
 0xea1   :  { %v3828_v5 = vadd.f32 %v11502_v51, %v3792_v44 }
 0xea3   :  { %v3860_v13 = vmul.f32 0.2, %v3828_v5  ;;  %vm3844_vm1 = vcmp.gt.f32.partialorder %v3828_v5, 0.0 }
 0xea5   :  { %v3876_v0 = vsel %vm3844_vm1, %v3828_v5, %v3860_v13  ;;  %v9434_v13 = vld [vmem:[%s15077_s12 + $0x68] sm:$0xff] }
 0xea8   :  { %3909 = vmax.xlane.f32.xlu0 %v11534_v39  ;;  %v11543_v47 = vpop.permute.xlu2 %3795 }
 0xeb0   :  { %3911 = vmax.xlane.f32.xlu0 %v11538_v48  ;;  %v3800_v2 = vpop.permute.xlu2 %3799 }
 0xeb1   :  { %v3830_v3 = vadd.f32 %v11502_v51, %v3800_v2 }
 0xeb3   :  { %v3862_v43 = vmul.f32 0.2, %v3830_v3  ;;  %vm3846_vm0 = vcmp.gt.f32.partialorder %v3830_v3, 0.0 }
 0xeb5   :  { %v3878_v56 = vsel %vm3846_vm0, %v3830_v3, %v3862_v43  ;;  %v4599_v3 = vld [vmem:[%s15086_s13] sm:$0xff] }
 0xeb6   :  { %v11557_v7 = vadd.f32 %v9430_v36, %v3878_v56  ;;  %4619 = vmatpush.msrb.mxu3 %v4599_v3  ;;  %v4162_v3 = vld [vmem:[%s15087_s30 + $0x10] sm:$0xff] }
 0xeb8   :  { %v11560_v45 = vpop.permute.xlu2 %3803 }
 0xeb9   :  { %v3831_v17 = vadd.f32 %v11502_v51, %v11560_v45 }
 0xebb   :  { %v3863_v60 = vmul.f32 0.2, %v3831_v17  ;;  %vm3847_vm4 = vcmp.gt.f32.partialorder %v3831_v17, 0.0 }
 0xebd   :  { %v3879_v6 = vsel %vm3847_vm4, %v3831_v17, %v3863_v60 }
 0xec9   :  { %3913 = vmax.xlane.f32.xlu2 %v11548_v1 }
 0xed1   :  { %3915 = vmax.xlane.f32.xlu2 %v11553_v50 }
 0xed9   :  { %3921 = vmax.xlane.f32.xlu2 %v11557_v7 }
 0xefb   :  { %v3902_v61 = vpop.xlane.xlu0 %3901  ;;  %v3900_v62 = vpop.xlane.xlu2 %3899 }
 0xefc   :  { %v3931_v24 = vsub.f32 %v11511_v26, %v3900_v62  ;;  %v3932_v58 = vsub.f32 %v11508_v22, %v3902_v61 }
 0xefe   :  { %v3947_v14 = vmul.f32 1.442695, %v3931_v24  ;;  %v3949_v54 = vmul.f32 1.442695, %v3932_v58 }
 0xf00   :  { %8765 = vpow2.f32 %v3947_v14 }
 0xf03   :  { %v3904_v4 = vpop.xlane.xlu0 %3903  ;;  %v3812_v33 = vpop.permute.xlu2 %3811 }
 0xf04   :  { %v3933_v8 = vsub.f32 %v11517_v35, %v3904_v4  ;;  %v9431_v35 = vld [vmem:[%s15077_s12 + $0x48] sm:$0xff] }
 0xf05   :  { %v11580_v29 = vadd.f32 %v9431_v35, %v3876_v0 }
 0xf06   :  { %v3951_v49 = vmul.f32 1.442695, %v3933_v8  ;;  %v11565_v19 = vpop.eup %8765 }
 0xf07   :  { %3979 = vadd.xlane.f32.xlu0 %v11565_v19 }
 0xf08   :  { %8767 = vpow2.f32 %v3951_v49 }
 0xf09   :  { %8769 = vpow2.f32 %v3949_v54 }
 0xf0b   :  { %v3906_v57 = vpop.xlane.xlu0 %3905 }
 0xf0c   :  { %v3934_v10 = vsub.f32 %v11522_v30, %v3906_v57 }
 0xf0e   :  { %v11570_v20 = vpop.eup %8767  ;;  %v3953_v23 = vmul.f32 1.442695, %v3934_v10  ;;  %v3833_v10 = vadd.f32 %v11502_v51, %v3812_v33 }
 0xf0f   :  { %v11572_v22 = vpop.eup %8769  ;;  %3983 = vadd.xlane.f32.xlu1 %v11570_v20 }
 0xf10   :  { %8771 = vpow2.f32 %v3953_v23  ;;  %3981 = vadd.xlane.f32.xlu0 %v11572_v22  ;;  %v3865_v0 = vmul.f32 0.2, %v3833_v10  ;;  %vm3849_vm6 = vcmp.gt.f32.partialorder %v3833_v10, 0.0 }
 0xf13   :  { %v3908_v26 = vpop.xlane.xlu0 %3907 }
 0xf14   :  { %v3935_v52 = vsub.f32 %v11527_v25, %v3908_v26 }
 0xf16   :  { %v11577_v27 = vpop.eup %8771  ;;  %v3955_v9 = vmul.f32 1.442695, %v3935_v52 }
 0xf17   :  { %3985 = vadd.xlane.f32.xlu2 %v11577_v27 }
 0xf18   :  { %8773 = vpow2.f32 %v3955_v9  ;;  %3917 = vmax.xlane.f32.xlu0 %v11580_v29 }
 0xf1b   :  { %v3910_v55 = vpop.xlane.xlu0 %3909 }
 0xf1c   :  { %v3936_v18 = vsub.f32 %v11534_v39, %v3910_v55 }
 0xf1e   :  { %v11585_v38 = vpop.eup %8773  ;;  %v3957_v30 = vmul.f32 1.442695, %v3936_v18 }
 0xf1f   :  { %3987 = vadd.xlane.f32.xlu2 %v11585_v38 }
 0xf20   :  { %8775 = vpow2.f32 %v3957_v30  ;;  %v3881_v30 = vsel %vm3849_vm6, %v3833_v10, %v3865_v0  ;;  %v5543_v10 = vld [vmem:[%s15090_s18 + $0x38] sm:$0xff]  ;;  %v5635_v0 = vld [vmem:[%s15089_s16 + $0x30] sm:$0xff] }
 0xf23   :  { %v3912_v63 = vpop.xlane.xlu0 %3911 }
 0xf24   :  { %v3937_v16 = vsub.f32 %v11538_v48, %v3912_v63 }
 0xf26   :  { %v11589_v59 = vpop.eup %8775  ;;  %v3959_v11 = vmul.f32 1.442695, %v3937_v16 }
 0xf27   :  { %3989 = vadd.xlane.f32.xlu2 %v11589_v59 }
 0xf28   :  { %8777 = vpow2.f32 %v3959_v11 }
 0xf2c   :  { %3807 = vperm.xlu0 %8485, %v11484_v40  }
 0xf2e   :  { %v11593_v25 = vpop.eup %8777 }
 0xf2f   :  { %3991 = vadd.xlane.f32.xlu2 %v11593_v25 }
 0xf34   :  { %3815 = vperm.xlu0 %8485, %v11492_v46   ;;  %v3829_v46 = vadd.f32 %v11502_v51, %v11543_v47  ;;  %v4176_v47 = vld [vmem:[%s15084_s15] sm:$0xff] }
 0xf35   :  { %4245 = vmatpush.msrb.mxu2 %v4176_v47 }
 0xf36   :  { %v3861_v48 = vmul.f32 0.2, %v3829_v46  ;;  %vm3845_vm3 = vcmp.gt.f32.partialorder %v3829_v46, 0.0 }
 0xf37   :  { %5556 = vmatpush.msra.mxu2 %v5543_v10 }
 0xf38   :  { %v3877_v44 = vsel %vm3845_vm3, %v3829_v46, %v3861_v48 }
 0xf39   :  { %v11610_v53 = vadd.f32 %v9432_v37, %v3877_v44  ;;  %v4160_v44 = vld [vmem:[%s15087_s30] sm:$0xff]  ;;  %v4161_v37 = vld [vmem:[%s15087_s30 + $0x8] sm:$0xff] }
 0xf3a   :  { %8063 = vmatmul.msk.f32.vlgmr.msrb.gmra.mxu2 %vm4181_vm2, %v4160_v44  ;;  %8111 = vmatmul.msk.f32.vlgmr.msrb.gmra.mxu0 %vm4181_vm2, %v4160_v44 }
 0xf3b   :  { %8095 = vmatmul.msk.f32.vlgmr.msrb.gmra.mxu3 %vm4181_vm2, %v4160_v44 }
 0xf3c   :  { %v3914_v41 = vpop.xlane.xlu2 %3913 }
 0xf3d   :  { %v3938_v42 = vsub.f32 %v11548_v1, %v3914_v41  ;;  %v9433_v1 = vld [vmem:[%s15077_s12 + $0x60] sm:$0xff] }
 0xf3e   :  { %v11614_v21 = vadd.f32 %v9433_v1, %v3879_v6 }
 0xf3f   :  { %v3961_v28 = vmul.f32 1.442695, %v3938_v42  ;;  %v9436_v42 = vld [vmem:[%s15077_s12 + $0x78] sm:$0xff] }
 0xf41   :  { %8779 = vpow2.f32 %v3961_v28 }
 0xf42   :  { %8064 = vmatmul.msk.f32.gmra.mxu2 %vm4181_vm2, %v4161_v37  ;;  %8112 = vmatmul.msk.f32.gmra.mxu0 %vm4181_vm2, %v4161_v37 }
 0xf43   :  { %8096 = vmatmul.msk.f32.gmra.mxu3 %vm4181_vm2, %v4161_v37 }
 0xf44   :  { %v3916_v39 = vpop.xlane.xlu2 %3915 }
 0xf45   :  { %v3939_v15 = vsub.f32 %v11553_v50, %v3916_v39 }
 0xf47   :  { %v11599_v31 = vpop.eup %8779  ;;  %v3963_v12 = vmul.f32 1.442695, %v3939_v15 }
 0xf48   :  { %3993 = vadd.xlane.f32.xlu2 %v11599_v31 }
 0xf49   :  { %8781 = vpow2.f32 %v3963_v12 }
 0xf4a   :  { %8065 = vmatmul.msk.f32.gmra.mxu2 %vm4181_vm2, %v4162_v3  ;;  %8113 = vmatmul.msk.f32.gmra.mxu0 %vm4181_vm2, %v4162_v3 }
 0xf4b   :  { %8097 = vmatmul.msk.f32.gmra.mxu3 %vm4181_vm2, %v4162_v3 }
 0xf4c   :  { %v3922_v50 = vpop.xlane.xlu2 %3921 }
 0xf4d   :  { %v3942_v52 = vsub.f32 %v11557_v7, %v3922_v50  ;;  %v9435_v7 = vld [vmem:[%s15077_s12 + $0x70] sm:$0xff] }
 0xf4e   :  { %v11636_v41 = vadd.f32 %v9435_v7, %v3881_v30  ;;  %v4166_v50 = vld [vmem:[%s15087_s30 + $0x30] sm:$0xff]  ;;  %v5541_v30 = vld [vmem:[%s15090_s18 + $0x28] sm:$0xff]  ;;  %v11745_v7 = vld [vmem:[%s15091_s22] ss:$0 sm:$0xff] }
 0xf4f   :  { %v11602_v40 = vpop.eup %8781  ;;  %v3969_v63 = vmul.f32 1.442695, %v3942_v52 }
 0xf50   :  { %3995 = vadd.xlane.f32.xlu1 %v11602_v40 }
 0xf5e   :  { %3919 = vmax.xlane.f32.xlu0 %v11610_v53 }
 0xf66   :  { %3923 = vmax.xlane.f32.xlu0 %v11614_v21 }
 0xf7a   :  { %v3980_v2 = vpop.xlane.xlu0 %3979 }
 0xf7b   :  { %8783 = vrcp.f32 %v3980_v2 }
 0xf81   :  { %v8784_v32 = vpop.eup %8783 }
 0xf82   :  { %v4027_v43 = vmul.f32 %v8784_v32, %v11565_v19  ;;  %v3984_v36 = vpop.xlane.xlu1 %3983  ;;  %v4165_v32 = vld [vmem:[%s15087_s30 + $0x28] sm:$0xff] }
 0xf83   :  { %v3982_v56 = vpop.xlane.xlu0 %3981 }
 0xf84   :  { %8785 = vrcp.f32 %v3982_v56  ;;  %4063 = vmatmul.f32.vlgmr.msrb.gmra.mxu1 %v4027_v43  ;;  %v4167_v43 = vld [vmem:[%s15087_s30 + $0x38] sm:$0xff]  ;;  %v4168_v56 = vld [vmem:[%s15087_s30 + $0x40] sm:$0xff] }
 0xf85   :  { %8787 = vrcp.f32 %v3984_v36  ;;  %v5114_v36 = vld [vmem:[%s15088_s11 + $0x38] sm:$0xff] }
 0xf86   :  { %5175 = vmatpush.msra.mxu1 %v5114_v36 }
 0xf8a   :  { %v8786_v45 = vpop.eup %8785  ;;  %v3986_v61 = vpop.xlane.xlu2 %3985 }
 0xf8b   :  { %v4028_v62 = vmul.f32 %v8786_v45, %v11572_v22  ;;  %v8788_v24 = vpop.eup %8787  ;;  %8789 = vrcp.f32 %v3986_v61  ;;  %v3918_v4 = vpop.xlane.xlu0 %3917  ;;  %v5636_v45 = vld [vmem:[%s15089_s16 + $0x38] sm:$0xff] }
 0xf8c   :  { %v4029_v58 = vmul.f32 %v8788_v24, %v11570_v20  ;;  %v3940_v9 = vsub.f32 %v11580_v29, %v3918_v4  ;;  %5649 = vmatpush.msra.mxu3 %v5636_v45 }
 0xf8d   :  { %4066 = vmatmul.f32.gmra.mxu1 %v4028_v62 }
 0xf8e   :  { %v3965_v16 = vmul.f32 1.442695, %v3940_v9  ;;  %5650 = vmatpush.msra.mxu3 %v5635_v0  ;;  %v4172_v9 = vld [vmem:[%s15087_s30 + $0x60] sm:$0xff] }
 0xf91   :  { %v8790_v8 = vpop.eup %8789 }
 0xf92   :  { %v3988_v14 = vpop.xlane.xlu2 %3987  ;;  %v4030_v54 = vmul.f32 %v8790_v8, %v11577_v27 }
 0xf93   :  { %8791 = vrcp.f32 %v3988_v14  ;;  %v4169_v14 = vld [vmem:[%s15087_s30 + $0x48] sm:$0xff] }
 0xf95   :  { %4069 = vmatmul.f32.gmra.mxu1 %v4029_v58 }
 0xf99   :  { %v8792_v5 = vpop.eup %8791 }
 0xf9a   :  { %v3990_v49 = vpop.xlane.xlu2 %3989  ;;  %v4031_v20 = vmul.f32 %v8792_v5, %v11585_v38  ;;  %v4170_v5 = vld [vmem:[%s15087_s30 + $0x50] sm:$0xff] }
 0xf9b   :  { %8793 = vrcp.f32 %v3990_v49 }
 0xf9d   :  { %4072 = vmatmul.f32.gmra.mxu1 %v4030_v54 }
 0xf9e   :  { %v3808_v19 = vpop.permute.xlu0 %3807 }
 0xf9f   :  { %v3832_v57 = vadd.f32 %v11502_v51, %v3808_v19 }
 0xfa1   :  { %vm3848_vm5 = vcmp.gt.f32.partialorder %v3832_v57, 0.0  ;;  %v3864_v23 = vmul.f32 0.2, %v3832_v57  ;;  %v8794_v18 = vpop.eup %8793 }
 0xfa2   :  { %v3992_v35 = vpop.xlane.xlu2 %3991  ;;  %v4032_v11 = vmul.f32 %v8794_v18, %v11589_v59  ;;  %v5634_v18 = vld [vmem:[%s15089_s16 + $0x28] sm:$0xff] }
 0xfa3   :  { %v3880_v22 = vsel %vm3848_vm5, %v3832_v57, %v3864_v23  ;;  %8795 = vrcp.f32 %v3992_v35  ;;  %v5113_v23 = vld [vmem:[%s15088_s11 + $0x30] sm:$0xff]  ;;  %5651 = vmatpush.msra.mxu3 %v5634_v18 }
 0xfa4   :  { %v11628_v26 = vadd.f32 %v9434_v13, %v3880_v22  ;;  %8797 = vpow2.f32 %v3969_v63  ;;  %5176 = vmatpush.msra.mxu1 %v5113_v23  ;;  %v5542_v35 = vld [vmem:[%s15090_s18 + $0x30] sm:$0xff] }
 0xfa5   :  { %4075 = vmatmul.f32.gmra.mxu1 %v4031_v20  ;;  %8799 = vpow2.f32 %v3965_v16  ;;  %5557 = vmatpush.msra.mxu2 %v5542_v35  ;;  %v4174_v63 = vld [vmem:[%s15087_s30 + $0x70] sm:$0xff]  ;;  %v5111_v16 = vld [vmem:[%s15088_s11 + $0x20] sm:$0xff] }
 0xfa6   :  { %3925 = vmax.xlane.f32.xlu0 %v11628_v26  ;;  %v3816_v27 = vpop.permute.xlu0 %3815 }
 0xfa7   :  { %v3834_v55 = vadd.f32 %v11502_v51, %v3816_v27  ;;  %5558 = vmatpush.msra.mxu2 %v5541_v30 }
 0xfa9   :  { %vm3850_vm7 = vcmp.gt.f32.partialorder %v3834_v55, 0.0  ;;  %v3866_v38 = vmul.f32 0.2, %v3834_v55  ;;  %v8796_v51 = vpop.eup %8795 }
 0xfaa   :  { %v4033_v29 = vmul.f32 %v8796_v51, %v11593_v25  ;;  %v11644_v39 = vpop.eup %8797  ;;  %v5632_v51 = vld [vmem:[%s15089_s16 + $0x18] sm:$0xff] }
 0xfab   :  { %v3882_v33 = vsel %vm3850_vm7, %v3834_v55, %v3866_v38  ;;  %v11646_v59 = vpop.eup %8799  ;;  %v5112_v55 = vld [vmem:[%s15088_s11 + $0x28] sm:$0xff] }
 0xfac   :  { %v11639_v28 = vadd.f32 %v9436_v42, %v3882_v33  ;;  %5177 = vmatpush.msra.mxu1 %v5112_v55  ;;  %v4173_v38 = vld [vmem:[%s15087_s30 + $0x68] sm:$0xff]  ;;  %v5110_v42 = vld [vmem:[%s15088_s11 + $0x18] sm:$0xff] }
 0xfad   :  { %4078 = vmatmul.f32.gmra.mxu1 %v4032_v11  ;;  %v5633_v11 = vld [vmem:[%s15089_s16 + $0x20] sm:$0xff] }
 0xfae   :  { %3927 = vmax.xlane.f32.xlu0 %v11636_v41  ;;  %3929 = vmax.xlane.f32.xlu2 %v11639_v28 }
 0xfaf   :  { %5178 = vmatpush.msra.mxu1 %v5111_v16  ;;  %5652 = vmatpush.msra.mxu3 %v5633_v11 }
 0xfb1   :  { %5179 = vmatpush.msra.mxu1 %v5110_v42  ;;  %5653 = vmatpush.msra.mxu3 %v5632_v51 }
 0xfb5   :  { %4081 = vmatmul.f32.gmra.mxu1 %v4033_v29  ;;  %v11750_v29 = vld [vmem:[#allocation2] ss:$0 sm:$0xff] }
 0xfb6   :  { %3997 = vadd.xlane.f32.xlu0 %v11646_v59  ;;  %4001 = vadd.xlane.f32.xlu2 %v11644_v39 }
 0xfbb   :  { %v3994_v15 = vpop.xlane.xlu2 %3993 }
 0xfbc   :  { %8801 = vrcp.f32 %v3994_v15 }
 0xfbd   :  { %v4247_v33 = vpop.f32.mrf.mxu2 }
 0xfbe   :  { %v4248_v15 = vadd.f32 %v11745_v7, %v4247_v33 }
 0xfc2   :  { %v8802_v12 = vpop.eup %8801 }
 0xfc3   :  { %v3996_v46 = vpop.xlane.xlu1 %3995  ;;  %v4034_v48 = vmul.f32 %v8802_v12, %v11599_v31 }
 0xfc4   :  { %8803 = vrcp.f32 %v3996_v46  ;;  %v8079_v46 = vmul.f32 -1.442695, %v4248_v15 }
 0xfc5   :  { %4084 = vmatmul.f32.gmra.mxu1 %v4034_v48 }
 0xfca   :  { %v8804_v25 = vpop.eup %8803 }
 0xfcb   :  { %v4035_v17 = vmul.f32 %v8804_v25, %v11602_v40  ;;  %v4250_v25 = vpop.f32.mrf.mxu2 }
 0xfcc   :  { %v4251_v37 = vadd.f32 %v11745_v7, %v4250_v25 }
 0xfcd   :  { %4087 = vmatmul.f32.gmra.mxu1 %v4035_v17 }
 0xfd1   :  { %v3920_v31 = vpop.xlane.xlu0 %3919 }
 0xfd2   :  { %v3941_v60 = vsub.f32 %v11610_v53, %v3920_v31  ;;  %v4163_v53 = vld [vmem:[%s15087_s30 + $0x18] sm:$0xff]  ;;  %v8080_v31 = vmul.f32 -1.442695, %v4251_v37 }
 0xfd3   :  { %8066 = vmatmul.msk.f32.gmra.mxu2 %vm4181_vm2, %v4163_v53  ;;  %8114 = vmatmul.msk.f32.gmra.mxu0 %vm4181_vm2, %v4163_v53  ;;  %v4253_v18 = vpop.f32.mrf.mxu2 }
 0xfd4   :  { %v3967_v6 = vmul.f32 1.442695, %v3941_v60  ;;  %8098 = vmatmul.msk.f32.gmra.mxu3 %vm4181_vm2, %v4163_v53  ;;  %v4254_v11 = vadd.f32 %v11745_v7, %v4253_v18 }
 0xfd6   :  { %8805 = vpow2.f32 %v3967_v6  ;;  %v8081_v42 = vmul.f32 -1.442695, %v4254_v11 }
 0xfd9   :  { %v3924_v1 = vpop.xlane.xlu0 %3923 }
 0xfda   :  { %v3943_v47 = vsub.f32 %v11614_v21, %v3924_v1  ;;  %v4164_v21 = vld [vmem:[%s15087_s30 + $0x20] sm:$0xff] }
 0xfdb   :  { %8067 = vmatmul.msk.f32.gmra.mxu2 %vm4181_vm2, %v4164_v21  ;;  %8115 = vmatmul.msk.f32.gmra.mxu0 %vm4181_vm2, %v4164_v21 }
 0xfdc   :  { %v11662_v40 = vpop.eup %8805  ;;  %v3971_v2 = vmul.f32 1.442695, %v3943_v47  ;;  %8099 = vmatmul.msk.f32.gmra.mxu3 %vm4181_vm2, %v4164_v21 }
 0xfdd   :  { %3999 = vadd.xlane.f32.xlu1 %v11662_v40 }
 0xfde   :  { %8807 = vpow2.f32 %v3971_v2 }
 0xfe3   :  { %8068 = vmatmul.msk.f32.gmra.mxu2 %vm4181_vm2, %v4165_v32  ;;  %8116 = vmatmul.msk.f32.gmra.mxu0 %vm4181_vm2, %v4165_v32 }
 0xfe4   :  { %v11665_v34 = vpop.eup %8807  ;;  %8100 = vmatmul.msk.f32.gmra.mxu3 %vm4181_vm2, %v4165_v32 }
 0xfe5   :  { %4003 = vadd.xlane.f32.xlu0 %v11665_v34 }
 0xfeb   :  { %8069 = vmatmul.msk.f32.gmra.mxu2 %vm4181_vm2, %v4166_v50  ;;  %8117 = vmatmul.msk.f32.gmra.mxu0 %vm4181_vm2, %v4166_v50 }
 0xfec   :  { %8101 = vmatmul.msk.f32.gmra.mxu3 %vm4181_vm2, %v4166_v50 }
 0xff3   :  { %8070 = vmatmul.msk.f32.gmra.mxu2 %vm4181_vm2, %v4167_v43  ;;  %8118 = vmatmul.msk.f32.gmra.mxu0 %vm4181_vm2, %v4167_v43 }
 0xff4   :  { %8102 = vmatmul.msk.f32.gmra.mxu3 %vm4181_vm2, %v4167_v43 }
 0xffb   :  { %8071 = vmatmul.msk.f32.gmra.mxu2 %vm4181_vm2, %v4168_v56  ;;  %8119 = vmatmul.msk.f32.gmra.mxu0 %vm4181_vm2, %v4168_v56 }
 0xffc   :  { %8103 = vmatmul.msk.f32.gmra.mxu3 %vm4181_vm2, %v4168_v56 }
0x1003   :  { %8072 = vmatmul.msk.f32.gmra.mxu2 %vm4181_vm2, %v4169_v14  ;;  %8120 = vmatmul.msk.f32.gmra.mxu0 %vm4181_vm2, %v4169_v14 }
0x1004   :  { %8104 = vmatmul.msk.f32.gmra.mxu3 %vm4181_vm2, %v4169_v14  ;;  %v4621_v14 = vpop.f32.mrf.mxu3 }
0x100b   :  { %8073 = vmatmul.msk.f32.gmra.mxu2 %vm4181_vm2, %v4170_v5  ;;  %8121 = vmatmul.msk.f32.gmra.mxu0 %vm4181_vm2, %v4170_v5 }
0x100c   :  { %8105 = vmatmul.msk.f32.gmra.mxu3 %vm4181_vm2, %v4170_v5 }
0x1019   :  { %v3926_v61 = vpop.xlane.xlu0 %3925 }
0x101a   :  { %v3944_v62 = vsub.f32 %v11628_v26, %v3926_v61  ;;  %v4171_v26 = vld [vmem:[%s15087_s30 + $0x58] sm:$0xff] }
0x101b   :  { %8074 = vmatmul.msk.f32.gmra.mxu2 %vm4181_vm2, %v4171_v26  ;;  %8122 = vmatmul.msk.f32.gmra.mxu0 %vm4181_vm2, %v4171_v26  ;;  %v5539_v61 = vld [vmem:[%s15090_s18 + $0x18] sm:$0xff] }
0x101c   :  { %v3973_v24 = vmul.f32 1.442695, %v3944_v62  ;;  %8106 = vmatmul.msk.f32.gmra.mxu3 %vm4181_vm2, %v4171_v26  ;;  %v5109_v62 = vld [vmem:[%s15088_s11 + $0x10] sm:$0xff] }
0x101d   :  { %5180 = vmatpush.msra.mxu1 %v5109_v62 }
0x101e   :  { %8809 = vpow2.f32 %v3973_v24  ;;  %v11772_v24 = vld [vmem:[%s15092_s5] ss:$0 sm:$0xff] }
0x1021   :  { %v3928_v58 = vpop.xlane.xlu0 %3927  ;;  %v3930_v4 = vpop.xlane.xlu2 %3929 }
0x1022   :  { %v3945_v8 = vsub.f32 %v11636_v41, %v3928_v58  ;;  %v3946_v54 = vsub.f32 %v11639_v28, %v3930_v4  ;;  %v5540_v41 = vld [vmem:[%s15090_s18 + $0x20] sm:$0xff]  ;;  %v4707_v28 = vpop.f32.mrf.mxu0  ;;  %v5631_v4 = vld [vmem:[%s15089_s16 + $0x10] sm:$0xff] }
0x1023   :  { %8075 = vmatmul.msk.f32.gmra.mxu2 %vm4181_vm2, %v4172_v9  ;;  %8123 = vmatmul.msk.f32.gmra.mxu0 %vm4181_vm2, %v4172_v9  ;;  %v4708_v12 = vadd.f32 %v11750_v29, %v4707_v28 }
0x1024   :  { %v11705_v49 = vpop.eup %8809  ;;  %v3975_v19 = vmul.f32 1.442695, %v3945_v8  ;;  %v3977_v57 = vmul.f32 1.442695, %v3946_v54  ;;  %8107 = vmatmul.msk.f32.gmra.mxu3 %vm4181_vm2, %v4172_v9  ;;  %5559 = vmatpush.msra.mxu2 %v5540_v41 }
0x1025   :  { %4005 = vadd.xlane.f32.xlu1 %v11705_v49  ;;  %v8127_v44 = vmul.f32 -1.442695, %v4708_v12  ;;  %5654 = vmatpush.msra.mxu3 %v5631_v4  ;;  %v4624_v12 = vpop.f32.mrf.mxu3 }
0x1026   :  { %8811 = vpow2.f32 %v3975_v19  ;;  %5560 = vmatpush.msra.mxu2 %v5539_v61  ;;  %v4625_v25 = vadd.f32 %v11772_v24, %v4624_v12 }
0x1027   :  { %8813 = vpow2.f32 %v3977_v57  ;;  %v4622_v57 = vadd.f32 %v11772_v24, %v4621_v14 }
0x1029   :  { %v3998_v20 = vpop.xlane.xlu0 %3997  ;;  %v4002_v17 = vpop.xlane.xlu2 %4001 }
0x102a   :  { %8815 = vrcp.f32 %v3998_v20  ;;  %v4710_v45 = vpop.f32.mrf.mxu0 }
0x102b   :  { %8076 = vmatmul.msk.f32.gmra.mxu2 %vm4181_vm2, %v4173_v38  ;;  %8124 = vmatmul.msk.f32.gmra.mxu0 %vm4181_vm2, %v4173_v38  ;;  %v4711_v58 = vadd.f32 %v11750_v29, %v4710_v45 }
0x102c   :  { %v11714_v22 = vpop.eup %8811  ;;  %8108 = vmatmul.msk.f32.gmra.mxu3 %vm4181_vm2, %v4173_v38 }
0x102d   :  { %v11716_v13 = vpop.eup %8813  ;;  %4007 = vadd.xlane.f32.xlu2 %v11714_v22  ;;  %v8128_v10 = vmul.f32 -1.442695, %v4711_v58  ;;  %v5538_v58 = vld [vmem:[%s15090_s18 + $0x10] sm:$0xff]  ;;  %v4627_v4 = vpop.f32.mrf.mxu3 }
0x102e   :  { %4009 = vadd.xlane.f32.xlu0 %v11716_v13  ;;  %5561 = vmatpush.msra.mxu2 %v5538_v58 }
0x1030   :  { %v8816_v52 = vpop.eup %8815 }
0x1031   :  { %v4036_v27 = vmul.f32 %v8816_v52, %v11646_v59  ;;  %v4175_v59 = vld [vmem:[%s15087_s30 + $0x78] sm:$0xff] }
0x1032   :  { %v4713_v55 = vpop.f32.mrf.mxu0 }
0x1033   :  { %4090 = vmatmul.f32.gmra.mxu1 %v4036_v27  ;;  %8077 = vmatmul.msk.f32.gmra.mxu2 %vm4181_vm2, %v4174_v63  ;;  %v4714_v30 = vadd.f32 %v11750_v29, %v4713_v55 }
0x1034   :  { %8125 = vmatmul.msk.f32.gmra.mxu0 %vm4181_vm2, %v4174_v63  ;;  %8109 = vmatmul.msk.f32.gmra.mxu3 %vm4181_vm2, %v4174_v63 }
0x1035   :  { %v8129_v51 = vmul.f32 -1.442695, %v4714_v30 }
0x103b   :  { %8078 = vmatmul.msk.f32.gmra.mxu2 %vm4181_vm2, %v4175_v59 }
0x103c   :  { %8126 = vmatmul.msk.f32.gmra.mxu0 %vm4181_vm2, %v4175_v59  ;;  %8110 = vmatmul.msk.f32.gmra.mxu3 %vm4181_vm2, %v4175_v59 }
0x1050   :  { %v4000_v48 = vpop.xlane.xlu1 %3999 }
0x1051   :  { %8817 = vrcp.f32 %v4000_v48 }
0x1052   :  { %8819 = vpow2.f32 %v8079_v46 }
0x1053   :  { %8821 = vpow2.f32 %v8127_v44 }
0x1054   :  { %8823 = vrcp.f32 %v4002_v17  ;;  %v4716_v17 = vpop.f32.mrf.mxu0 }
0x1055   :  { %8825 = vpow2.f32 %v8080_v31 }
0x1057   :  { %v8818_v60 = vpop.eup %8817 }
0x1058   :  { %v8820_v6 = vpop.eup %8819  ;;  %v4037_v1 = vmul.f32 %v8818_v60, %v11662_v40  ;;  %v4004_v21 = vpop.xlane.xlu0 %4003 }
0x1059   :  { %v8822_v47 = vpop.eup %8821  ;;  %v4343_v2 = vadd.f32 1.0, %v8820_v6  ;;  %v4256_v60 = vpop.f32.mrf.mxu2  ;;  %v4717_v6 = vadd.f32 %v11750_v29, %v4716_v17 }
0x105a   :  { %4093 = vmatmul.f32.gmra.mxu1 %v4037_v1  ;;  %v11760_v3 = vadd.f32 1.0, %v8822_v47  ;;  %v8824_v53 = vpop.eup %8823  ;;  %v4257_v47 = vadd.f32 %v11745_v7, %v4256_v60 }
0x105b   :  { %8827 = vrcp.f32 %v4343_v2  ;;  %v8826_v32 = vpop.eup %8825  ;;  %v4038_v43 = vmul.f32 %v8824_v53, %v11644_v39  ;;  %vm4364_vm8 = vweird.f32 %v4343_v2  ;;  %v4370_v39 = vand.u32 2147483648, %v4343_v2 }
0x105c   :  { %8829 = vrcp.f32 %v11760_v3  ;;  %v11763_v50 = vadd.f32 1.0, %v8826_v32  ;;  %v4368_v19 = vand.u32 2147483647, %v4343_v2  ;;  %vm4824_vm12 = vweird.f32 %v11760_v3 }
0x105d   :  { %8831 = vrcp.f32 %v4004_v21  ;;  %v4371_v26 = vor.u32 1.1754944e-38, %v4370_v39  ;;  %v4828_v59 = vand.u32 2147483647, %v11760_v3  ;;  %v4830_v15 = vand.u32 2147483648, %v11760_v3  ;;  %v5108_v39 = vld [vmem:[%s15088_s11 + $0x8] sm:$0xff] }
0x105e   :  { %8833 = vrcp.f32 %v11763_v50  ;;  %vm4369_vm11 = vcmp.eq.f32.partialorder %v4368_v19, 8.507059e+37  ;;  %vm4379_vm1 = vweird.f32 %v11763_v50  ;;  %v8130_v53 = vmul.f32 -1.442695, %v4717_v6  ;;  %5181 = vmatpush.msra.mxu1 %v5108_v39 }
0x105f   :  { %8835 = vtanh.f32 %v4622_v57  ;;  %vm11802_vm0 = vcmp.eq.f32.partialorder %v4828_v59, 8.507059e+37  ;;  %v4831_v31 = vor.u32 1.1754944e-38, %v4830_v15  ;;  %v8082_v32 = vmul.f32 -1.442695, %v4257_v47  ;;  %v4630_v59 = vpop.f32.mrf.mxu3 }
0x1060   :  { %8837 = vpow2.f32 %v8128_v10  ;;  %v4628_v57 = vadd.f32 %v11772_v24, %v4627_v4  ;;  %v5629_v10 = vld [vmem:[%s15089_s16] sm:$0xff] }
0x1061   :  { %v8828_v40 = vpop.eup %8827 }
0x1062   :  { %v11767_v56 = vpop.eup %8829  ;;  %4096 = vmatmul.f32.gmra.mxu1 %v4038_v43  ;;  %v4360_v36 = vmul.f32 %v8828_v40, %v4343_v2  ;;  %vm4365_vm9 = vweird.f32 %v8828_v40 }
0x1063   :  { %v4820_v54 = vmul.f32 %v11767_v56, %v11760_v3  ;;  %v8832_v5 = vpop.eup %8831  ;;  %vm4366_vm10 = vmor %vm4364_vm8, %vm4365_vm9  ;;  %vm4825_vm13 = vweird.f32 %v11767_v56  ;;  %v4385_v3 = vand.u32 2147483648, %v11763_v50 }
0x1064   :  { %v4361_v8 = vsub.f32 1.0, %v4360_v36  ;;  %v11779_v20 = vpop.eup %8833  ;;  %v4039_v0 = vmul.f32 %v8832_v5, %v11665_v34  ;;  %vm11795_vm14 = vmor %vm4824_vm12, %vm4825_vm13  ;;  %v4719_v5 = vpop.f32.mrf.mxu0 }
0x1065   :  { %v4821_v52 = vsub.f32 1.0, %v4820_v54  ;;  %v4375_v9 = vmul.f32 %v11779_v20, %v11763_v50  ;;  %v8836_v63 = vpop.eup %8835  ;;  %vm4380_vm3 = vweird.f32 %v11779_v20 }
0x1066   :  { %v4362_v23 = vmul.f32 %v8828_v40, %v4361_v8  ;;  %v8838_v33 = vpop.eup %8837  ;;  %vm11822_vm4 = vmor %vm4379_vm1, %vm4380_vm3  ;;  %v5630_v8 = vld [vmem:[%s15089_s16 + $0x8] sm:$0xff] }
0x1067   :  { %v4822_v16 = vmul.f32 %v11767_v56, %v4821_v52  ;;  %v4376_v41 = vsub.f32 1.0, %v4375_v9  ;;  %v11790_v28 = vadd.f32 1.0, %v8838_v33  ;;  %5655 = vmatpush.msra.mxu3 %v5630_v8 }
0x1068   :  { %v4363_v27 = vadd.f32 %v8828_v40, %v4362_v23 }
0x1069   :  { %v4823_v46 = vadd.f32 %v11767_v56, %v4822_v16  ;;  %v4377_v44 = vmul.f32 %v11779_v20, %v4376_v41  ;;  %5656 = vmatpush.msra.mxu3 %v5629_v10  ;;  %v4843_v58 = vand.u32 2147483647, %v11790_v28 }
0x106a   :  { %4099 = vmatmul.f32.gmra.mxu1 %v4039_v0  ;;  %v4367_v35 = vsel %vm4366_vm10, %v8828_v40, %v4363_v27  ;;  %v4383_v40 = vand.u32 2147483647, %v11763_v50  ;;  %v4386_v50 = vor.u32 1.1754944e-38, %v4385_v3  ;;  %v4720_v0 = vadd.f32 %v11750_v29, %v4719_v5 }
0x106b   :  { %v4372_v38 = vsel %vm4369_vm11, %v4371_v26, %v4367_v35  ;;  %v4827_v1 = vsel %vm11795_vm14, %v11767_v56, %v4823_v46  ;;  %v4378_v43 = vadd.f32 %v11779_v20, %v4377_v44  ;;  %v4259_v26 = vpop.f32.mrf.mxu2  ;;  %v4631_v46 = vadd.f32 %v11772_v24, %v4630_v59 }
0x106c   :  { %v5059_v34 = vmul.f32 %v8836_v63, %v4372_v38  ;;  %v4832_v45 = vsel %vm11802_vm0, %v4831_v31, %v4827_v1  ;;  %vm4384_vm5 = vcmp.eq.f32.partialorder %v4383_v40, 8.507059e+37  ;;  %v4260_v27 = vadd.f32 %v11745_v7, %v4259_v26  ;;  %v4722_v48 = vpop.f32.mrf.mxu0  ;;  %v5107_v26 = vld [vmem:[%s15088_s11] sm:$0xff] }
0x106d   :  { %v4382_v19 = vsel %vm11822_vm4, %v11779_v20, %v4378_v43  ;;  %v8131_v35 = vmul.f32 -1.442695, %v4720_v0  ;;  %v4723_v60 = vadd.f32 %v11750_v29, %v4722_v48  ;;  %vm4839_vm10 = vweird.f32 %v11790_v28  ;;  %v5536_v0 = vld [vmem:[%s15090_s18] sm:$0xff]  ;;  %5182 = vmatpush.msra.mxu1 %v5107_v26 }
0x106e   :  { %8839 = vtanh.f32 %v5059_v34  ;;  %v4387_v9 = vsel %vm4384_vm5, %v4386_v50, %v4382_v19  ;;  %v8083_v18 = vmul.f32 -1.442695, %v4260_v27  ;;  %vm4844_vm0 = vcmp.eq.f32.partialorder %v4843_v58, 8.507059e+37 }
0x106f   :  { %8841 = vpow2.f32 %v8081_v42 }
0x1070   :  { %8843 = vrcp.f32 %v11790_v28 }
0x1071   :  { %8845 = vpow2.f32 %v8129_v51 }
0x1072   :  { %8847 = vtanh.f32 %v4625_v25  ;;  %v5537_v25 = vld [vmem:[%s15090_s18 + $0x8] sm:$0xff] }
0x1073   :  { %8849 = vpow2.f32 %v8130_v53  ;;  %v4262_v12 = vpop.f32.mrf.mxu2  ;;  %5562 = vmatpush.msra.mxu2 %v5537_v25 }
0x1074   :  { %v8840_v2 = vpop.eup %8839  ;;  %8851 = vpow2.f32 %v8082_v32  ;;  %v4263_v31 = vadd.f32 %v11745_v7, %v4262_v12 }
0x1075   :  { %v8842_v21 = vpop.eup %8841  ;;  %v11832_v54 = vmul.f32 %v8840_v2, %v4832_v45  ;;  %5563 = vmatpush.msra.mxu2 %v5536_v0 }
0x1076   :  { %v11816_v56 = vpop.eup %8843  ;;  %v11818_v36 = vadd.f32 1.0, %v8842_v21  ;;  %v8084_v32 = vmul.f32 -1.442695, %v4263_v31 }
0x1077   :  { %v8846_v62 = vpop.eup %8845  ;;  %v4835_v23 = vmul.f32 %v11816_v56, %v11790_v28  ;;  %8191 = vmatmul.msk.f32.vlgmr.msra.gmra.mxu3 %vm3544_vm15, %v11832_v54  ;;  %vm4840_vm11 = vweird.f32 %v11816_v56  ;;  %8175 = vmatmul.msk.f32.vlgmr.msra.gmra.mxu2 %vm3544_vm15, %v11832_v54 }
0x1078   :  { %8853 = vrcp.f32 %v11818_v36  ;;  %v11827_v14 = vadd.f32 1.0, %v8846_v62  ;;  %v8848_v52 = vpop.eup %8847  ;;  %v4398_v11 = vand.u32 2147483647, %v11818_v36  ;;  %v4400_v41 = vand.u32 2147483648, %v11818_v36  ;;  %vm11900_vm12 = vmor %vm4839_vm10, %vm4840_vm11 }
0x1079   :  { %v8850_v20 = vpop.eup %8849  ;;  %v4836_v63 = vsub.f32 1.0, %v4835_v23  ;;  %v5060_v34 = vmul.f32 %v8848_v52, %v4387_v9  ;;  %vm4394_vm6 = vweird.f32 %v11818_v36  ;;  %v4845_v9 = vand.u32 2147483648, %v11790_v28 }
0x107a   :  { %8855 = vrcp.f32 %v11827_v14  ;;  %v8852_v55 = vpop.eup %8851  ;;  %v11844_v38 = vadd.f32 1.0, %v8850_v20  ;;  %vm11858_vm2 = vcmp.eq.f32.partialorder %v4398_v11, 8.507059e+37  ;;  %v4401_v2 = vor.u32 1.1754944e-38, %v4400_v41  ;;  %v4725_v11 = vpop.f32.mrf.mxu0 }
0x107b   :  { %8857 = vtanh.f32 %v4628_v57  ;;  %v11848_v16 = vadd.f32 1.0, %v8852_v55  ;;  %v4837_v44 = vmul.f32 %v11816_v56, %v4836_v63  ;;  %v4265_v20 = vpop.f32.mrf.mxu2  ;;  %v4860_v19 = vand.u32 2147483648, %v11827_v14 }
0x107c   :  { %8859 = vpow2.f32 %v8131_v35  ;;  %v4633_v35 = vpop.f32.mrf.mxu3  ;;  %v4873_v58 = vand.u32 2147483647, %v11844_v38 }
0x107d   :  { %8861 = vpow2.f32 %v8083_v18  ;;  %vm4409_vm9 = vweird.f32 %v11848_v16  ;;  %v4413_v3 = vand.u32 2147483647, %v11848_v16  ;;  %v4838_v43 = vadd.f32 %v11816_v56, %v4837_v44 }
0x107e   :  { %v8854_v30 = vpop.eup %8853  ;;  %8863 = vrcp.f32 %v11848_v16  ;;  %v4415_v8 = vand.u32 2147483648, %v11848_v16  ;;  %v4634_v48 = vadd.f32 %v11772_v24, %v4633_v35  ;;  %v4726_v44 = vadd.f32 %v11750_v29, %v4725_v11 }
0x107f   :  { %v4390_v33 = vmul.f32 %v8854_v30, %v11818_v36  ;;  %8865 = vrcp.f32 %v11844_v38  ;;  %vm4395_vm7 = vweird.f32 %v8854_v30  ;;  %v8132_v36 = vmul.f32 -1.442695, %v4723_v60 }
0x1080   :  { %v11854_v42 = vpop.eup %8855  ;;  %8867 = vtanh.f32 %v5060_v34  ;;  %vm11874_vm8 = vmor %vm4394_vm6, %vm4395_vm7  ;;  %vm11912_vm14 = vcmp.eq.f32.partialorder %v4413_v3, 8.507059e+37  ;;  %v4842_v63 = vsel %vm11900_vm12, %v11816_v56, %v4838_v43  ;;  %v4846_v34 = vor.u32 1.1754944e-38, %v4845_v9 }
0x1081   :  { %v4391_v51 = vsub.f32 1.0, %v4390_v33  ;;  %v8858_v17 = vpop.eup %8857  ;;  %v11869_v1 = vmul.f32 %v11854_v42, %v11827_v14  ;;  %8869 = vtanh.f32 %v4631_v46  ;;  %v4416_v33 = vor.u32 1.1754944e-38, %v4415_v8 }
0x1082   :  { %v8860_v6 = vpop.eup %8859  ;;  %8871 = vpow2.f32 %v8084_v32  ;;  %vm4854_vm6 = vweird.f32 %v11827_v14  ;;  %vm4855_vm7 = vweird.f32 %v11854_v42 }
0x1083   :  { %v4392_v37 = vmul.f32 %v8854_v30, %v4391_v51  ;;  %v8862_v53 = vpop.eup %8861  ;;  %v11897_v4 = vadd.f32 1.0, %v8860_v6  ;;  %v4851_v52 = vsub.f32 1.0, %v11869_v1 }
0x1084   :  { %v11881_v40 = vpop.eup %8863  ;;  %v11883_v45 = vadd.f32 1.0, %v8862_v53  ;;  %v4268_v53 = vpop.f32.mrf.mxu2 }
0x1085   :  { %v4393_v21 = vadd.f32 %v8854_v30, %v4392_v37  ;;  %v11887_v61 = vpop.eup %8865  ;;  %v4405_v62 = vmul.f32 %v11881_v40, %v11848_v16  ;;  %vm4410_vm13 = vweird.f32 %v11881_v40  ;;  %v4847_v16 = vsel %vm4844_vm0, %v4846_v34, %v4842_v63 }
0x1086   :  { %8873 = vrcp.f32 %v11883_v45  ;;  %v8868_v57 = vpop.eup %8867  ;;  %v11906_v10 = vmul.f32 %v11887_v61, %v11844_v38  ;;  %vm11929_vm1 = vmor %vm4409_vm9, %vm4410_vm13  ;;  %v4428_v41 = vand.u32 2147483647, %v11883_v45  ;;  %vm4424_vm3 = vweird.f32 %v11883_v45 }
0x1087   :  { %v4397_v50 = vsel %vm11874_vm8, %v8854_v30, %v4393_v21  ;;  %v4406_v5 = vsub.f32 1.0, %v4405_v62  ;;  %8875 = vpow2.f32 %v8132_v36  ;;  %v8870_v55 = vpop.eup %8869  ;;  %v4266_v30 = vadd.f32 %v11745_v7, %v4265_v20 }
0x1088   :  { %v4402_v39 = vsel %vm11858_vm2, %v4401_v2, %v4397_v50  ;;  %8877 = vrcp.f32 %v11897_v4  ;;  %v8872_v56 = vpop.eup %8871  ;;  %v4866_v51 = vsub.f32 1.0, %v11906_v10  ;;  %v11947_v37 = vmul.f32 %v8868_v57, %v4847_v16  ;;  %vm11970_vm2 = vmor %vm4854_vm6, %vm4855_vm7  ;;  %v4636_v57 = vpop.f32.mrf.mxu3 }
0x1089   :  { %v5061_v23 = vmul.f32 %v8858_v17, %v4402_v39  ;;  %v4407_v18 = vmul.f32 %v11881_v40, %v4406_v5  ;;  %v8085_v15 = vmul.f32 -1.442695, %v4266_v30  ;;  %v11938_v46 = vadd.f32 1.0, %v8872_v56 }
0x108a   :  { %vm11951_vm4 = vcmp.eq.f32.partialorder %v4428_v41, 8.507059e+37  ;;  %v4430_v6 = vand.u32 2147483648, %v11883_v45  ;;  %8192 = vmatmul.msk.f32.gmra.mxu3 %vm3544_vm15, %v11947_v37  ;;  %v8133_v21 = vmul.f32 -1.442695, %v4726_v44  ;;  %v4852_v32 = vmul.f32 %v11854_v42, %v4851_v52  ;;  %8176 = vmatmul.msk.f32.gmra.mxu2 %vm3544_vm15, %v11947_v37 }
0x108b   :  { %8879 = vtanh.f32 %v5061_v23  ;;  %v4408_v59 = vadd.f32 %v11881_v40, %v4407_v18  ;;  %v4269_v36 = vadd.f32 %v11745_v7, %v4268_v53  ;;  %v4858_v50 = vand.u32 2147483647, %v11827_v14 }
0x108c   :  { %v11936_v12 = vpop.eup %8873  ;;  %8881 = vpow2.f32 %v8085_v15  ;;  %v4431_v39 = vor.u32 1.1754944e-38, %v4430_v6  ;;  %v4853_v8 = vadd.f32 %v11854_v42, %v4852_v32  ;;  %v4861_v20 = vor.u32 1.1754944e-38, %v4860_v19  ;;  %v4271_v56 = vpop.f32.mrf.mxu2 }
0x108d   :  { %v4420_v25 = vmul.f32 %v11936_v12, %v11883_v45  ;;  %v4412_v17 = vsel %vm11929_vm1, %v11881_v40, %v4408_v59  ;;  %v8876_v31 = vpop.eup %8875  ;;  %8883 = vrcp.f32 %v11938_v46  ;;  %vm4425_vm5 = vweird.f32 %v11936_v12 }
0x108e   :  { %v4417_v47 = vsel %vm11912_vm14, %v4416_v33, %v4412_v17  ;;  %v11958_v2 = vadd.f32 1.0, %v8876_v31  ;;  %v11963_v3 = vpop.eup %8877  ;;  %8885 = vtanh.f32 %v4634_v48  ;;  %vm11982_vm8 = vmor %vm4424_vm3, %vm4425_vm5  ;;  %v8086_v0 = vmul.f32 -1.442695, %v4269_v36 }
0x108f   :  { %v4421_v1 = vsub.f32 1.0, %v4420_v25  ;;  %v5062_v23 = vmul.f32 %v8870_v55, %v4417_v47  ;;  %vm4859_vm9 = vcmp.eq.f32.partialorder %v4858_v50, 8.507059e+37  ;;  %v4857_v45 = vsel %vm11970_vm2, %v11854_v42, %v4853_v8  ;;  %v4728_v55 = vpop.f32.mrf.mxu0 }
0x1090   :  { %8887 = vrcp.f32 %v11958_v2  ;;  %vm4439_vm10 = vweird.f32 %v11938_v46  ;;  %v4862_v18 = vsel %vm4859_vm9, %v4861_v20, %v4857_v45  ;;  %v4443_v30 = vand.u32 2147483647, %v11938_v46  ;;  %v4639_v32 = vpop.f32.mrf.mxu3 }
0x1091   :  { %v8880_v43 = vpop.eup %8879  ;;  %v4422_v40 = vmul.f32 %v11936_v12, %v4421_v1  ;;  %8889 = vpow2.f32 %v8133_v21  ;;  %v4445_v34 = vand.u32 2147483648, %v11938_v46  ;;  %v4637_v41 = vadd.f32 %v11772_v24, %v4636_v57 }
0x1092   :  { %v8882_v5 = vpop.eup %8881  ;;  %8891 = vpow2.f32 %v8086_v0  ;;  %v12003_v28 = vmul.f32 %v8880_v43, %v4862_v18  ;;  %v4729_v59 = vadd.f32 %v11750_v29, %v4728_v55  ;;  %v4867_v15 = vmul.f32 %v11887_v61, %v4866_v51  ;;  %v12065_v55 = vpop.f32.mrf.mxu1 }
0x1093   :  { %v4423_v26 = vadd.f32 %v11936_v12, %v4422_v40  ;;  %v8884_v52 = vpop.eup %8883  ;;  %v11989_v27 = vadd.f32 1.0, %v8882_v5  ;;  %v4272_v48 = vadd.f32 %v11745_v7, %v4271_v56  ;;  %vm12029_vm13 = vcmp.eq.f32.partialorder %v4443_v30, 8.507059e+37 }
0x1094   :  { %v4435_v35 = vmul.f32 %v8884_v52, %v11938_v46  ;;  %vm4440_vm11 = vweird.f32 %v8884_v52  ;;  %v8886_v63 = vpop.eup %8885  ;;  %8193 = vmatmul.msk.f32.gmra.mxu3 %vm3544_vm15, %v12003_v28  ;;  %8177 = vmatmul.msk.f32.gmra.mxu2 %vm3544_vm15, %v12003_v28  ;;  %v4446_v17 = vor.u32 1.1754944e-38, %v4445_v34  ;;  %v8134_v47 = vmul.f32 -1.442695, %v4729_v59  ;;  %v4274_v20 = vpop.f32.mrf.mxu2 }
0x1095   :  { %v4427_v14 = vsel %vm11982_vm8, %v11936_v12, %v4423_v26  ;;  %v12015_v12 = vmul.f32 %v11963_v3, %v11897_v4  ;;  %vm12025_vm12 = vmor %vm4439_vm10, %vm4440_vm11  ;;  %v8087_v1 = vmul.f32 -1.442695, %v4272_v48  ;;  %v4868_v21 = vadd.f32 %v11887_v61, %v4867_v15 }
0x1096   :  { %v4436_v11 = vsub.f32 1.0, %v4435_v35  ;;  %v4432_v42 = vsel %vm11951_vm4, %v4431_v39, %v4427_v14  ;;  %v12005_v33 = vpop.eup %8887  ;;  %vm4869_vm14 = vweird.f32 %v11844_v38  ;;  %vm4870_vm0 = vweird.f32 %v11887_v61 }
0x1097   :  { %v8890_v44 = vpop.eup %8889  ;;  %v5063_v25 = vmul.f32 %v8886_v63, %v4432_v42  ;;  %v12035_v60 = vmul.f32 %v12005_v33, %v11958_v2  ;;  %vm12047_vm1 = vmor %vm4869_vm14, %vm4870_vm0  ;;  %v4881_v57 = vsub.f32 1.0, %v12015_v12  ;;  %v4875_v5 = vand.u32 2147483648, %v11844_v38 }
0x1098   :  { %v4006_v9 = vpop.xlane.xlu1 %4005  ;;  %v4437_v16 = vmul.f32 %v8884_v52, %v4436_v11  ;;  %v8892_v31 = vpop.eup %8891  ;;  %v12054_v8 = vadd.f32 1.0, %v8890_v44  ;;  %v4872_v45 = vsel %vm12047_vm1, %v11887_v61, %v4868_v21  ;;  %vm4874_vm3 = vcmp.eq.f32.partialorder %v4873_v58, 8.507059e+37 }
0x1099   :  { %8893 = vrcp.f32 %v4006_v9  ;;  %v12037_v46 = vadd.f32 1.0, %v8892_v31  ;;  %v4896_v9 = vsub.f32 1.0, %v12035_v60  ;;  %v4876_v14 = vor.u32 1.1754944e-38, %v4875_v5  ;;  %v4642_v51 = vpop.f32.mrf.mxu3 }
0x109a   :  { %8895 = vrcp.f32 %v11989_v27  ;;  %v4438_v6 = vadd.f32 %v8884_v52, %v4437_v16  ;;  %v4458_v38 = vand.u32 2147483647, %v11989_v27  ;;  %v4460_v18 = vand.u32 2147483648, %v11989_v27 }
0x109b   :  { %8897 = vtanh.f32 %v5062_v23  ;;  %v4731_v23 = vpop.f32.mrf.mxu0  ;;  %v4275_v30 = vadd.f32 %v11745_v7, %v4274_v20  ;;  %v4877_v61 = vsel %vm4874_vm3, %v4876_v14, %v4872_v45  ;;  %vm4454_vm4 = vweird.f32 %v11989_v27 }
0x109c   :  { %8899 = vtanh.f32 %v4637_v41  ;;  %v4442_v62 = vsel %vm12025_vm12, %v8884_v52, %v4438_v6  ;;  %v4640_v56 = vadd.f32 %v11772_v24, %v4639_v32  ;;  %v4732_v16 = vadd.f32 %v11750_v29, %v4731_v23  ;;  %v12130_v23 = vpop.f32.mrf.mxu1 }
0x109d   :  { %8901 = vpow2.f32 %v8087_v1  ;;  %v4447_v19 = vsel %vm12029_vm13, %v4446_v17, %v4442_v62  ;;  %v8088_v12 = vmul.f32 -1.442695, %v4275_v30  ;;  %vm12086_vm6 = vcmp.eq.f32.partialorder %v4458_v38, 8.507059e+37  ;;  %v4277_v62 = vpop.f32.mrf.mxu2 }
0x109e   :  { %v4882_v10 = vmul.f32 %v11963_v3, %v4881_v57  ;;  %v8135_v6 = vmul.f32 -1.442695, %v4732_v16  ;;  %vm4884_vm2 = vweird.f32 %v11897_v4  ;;  %vm4885_vm8 = vweird.f32 %v11963_v3 }
0x109f   :  { %v8894_v53 = vpop.eup %8893  ;;  %vm12109_vm9 = vmor %vm4884_vm2, %vm4885_vm8  ;;  %vm4469_vm10 = vweird.f32 %v12037_v46  ;;  %vm4899_vm0 = vweird.f32 %v11958_v2  ;;  %vm4900_vm1 = vweird.f32 %v12005_v33  ;;  %vm4914_vm8 = vweird.f32 %v12054_v8 }
0x10a0   :  { %v12042_v43 = vpop.eup %8895  ;;  %v4008_v40 = vpop.xlane.xlu2 %4007  ;;  %v4040_v36 = vmul.f32 %v8894_v53, %v11705_v49  ;;  %v4883_v53 = vadd.f32 %v11963_v3, %v4882_v10  ;;  %vm12181_vm3 = vmor %vm4899_vm0, %vm4900_vm1 }
0x10a1   :  { %8903 = vrcp.f32 %v4008_v40  ;;  %v4450_v39 = vmul.f32 %v12042_v43, %v11989_v27  ;;  %v8898_v49 = vpop.eup %8897  ;;  %v4010_v0 = vpop.xlane.xlu0 %4009  ;;  %vm4455_vm5 = vweird.f32 %v12042_v43  ;;  %v4888_v27 = vand.u32 2147483647, %v11897_v4 }
0x10a2   :  { %4102 = vmatmul.f32.gmra.mxu1 %v4040_v36  ;;  %8905 = vtanh.f32 %v5063_v25  ;;  %v8900_v26 = vpop.eup %8899  ;;  %v12075_v41 = vmul.f32 %v8898_v49, %v4877_v61  ;;  %v4461_v25 = vor.u32 1.1754944e-38, %v4460_v18  ;;  %vm12102_vm7 = vmor %vm4454_vm4, %vm4455_vm5  ;;  %v4890_v36 = vand.u32 2147483648, %v11897_v4 }
0x10a3   :  { %v4451_v52 = vsub.f32 1.0, %v4450_v39  ;;  %8907 = vrcp.f32 %v12037_v46  ;;  %v5064_v35 = vmul.f32 %v8900_v26, %v4447_v19  ;;  %v8902_v63 = vpop.eup %8901  ;;  %v4734_v50 = vpop.f32.mrf.mxu0  ;;  %v4887_v39 = vsel %vm12109_vm9, %v11963_v3, %v4883_v53 }
0x10a4   :  { %8909 = vpow2.f32 %v8134_v47  ;;  %v12073_v34 = vadd.f32 1.0, %v8902_v63  ;;  %8194 = vmatmul.msk.f32.gmra.mxu3 %vm3544_vm15, %v12075_v41  ;;  %8178 = vmatmul.msk.f32.gmra.mxu2 %vm3544_vm15, %v12075_v41  ;;  %vm4889_vm12 = vcmp.eq.f32.partialorder %v4888_v27, 8.507059e+37  ;;  %v4891_v4 = vor.u32 1.1754944e-38, %v4890_v36 }
0x10a5   :  { %8911 = vrcp.f32 %v12054_v8  ;;  %v4452_v11 = vmul.f32 %v12042_v43, %v4451_v52  ;;  %v4473_v3 = vand.u32 2147483647, %v12037_v46  ;;  %v4475_v26 = vand.u32 2147483648, %v12037_v46  ;;  %v4280_v60 = vpop.f32.mrf.mxu2 }
0x10a6   :  { %8913 = vrcp.f32 %v4010_v0  ;;  %v4643_v0 = vadd.f32 %v11772_v24, %v4642_v51  ;;  %v4278_v52 = vadd.f32 %v11745_v7, %v4277_v62  ;;  %v4735_v44 = vadd.f32 %v11750_v29, %v4734_v50  ;;  %v12201_v62 = vpop.f32.mrf.mxu1 }
0x10a7   :  { %v8904_v42 = vpop.eup %8903  ;;  %8915 = vtanh.f32 %v5064_v35  ;;  %v4453_v31 = vadd.f32 %v12042_v43, %v4452_v11  ;;  %v4892_v35 = vsel %vm4889_vm12, %v4891_v4, %v4887_v39  ;;  %vm12155_vm14 = vcmp.eq.f32.partialorder %v4473_v3, 8.507059e+37 }
0x10a8   :  { %v8906_v59 = vpop.eup %8905  ;;  %v4041_v15 = vmul.f32 %v8904_v42, %v11714_v22  ;;  %8917 = vrcp.f32 %v12073_v34  ;;  %v4905_v53 = vand.u32 2147483648, %v11958_v2  ;;  %vm4484_vm5 = vweird.f32 %v12073_v34 }
0x10a9   :  { %v12081_v48 = vpop.eup %8907  ;;  %8919 = vpow2.f32 %v8088_v12  ;;  %v4457_v49 = vsel %vm12102_vm7, %v12042_v43, %v4453_v31  ;;  %v12153_v63 = vmul.f32 %v8906_v59, %v4892_v35  ;;  %v8089_v59 = vmul.f32 -1.442695, %v4278_v52 }
0x10aa   :  { %v8910_v22 = vpop.eup %8909  ;;  %4105 = vmatmul.f32.gmra.mxu1 %v4041_v15  ;;  %v4465_v17 = vmul.f32 %v12081_v48, %v12037_v46  ;;  %8921 = vtanh.f32 %v4640_v56  ;;  %vm4470_vm11 = vweird.f32 %v12081_v48  ;;  %v4476_v46 = vor.u32 1.1754944e-38, %v4475_v26  ;;  %v4645_v15 = vpop.f32.mrf.mxu3 }
0x10ab   :  { %v12096_v1 = vpop.eup %8911  ;;  %8923 = vpow2.f32 %v8135_v6  ;;  %v12115_v58 = vadd.f32 1.0, %v8910_v22  ;;  %vm12144_vm13 = vmor %vm4469_vm10, %vm4470_vm11  ;;  %v8136_v22 = vmul.f32 -1.442695, %v4735_v44  ;;  %v4488_v27 = vand.u32 2147483647, %v12073_v34 }
0x10ac   :  { %v8914_v21 = vpop.eup %8913  ;;  %v4466_v32 = vsub.f32 1.0, %v4465_v17  ;;  %8195 = vmatmul.msk.f32.gmra.mxu3 %vm3544_vm15, %v12153_v63  ;;  %8179 = vmatmul.msk.f32.gmra.mxu2 %vm3544_vm15, %v12153_v63  ;;  %v4910_v12 = vmul.f32 %v12096_v1, %v12054_v8  ;;  %v4490_v4 = vand.u32 2147483648, %v12073_v34  ;;  %v4281_v3 = vadd.f32 %v11745_v7, %v4280_v60 }
0x10ad   :  { %v12122_v19 = vpop.eup %8915  ;;  %v4042_v20 = vmul.f32 %v8914_v21, %v11716_v13  ;;  %8925 = vrcp.f32 %v12115_v58  ;;  %v4462_v13 = vsel %vm12086_vm6, %v4461_v25, %v4457_v49  ;;  %v4897_v25 = vmul.f32 %v12005_v33, %v4896_v9  ;;  %v4737_v9 = vpop.f32.mrf.mxu0 }
0x10ae   :  { %v4467_v57 = vmul.f32 %v12081_v48, %v4466_v32  ;;  %v12128_v5 = vpop.eup %8917  ;;  %8927 = vtanh.f32 %v4643_v0  ;;  %v4911_v50 = vsub.f32 1.0, %v4910_v12  ;;  %vm12225_vm2 = vcmp.eq.f32.partialorder %v4488_v27, 8.507059e+37 }
0x10af   :  { %v8920_v45 = vpop.eup %8919  ;;  %v4480_v43 = vmul.f32 %v12128_v5, %v12073_v34  ;;  %v4898_v17 = vadd.f32 %v12005_v33, %v4897_v25  ;;  %vm4485_vm6 = vweird.f32 %v12128_v5  ;;  %v8090_v35 = vmul.f32 -1.442695, %v4281_v3 }
0x10b0   :  { %v4468_v14 = vadd.f32 %v12081_v48, %v4467_v57  ;;  %v8922_v18 = vpop.eup %8921  ;;  %v12151_v30 = vadd.f32 1.0, %v8920_v45  ;;  %vm12208_vm7 = vmor %vm4484_vm5, %vm4485_vm6  ;;  %v4646_v57 = vadd.f32 %v11772_v24, %v4645_v15  ;;  %vm4915_vm9 = vweird.f32 %v12096_v1  ;;  %v4283_v15 = vpop.f32.mrf.mxu2 }
0x10b1   :  { %v8924_v61 = vpop.eup %8923  ;;  %v4481_v42 = vsub.f32 1.0, %v4480_v43  ;;  %v5065_v16 = vmul.f32 %v8922_v18, %v4462_v13  ;;  %v4902_v40 = vsel %vm12181_vm3, %v12005_v33, %v4898_v17  ;;  %v4912_v13 = vmul.f32 %v12096_v1, %v4911_v50  ;;  %vm12245_vm10 = vmor %vm4914_vm8, %vm4915_vm9 }
0x10b2   :  { %4108 = vmatmul.f32.gmra.mxu1 %v4042_v20  ;;  %8929 = vrcp.f32 %v12151_v30  ;;  %v4472_v56 = vsel %vm12144_vm13, %v12081_v48, %v4468_v14  ;;  %v12173_v10 = vadd.f32 1.0, %v8924_v61  ;;  %v4903_v48 = vand.u32 2147483647, %v11958_v2  ;;  %v4648_v38 = vpop.f32.mrf.mxu3 }
0x10b3   :  { %v4477_v51 = vsel %vm12155_vm14, %v4476_v46, %v4472_v56  ;;  %8931 = vpow2.f32 %v8089_v59  ;;  %v12185_v6 = vpop.eup %8925  ;;  %v4482_v21 = vmul.f32 %v12128_v5, %v4481_v42  ;;  %v4906_v2 = vor.u32 1.1754944e-38, %v4905_v53  ;;  %v12279_v53 = vld [vmem:[#allocation2] ss:$0 sm:$0xff] }
0x10b4   :  { %vm12187_vm4 = vcmp.eq.f32.partialorder %v4903_v48, 8.507059e+37  ;;  %v8928_v32 = vpop.eup %8927  ;;  %8933 = vpow2.f32 %v8136_v22  ;;  %v12217_v26 = vmul.f32 %v12185_v6, %v12115_v58  ;;  %v4738_v14 = vadd.f32 %v11750_v29, %v4737_v9 }
0x10b5   :  { %8935 = vtanh.f32 %v5065_v16  ;;  %v4483_v39 = vadd.f32 %v12128_v5, %v4482_v21  ;;  %v4907_v0 = vsel %vm12187_vm4, %v4906_v2, %v4902_v40  ;;  %v4918_v46 = vand.u32 2147483647, %v12054_v8  ;;  %v4740_v12 = vpop.f32.mrf.mxu0 }
0x10b6   :  { %8937 = vrcp.f32 %v12173_v10  ;;  %v12223_v20 = vmul.f32 %v12122_v19, %v4907_v0  ;;  %v4491_v19 = vor.u32 1.1754944e-38, %v4490_v4  ;;  %v8137_v29 = vmul.f32 -1.442695, %v4738_v14  ;;  %v6065_v4 = vld [vmem:[%s15143_s9 + $0x38] sm:$0xff] }
0x10b7   :  { %8939 = vtanh.f32 %v4646_v57  ;;  %v4487_v43 = vsel %vm12208_vm7, %v12128_v5, %v4483_v39  ;;  %v4913_v42 = vadd.f32 %v12096_v1, %v4912_v13  ;;  %v4920_v56 = vand.u32 2147483648, %v12054_v8  ;;  %v6587_v57 = vld [vmem:[%s15144_s21 + $0x38] sm:$0xff]  ;;  %6126 = vmatpush.msra.mxu0 %v6065_v4 }
0x10b8   :  { %v12199_v36 = vpop.eup %8929  ;;  %8196 = vmatmul.msk.f32.gmra.mxu3 %vm3544_vm15, %v12223_v20  ;;  %8180 = vmatmul.msk.f32.gmra.mxu2 %vm3544_vm15, %v12223_v20  ;;  %vm4919_vm11 = vcmp.eq.f32.partialorder %v4918_v46, 8.507059e+37  ;;  %vm4499_vm12 = vweird.f32 %v12151_v30  ;;  %v4492_v8 = vsel %vm12225_vm2, %v4491_v19, %v4487_v43  ;;  %v4926_v22 = vsub.f32 1.0, %v12217_v26 }
0x10b9   :  { %v4495_v49 = vmul.f32 %v12199_v36, %v12151_v30  ;;  %v8932_v52 = vpop.eup %8931  ;;  %vm4500_vm13 = vweird.f32 %v12199_v36  ;;  %v4917_v25 = vsel %vm12245_vm10, %v12096_v1, %v4913_v42  ;;  %v4921_v48 = vor.u32 1.1754944e-38, %v4920_v56  ;;  %v12276_v1 = vld [vmem:[%s15091_s22] ss:$0 sm:$0xff]  ;;  %6600 = vmatpush.msrb.mxu2 %v6587_v57 }
0x10ba   :  { %8143 = vmatmul.msk.f32.vlgmr.msra.gmra.mxu1 %vm3544_vm15, %v11832_v54  ;;  %v5066_v54 = vmul.f32 %v8928_v32, %v4477_v51  ;;  %v12229_v7 = vadd.f32 1.0, %v8932_v52  ;;  %v8934_v18 = vpop.eup %8933  ;;  %v12264_v51 = vpop.f32.mrf.mxu1  ;;  %v4649_v31 = vadd.f32 %v11772_v24, %v4648_v38  ;;  %vm12270_vm14 = vmor %vm4499_vm12, %vm4500_vm13  ;;  %v4505_v9 = vand.u32 2147483648, %v12151_v30 }
0x10bb   :  { %v4496_v45 = vsub.f32 1.0, %v4495_v49  ;;  %v8936_v61 = vpop.eup %8935  ;;  %v12243_v5 = vadd.f32 1.0, %v8934_v18  ;;  %v4284_v47 = vadd.f32 %v12276_v1, %v4283_v15  ;;  %v4741_v21 = vadd.f32 %v12279_v53, %v4740_v12  ;;  %v4651_v0 = vpop.f32.mrf.mxu3 }
0x10bc   :  { %8941 = vrcp.f32 %v12229_v7  ;;  %v12253_v16 = vpop.eup %8937  ;;  %v4503_v50 = vand.u32 2147483647, %v12151_v30  ;;  %v4927_v30 = vmul.f32 %v12185_v6, %v4926_v22  ;;  %vm4929_vm0 = vweird.f32 %v12115_v58 }
0x10bd   :  { %8943 = vpow2.f32 %v8090_v35  ;;  %v4497_v59 = vmul.f32 %v12199_v36, %v4496_v45  ;;  %v8940_v44 = vpop.eup %8939  ;;  %v12286_v24 = vmul.f32 %v12253_v16, %v12173_v10  ;;  %v8091_v49 = vmul.f32 -1.442695, %v4284_v47 }
0x10be   :  { %8945 = vtanh.f32 %v5066_v54  ;;  %v5067_v40 = vmul.f32 %v8940_v44, %v4492_v8  ;;  %v8138_v33 = vmul.f32 -1.442695, %v4741_v21  ;;  %v4506_v34 = vor.u32 1.1754944e-38, %v4505_v9 }
0x10bf   :  { %8947 = vpow2.f32 %v8137_v29  ;;  %v4498_v17 = vadd.f32 %v12199_v36, %v4497_v59  ;;  %vm4930_vm1 = vweird.f32 %v12185_v6  ;;  %vm12310_vm3 = vcmp.eq.f32.partialorder %v4503_v50, 8.507059e+37  ;;  %v4743_v29 = vpop.f32.mrf.mxu0 }
0x10c0   :  { %8949 = vrcp.f32 %v12243_v5  ;;  %v4928_v35 = vadd.f32 %v12185_v6, %v4927_v30  ;;  %vm12315_vm4 = vmor %vm4929_vm0, %vm4930_vm1  ;;  %v4933_v38 = vand.u32 2147483647, %v12115_v58  ;;  %v4935_v19 = vand.u32 2147483648, %v12115_v58 }
0x10c1   :  { %8951 = vtanh.f32 %v4649_v31  ;;  %v4502_v54 = vsel %vm12270_vm14, %v12199_v36, %v4498_v17  ;;  %v4941_v11 = vsub.f32 1.0, %v12286_v24  ;;  %vm4514_vm6 = vweird.f32 %v12229_v7 }
0x10c2   :  { %8144 = vmatmul.msk.f32.gmra.mxu1 %vm3544_vm15, %v11947_v37  ;;  %v4922_v37 = vsel %vm4919_vm11, %v4921_v48, %v4917_v25  ;;  %v12282_v32 = vpop.eup %8941  ;;  %8953 = vpow2.f32 %v8091_v49  ;;  %v4932_v46 = vsel %vm12315_vm4, %v12185_v6, %v4928_v35  ;;  %vm4934_vm5 = vcmp.eq.f32.partialorder %v4933_v38, 8.507059e+37  ;;  %v12334_v56 = vpop.f32.mrf.mxu1  ;;  %v12342_v6 = vld [vmem:[%s15092_s5] ss:$0 sm:$0xff] }
0x10c3   :  { %v12288_v27 = vmul.f32 %v8936_v61, %v4922_v37  ;;  %v8944_v2 = vpop.eup %8943  ;;  %v4510_v39 = vmul.f32 %v12282_v32, %v12229_v7  ;;  %v4286_v61 = vpop.f32.mrf.mxu2  ;;  %v4507_v42 = vsel %vm12310_vm3, %v4506_v34, %v4502_v54  ;;  %v4936_v58 = vor.u32 1.1754944e-38, %v4935_v19 }
0x10c4   :  { %v8946_v3 = vpop.eup %8945  ;;  %v12295_v26 = vadd.f32 1.0, %v8944_v2  ;;  %vm4515_vm7 = vweird.f32 %v12282_v32  ;;  %v4652_v12 = vadd.f32 %v12342_v6, %v4651_v0  ;;  %v4287_v44 = vadd.f32 %v12276_v1, %v4286_v61  ;;  %v4654_v49 = vpop.f32.mrf.mxu3 }
0x10c5   :  { %8197 = vmatmul.msk.f32.gmra.mxu3 %vm3544_vm15, %v12288_v27  ;;  %8181 = vmatmul.msk.f32.gmra.mxu2 %vm3544_vm15, %v12288_v27  ;;  %v8948_v52 = vpop.eup %8947  ;;  %v4511_v45 = vsub.f32 1.0, %v4510_v39  ;;  %v4937_v25 = vsel %vm4934_vm5, %v4936_v58, %v4932_v46  ;;  %vm12349_vm2 = vmor %vm4514_vm6, %vm4515_vm7  ;;  %v4520_v22 = vand.u32 2147483648, %v12229_v7  ;;  %v4744_v17 = vadd.f32 %v12279_v53, %v4743_v29 }
0x10c6   :  { %v12307_v43 = vpop.eup %8949  ;;  %8955 = vrcp.f32 %v12295_v26  ;;  %v12322_v18 = vadd.f32 1.0, %v8948_v52  ;;  %v12359_v9 = vmul.f32 %v8946_v3, %v4937_v25  ;;  %v4518_v47 = vand.u32 2147483647, %v12229_v7 }
0x10c7   :  { %8957 = vpow2.f32 %v8138_v33  ;;  %v4512_v13 = vmul.f32 %v12282_v32, %v4511_v45  ;;  %v12338_v59 = vmul.f32 %v12307_v43, %v12243_v5  ;;  %v8139_v50 = vmul.f32 -1.442695, %v4744_v17  ;;  %v4746_v34 = vpop.f32.mrf.mxu0 }
0x10c8   :  { %8959 = vtanh.f32 %v5067_v40  ;;  %v8092_v40 = vmul.f32 -1.442695, %v4287_v44  ;;  %v4942_v7 = vmul.f32 %v12253_v16, %v4941_v11  ;;  %v4521_v57 = vor.u32 1.1754944e-38, %v4520_v22 }
0x10c9   :  { %v4513_v15 = vadd.f32 %v12282_v32, %v4512_v13  ;;  %8961 = vrcp.f32 %v12322_v18  ;;  %vm4944_vm8 = vweird.f32 %v12173_v10  ;;  %vm4945_vm9 = vweird.f32 %v12253_v16 }
0x10ca   :  { %8145 = vmatmul.msk.f32.gmra.mxu1 %vm3544_vm15, %v12003_v28  ;;  %v8952_v28 = vpop.eup %8951  ;;  %8963 = vtanh.f32 %v4652_v12  ;;  %v4943_v3 = vadd.f32 %v12253_v16, %v4942_v7  ;;  %vm12384_vm10 = vcmp.eq.f32.partialorder %v4518_v47, 8.507059e+37  ;;  %vm12388_vm11 = vmor %vm4944_vm8, %vm4945_vm9  ;;  %v4950_v0 = vand.u32 2147483648, %v12173_v10  ;;  %v12407_v61 = vpop.f32.mrf.mxu1 }
0x10cb   :  { %v8954_v8 = vpop.eup %8953  ;;  %v5068_v37 = vmul.f32 %v8952_v28, %v4507_v42  ;;  %v4517_v39 = vsel %vm12349_vm2, %v12282_v32, %v4513_v15  ;;  %v4948_v32 = vand.u32 2147483647, %v12173_v10  ;;  %v4289_v45 = vpop.f32.mrf.mxu2  ;;  %vm4529_vm13 = vweird.f32 %v12295_v26 }
0x10cc   :  { %v12355_v31 = vpop.eup %8955  ;;  %v12357_v60 = vadd.f32 1.0, %v8954_v8  ;;  %v4947_v36 = vsel %vm12388_vm11, %v12253_v16, %v4943_v3  ;;  %v4951_v38 = vor.u32 1.1754944e-38, %v4950_v0  ;;  %v4533_v19 = vand.u32 2147483647, %v12295_v26 }
0x10cd   :  { %v8958_v21 = vpop.eup %8957  ;;  %v4525_v24 = vmul.f32 %v12355_v31, %v12295_v26  ;;  %8198 = vmatmul.msk.f32.gmra.mxu3 %vm3544_vm15, %v12359_v9  ;;  %8182 = vmatmul.msk.f32.gmra.mxu2 %vm3544_vm15, %v12359_v9  ;;  %vm12397_vm12 = vcmp.eq.f32.partialorder %v4948_v32, 8.507059e+37  ;;  %vm4530_vm14 = vweird.f32 %v12355_v31  ;;  %v4956_v16 = vsub.f32 1.0, %v12338_v59 }
0x10ce   :  { %8965 = vrcp.f32 %v12357_v60  ;;  %v12365_v2 = vadd.f32 1.0, %v8958_v21  ;;  %v8960_v33 = vpop.eup %8959  ;;  %v4522_v29 = vsel %vm12384_vm10, %v4521_v57, %v4517_v39  ;;  %vm12412_vm0 = vmor %vm4529_vm13, %vm4530_vm14  ;;  %v4290_v46 = vadd.f32 %v12276_v1, %v4289_v45 }
0x10cf   :  { %v4526_v4 = vsub.f32 1.0, %v4525_v24  ;;  %8967 = vpow2.f32 %v8092_v40  ;;  %v12382_v54 = vpop.eup %8961  ;;  %v4747_v28 = vadd.f32 %v12279_v53, %v4746_v34  ;;  %v4952_v15 = vsel %vm12397_vm12, %v4951_v38, %v4947_v36  ;;  %v4657_v40 = vpop.f32.mrf.mxu3 }
0x10d0   :  { %8969 = vrcp.f32 %v12365_v2  ;;  %v8964_v14 = vpop.eup %8963  ;;  %v4535_v59 = vand.u32 2147483648, %v12295_v26  ;;  %v4655_v12 = vadd.f32 %v12342_v6, %v4654_v49  ;;  %v12428_v8 = vmul.f32 %v12382_v54, %v12322_v18  ;;  %v6586_v49 = vld [vmem:[%s15144_s21 + $0x30] sm:$0xff]  ;;  %v4749_v45 = vpop.f32.mrf.mxu0 }
0x10d1   :  { %8971 = vpow2.f32 %v8139_v50  ;;  %v4527_v52 = vmul.f32 %v12355_v31, %v4526_v4  ;;  %v12432_v48 = vmul.f32 %v8960_v33, %v4952_v15  ;;  %v5069_v26 = vmul.f32 %v8964_v14, %v4522_v29  ;;  %v6064_v50 = vld [vmem:[%s15143_s9 + $0x30] sm:$0xff]  ;;  %v6494_v33 = vld [vmem:[%s15159_s29 + $0x38] sm:$0xff]  ;;  %6601 = vmatpush.msrb.mxu2 %v6586_v49 }
0x10d2   :  { %8146 = vmatmul.msk.f32.gmra.mxu1 %vm3544_vm15, %v12075_v41  ;;  %8973 = vtanh.f32 %v5068_v37  ;;  %vm12439_vm1 = vcmp.eq.f32.partialorder %v4533_v19, 8.507059e+37  ;;  %v8093_v24 = vmul.f32 -1.442695, %v4290_v46  ;;  %v4536_v39 = vor.u32 1.1754944e-38, %v4535_v59  ;;  %6127 = vmatpush.msra.mxu0 %v6064_v50  ;;  %v6063_v59 = vld [vmem:[%s15143_s9 + $0x28] sm:$0xff] }
0x10d3   :  { %v4528_v10 = vadd.f32 %v12355_v31, %v4527_v52  ;;  %v4957_v7 = vmul.f32 %v12307_v43, %v4956_v16  ;;  %vm4959_vm3 = vweird.f32 %v12243_v5  ;;  %vm4960_vm4 = vweird.f32 %v12307_v43  ;;  %6507 = vmatpush.msrb.mxu1 %v6494_v33  ;;  %v4292_v41 = vpop.f32.mrf.mxu2  ;;  %v6585_v33 = vld [vmem:[%s15144_s21 + $0x28] sm:$0xff] }
0x10d4   :  { %v12405_v13 = vpop.eup %8965  ;;  %v4963_v4 = vand.u32 2147483647, %v12243_v5  ;;  %vm12463_vm5 = vmor %vm4959_vm3, %vm4960_vm4  ;;  %v4965_v32 = vand.u32 2147483648, %v12243_v5  ;;  %vm4544_vm7 = vweird.f32 %v12357_v60  ;;  %v4548_v19 = vand.u32 2147483647, %v12357_v60  ;;  %6128 = vmatpush.msra.mxu0 %v6063_v59  ;;  %6602 = vmatpush.msrb.mxu2 %v6585_v33 }
0x10d5   :  { %v8968_v42 = vpop.eup %8967  ;;  %v4540_v58 = vmul.f32 %v12405_v13, %v12357_v60  ;;  %v4532_v47 = vsel %vm12412_vm0, %v12355_v31, %v4528_v10  ;;  %8199 = vmatmul.msk.f32.gmra.mxu3 %vm3544_vm15, %v12432_v48  ;;  %8183 = vmatmul.msk.f32.gmra.mxu2 %vm3544_vm15, %v12432_v48  ;;  %v4958_v57 = vadd.f32 %v12307_v43, %v4957_v7  ;;  %vm4545_vm2 = vweird.f32 %v12405_v13  ;;  %v12487_v10 = vpop.f32.mrf.mxu1 }
0x10d6   :  { %v12424_v44 = vpop.eup %8969  ;;  %v12430_v25 = vadd.f32 1.0, %v8968_v42  ;;  %vm12469_vm6 = vcmp.eq.f32.partialorder %v4963_v4, 8.507059e+37  ;;  %v4537_v34 = vsel %vm12439_vm1, %v4536_v39, %v4532_v47  ;;  %v4966_v36 = vor.u32 1.1754944e-38, %v4965_v32  ;;  %vm12481_vm8 = vmor %vm4544_vm7, %vm4545_vm2  ;;  %v6493_v4 = vld [vmem:[%s15159_s29 + $0x30] sm:$0xff] }
0x10d7   :  { %v8972_v22 = vpop.eup %8971  ;;  %v4541_v17 = vsub.f32 1.0, %v4540_v58  ;;  %v12453_v31 = vmul.f32 %v12424_v44, %v12365_v2  ;;  %v4962_v5 = vsel %vm12463_vm5, %v12307_v43, %v4958_v57  ;;  %v4550_v16 = vand.u32 2147483648, %v12357_v60  ;;  %6508 = vmatpush.msrb.mxu1 %v6493_v4 }
0x10d8   :  { %8975 = vrcp.f32 %v12430_v25  ;;  %v12444_v37 = vadd.f32 1.0, %v8972_v22  ;;  %v8974_v0 = vpop.eup %8973  ;;  %v4658_v29 = vadd.f32 %v12342_v6, %v4657_v40  ;;  %v4293_v43 = vadd.f32 %v12276_v1, %v4292_v41  ;;  %v4752_v41 = vpop.f32.mrf.mxu0 }
0x10d9   :  { %8977 = vtanh.f32 %v4655_v12  ;;  %v4542_v30 = vmul.f32 %v12405_v13, %v4541_v17  ;;  %v4971_v46 = vsub.f32 1.0, %v12428_v8  ;;  %v4967_v42 = vsel %vm12469_vm6, %v4966_v36, %v4962_v5 }
0x10da   :  { %8147 = vmatmul.msk.f32.gmra.mxu1 %vm3544_vm15, %v12153_v63  ;;  %v8140_v63 = vmul.f32 -1.442695, %v4747_v28  ;;  %8979 = vrcp.f32 %v12444_v37  ;;  %v4986_v60 = vsub.f32 1.0, %v12453_v31  ;;  %v12503_v15 = vmul.f32 %v8974_v0, %v4967_v42 }
0x10db   :  { %8981 = vpow2.f32 %v8093_v24  ;;  %v4543_v35 = vadd.f32 %v12405_v13, %v4542_v30  ;;  %v4551_v22 = vor.u32 1.1754944e-38, %v4550_v16  ;;  %vm4549_vm9 = vcmp.eq.f32.partialorder %v4548_v19, 8.507059e+37  ;;  %v4660_v24 = vpop.f32.mrf.mxu3 }
0x10dc   :  { %8983 = vpow2.f32 %v8140_v63  ;;  %v4972_v40 = vmul.f32 %v12382_v54, %v4971_v46  ;;  %vm4974_vm10 = vweird.f32 %v12322_v18  ;;  %vm4975_vm11 = vweird.f32 %v12382_v54 }
0x10dd   :  { %8985 = vtanh.f32 %v5069_v26  ;;  %v4547_v1 = vsel %vm12481_vm8, %v12405_v13, %v4543_v35  ;;  %8200 = vmatmul.msk.f32.gmra.mxu3 %vm3544_vm15, %v12503_v15  ;;  %v4750_v26 = vadd.f32 %v12279_v53, %v4749_v45  ;;  %8184 = vmatmul.msk.f32.gmra.mxu2 %vm3544_vm15, %v12503_v15  ;;  %vm12528_vm12 = vmor %vm4974_vm10, %vm4975_vm11  ;;  %v4978_v49 = vand.u32 2147483647, %v12322_v18  ;;  %v12535_v3 = vpop.f32.mrf.mxu1 }
0x10de   :  { %v12485_v38 = vpop.eup %8975  ;;  %8987 = vtanh.f32 %v4658_v29  ;;  %v4552_v31 = vsel %vm4549_vm9, %v4551_v22, %v4547_v1  ;;  %v4973_v39 = vadd.f32 %v12382_v54, %v4972_v40  ;;  %v4980_v32 = vand.u32 2147483648, %v12322_v18 }
0x10df   :  { %v8978_v11 = vpop.eup %8977  ;;  %v4555_v28 = vmul.f32 %v12485_v38, %v12430_v25  ;;  %v8141_v50 = vmul.f32 -1.442695, %v4750_v26  ;;  %vm4559_vm13 = vweird.f32 %v12430_v25  ;;  %vm4979_vm14 = vcmp.eq.f32.partialorder %v4978_v49, 8.507059e+37 }
0x10e0   :  { %v12500_v58 = vpop.eup %8979  ;;  %v5070_v8 = vmul.f32 %v8978_v11, %v4537_v34  ;;  %v4977_v52 = vsel %vm12528_vm12, %v12382_v54, %v4973_v39  ;;  %vm4560_vm0 = vweird.f32 %v12485_v38  ;;  %v4981_v45 = vor.u32 1.1754944e-38, %v4980_v32 }
0x10e1   :  { %v8982_v12 = vpop.eup %8981  ;;  %v4556_v47 = vsub.f32 1.0, %v4555_v28  ;;  %v12518_v13 = vmul.f32 %v12500_v58, %v12444_v37  ;;  %vm12547_vm1 = vmor %vm4559_vm13, %vm4560_vm0  ;;  %v4563_v36 = vand.u32 2147483647, %v12430_v25  ;;  %v4661_v14 = vadd.f32 %v12342_v6, %v4660_v24 }
0x10e2   :  { %8148 = vmatmul.msk.f32.gmra.mxu1 %vm3544_vm15, %v12223_v20  ;;  %v8094_v20 = vmul.f32 -1.442695, %v4293_v43  ;;  %v8984_v17 = vpop.eup %8983  ;;  %v12509_v21 = vadd.f32 1.0, %v8982_v12  ;;  %v4753_v54 = vadd.f32 %v12279_v53, %v4752_v41  ;;  %v4987_v19 = vmul.f32 %v12424_v44, %v4986_v60 }
0x10e3   :  { %v12520_v63 = vadd.f32 1.0, %v8984_v17  ;;  %v8986_v57 = vpop.eup %8985  ;;  %v4557_v30 = vmul.f32 %v12485_v38, %v4556_v47  ;;  %v4982_v43 = vsel %vm4979_vm14, %v4981_v45, %v4977_v52  ;;  %vm4564_vm3 = vcmp.eq.f32.partialorder %v4563_v36, 8.507059e+37  ;;  %v4663_v12 = vpop.f32.mrf.mxu3  ;;  %v6062_v47 = vld [vmem:[%s15143_s9 + $0x20] sm:$0xff] }
0x10e4   :  { %8989 = vpow2.f32 %v8094_v20  ;;  %v8988_v0 = vpop.eup %8987  ;;  %v12567_v28 = vmul.f32 %v8986_v57, %v4982_v43  ;;  %v5001_v60 = vsub.f32 1.0, %v12518_v13  ;;  %v8142_v1 = vmul.f32 -1.442695, %v4753_v54  ;;  %6129 = vmatpush.msra.mxu0 %v6062_v47 }
0x10e5   :  { %8991 = vrcp.f32 %v12509_v21  ;;  %v5071_v18 = vmul.f32 %v8988_v0, %v4552_v31  ;;  %v4558_v34 = vadd.f32 %v12485_v38, %v4557_v30  ;;  %v4988_v59 = vadd.f32 %v12424_v44, %v4987_v19  ;;  %v6492_v31 = vld [vmem:[%s15159_s29 + $0x28] sm:$0xff]  ;;  %v12597_v7 = vpop.f32.mrf.mxu1 }
0x10e6   :  { %8993 = vrcp.f32 %v12520_v63  ;;  %8201 = vmatmul.msk.f32.gmra.mxu3 %vm3544_vm15, %v12567_v28  ;;  %8185 = vmatmul.msk.f32.gmra.mxu2 %vm3544_vm15, %v12567_v28  ;;  %vm4989_vm4 = vweird.f32 %v12365_v2  ;;  %vm4990_vm5 = vweird.f32 %v12424_v44  ;;  %v4993_v24 = vand.u32 2147483647, %v12365_v2 }
0x10e7   :  { %8995 = vpow2.f32 %v8141_v50  ;;  %v4562_v11 = vsel %vm12547_vm1, %v12485_v38, %v4558_v34  ;;  %vm12588_vm6 = vmor %vm4989_vm4, %vm4990_vm5  ;;  %v4995_v13 = vand.u32 2147483648, %v12365_v2  ;;  %v6584_v50 = vld [vmem:[%s15144_s21 + $0x20] sm:$0xff]  ;;  %vm4574_vm7 = vweird.f32 %v12509_v21  ;;  %6509 = vmatpush.msrb.mxu1 %v6492_v31 }
0x10e8   :  { %8997 = vtanh.f32 %v5070_v8  ;;  %v4578_v49 = vand.u32 2147483647, %v12509_v21  ;;  %6603 = vmatpush.msrb.mxu2 %v6584_v50  ;;  %vm4994_vm8 = vcmp.eq.f32.partialorder %v4993_v24, 8.507059e+37  ;;  %v4580_v57 = vand.u32 2147483648, %v12509_v21 }
0x10e9   :  { %8999 = vtanh.f32 %v5071_v18  ;;  %v4996_v2 = vor.u32 1.1754944e-38, %v4995_v13  ;;  %v4664_v30 = vadd.f32 %v12342_v6, %v4663_v12  ;;  %v5002_v41 = vmul.f32 %v12500_v58, %v5001_v60 }
0x10ea   :  { %8149 = vmatmul.msk.f32.gmra.mxu1 %vm3544_vm15, %v12288_v27  ;;  %v8990_v35 = vpop.eup %8989  ;;  %v4565_v27 = vand.u32 2147483648, %v12430_v25  ;;  %vm12613_vm10 = vcmp.eq.f32.partialorder %v4578_v49, 8.507059e+37  ;;  %vm5004_vm11 = vweird.f32 %v12444_v37  ;;  %v4581_v45 = vor.u32 1.1754944e-38, %v4580_v57 }
0x10eb   :  { %v12556_v16 = vpop.eup %8991  ;;  %v12558_v29 = vadd.f32 1.0, %v8990_v35  ;;  %v5003_v35 = vadd.f32 %v12500_v58, %v5002_v41  ;;  %vm5005_vm12 = vweird.f32 %v12500_v58 }
0x10ec   :  { %v12563_v46 = vpop.eup %8993  ;;  %v4570_v25 = vmul.f32 %v12556_v16, %v12509_v21  ;;  %v4566_v53 = vor.u32 1.1754944e-38, %v4565_v27  ;;  %vm4575_vm2 = vweird.f32 %v12556_v16  ;;  %vm12640_vm13 = vmor %vm5004_vm11, %vm5005_vm12 }
0x10ed   :  { %v8996_v42 = vpop.eup %8995  ;;  %9001 = vrcp.f32 %v12558_v29  ;;  %v12574_v22 = vmul.f32 %v12563_v46, %v12520_v63  ;;  %vm12606_vm9 = vmor %vm4574_vm7, %vm4575_vm2  ;;  %v5007_v60 = vsel %vm12640_vm13, %v12500_v58, %v5003_v35  ;;  %vm4589_vm0 = vweird.f32 %v12558_v29 }
0x10ee   :  { %v8998_v38 = vpop.eup %8997  ;;  %v4571_v8 = vsub.f32 1.0, %v4570_v25  ;;  %v12576_v20 = vadd.f32 1.0, %v8996_v42  ;;  %9003 = vtanh.f32 %v4661_v14  ;;  %v4567_v17 = vsel %vm4564_vm3, %v4566_v53, %v4562_v11  ;;  %v4666_v53 = vpop.f32.mrf.mxu3 }
0x10ef   :  { %9005 = vpow2.f32 %v8142_v1  ;;  %v9000_v39 = vpop.eup %8999  ;;  %v5016_v19 = vsub.f32 1.0, %v12574_v22  ;;  %v5008_v11 = vand.u32 2147483647, %v12444_v37  ;;  %v5010_v25 = vand.u32 2147483648, %v12444_v37 }
0x10f0   :  { %9007 = vrcp.f32 %v12576_v20  ;;  %v4572_v40 = vmul.f32 %v12556_v16, %v4571_v8  ;;  %vm5019_vm3 = vweird.f32 %v12520_v63  ;;  %vm5020_vm4 = vweird.f32 %v12563_v46 }
0x10f1   :  { %9009 = vtanh.f32 %v4664_v30  ;;  %vm5009_vm14 = vcmp.eq.f32.partialorder %v5008_v11, 8.507059e+37  ;;  %v5011_v37 = vor.u32 1.1754944e-38, %v5010_v25  ;;  %v5017_v58 = vmul.f32 %v12563_v46, %v5016_v19  ;;  %vm12670_vm5 = vmor %vm5019_vm3, %vm5020_vm4 }
0x10f2   :  { %8150 = vmatmul.msk.f32.gmra.mxu1 %vm3544_vm15, %v12359_v9  ;;  %v4992_v9 = vsel %vm12588_vm6, %v12424_v44, %v4988_v59  ;;  %v4573_v33 = vadd.f32 %v12556_v16, %v4572_v40  ;;  %v12657_v59 = vpop.f32.mrf.mxu1  ;;  %v4593_v26 = vand.u32 2147483647, %v12558_v29  ;;  %v5023_v40 = vand.u32 2147483647, %v12520_v63  ;;  %v6061_v44 = vld [vmem:[%s15143_s9 + $0x18] sm:$0xff] }
0x10f3   :  { %v12611_v32 = vpop.eup %9001  ;;  %v4997_v18 = vsel %vm4994_vm8, %v4996_v2, %v4992_v9  ;;  %v5012_v22 = vsel %vm5009_vm14, %v5011_v37, %v5007_v60  ;;  %v5018_v13 = vadd.f32 %v12563_v46, %v5017_v58  ;;  %vm5034_vm2 = vweird.f32 %v12576_v20  ;;  %6130 = vmatpush.msra.mxu0 %v6061_v44  ;;  %v6582_v58 = vld [vmem:[%s15144_s21 + $0x10] sm:$0xff] }
0x10f4   :  { %v9004_v0 = vpop.eup %9003  ;;  %v4585_v52 = vmul.f32 %v12611_v32, %v12558_v29  ;;  %v4577_v21 = vsel %vm12606_vm9, %v12556_v16, %v4573_v33  ;;  %v12625_v36 = vmul.f32 %v8998_v38, %v4997_v18  ;;  %vm4590_vm1 = vweird.f32 %v12611_v32  ;;  %v6583_v18 = vld [vmem:[%s15144_s21 + $0x18] sm:$0xff] }
0x10f5   :  { %v9006_v34 = vpop.eup %9005  ;;  %v5072_v5 = vmul.f32 %v9004_v0, %v4567_v17  ;;  %v4582_v42 = vsel %vm12613_vm10, %v4581_v45, %v4577_v21  ;;  %v4667_v38 = vadd.f32 %v12342_v6, %v4666_v53  ;;  %v12666_v17 = vmul.f32 %v9000_v39, %v5012_v22  ;;  %vm12674_vm6 = vmor %vm4589_vm0, %vm4590_vm1  ;;  %6604 = vmatpush.msrb.mxu2 %v6583_v18 }
0x10f6   :  { %v12628_v27 = vpop.eup %9007  ;;  %v4586_v14 = vsub.f32 1.0, %v4585_v52  ;;  %v12630_v54 = vadd.f32 1.0, %v9006_v34  ;;  %8202 = vmatmul.msk.f32.gmra.mxu3 %vm3544_vm15, %v12625_v36  ;;  %8186 = vmatmul.msk.f32.gmra.mxu2 %vm3544_vm15, %v12625_v36  ;;  %v5022_v33 = vsel %vm12670_vm5, %v12563_v46, %v5018_v13  ;;  %vm12691_vm7 = vcmp.eq.f32.partialorder %v5023_v40, 8.507059e+37 }
0x10f7   :  { %v5030_v16 = vmul.f32 %v12628_v27, %v12576_v20  ;;  %v9010_v8 = vpop.eup %9009  ;;  %vm12703_vm8 = vcmp.eq.f32.partialorder %v4593_v26, 8.507059e+37  ;;  %vm5035_vm9 = vweird.f32 %v12628_v27  ;;  %v5038_v52 = vand.u32 2147483647, %v12576_v20  ;;  %6605 = vmatpush.msrb.mxu2 %v6582_v58 }
0x10f8   :  { %9011 = vrcp.f32 %v12630_v54  ;;  %v4587_v1 = vmul.f32 %v12611_v32, %v4586_v14  ;;  %v5073_v31 = vmul.f32 %v9010_v8, %v4582_v42  ;;  %vm12720_vm10 = vmor %vm5034_vm2, %vm5035_vm9  ;;  %vm5049_vm12 = vweird.f32 %v12630_v54 }
0x10f9   :  { %9013 = vtanh.f32 %v5072_v5  ;;  %v5031_v12 = vsub.f32 1.0, %v5030_v16  ;;  %vm5039_vm11 = vcmp.eq.f32.partialorder %v5038_v52, 8.507059e+37  ;;  %v5055_v25 = vand.u32 2147483648, %v12630_v54 }
0x10fa   :  { %8151 = vmatmul.msk.f32.gmra.mxu1 %vm3544_vm15, %v12432_v48  ;;  %v4595_v48 = vand.u32 2147483648, %v12558_v29  ;;  %v4588_v47 = vadd.f32 %v12611_v32, %v4587_v1  ;;  %9015 = vtanh.f32 %v4667_v38  ;;  %v5025_v29 = vand.u32 2147483648, %v12520_v63  ;;  %v12709_v30 = vpop.f32.mrf.mxu1  ;;  %v5658_v42 = vpop.f32.mrf.mxu3  ;;  %v12747_v38 = vld [vmem:[#allocation7] ss:$0 sm:$0xff] }
0x10fb   :  { %v5032_v9 = vmul.f32 %v12628_v27, %v5031_v12  ;;  %9017 = vtanh.f32 %v5073_v31  ;;  %v5053_v53 = vand.u32 2147483647, %v12630_v54  ;;  %v5056_v37 = vor.u32 1.1754944e-38, %v5055_v25  ;;  %v5565_v6 = vpop.f32.mrf.mxu2 }
0x10fc   :  { %v4596_v39 = vor.u32 1.1754944e-38, %v4595_v48  ;;  %v4592_v63 = vsel %vm12674_vm6, %v12611_v32, %v4588_v47  ;;  %v5026_v57 = vor.u32 1.1754944e-38, %v5025_v29  ;;  %v6491_v32 = vld [vmem:[%s15159_s29 + $0x20] sm:$0xff]  ;;  %v6060_v48 = vld [vmem:[%s15143_s9 + $0x10] sm:$0xff]  ;;  %v6490_v47 = vld [vmem:[%s15159_s29 + $0x18] sm:$0xff]  ;;  %v5659_v24 = vadd.f32 %v12747_v38, %v5658_v42 }
0x10fd   :  { %v5033_v0 = vadd.f32 %v12628_v27, %v5032_v9  ;;  %6510 = vmatpush.msrb.mxu1 %v6491_v32  ;;  %vm5054_vm0 = vcmp.eq.f32.partialorder %v5053_v53, 8.507059e+37  ;;  %6131 = vmatpush.msra.mxu0 %v6060_v48  ;;  %v12783_v32 = vld [vmem:[#allocation4] ss:$0 sm:$0xff] }
0x10fe   :  { %v12680_v50 = vpop.eup %9011  ;;  %8203 = vmatmul.msk.f32.gmra.mxu3 %vm3544_vm15, %v12666_v17  ;;  %8187 = vmatmul.msk.f32.gmra.mxu2 %vm3544_vm15, %v12666_v17  ;;  %v5027_v21 = vsel %vm12691_vm7, %v5026_v57, %v5022_v33  ;;  %v4597_v5 = vsel %vm12703_vm8, %v4596_v39, %v4592_v63  ;;  %v8207_v13 = vmul.f32 -1.442695, %v5659_v24 }
0x10ff   :  { %v9014_v49 = vpop.eup %9013  ;;  %v5045_v2 = vmul.f32 %v12680_v50, %v12630_v54  ;;  %v5037_v19 = vsel %vm12720_vm10, %v12628_v27, %v5033_v0  ;;  %vm5050_vm13 = vweird.f32 %v12680_v50  ;;  %6511 = vmatpush.msrb.mxu1 %v6490_v47 }
0x1100   :  { %v9016_v34 = vpop.eup %9015  ;;  %v5104_v35 = vmul.f32 %v9014_v49, %v5027_v21  ;;  %vm5051_vm14 = vmor %vm5049_vm12, %vm5050_vm13 }
0x1101   :  { %v5046_v41 = vsub.f32 1.0, %v5045_v2  ;;  %v9018_v43 = vpop.eup %9017 }
0x1102   :  { %8152 = vmatmul.msk.f32.gmra.mxu1 %vm3544_vm15, %v12503_v15  ;;  %v5040_v15 = vand.u32 2147483648, %v12576_v20  ;;  %v5074_v20 = vmul.f32 %v9016_v34, %v4597_v5  ;;  %v12739_v60 = vpop.f32.mrf.mxu1 }
0x1103   :  { %v5047_v16 = vmul.f32 %v12680_v50, %v5046_v41 }
0x1104   :  { %v5041_v14 = vor.u32 1.1754944e-38, %v5040_v15  ;;  %9019 = vtanh.f32 %v5074_v20  ;;  %v12792_v20 = vld [vmem:[#allocation6] ss:$0 sm:$0xff] }
0x1105   :  { %v5048_v27 = vadd.f32 %v12680_v50, %v5047_v16  ;;  %9021 = vpow2.f32 %v8207_v13 }
0x1106   :  { %8204 = vmatmul.msk.f32.gmra.mxu3 %vm3544_vm15, %v5104_v35  ;;  %8188 = vmatmul.msk.f32.gmra.mxu2 %vm3544_vm15, %v5104_v35  ;;  %v5042_v11 = vsel %vm5039_vm11, %v5041_v14, %v5037_v19 }
0x1107   :  { %v5105_v1 = vmul.f32 %v9018_v43, %v5042_v11  ;;  %v5052_v12 = vsel %vm5051_vm14, %v12680_v50, %v5048_v27 }
0x1108   :  { %v5057_v54 = vsel %vm5054_vm0, %v5056_v37, %v5052_v12  ;;  %v6581_v37 = vld [vmem:[%s15144_s21 + $0x8] sm:$0xff]  ;;  %v6489_v12 = vld [vmem:[%s15159_s29 + $0x10] sm:$0xff] }
0x1109   :  { %6606 = vmatpush.msrb.mxu2 %v6581_v37  ;;  %6512 = vmatpush.msrb.mxu1 %v6489_v12 }
0x110a   :  { %8153 = vmatmul.msk.f32.gmra.mxu1 %vm3544_vm15, %v12567_v28  ;;  %v9020_v28 = vpop.eup %9019  ;;  %v12751_v26 = vpop.f32.mrf.mxu1 }
0x110b   :  { %v5106_v8 = vmul.f32 %v9020_v28, %v5057_v54  ;;  %v9022_v49 = vpop.eup %9021  ;;  %v5566_v54 = vadd.f32 %v12792_v20, %v5565_v6 }
0x110d   :  { %v5661_v22 = vpop.f32.mrf.mxu3  ;;  %v5568_v9 = vpop.f32.mrf.mxu2 }
0x110e   :  { %8205 = vmatmul.msk.f32.gmra.mxu3 %vm3544_vm15, %v5105_v1  ;;  %8189 = vmatmul.msk.f32.gmra.mxu2 %vm3544_vm15, %v5105_v1 }
0x1112   :  { %8154 = vmatmul.msk.f32.gmra.mxu1 %vm3544_vm15, %v12625_v36  ;;  %v5662_v36 = vadd.f32 %v12747_v38, %v5661_v22 }
0x1114   :  { %v8208_v40 = vmul.f32 -1.442695, %v5662_v36 }
0x1116   :  { %8206 = vmatmul.msk.f32.gmra.mxu3 %vm3544_vm15, %v5106_v8  ;;  %8190 = vmatmul.msk.f32.gmra.mxu2 %vm3544_vm15, %v5106_v8  ;;  %9023 = vpow2.f32 %v8208_v40  ;;  %v5569_v40 = vadd.f32 %v12792_v20, %v5568_v9 }
0x1117   :  { %v5664_v31 = vpop.f32.mrf.mxu3  ;;  %v5571_v44 = vpop.f32.mrf.mxu2 }
0x1118   :  { %v5665_v39 = vadd.f32 %v12747_v38, %v5664_v31  ;;  %v5572_v31 = vadd.f32 %v12792_v20, %v5571_v44 }
0x111a   :  { %8155 = vmatmul.msk.f32.gmra.mxu1 %vm3544_vm15, %v12666_v17  ;;  %v8209_v29 = vmul.f32 -1.442695, %v5665_v39  ;;  %v12765_v17 = vadd.f32 1.0, %v9022_v49 }
0x111c   :  { %9025 = vpow2.f32 %v8209_v29  ;;  %v9024_v2 = vpop.eup %9023  ;;  %vm5775_vm1 = vweird.f32 %v12765_v17  ;;  %v5779_v24 = vand.u32 2147483647, %v12765_v17  ;;  %v5781_v36 = vand.u32 2147483648, %v12765_v17 }
0x111d   :  { %v12768_v63 = vadd.f32 1.0, %v9024_v2  ;;  %9027 = vrcp.f32 %v12765_v17 }
0x111e   :  { %vm12842_vm8 = vcmp.eq.f32.partialorder %v5779_v24, 8.507059e+37 }
0x111f   :  { %v12759_v50 = vpop.f32.mrf.mxu1  ;;  %9029 = vrcp.f32 %v12768_v63  ;;  %vm5790_vm4 = vweird.f32 %v12768_v63 }
0x1122   :  { %8156 = vmatmul.msk.f32.gmra.mxu1 %vm3544_vm15, %v5104_v35  ;;  %v9026_v4 = vpop.eup %9025 }
0x1123   :  { %v12771_v46 = vadd.f32 1.0, %v9026_v4  ;;  %v12778_v15 = vpop.eup %9027  ;;  %v5796_v4 = vand.u32 2147483648, %v12768_v63 }
0x1124   :  { %v5771_v45 = vmul.f32 %v12778_v15, %v12765_v17  ;;  %vm5776_vm3 = vweird.f32 %v12778_v15 }
0x1125   :  { %9031 = vrcp.f32 %v12771_v46  ;;  %v12781_v18 = vpop.eup %9029  ;;  %vm5805_vm6 = vweird.f32 %v12771_v46  ;;  %vm12832_vm2 = vmor %vm5775_vm1, %vm5776_vm3 }
0x1126   :  { %v5786_v14 = vmul.f32 %v12781_v18, %v12768_v63  ;;  %v5772_v11 = vsub.f32 1.0, %v5771_v45  ;;  %vm5791_vm5 = vweird.f32 %v12781_v18 }
0x1127   :  { %v12763_v33 = vpop.f32.mrf.mxu1  ;;  %v5667_v57 = vpop.f32.mrf.mxu3  ;;  %vm12852_vm9 = vmor %vm5790_vm4, %vm5791_vm5 }
0x1128   :  { %v5668_v41 = vadd.f32 %v12747_v38, %v5667_v57  ;;  %v5574_v21 = vpop.f32.mrf.mxu2  ;;  %v5787_v28 = vsub.f32 1.0, %v5786_v14  ;;  %v5794_v14 = vand.u32 2147483647, %v12768_v63 }
0x112a   :  { %8157 = vmatmul.msk.f32.gmra.mxu1 %vm3544_vm15, %v5105_v1  ;;  %v8210_v52 = vmul.f32 -1.442695, %v5668_v41  ;;  %v6059_v1 = vld [vmem:[%s15143_s9 + $0x8] sm:$0xff]  ;;  %v5788_v47 = vmul.f32 %v12781_v18, %v5787_v28  ;;  %vm12879_vm11 = vcmp.eq.f32.partialorder %v5794_v14, 8.507059e+37 }
0x112b   :  { %v12787_v34 = vpop.eup %9031  ;;  %6132 = vmatpush.msra.mxu0 %v6059_v1 }
0x112c   :  { %9033 = vpow2.f32 %v8210_v52  ;;  %v5801_v53 = vmul.f32 %v12787_v34, %v12771_v46  ;;  %v5789_v45 = vadd.f32 %v12781_v18, %v5788_v47  ;;  %vm5806_vm7 = vweird.f32 %v12787_v34 }
0x112d   :  { %vm12866_vm10 = vmor %vm5805_vm6, %vm5806_vm7 }
0x112e   :  { %v5802_v22 = vsub.f32 1.0, %v5801_v53  ;;  %v5782_v53 = vor.u32 1.1754944e-38, %v5781_v36  ;;  %v6058_v36 = vld [vmem:[%s15143_s9] sm:$0xff] }
0x112f   :  { %v12775_v0 = vpop.f32.mrf.mxu1  ;;  %v5670_v5 = vpop.f32.mrf.mxu3  ;;  %6133 = vmatpush.msra.mxu0 %v6058_v36 }
0x1130   :  { %v5671_v16 = vadd.f32 %v12747_v38, %v5670_v5  ;;  %v5577_v48 = vpop.f32.mrf.mxu2  ;;  %v5803_v57 = vmul.f32 %v12787_v34, %v5802_v22 }
0x1132   :  { %8158 = vmatmul.msk.f32.gmra.mxu1 %vm3544_vm15, %v5106_v8  ;;  %v9034_v35 = vpop.eup %9033  ;;  %v8211_v27 = vmul.f32 -1.442695, %v5671_v16  ;;  %v5773_v8 = vmul.f32 %v12778_v15, %v5772_v11  ;;  %v5804_v11 = vadd.f32 %v12787_v34, %v5803_v57 }
0x1133   :  { %v12795_v25 = vadd.f32 1.0, %v9034_v35  ;;  %v5575_v35 = vadd.f32 %v12792_v20, %v5574_v21 }
0x1134   :  { %v12811_v13 = vadd.f32 %v12778_v15, %v5773_v8  ;;  %v6488_v8 = vld [vmem:[%s15159_s29 + $0x8] sm:$0xff] }
0x1135   :  { %6513 = vmatpush.msrb.mxu1 %v6488_v8  ;;  %vm5820_vm13 = vweird.f32 %v12795_v25 }
0x1136   :  { %v5778_v12 = vsel %vm12832_vm2, %v12778_v15, %v12811_v13  ;;  %v5578_v15 = vadd.f32 %v12792_v20, %v5577_v48  ;;  %v6580_v13 = vld [vmem:[%s15144_s21] sm:$0xff] }
0x1137   :  { %v5184_v19 = vpop.f32.mrf.mxu1  ;;  %6607 = vmatpush.msrb.mxu2 %v6580_v13  ;;  %v12904_v57 = vsel %vm12842_vm8, %v5782_v53, %v5778_v12 }
0x1138   :  { %v5185_v43 = vadd.f32 %v12783_v32, %v5184_v19  ;;  %v5811_v19 = vand.u32 2147483648, %v12771_v46 }
0x113a   :  { %v8159_v42 = vmul.f32 -1.442695, %v5185_v43 }
0x113b   :  { %v5673_v39 = vpop.f32.mrf.mxu3  ;;  %v12846_v17 = vpop.f32.mrf.mxu2 }
0x113c   :  { %9035 = vpow2.f32 %v8159_v42  ;;  %v5674_v2 = vadd.f32 %v12747_v38, %v5673_v39 }
0x113d   :  { %9037 = vrcp.f32 %v12795_v25 }
0x113e   :  { %9039 = vpow2.f32 %v8211_v27  ;;  %v8212_v44 = vmul.f32 -1.442695, %v5674_v2  ;;  %v5809_v27 = vand.u32 2147483647, %v12771_v46  ;;  %v5793_v46 = vsel %vm12852_vm9, %v12781_v18, %v5789_v45 }
0x113f   :  { %v5187_v58 = vpop.f32.mrf.mxu1  ;;  %9041 = vtanh.f32 %v5566_v54  ;;  %v5797_v54 = vor.u32 1.1754944e-38, %v5796_v4 }
0x1140   :  { %v5188_v6 = vadd.f32 %v12783_v32, %v5187_v58  ;;  %v5812_v58 = vor.u32 1.1754944e-38, %v5811_v19  ;;  %vm12889_vm12 = vcmp.eq.f32.partialorder %v5809_v27, 8.507059e+37 }
0x1141   :  { %v12908_v45 = vsel %vm12879_vm11, %v5797_v54, %v5793_v46 }
0x1142   :  { %v9036_v29 = vpop.eup %9035  ;;  %v8160_v49 = vmul.f32 -1.442695, %v5188_v6 }
0x1143   :  { %v12819_v41 = vpop.eup %9037  ;;  %v12821_v52 = vadd.f32 1.0, %v9036_v29 }
0x1144   :  { %v9040_v9 = vpop.eup %9039  ;;  %9043 = vpow2.f32 %v8160_v49  ;;  %v5816_v42 = vmul.f32 %v12819_v41, %v12795_v25  ;;  %v6487_v49 = vld [vmem:[%s15159_s29] sm:$0xff]  ;;  %vm5821_vm0 = vweird.f32 %v12819_v41 }
0x1145   :  { %9045 = vrcp.f32 %v12821_v52  ;;  %v12840_v16 = vpop.eup %9041  ;;  %v12860_v1 = vadd.f32 1.0, %v9040_v9  ;;  %6514 = vmatpush.msrb.mxu1 %v6487_v49  ;;  %v5826_v9 = vand.u32 2147483648, %v12795_v25  ;;  %v5307_v43 = vand.u32 2147483648, %v12821_v52  ;;  %vm12948_vm5 = vmor %vm5820_vm13, %vm5821_vm0 }
0x1146   :  { %9047 = vtanh.f32 %v5569_v40  ;;  %v5808_v40 = vsel %vm12866_vm10, %v12787_v34, %v5804_v11  ;;  %v5817_v39 = vsub.f32 1.0, %v5816_v42  ;;  %v5305_v42 = vand.u32 2147483647, %v12821_v52 }
0x1147   :  { %v5190_v37 = vpop.f32.mrf.mxu1  ;;  %9049 = vpow2.f32 %v8212_v44  ;;  %v12917_v19 = vsel %vm12889_vm12, %v5812_v58, %v5808_v40  ;;  %v5827_v54 = vor.u32 1.1754944e-38, %v5826_v9  ;;  %vm5301_vm1 = vweird.f32 %v12821_v52 }
0x1148   :  { %9051 = vtanh.f32 %v5572_v31  ;;  %v5191_v28 = vadd.f32 %v12783_v32, %v5190_v37  ;;  %v5676_v6 = vpop.f32.mrf.mxu3  ;;  %v5818_v27 = vmul.f32 %v12819_v41, %v5817_v39  ;;  %v12926_v63 = vpop.f32.mrf.mxu2  ;;  %vm5306_vm4 = vcmp.eq.f32.partialorder %v5305_v42, 8.507059e+37 }
0x1149   :  { %9053 = vtanh.f32 %v5575_v35  ;;  %v5677_v48 = vadd.f32 %v12747_v38, %v5676_v6  ;;  %vm5835_vm9 = vweird.f32 %v12860_v1 }
0x114a   :  { %v9044_v47 = vpop.eup %9043  ;;  %v8161_v24 = vmul.f32 -1.442695, %v5191_v28  ;;  %9055 = vrcp.f32 %v12860_v1  ;;  %v5824_v28 = vand.u32 2147483647, %v12795_v25  ;;  %v5819_v36 = vadd.f32 %v12819_v41, %v5818_v27 }
0x114b   :  { %v9046_v31 = vpop.eup %9045  ;;  %v12893_v29 = vadd.f32 1.0, %v9044_v47  ;;  %v8213_v14 = vmul.f32 -1.442695, %v5677_v48  ;;  %v5308_v47 = vor.u32 1.1754944e-38, %v5307_v43  ;;  %v5839_v43 = vand.u32 2147483647, %v12860_v1 }
0x114c   :  { %v12898_v2 = vpop.eup %9047  ;;  %v5297_v4 = vmul.f32 %v9046_v31, %v12821_v52  ;;  %9057 = vpow2.f32 %v8161_v24  ;;  %vm5302_vm14 = vweird.f32 %v9046_v31  ;;  %vm12957_vm6 = vcmp.eq.f32.partialorder %v5824_v28, 8.507059e+37 }
0x114d   :  { %v9050_v34 = vpop.eup %9049  ;;  %9059 = vrcp.f32 %v12893_v29  ;;  %vm5303_vm3 = vmor %vm5301_vm1, %vm5302_vm14  ;;  %v5322_v9 = vand.u32 2147483648, %v12893_v29  ;;  %vm5316_vm2 = vweird.f32 %v12893_v29  ;;  %vm13019_vm14 = vcmp.eq.f32.partialorder %v5839_v43, 8.507059e+37 }
0x114e   :  { %v12911_v44 = vpop.eup %9051  ;;  %v5298_v5 = vsub.f32 1.0, %v5297_v4  ;;  %v12913_v35 = vadd.f32 1.0, %v9050_v34  ;;  %9061 = vtanh.f32 %v5578_v15  ;;  %v5581_v15 = vadd.f32 %v12792_v20, %v12846_v17 }
0x114f   :  { %v12919_v21 = vpop.eup %9053  ;;  %v5193_v11 = vpop.f32.mrf.mxu1  ;;  %9063 = vpow2.f32 %v8213_v14  ;;  %v5841_v4 = vand.u32 2147483648, %v12860_v1  ;;  %v5823_v14 = vsel %vm12948_vm5, %v12819_v41, %v5819_v36 }
0x1150   :  { %v5299_v53 = vmul.f32 %v9046_v31, %v5298_v5  ;;  %v5194_v37 = vadd.f32 %v12783_v32, %v5193_v11  ;;  %v12928_v12 = vpop.eup %9055  ;;  %9065 = vrcp.f32 %v12913_v35  ;;  %v5679_v13 = vpop.f32.mrf.mxu3 }
0x1151   :  { %v5680_v25 = vadd.f32 %v12747_v38, %v5679_v13  ;;  %v5323_v13 = vor.u32 1.1754944e-38, %v5322_v9  ;;  %vm5836_vm13 = vweird.f32 %v12928_v12 }
0x1152   :  { %v9058_v8 = vpop.eup %9057  ;;  %v5300_v46 = vadd.f32 %v9046_v31, %v5299_v53  ;;  %v8162_v22 = vmul.f32 -1.442695, %v5194_v37  ;;  %v5320_v53 = vand.u32 2147483647, %v12893_v29 }
0x1153   :  { %v12934_v58 = vpop.eup %9059  ;;  %v12937_v24 = vadd.f32 1.0, %v9058_v8  ;;  %v8214_v28 = vmul.f32 -1.442695, %v5680_v25 }
0x1154   :  { %v5304_v6 = vsel %vm5303_vm3, %v9046_v31, %v5300_v46  ;;  %v5312_v52 = vmul.f32 %v12934_v58, %v12893_v29  ;;  %9067 = vpow2.f32 %v8162_v22  ;;  %v12952_v18 = vpop.eup %9061  ;;  %v5831_v31 = vmul.f32 %v12928_v12, %v12860_v1  ;;  %v5586_v46 = vpop.f32.mrf.mxu2 }
0x1155   :  { %v5309_v17 = vsel %vm5306_vm4, %v5308_v47, %v5304_v6  ;;  %9069 = vrcp.f32 %v12937_v24  ;;  %v9064_v34 = vpop.eup %9063  ;;  %vm5317_vm7 = vweird.f32 %v12934_v58  ;;  %v12981_v22 = vsel %vm12957_vm6, %v5827_v54, %v5823_v14  ;;  %vm13040_vm4 = vmor %vm5835_vm9, %vm5836_vm13 }
0x1156   :  { %v6010_v48 = vmul.f32 %v12840_v16, %v5309_v17  ;;  %v5313_v49 = vsub.f32 1.0, %v5312_v52  ;;  %9071 = vtanh.f32 %v5581_v15  ;;  %v12969_v11 = vpop.eup %9065  ;;  %v12973_v27 = vadd.f32 1.0, %v9064_v34  ;;  %vm12985_vm8 = vmor %vm5316_vm2, %vm5317_vm7 }
0x1157   :  { %v5196_v5 = vpop.f32.mrf.mxu1  ;;  %v5832_v42 = vsub.f32 1.0, %v5831_v31  ;;  %v12983_v47 = vor.u32 1.1754944e-38, %v5841_v4  ;;  %v5846_v6 = vmul.f32 %v12969_v11, %v12913_v35  ;;  %vm5321_vm10 = vcmp.eq.f32.partialorder %v5320_v53, 8.507059e+37 }
0x1158   :  { %9073 = vtanh.f32 %v6010_v48  ;;  %v5314_v16 = vmul.f32 %v12934_v58, %v5313_v49  ;;  %v5197_v37 = vadd.f32 %v12783_v32, %v5196_v5  ;;  %v5584_v31 = vadd.f32 %v12792_v20, %v12926_v63  ;;  %v5682_v4 = vpop.f32.mrf.mxu3 }
0x1159   :  { %9075 = vrcp.f32 %v12973_v27  ;;  %v5833_v39 = vmul.f32 %v12928_v12, %v5832_v42  ;;  %v5335_v25 = vand.u32 2147483647, %v12937_v24  ;;  %v5337_v9 = vand.u32 2147483648, %v12937_v24 }
0x115a   :  { %v9068_v8 = vpop.eup %9067  ;;  %v5315_v41 = vadd.f32 %v12934_v58, %v5314_v16  ;;  %v8163_v29 = vmul.f32 -1.442695, %v5197_v37  ;;  %9077 = vpow2.f32 %v8214_v28  ;;  %v5683_v16 = vadd.f32 %v12747_v38, %v5682_v4 }
0x115b   :  { %v9070_v15 = vpop.eup %9069  ;;  %v12991_v52 = vadd.f32 1.0, %v9068_v8  ;;  %vm5331_vm12 = vweird.f32 %v12937_v24  ;;  %vm5336_vm1 = vcmp.eq.f32.partialorder %v5335_v25, 8.507059e+37  ;;  %vm5850_vm3 = vweird.f32 %v12913_v35 }
0x115c   :  { %v5327_v54 = vmul.f32 %v9070_v15, %v12937_v24  ;;  %v5319_v40 = vsel %vm12985_vm8, %v12934_v58, %v5315_v41  ;;  %v12999_v17 = vpop.eup %9071  ;;  %v5847_v58 = vsub.f32 1.0, %v5846_v6  ;;  %vm5332_vm11 = vweird.f32 %v9070_v15 }
0x115d   :  { %9079 = vrcp.f32 %v12991_v52  ;;  %v5324_v34 = vsel %vm5321_vm10, %v5323_v13, %v5319_v40  ;;  %v8215_v36 = vmul.f32 -1.442695, %v5683_v16  ;;  %vm5333_vm0 = vmor %vm5331_vm12, %vm5332_vm11  ;;  %v5338_v6 = vor.u32 1.1754944e-38, %v5337_v9  ;;  %v5589_v40 = vpop.f32.mrf.mxu2 }
0x115e   :  { %v9074_v48 = vpop.eup %9073  ;;  %v5328_v49 = vsub.f32 1.0, %v5327_v54  ;;  %9081 = vpow2.f32 %v8163_v29  ;;  %v6011_v42 = vmul.f32 %v12898_v2, %v5324_v34  ;;  %v5587_v29 = vadd.f32 %v12792_v20, %v5586_v46 }
0x115f   :  { %v5199_v5 = vpop.f32.mrf.mxu1  ;;  %v6042_v14 = vmul.f32 %v9074_v48, %v12904_v57  ;;  %v13011_v37 = vpop.eup %9075  ;;  %9083 = vtanh.f32 %v5584_v31  ;;  %v5856_v57 = vand.u32 2147483648, %v12913_v35  ;;  %v5834_v48 = vadd.f32 %v12928_v12, %v5833_v39 }
0x1160   :  { %v5329_v53 = vmul.f32 %v9070_v15, %v5328_v49  ;;  %v5200_v63 = vadd.f32 %v12783_v32, %v5199_v5  ;;  %v9078_v28 = vpop.eup %9077  ;;  %9085 = vtanh.f32 %v6011_v42  ;;  %v5848_v43 = vmul.f32 %v12969_v11, %v5847_v58 }
0x1161   :  { %8223 = vmatmul.msk.f32.vlgmr.msra.gmra.mxu0 %vm3544_vm15, %v6042_v14  ;;  %8255 = vmatmul.msk.f32.vlgmr.msrb.gmra.mxu1 %vm3544_vm15, %v6042_v14  ;;  %v5861_v49 = vmul.f32 %v13011_v37, %v12973_v27  ;;  %v13033_v46 = vadd.f32 1.0, %v9078_v28  ;;  %v5350_v58 = vand.u32 2147483647, %v12991_v52  ;;  %v5352_v5 = vand.u32 2147483648, %v12991_v52 }
0x1162   :  { %v5330_v8 = vadd.f32 %v9070_v15, %v5329_v53  ;;  %v8164_v41 = vmul.f32 -1.442695, %v5200_v63  ;;  %8271 = vmatmul.msk.f32.vlgmr.msrb.gmra.mxu2 %vm3544_vm15, %v6042_v14  ;;  %vm5851_vm5 = vweird.f32 %v12969_v11  ;;  %vm5346_vm7 = vweird.f32 %v12991_v52  ;;  %v5685_v63 = vpop.f32.mrf.mxu3 }
0x1163   :  { %v9080_v24 = vpop.eup %9079  ;;  %v5838_v42 = vsel %vm13040_vm4, %v12928_v12, %v5834_v48  ;;  %v13057_v28 = vadd.f32 %v12969_v11, %v5848_v43  ;;  %vm13064_vm2 = vmor %vm5850_vm3, %vm5851_vm5  ;;  %v5353_v12 = vor.u32 1.1754944e-38, %v5352_v5  ;;  %vm5351_vm9 = vcmp.eq.f32.partialorder %v5350_v58, 8.507059e+37 }
0x1164   :  { %v9082_v13 = vpop.eup %9081  ;;  %v5342_v54 = vmul.f32 %v9080_v24, %v12991_v52  ;;  %v5334_v31 = vsel %vm5333_vm0, %v9070_v15, %v5330_v8  ;;  %9087 = vpow2.f32 %v8164_v41  ;;  %vm5347_vm6 = vweird.f32 %v9080_v24 }
0x1165   :  { %v13031_v4 = vadd.f32 1.0, %v9082_v13  ;;  %v5339_v25 = vsel %vm5336_vm1, %v5338_v6, %v5334_v31  ;;  %9089 = vpow2.f32 %v8215_v36  ;;  %v13044_v39 = vpop.eup %9083  ;;  %v5862_v41 = vsub.f32 1.0, %v5861_v49  ;;  %vm13068_vm8 = vmor %vm5346_vm7, %vm5347_vm6 }
0x1166   :  { %v5343_v34 = vsub.f32 1.0, %v5342_v54  ;;  %v6012_v9 = vmul.f32 %v12911_v44, %v5339_v25  ;;  %v9086_v44 = vpop.eup %9085  ;;  %v5854_v13 = vand.u32 2147483647, %v12913_v35  ;;  %v5857_v54 = vor.u32 1.1754944e-38, %v5856_v57 }
0x1167   :  { %9091 = vrcp.f32 %v13031_v4  ;;  %v5202_v14 = vpop.f32.mrf.mxu1  ;;  %v6043_v53 = vmul.f32 %v9086_v44, %v12908_v45  ;;  %v5590_v43 = vadd.f32 %v12792_v20, %v5589_v40  ;;  %v13087_v35 = vsel %vm13019_vm14, %v12983_v47, %v5838_v42  ;;  %v5592_v40 = vpop.f32.mrf.mxu2 }
0x1168   :  { %v5344_v16 = vmul.f32 %v9080_v24, %v5343_v34  ;;  %v5203_v1 = vadd.f32 %v12783_v32, %v5202_v14  ;;  %9093 = vtanh.f32 %v6012_v9  ;;  %v5863_v15 = vmul.f32 %v13011_v37, %v5862_v41 }
0x1169   :  { %9095 = vrcp.f32 %v13033_v46  ;;  %8224 = vmatmul.msk.f32.gmra.mxu0 %vm3544_vm15, %v6043_v53  ;;  %8256 = vmatmul.msk.f32.gmra.mxu1 %vm3544_vm15, %v6043_v53  ;;  %vm13100_vm10 = vcmp.eq.f32.partialorder %v5854_v13, 8.507059e+37  ;;  %vm5865_vm11 = vweird.f32 %v12973_v27  ;;  %vm5866_vm12 = vweird.f32 %v13011_v37 }
0x116a   :  { %v5345_v8 = vadd.f32 %v9080_v24, %v5344_v16  ;;  %v8165_v36 = vmul.f32 -1.442695, %v5203_v1  ;;  %v9088_v45 = vpop.eup %9087  ;;  %9097 = vtanh.f32 %v5587_v29  ;;  %8272 = vmatmul.msk.f32.gmra.mxu2 %vm3544_vm15, %v6043_v53  ;;  %v5686_v29 = vadd.f32 %v12747_v38, %v5685_v63  ;;  %vm13136_vm14 = vmor %vm5865_vm11, %vm5866_vm12 }
0x116b   :  { %v9090_v31 = vpop.eup %9089  ;;  %v13075_v48 = vadd.f32 1.0, %v9088_v45  ;;  %v5365_v53 = vand.u32 2147483647, %v13031_v4  ;;  %v5869_v52 = vand.u32 2147483647, %v12973_v27  ;;  %vm5361_vm0 = vweird.f32 %v13031_v4 }
0x116c   :  { %v5349_v49 = vsel %vm13068_vm8, %v9080_v24, %v5345_v8  ;;  %9099 = vpow2.f32 %v8165_v36  ;;  %v5853_v24 = vsel %vm13064_vm2, %v12969_v11, %v13057_v28  ;;  %v13097_v58 = vadd.f32 1.0, %v9090_v31  ;;  %v5688_v36 = vpop.f32.mrf.mxu3 }
0x116d   :  { %v13081_v25 = vpop.eup %9091  ;;  %v5354_v34 = vsel %vm5351_vm9, %v5353_v12, %v5349_v49  ;;  %9101 = vrcp.f32 %v13075_v48  ;;  %v8216_v63 = vmul.f32 -1.442695, %v5686_v29  ;;  %v13116_v8 = vadd.f32 %v13011_v37, %v5863_v15 }
0x116e   :  { %v9094_v57 = vpop.eup %9093  ;;  %v5357_v9 = vmul.f32 %v13081_v25, %v13031_v4  ;;  %9103 = vtanh.f32 %v5590_v43  ;;  %v6013_v11 = vmul.f32 %v12919_v21, %v5354_v34  ;;  %vm5362_vm13 = vweird.f32 %v13081_v25 }
0x116f   :  { %v5205_v5 = vpop.f32.mrf.mxu1  ;;  %v6044_v47 = vmul.f32 %v9094_v57, %v12917_v19  ;;  %v13105_v14 = vpop.eup %9095  ;;  %v5367_v19 = vand.u32 2147483648, %v13031_v4  ;;  %v5689_v13 = vadd.f32 %v12747_v38, %v5688_v36  ;;  %v13145_v49 = vsel %vm13100_vm10, %v5857_v54, %v5853_v24  ;;  %vm13157_vm3 = vmor %vm5361_vm0, %vm5362_vm13 }
0x1170   :  { %v5358_v44 = vsub.f32 1.0, %v5357_v9  ;;  %v5206_v16 = vadd.f32 %v12783_v32, %v5205_v5  ;;  %v13109_v1 = vpop.eup %9097  ;;  %9105 = vtanh.f32 %v6013_v11  ;;  %v5876_v21 = vmul.f32 %v13105_v14, %v13033_v46 }
0x1171   :  { %9107 = vrcp.f32 %v13097_v58  ;;  %8225 = vmatmul.msk.f32.gmra.mxu0 %vm3544_vm15, %v6044_v47  ;;  %8257 = vmatmul.msk.f32.gmra.mxu1 %vm3544_vm15, %v6044_v47  ;;  %vm13149_vm1 = vcmp.eq.f32.partialorder %v5365_v53, 8.507059e+37  ;;  %v5368_v57 = vor.u32 1.1754944e-38, %v5367_v19  ;;  %v5593_v9 = vadd.f32 %v12792_v20, %v5592_v40 }
0x1172   :  { %v5359_v42 = vmul.f32 %v13081_v25, %v5358_v44  ;;  %v8166_v28 = vmul.f32 -1.442695, %v5206_v16  ;;  %v9100_v41 = vpop.eup %9099  ;;  %8273 = vmatmul.msk.f32.gmra.mxu2 %vm3544_vm15, %v6044_v47  ;;  %v8217_v54 = vmul.f32 -1.442695, %v5689_v13  ;;  %v5868_v5 = vsel %vm13136_vm14, %v13011_v37, %v13116_v8  ;;  %v5595_v16 = vpop.f32.mrf.mxu2 }
0x1173   :  { %v13125_v45 = vpop.eup %9101  ;;  %v13128_v12 = vadd.f32 1.0, %v9100_v41  ;;  %v5871_v47 = vand.u32 2147483648, %v12973_v27  ;;  %v5877_v44 = vsub.f32 1.0, %v5876_v21  ;;  %vm13170_vm4 = vcmp.eq.f32.partialorder %v5869_v52, 8.507059e+37 }
0x1174   :  { %v5360_v6 = vadd.f32 %v13081_v25, %v5359_v42  ;;  %9109 = vpow2.f32 %v8166_v28  ;;  %v5372_v43 = vmul.f32 %v13125_v45, %v13075_v48  ;;  %v13147_v29 = vpop.eup %9103  ;;  %v5380_v37 = vand.u32 2147483647, %v13075_v48 }
0x1175   :  { %9111 = vpow2.f32 %v8216_v63  ;;  %v5382_v8 = vand.u32 2147483648, %v13075_v48  ;;  %vm5377_vm5 = vweird.f32 %v13125_v45  ;;  %vm5376_vm6 = vweird.f32 %v13075_v48 }
0x1176   :  { %9113 = vrcp.f32 %v13128_v12  ;;  %v5373_v15 = vsub.f32 1.0, %v5372_v43  ;;  %v9106_v2 = vpop.eup %9105  ;;  %v5364_v11 = vsel %vm13157_vm3, %v13081_v25, %v5360_v6  ;;  %v5872_v6 = vor.u32 1.1754944e-38, %v5871_v47  ;;  %vm13207_vm2 = vmor %vm5376_vm6, %vm5377_vm5 }
0x1177   :  { %v5208_v24 = vpop.f32.mrf.mxu1  ;;  %v13174_v19 = vpop.eup %9107  ;;  %v6045_v27 = vmul.f32 %v9106_v2, %v12981_v22  ;;  %v5369_v42 = vsel %vm13149_vm1, %v5368_v57, %v5364_v11  ;;  %9115 = vtanh.f32 %v5593_v9  ;;  %v5878_v13 = vmul.f32 %v13105_v14, %v5877_v44 }
0x1178   :  { %v5209_v40 = vadd.f32 %v12783_v32, %v5208_v24  ;;  %v5374_v63 = vmul.f32 %v13125_v45, %v5373_v15  ;;  %v6014_v25 = vmul.f32 %v12952_v18, %v5369_v42  ;;  %9117 = vpow2.f32 %v8217_v54 }
0x1179   :  { %8226 = vmatmul.msk.f32.gmra.mxu0 %vm3544_vm15, %v6045_v27  ;;  %8258 = vmatmul.msk.f32.gmra.mxu1 %vm3544_vm15, %v6045_v27  ;;  %v5691_v18 = vpop.f32.mrf.mxu3  ;;  %vm13194_vm7 = vcmp.eq.f32.partialorder %v5380_v37, 8.507059e+37  ;;  %v13200_v43 = vmul.f32 %v13174_v19, %v13097_v58  ;;  %v5383_v57 = vor.u32 1.1754944e-38, %v5382_v8  ;;  %v5596_v4 = vadd.f32 %v12792_v20, %v5595_v16 }
0x117a   :  { %v9110_v28 = vpop.eup %9109  ;;  %v8167_v41 = vmul.f32 -1.442695, %v5209_v40  ;;  %v5375_v36 = vadd.f32 %v13125_v45, %v5374_v63  ;;  %8274 = vmatmul.msk.f32.gmra.mxu2 %vm3544_vm15, %v6045_v27  ;;  %v5692_v9 = vadd.f32 %v12747_v38, %v5691_v18  ;;  %vm5880_vm8 = vweird.f32 %v13033_v46  ;;  %v5598_v53 = vpop.f32.mrf.mxu2 }
0x117b   :  { %v9112_v21 = vpop.eup %9111  ;;  %v13185_v52 = vadd.f32 1.0, %v9110_v28  ;;  %v13223_v40 = vsel %vm13170_vm4, %v5872_v6, %v5868_v5  ;;  %v13226_v16 = vadd.f32 %v13105_v14, %v5878_v13  ;;  %vm5881_vm9 = vweird.f32 %v13105_v14  ;;  %v7016_v28 = vld [vmem:[%s15230_s8 + $0x38] sm:$0xff] }
0x117c   :  { %v13189_v22 = vpop.eup %9113  ;;  %9119 = vpow2.f32 %v8167_v41  ;;  %v13213_v54 = vadd.f32 1.0, %v9112_v21  ;;  %v5379_v47 = vsel %vm13207_vm2, %v13125_v45, %v5375_v36  ;;  %v8218_v44 = vmul.f32 -1.442695, %v5692_v9  ;;  %7077 = vmatpush.msrb.mxu3 %v7016_v28  ;;  %vm13252_vm12 = vmor %vm5880_vm8, %vm5881_vm9 }
0x117d   :  { %v5387_v34 = vmul.f32 %v13189_v22, %v13128_v12  ;;  %9121 = vrcp.f32 %v13185_v52  ;;  %v13219_v2 = vpop.eup %9115  ;;  %v5892_v63 = vsub.f32 1.0, %v13200_v43  ;;  %v5395_v37 = vand.u32 2147483647, %v13128_v12 }
0x117e   :  { %9123 = vtanh.f32 %v6014_v25  ;;  %v9118_v11 = vpop.eup %9117  ;;  %vm5391_vm10 = vweird.f32 %v13128_v12  ;;  %v5397_v5 = vand.u32 2147483648, %v13128_v12  ;;  %v5384_v8 = vsel %vm13194_vm7, %v5383_v57, %v5379_v47 }
0x117f   :  { %v5388_v15 = vsub.f32 1.0, %v5387_v34  ;;  %v5211_v24 = vpop.f32.mrf.mxu1  ;;  %9125 = vtanh.f32 %v5596_v4  ;;  %vm5392_vm11 = vweird.f32 %v13189_v22  ;;  %v6015_v31 = vmul.f32 %v12999_v17, %v5384_v8 }
0x1180   :  { %v5212_v27 = vadd.f32 %v12783_v32, %v5211_v24  ;;  %9127 = vrcp.f32 %v13213_v54  ;;  %vm13256_vm13 = vcmp.eq.f32.partialorder %v5395_v37, 8.507059e+37  ;;  %v13260_v48 = vadd.f32 1.0, %v9118_v11  ;;  %vm13270_vm14 = vmor %vm5391_vm10, %vm5392_vm11 }
0x1181   :  { %v5389_v45 = vmul.f32 %v13189_v22, %v5388_v15  ;;  %9129 = vpow2.f32 %v8218_v44  ;;  %v5694_v13 = vpop.f32.mrf.mxu3  ;;  %v5599_v57 = vadd.f32 %v12792_v20, %v5598_v53  ;;  %v5398_v24 = vor.u32 1.1754944e-38, %v5397_v5 }
0x1182   :  { %v9120_v42 = vpop.eup %9119  ;;  %v8168_v21 = vmul.f32 -1.442695, %v5212_v27  ;;  %v5695_v4 = vadd.f32 %v12747_v38, %v5694_v13  ;;  %v5883_v44 = vsel %vm13252_vm12, %v13105_v14, %v13226_v16  ;;  %v5886_v53 = vand.u32 2147483648, %v13033_v46 }
0x1183   :  { %v13238_v41 = vpop.eup %9121  ;;  %v13242_v25 = vadd.f32 1.0, %v9120_v42  ;;  %v5390_v18 = vadd.f32 %v13189_v22, %v5389_v45  ;;  %v5893_v28 = vmul.f32 %v13174_v19, %v5892_v63  ;;  %vm5406_vm1 = vweird.f32 %v13185_v52 }
0x1184   :  { %v9124_v36 = vpop.eup %9123  ;;  %v5402_v6 = vmul.f32 %v13238_v41, %v13185_v52  ;;  %v8219_v12 = vmul.f32 -1.442695, %v5695_v4  ;;  %vm5407_vm0 = vweird.f32 %v13238_v41  ;;  %vm5895_vm3 = vweird.f32 %v13097_v58 }
0x1185   :  { %9131 = vrcp.f32 %v13242_v25  ;;  %v6046_v17 = vmul.f32 %v9124_v36, %v13087_v35  ;;  %v5884_v35 = vand.u32 2147483647, %v13033_v46  ;;  %v13279_v11 = vpop.eup %9125  ;;  %v5394_v27 = vsel %vm13270_vm14, %v13189_v22, %v5390_v18  ;;  %vm13309_vm4 = vmor %vm5406_vm1, %vm5407_vm0 }
0x1186   :  { %v5403_v9 = vsub.f32 1.0, %v5402_v6  ;;  %9133 = vpow2.f32 %v8168_v21  ;;  %v13288_v42 = vpop.eup %9127  ;;  %v5399_v5 = vsel %vm13256_vm13, %v5398_v24, %v5394_v27  ;;  %v5410_v18 = vand.u32 2147483647, %v13185_v52 }
0x1187   :  { %v5214_v47 = vpop.f32.mrf.mxu1  ;;  %9135 = vtanh.f32 %v6015_v31  ;;  %8227 = vmatmul.msk.f32.gmra.mxu0 %vm3544_vm15, %v6046_v17  ;;  %8259 = vmatmul.msk.f32.gmra.mxu1 %vm3544_vm15, %v6046_v17  ;;  %v9130_v8 = vpop.eup %9129  ;;  %v5412_v6 = vand.u32 2147483648, %v13185_v52  ;;  %v6016_v13 = vmul.f32 %v13044_v39, %v5399_v5  ;;  %vm5896_vm5 = vweird.f32 %v13174_v19 }
0x1188   :  { %v5404_v45 = vmul.f32 %v13238_v41, %v5403_v9  ;;  %v5215_v37 = vadd.f32 %v12783_v32, %v5214_v47  ;;  %8275 = vmatmul.msk.f32.gmra.mxu2 %vm3544_vm15, %v6046_v17  ;;  %9137 = vtanh.f32 %v5599_v57  ;;  %v5601_v57 = vpop.f32.mrf.mxu2  ;;  %v13317_v15 = vadd.f32 1.0, %v9130_v8  ;;  %vm13384_vm10 = vmor %vm5895_vm3, %vm5896_vm5 }
0x1189   :  { %9139 = vrcp.f32 %v13260_v48  ;;  %v5697_v34 = vpop.f32.mrf.mxu3  ;;  %vm13329_vm6 = vcmp.eq.f32.partialorder %v5410_v18, 8.507059e+37  ;;  %vm5421_vm7 = vweird.f32 %v13242_v25  ;;  %v5425_v18 = vand.u32 2147483647, %v13242_v25 }
0x118a   :  { %v5405_v21 = vadd.f32 %v13238_v41, %v5404_v45  ;;  %v8169_v22 = vmul.f32 -1.442695, %v5215_v37  ;;  %9141 = vpow2.f32 %v8219_v12  ;;  %v5698_v39 = vadd.f32 %v12747_v38, %v5697_v34 }
0x118b   :  { %v13298_v36 = vpop.eup %9131  ;;  %v13327_v12 = vmul.f32 %v13288_v42, %v13213_v54  ;;  %v5413_v37 = vor.u32 1.1754944e-38, %v5412_v6  ;;  %vm13363_vm9 = vcmp.eq.f32.partialorder %v5884_v35, 8.507059e+37  ;;  %v5899_v35 = vand.u32 2147483647, %v13097_v58 }
0x118c   :  { %v9134_v31 = vpop.eup %9133  ;;  %v5417_v63 = vmul.f32 %v13298_v36, %v13242_v25  ;;  %9143 = vpow2.f32 %v8169_v22  ;;  %v5409_v47 = vsel %vm13309_vm4, %v13238_v41, %v5405_v21  ;;  %v8220_v41 = vmul.f32 -1.442695, %v5698_v39 }
0x118d   :  { %v9136_v9 = vpop.eup %9135  ;;  %v13313_v4 = vadd.f32 1.0, %v9134_v31  ;;  %9145 = vtanh.f32 %v6016_v13  ;;  %v5887_v21 = vor.u32 1.1754944e-38, %v5886_v53  ;;  %vm5422_vm2 = vweird.f32 %v13298_v36 }
0x118e   :  { %v5418_v52 = vsub.f32 1.0, %v5417_v63  ;;  %v6047_v24 = vmul.f32 %v9136_v9, %v13145_v49  ;;  %v13323_v45 = vpop.eup %9137  ;;  %v5414_v6 = vsel %vm13329_vm6, %v5413_v37, %v5409_v47  ;;  %v5427_v63 = vand.u32 2147483648, %v13242_v25  ;;  %vm13355_vm8 = vmor %vm5421_vm7, %vm5422_vm2 }
0x118f   :  { %9147 = vrcp.f32 %v13313_v4  ;;  %v5217_v27 = vpop.f32.mrf.mxu1  ;;  %v13334_v5 = vpop.eup %9139  ;;  %v5602_v9 = vadd.f32 %v12792_v20, %v5601_v57  ;;  %v6017_v17 = vmul.f32 %v13109_v1, %v5414_v6  ;;  %v13368_v20 = vadd.f32 %v13174_v19, %v5893_v28 }
0x1190   :  { %v5419_v49 = vmul.f32 %v13298_v36, %v5418_v52  ;;  %8228 = vmatmul.msk.f32.gmra.mxu0 %vm3544_vm15, %v6047_v24  ;;  %8260 = vmatmul.msk.f32.gmra.mxu1 %vm3544_vm15, %v6047_v24  ;;  %v5218_v8 = vadd.f32 %v12783_v32, %v5217_v27  ;;  %v9142_v22 = vpop.eup %9141  ;;  %9149 = vrcp.f32 %v13317_v15  ;;  %v13374_v25 = vmul.f32 %v13334_v5, %v13260_v48  ;;  %v5604_v27 = vpop.f32.mrf.mxu2 }
0x1191   :  { %8276 = vmatmul.msk.f32.gmra.mxu2 %vm3544_vm15, %v6047_v24  ;;  %9151 = vpow2.f32 %v8220_v41  ;;  %v7015_v24 = vld [vmem:[%s15230_s8 + $0x30] sm:$0xff]  ;;  %v5700_v57 = vpop.f32.mrf.mxu3  ;;  %v5428_v28 = vor.u32 1.1754944e-38, %v5427_v63  ;;  %v13391_v37 = vadd.f32 1.0, %v9142_v22  ;;  %vm5426_vm11 = vcmp.eq.f32.partialorder %v5425_v18, 8.507059e+37  ;;  %v13405_v22 = vld [vmem:[#allocation4] ss:$0 sm:$0xff] }
0x1192   :  { %v9144_v13 = vpop.eup %9143  ;;  %v5420_v31 = vadd.f32 %v13298_v36, %v5419_v49  ;;  %v8170_v32 = vmul.f32 -1.442695, %v5218_v8  ;;  %7078 = vmatpush.msrb.mxu3 %v7015_v24  ;;  %v5888_v41 = vsel %vm13363_vm9, %v5887_v21, %v5883_v44  ;;  %v5898_v14 = vsel %vm13384_vm10, %v13174_v19, %v13368_v20  ;;  %v9441_v44 = vld [vmem:[#allocation7] ss:$0 sm:$0xff] }
0x1193   :  { %v9146_v53 = vpop.eup %9145  ;;  %v13349_v34 = vadd.f32 1.0, %v9144_v13  ;;  %v5701_v21 = vadd.f32 %v9441_v44, %v5700_v57  ;;  %vm13417_vm12 = vcmp.eq.f32.partialorder %v5899_v35, 8.507059e+37  ;;  %vm5436_vm13 = vweird.f32 %v13313_v4 }
0x1194   :  { %9153 = vpow2.f32 %v8170_v32  ;;  %v6048_v52 = vmul.f32 %v9146_v53, %v13223_v40  ;;  %v5424_v46 = vsel %vm13355_vm8, %v13298_v36, %v5420_v31  ;;  %v5907_v36 = vsub.f32 1.0, %v13327_v12  ;;  %v13414_v31 = vld [vmem:[#allocation6] ss:$0 sm:$0xff] }
0x1195   :  { %v13370_v1 = vpop.eup %9147  ;;  %9155 = vrcp.f32 %v13349_v34  ;;  %v5429_v13 = vsel %vm5426_vm11, %v5428_v28, %v5424_v46  ;;  %v5605_v63 = vadd.f32 %v13414_v31, %v5604_v27  ;;  %v5440_v57 = vand.u32 2147483647, %v13313_v4 }
0x1196   :  { %v5432_v38 = vmul.f32 %v13370_v1, %v13313_v4  ;;  %9157 = vtanh.f32 %v6017_v17  ;;  %v13401_v8 = vpop.eup %9149  ;;  %vm5437_vm14 = vweird.f32 %v13370_v1  ;;  %v6018_v24 = vmul.f32 %v13147_v29, %v5429_v13 }
0x1197   :  { %9159 = vtanh.f32 %v5602_v9  ;;  %v5220_v49 = vpop.f32.mrf.mxu1  ;;  %v9152_v16 = vpop.eup %9151  ;;  %v5442_v46 = vand.u32 2147483648, %v13313_v4  ;;  %v13440_v28 = vmul.f32 %v13401_v8, %v13317_v15  ;;  %v8221_v29 = vmul.f32 -1.442695, %v5701_v21  ;;  %vm13446_vm0 = vmor %vm5436_vm13, %vm5437_vm14 }
0x1198   :  { %v5433_v6 = vsub.f32 1.0, %v5432_v38  ;;  %8229 = vmatmul.msk.f32.gmra.mxu0 %vm3544_vm15, %v6048_v52  ;;  %8261 = vmatmul.msk.f32.gmra.mxu1 %vm3544_vm15, %v6048_v52  ;;  %v5221_v18 = vadd.f32 %v13405_v22, %v5220_v49  ;;  %9161 = vrcp.f32 %v13391_v37  ;;  %v5457_v49 = vand.u32 2147483648, %v13349_v34 }
0x1199   :  { %8277 = vmatmul.msk.f32.gmra.mxu2 %vm3544_vm15, %v6048_v52  ;;  %v5901_v52 = vand.u32 2147483648, %v13097_v58  ;;  %v5455_v58 = vand.u32 2147483647, %v13349_v34  ;;  %v5703_v13 = vpop.f32.mrf.mxu3  ;;  %vm5441_vm1 = vcmp.eq.f32.partialorder %v5440_v57, 8.507059e+37  ;;  %v5443_v43 = vor.u32 1.1754944e-38, %v5442_v46 }
0x119a   :  { %v9154_v53 = vpop.eup %9153  ;;  %v5434_v9 = vmul.f32 %v13370_v1, %v5433_v6  ;;  %v8171_v19 = vmul.f32 -1.442695, %v5221_v18  ;;  %v13451_v18 = vadd.f32 1.0, %v9152_v16  ;;  %v5937_v16 = vsub.f32 1.0, %v13440_v28 }
0x119b   :  { %v13424_v17 = vpop.eup %9155  ;;  %v13427_v39 = vadd.f32 1.0, %v9154_v53  ;;  %vm5451_vm3 = vweird.f32 %v13349_v34  ;;  %vm13472_vm4 = vcmp.eq.f32.partialorder %v5455_v58, 8.507059e+37  ;;  %vm5910_vm6 = vweird.f32 %v13213_v54 }
0x119c   :  { %v9158_v47 = vpop.eup %9157  ;;  %v5435_v20 = vadd.f32 %v13370_v1, %v5434_v9  ;;  %v5447_v40 = vmul.f32 %v13424_v17, %v13349_v34  ;;  %v5902_v9 = vor.u32 1.1754944e-38, %v5901_v52  ;;  %v5704_v52 = vadd.f32 %v9441_v44, %v5703_v13 }
0x119d   :  { %v13436_v35 = vpop.eup %9159  ;;  %9163 = vrcp.f32 %v13427_v39  ;;  %v6049_v6 = vmul.f32 %v9158_v47, %v5888_v41  ;;  %v7014_v47 = vld [vmem:[%s15230_s8 + $0x28] sm:$0xff]  ;;  %vm5452_vm5 = vweird.f32 %v13424_v17  ;;  %vm5911_vm7 = vweird.f32 %v13288_v42 }
0x119e   :  { %v5448_v27 = vsub.f32 1.0, %v5447_v40  ;;  %9165 = vpow2.f32 %v8171_v19  ;;  %v5439_v21 = vsel %vm13446_vm0, %v13370_v1, %v5435_v20  ;;  %v13456_v4 = vpop.eup %9161  ;;  %v5458_v1 = vor.u32 1.1754944e-38, %v5457_v49  ;;  %7079 = vmatpush.msrb.mxu3 %v7014_v47  ;;  %vm13498_vm2 = vmor %vm5451_vm3, %vm5452_vm5 }
0x119f   :  { %v5223_v53 = vpop.f32.mrf.mxu1  ;;  %9167 = vtanh.f32 %v6018_v24  ;;  %v13470_v57 = vmul.f32 %v13456_v4, %v13391_v37  ;;  %v5903_v40 = vsel %vm13417_vm12, %v5902_v9, %v5898_v14  ;;  %v5607_v14 = vpop.f32.mrf.mxu2  ;;  %v8222_v49 = vmul.f32 -1.442695, %v5704_v52  ;;  %vm13517_vm8 = vmor %vm5910_vm6, %vm5911_vm7 }
0x11a0   :  { %9169 = vtanh.f32 %v5605_v63  ;;  %8230 = vmatmul.msk.f32.gmra.mxu0 %vm3544_vm15, %v6049_v6  ;;  %8262 = vmatmul.msk.f32.gmra.mxu1 %vm3544_vm15, %v6049_v6  ;;  %v5224_v41 = vadd.f32 %v13405_v22, %v5223_v53  ;;  %v5449_v19 = vmul.f32 %v13424_v17, %v5448_v27  ;;  %v5444_v63 = vsel %vm5441_vm1, %v5443_v43, %v5439_v21 }
0x11a1   :  { %9171 = vpow2.f32 %v8221_v29  ;;  %8278 = vmatmul.msk.f32.gmra.mxu2 %vm3544_vm15, %v6049_v6  ;;  %v5908_v43 = vmul.f32 %v13288_v42, %v5907_v36  ;;  %v6019_v12 = vmul.f32 %v13219_v2, %v5444_v63  ;;  %v5916_v13 = vand.u32 2147483648, %v13213_v54 }
0x11a2   :  { %v8172_v24 = vmul.f32 -1.442695, %v5224_v41  ;;  %9173 = vrcp.f32 %v13451_v18  ;;  %v5450_v38 = vadd.f32 %v13424_v17, %v5449_v19  ;;  %v5470_v21 = vand.u32 2147483647, %v13427_v39 }
0x11a3   :  { %v13466_v20 = vpop.eup %9163  ;;  %v5909_v41 = vadd.f32 %v13288_v42, %v5908_v43  ;;  %v5914_v19 = vand.u32 2147483647, %v13213_v54  ;;  %v5952_v52 = vsub.f32 1.0, %v13470_v57  ;;  %vm5466_vm9 = vweird.f32 %v13427_v39 }
0x11a4   :  { %v9166_v44 = vpop.eup %9165  ;;  %v5462_v29 = vmul.f32 %v13466_v20, %v13427_v39  ;;  %9175 = vpow2.f32 %v8172_v24  ;;  %v13508_v24 = vadd.f32 %v13414_v31, %v5607_v14  ;;  %v5472_v43 = vand.u32 2147483648, %v13427_v39 }
0x11a5   :  { %v9168_v58 = vpop.eup %9167  ;;  %v13487_v27 = vadd.f32 1.0, %v9166_v44  ;;  %v5454_v54 = vsel %vm13498_vm2, %v13424_v17, %v5450_v38  ;;  %v5917_v14 = vor.u32 1.1754944e-38, %v5916_v13  ;;  %vm13532_vm10 = vcmp.eq.f32.partialorder %v5470_v21, 8.507059e+37  ;;  %v7012_v21 = vld [vmem:[%s15230_s8 + $0x18] sm:$0xff] }
0x11a6   :  { %v13491_v36 = vpop.eup %9169  ;;  %v5463_v32 = vsub.f32 1.0, %v5462_v29  ;;  %v6050_v6 = vmul.f32 %v9168_v58, %v5903_v40  ;;  %vm13541_vm11 = vcmp.eq.f32.partialorder %v5914_v19, 8.507059e+37  ;;  %v15261_v17 = vsub.f32 1.0, %v13374_v25 }
0x11a7   :  { %v9172_v53 = vpop.eup %9171  ;;  %9177 = vrcp.f32 %v13487_v27  ;;  %v5226_v2 = vpop.f32.mrf.mxu1  ;;  %vm5467_vm12 = vweird.f32 %v13466_v20  ;;  %v5459_v13 = vsel %vm13472_vm4, %v5458_v1, %v5454_v54  ;;  %vm5925_vm13 = vweird.f32 %v13260_v48 }
0x11a8   :  { %8231 = vmatmul.msk.f32.gmra.mxu0 %vm3544_vm15, %v6050_v6  ;;  %8263 = vmatmul.msk.f32.gmra.mxu1 %vm3544_vm15, %v6050_v6  ;;  %v5227_v34 = vadd.f32 %v13405_v22, %v5226_v2  ;;  %9179 = vtanh.f32 %v6019_v12  ;;  %v13521_v63 = vpop.eup %9173  ;;  %v5464_v40 = vmul.f32 %v13466_v20, %v5463_v32  ;;  %v13530_v29 = vadd.f32 1.0, %v9172_v53  ;;  %v7013_v53 = vld [vmem:[%s15230_s8 + $0x20] sm:$0xff]  ;;  %vm13572_vm0 = vmor %vm5466_vm9, %vm5467_vm12 }
0x11a9   :  { %8279 = vmatmul.msk.f32.gmra.mxu2 %vm3544_vm15, %v6050_v6  ;;  %9181 = vpow2.f32 %v8222_v49  ;;  %v5913_v6 = vsel %vm13517_vm8, %v13288_v42, %v5909_v41  ;;  %v5923_v38 = vmul.f32 %v13334_v5, %v15261_v17  ;;  %v5485_v49 = vand.u32 2147483647, %v13487_v27  ;;  %7080 = vmatpush.msrb.mxu3 %v7013_v53 }
0x11aa   :  { %v9176_v44 = vpop.eup %9175  ;;  %v8173_v58 = vmul.f32 -1.442695, %v5227_v34  ;;  %v5465_v42 = vadd.f32 %v13466_v20, %v5464_v40  ;;  %vm5926_vm14 = vweird.f32 %v13334_v5  ;;  %v13562_v41 = vmul.f32 %v13521_v63, %v13451_v18 }
0x11ab   :  { %v13536_v32 = vadd.f32 1.0, %v9176_v44  ;;  %v5473_v46 = vor.u32 1.1754944e-38, %v5472_v43  ;;  %v5918_v19 = vsel %vm13541_vm11, %v5917_v14, %v5913_v6  ;;  %v5924_v43 = vadd.f32 %v13334_v5, %v5923_v38  ;;  %7081 = vmatpush.msrb.mxu3 %v7012_v21  ;;  %vm13584_vm1 = vmor %vm5925_vm13, %vm5926_vm14 }
0x11ac   :  { %9183 = vpow2.f32 %v8173_v58  ;;  %v5931_v54 = vand.u32 2147483648, %v13260_v48  ;;  %v5929_v6 = vand.u32 2147483647, %v13260_v48  ;;  %v6020_v9 = vmul.f32 %v13279_v11, %v5459_v13 }
0x11ad   :  { %v13554_v2 = vpop.eup %9177  ;;  %9185 = vrcp.f32 %v13536_v32  ;;  %vm5481_vm3 = vweird.f32 %v13487_v27  ;;  %vm13591_vm4 = vcmp.eq.f32.partialorder %v5485_v49, 8.507059e+37  ;;  %v5469_v38 = vsel %vm13572_vm0, %v13466_v20, %v5465_v42 }
0x11ae   :  { %v9180_v25 = vpop.eup %9179  ;;  %v5477_v1 = vmul.f32 %v13554_v2, %v13487_v27  ;;  %9187 = vrcp.f32 %v13530_v29  ;;  %vm5482_vm5 = vweird.f32 %v13554_v2  ;;  %v5928_v21 = vsel %vm13584_vm1, %v13334_v5, %v5924_v43 }
0x11af   :  { %v6051_v47 = vmul.f32 %v9180_v25, %v5918_v19  ;;  %v5229_v40 = vpop.f32.mrf.mxu1  ;;  %v9182_v44 = vpop.eup %9181  ;;  %9189 = vtanh.f32 %v6020_v9  ;;  %v5932_v25 = vor.u32 1.1754944e-38, %v5931_v54  ;;  %v5938_v20 = vmul.f32 %v13401_v8, %v5937_v16  ;;  %vm5483_vm8 = vmor %vm5481_vm3, %vm5482_vm5 }
0x11b0   :  { %v5478_v58 = vsub.f32 1.0, %v5477_v1  ;;  %v5230_v14 = vadd.f32 %v13405_v22, %v5229_v40  ;;  %v5487_v22 = vand.u32 2147483648, %v13487_v27  ;;  %vm5930_vm6 = vcmp.eq.f32.partialorder %v5929_v6, 8.507059e+37 }
0x11b1   :  { %8232 = vmatmul.msk.f32.gmra.mxu0 %vm3544_vm15, %v6051_v47  ;;  %8264 = vmatmul.msk.f32.gmra.mxu1 %vm3544_vm15, %v6051_v47  ;;  %v5474_v19 = vsel %vm13532_vm10, %v5473_v46, %v5469_v38  ;;  %v13621_v40 = vadd.f32 1.0, %v9182_v44  ;;  %v5500_v5 = vand.u32 2147483647, %v13536_v32  ;;  %vm5940_vm7 = vweird.f32 %v13317_v15 }
0x11b2   :  { %v9184_v53 = vpop.eup %9183  ;;  %v5479_v48 = vmul.f32 %v13554_v2, %v5478_v58  ;;  %8280 = vmatmul.msk.f32.gmra.mxu2 %vm3544_vm15, %v6051_v47  ;;  %v8174_v11 = vmul.f32 -1.442695, %v5230_v14  ;;  %v5488_v47 = vor.u32 1.1754944e-38, %v5487_v22  ;;  %vm5941_vm2 = vweird.f32 %v13401_v8 }
0x11b3   :  { %v13604_v49 = vpop.eup %9185  ;;  %v13606_v13 = vadd.f32 1.0, %v9184_v53  ;;  %v5933_v16 = vsel %vm5930_vm6, %v5932_v25, %v5928_v21  ;;  %v5939_v12 = vadd.f32 %v13401_v8, %v5938_v20  ;;  %v5946_v46 = vand.u32 2147483648, %v13317_v15  ;;  %vm13639_vm10 = vmor %vm5940_vm7, %vm5941_vm2  ;;  %v7361_v21 = vld [vmem:[%s15270_s20 + $0x30] sm:$0xff] }
0x11b4   :  { %v5480_v42 = vadd.f32 %v13554_v2, %v5479_v48  ;;  %v5492_v1 = vmul.f32 %v13604_v49, %v13536_v32  ;;  %v13619_v34 = vpop.eup %9187  ;;  %v6021_v43 = vmul.f32 %v13323_v45, %v5474_v19  ;;  %vm5497_vm9 = vweird.f32 %v13604_v49 }
0x11b5   :  { %9191 = vrcp.f32 %v13606_v13  ;;  %v9190_v54 = vpop.eup %9189  ;;  %v5944_v58 = vand.u32 2147483647, %v13317_v15  ;;  %v5502_v39 = vand.u32 2147483648, %v13536_v32  ;;  %v5967_v9 = vsub.f32 1.0, %v13562_v41 }
0x11b6   :  { %v5493_v28 = vsub.f32 1.0, %v5492_v1  ;;  %9193 = vpow2.f32 %v8174_v11  ;;  %v5484_v14 = vsel %vm5483_vm8, %v13554_v2, %v5480_v42  ;;  %v6052_v27 = vmul.f32 %v9190_v54, %v5933_v16  ;;  %v7011_v42 = vld [vmem:[%s15230_s8 + $0x10] sm:$0xff] }
0x11b7   :  { %9195 = vtanh.f32 %v6021_v43  ;;  %v5489_v45 = vsel %vm13591_vm4, %v5488_v47, %v5484_v14  ;;  %vm5496_vm11 = vweird.f32 %v13536_v32  ;;  %v5953_v15 = vmul.f32 %v13456_v4, %v5952_v52  ;;  %v7360_v47 = vld [vmem:[%s15270_s20 + $0x28] sm:$0xff]  ;;  %7082 = vmatpush.msrb.mxu3 %v7011_v42 }
0x11b8   :  { %v5494_v44 = vmul.f32 %v13604_v49, %v5493_v28  ;;  %9197 = vrcp.f32 %v13621_v40  ;;  %vm13654_vm12 = vmor %vm5496_vm11, %vm5497_vm9  ;;  %vm13658_vm13 = vcmp.eq.f32.partialorder %v5500_v5, 8.507059e+37  ;;  %v5947_v57 = vor.u32 1.1754944e-38, %v5946_v46 }
0x11b9   :  { %8233 = vmatmul.msk.f32.gmra.mxu0 %vm3544_vm15, %v6052_v27  ;;  %8265 = vmatmul.msk.f32.gmra.mxu1 %vm3544_vm15, %v6052_v27  ;;  %v6022_v52 = vmul.f32 %v13436_v35, %v5489_v45  ;;  %v5943_v53 = vsel %vm13639_vm10, %v13401_v8, %v5939_v12  ;;  %vm13671_vm14 = vcmp.eq.f32.partialorder %v5944_v58, 8.507059e+37  ;;  %v7362_v35 = vld [vmem:[%s15270_s20 + $0x38] sm:$0xff]  ;;  %v5503_v25 = vor.u32 1.1754944e-38, %v5502_v39  ;;  %v5610_v39 = vpop.f32.mrf.mxu2  ;;  %v7359_v45 = vld [vmem:[%s15270_s20 + $0x20] sm:$0xff] }
0x11ba   :  { %v5495_v22 = vadd.f32 %v13604_v49, %v5494_v44  ;;  %8281 = vmatmul.msk.f32.gmra.mxu2 %vm3544_vm15, %v6052_v27  ;;  %vm5955_vm0 = vweird.f32 %v13391_v37  ;;  %vm5956_vm1 = vweird.f32 %v13456_v4  ;;  %v5954_v1 = vadd.f32 %v13456_v4, %v5953_v15 }
0x11bb   :  { %v13651_v2 = vpop.eup %9191  ;;  %7540 = vmatpush.msra.mxu2 %v7362_v35  ;;  %v5961_v19 = vand.u32 2147483648, %v13391_v37  ;;  %9199 = vtanh.f32 %v6022_v52  ;;  %v5948_v5 = vsel %vm13671_vm14, %v5947_v57, %v5943_v53  ;;  %v5959_v28 = vand.u32 2147483647, %v13391_v37  ;;  %vm13702_vm4 = vmor %vm5955_vm0, %vm5956_vm1  ;;  %v7358_v57 = vld [vmem:[%s15270_s20 + $0x18] sm:$0xff] }
0x11bc   :  { %v9194_v32 = vpop.eup %9193  ;;  %v5507_v17 = vmul.f32 %v13651_v2, %v13606_v13  ;;  %v5499_v11 = vsel %vm13654_vm12, %v13604_v49, %v5495_v22  ;;  %v5981_v12 = vmul.f32 %v13619_v34, %v13530_v29  ;;  %vm5512_vm3 = vweird.f32 %v13651_v2 }
0x11bd   :  { %v13680_v20 = vadd.f32 1.0, %v9194_v32  ;;  %v9196_v49 = vpop.eup %9195  ;;  %v5504_v16 = vsel %vm13658_vm13, %v5503_v25, %v5499_v11  ;;  %7541 = vmatpush.msra.mxu2 %v7361_v21  ;;  %v5515_v58 = vand.u32 2147483647, %v13606_v13  ;;  %v5517_v14 = vand.u32 2147483648, %v13606_v13 }
0x11be   :  { %v5508_v8 = vsub.f32 1.0, %v5507_v17  ;;  %v6053_v43 = vmul.f32 %v9196_v49, %v5948_v5  ;;  %v13706_v44 = vpop.eup %9197  ;;  %vm5511_vm5 = vweird.f32 %v13606_v13  ;;  %v5962_v6 = vor.u32 1.1754944e-38, %v5961_v19  ;;  %v7357_v17 = vld [vmem:[%s15270_s20 + $0x10] sm:$0xff] }
0x11bf   :  { %9201 = vrcp.f32 %v13680_v20  ;;  %7542 = vmatpush.msra.mxu2 %v7360_v47  ;;  %v6023_v37 = vmul.f32 %v13491_v36, %v5504_v16  ;;  %vm13715_vm6 = vmor %vm5511_vm5, %vm5512_vm3  ;;  %v5958_v15 = vsel %vm13702_vm4, %v13456_v4, %v5954_v1  ;;  %vm5960_vm7 = vcmp.eq.f32.partialorder %v5959_v28, 8.507059e+37 }
0x11c0   :  { %v5509_v46 = vmul.f32 %v13651_v2, %v5508_v8  ;;  %9203 = vtanh.f32 %v13508_v24  ;;  %v5968_v13 = vmul.f32 %v13521_v63, %v5967_v9  ;;  %v5982_v36 = vsub.f32 1.0, %v5981_v12 }
0x11c1   :  { %8234 = vmatmul.msk.f32.gmra.mxu0 %vm3544_vm15, %v6053_v43  ;;  %8266 = vmatmul.msk.f32.gmra.mxu1 %vm3544_vm15, %v6053_v43  ;;  %v9200_v38 = vpop.eup %9199  ;;  %v5611_v24 = vadd.f32 %v13414_v31, %v5610_v39  ;;  %vm5516_vm2 = vcmp.eq.f32.partialorder %v5515_v58, 8.507059e+37  ;;  %v5518_v32 = vor.u32 1.1754944e-38, %v5517_v14  ;;  %vm5970_vm8 = vweird.f32 %v13451_v18 }
0x11c2   :  { %v5510_v27 = vadd.f32 %v13651_v2, %v5509_v46  ;;  %8282 = vmatmul.msk.f32.gmra.mxu2 %vm3544_vm15, %v6053_v43  ;;  %vm5971_vm9 = vweird.f32 %v13521_v63  ;;  %v5963_v9 = vsel %vm5960_vm7, %v5962_v6, %v5958_v15  ;;  %v5976_v31 = vand.u32 2147483648, %v13451_v18 }
0x11c3   :  { %7543 = vmatpush.msra.mxu2 %v7359_v45  ;;  %9205 = vtanh.f32 %v6023_v37  ;;  %v6054_v53 = vmul.f32 %v9200_v38, %v5963_v9  ;;  %v5969_v48 = vadd.f32 %v13521_v63, %v5968_v13  ;;  %v5996_v35 = vmul.f32 %v13706_v44, %v13621_v40  ;;  %vm13742_vm10 = vmor %vm5970_vm8, %vm5971_vm9  ;;  %v13778_v9 = vld [vmem:[%s15283_s27] ss:$0 sm:$0xff] }
0x11c4   :  { %v5514_v41 = vsel %vm13715_vm6, %v13651_v2, %v5510_v27  ;;  %v5974_v2 = vand.u32 2147483647, %v13451_v18  ;;  %v5530_v8 = vand.u32 2147483647, %v13680_v20  ;;  %v5532_v1 = vand.u32 2147483648, %v13680_v20 }
0x11c5   :  { %v9202_v52 = vpop.eup %9201  ;;  %v5519_v11 = vsel %vm5516_vm2, %v5518_v32, %v5514_v41  ;;  %7544 = vmatpush.msra.mxu2 %v7358_v57  ;;  %v5977_v47 = vor.u32 1.1754944e-38, %v5976_v31  ;;  %9207 = vtanh.f32 %v5611_v24  ;;  %v5973_v18 = vsel %vm13742_vm10, %v13521_v63, %v5969_v48  ;;  %v13774_v57 = vld [vmem:[#allocation9] ss:$0 sm:$0xff] }
0x11c6   :  { %v5522_v4 = vmul.f32 %v9202_v52, %v13680_v20  ;;  %v9204_v42 = vpop.eup %9203  ;;  %vm5527_vm11 = vweird.f32 %v9202_v52  ;;  %vm5975_vm12 = vcmp.eq.f32.partialorder %v5974_v2, 8.507059e+37  ;;  %v5983_v5 = vmul.f32 %v13619_v34, %v5982_v36 }
0x11c7   :  { %7545 = vmatpush.msra.mxu2 %v7357_v17  ;;  %v6024_v49 = vmul.f32 %v9204_v42, %v5519_v11  ;;  %v5997_v16 = vsub.f32 1.0, %v5996_v35  ;;  %vm5526_vm13 = vweird.f32 %v13680_v20  ;;  %vm5531_vm0 = vcmp.eq.f32.partialorder %v5530_v8, 8.507059e+37  ;;  %v7356_v17 = vld [vmem:[%s15270_s20 + $0x8] sm:$0xff] }
0x11c8   :  { %v5523_v21 = vsub.f32 1.0, %v5522_v4  ;;  %vm5528_vm14 = vmor %vm5526_vm13, %vm5527_vm11  ;;  %v5533_v46 = vor.u32 1.1754944e-38, %v5532_v1  ;;  %vm5985_vm1 = vweird.f32 %v13530_v29  ;;  %vm5986_vm3 = vweird.f32 %v13619_v34 }
0x11c9   :  { %8235 = vmatmul.msk.f32.gmra.mxu0 %vm3544_vm15, %v6054_v53  ;;  %8267 = vmatmul.msk.f32.gmra.mxu1 %vm3544_vm15, %v6054_v53  ;;  %v9206_v28 = vpop.eup %9205  ;;  %v5978_v43 = vsel %vm5975_vm12, %v5977_v47, %v5973_v18  ;;  %v5991_v63 = vand.u32 2147483648, %v13530_v29  ;;  %9209 = vtanh.f32 %v6024_v49  ;;  %v5984_v14 = vadd.f32 %v13619_v34, %v5983_v5  ;;  %vm5987_vm4 = vmor %vm5985_vm1, %vm5986_vm3  ;;  %v7010_v5 = vld [vmem:[%s15230_s8 + $0x8] sm:$0xff] }
0x11ca   :  { %v5524_v19 = vmul.f32 %v9202_v52, %v5523_v21  ;;  %8283 = vmatmul.msk.f32.gmra.mxu2 %vm3544_vm15, %v6054_v53  ;;  %v6055_v58 = vmul.f32 %v9206_v28, %v5978_v43  ;;  %v5989_v39 = vand.u32 2147483647, %v13530_v29  ;;  %v5998_v22 = vmul.f32 %v13706_v44, %v5997_v16  ;;  %v7355_v53 = vld [vmem:[%s15270_s20] sm:$0xff]  ;;  %7083 = vmatpush.msrb.mxu3 %v7010_v5 }
0x11cb   :  { %v9208_v27 = vpop.eup %9207  ;;  %v5992_v6 = vor.u32 1.1754944e-38, %v5991_v63  ;;  %v5988_v45 = vsel %vm5987_vm4, %v13619_v34, %v5984_v14  ;;  %vm6000_vm6 = vweird.f32 %v13621_v40  ;;  %vm6001_vm7 = vweird.f32 %v13706_v44  ;;  %7546 = vmatpush.msra.mxu2 %v7356_v17  ;;  %v13807_v63 = vld [vmem:[#allocation10] ss:$0 sm:$0xff] }
0x11cc   :  { %v5525_v12 = vadd.f32 %v9202_v52, %v5524_v19  ;;  %vm5990_vm5 = vcmp.eq.f32.partialorder %v5989_v39, 8.507059e+37  ;;  %v6006_v13 = vand.u32 2147483648, %v13621_v40  ;;  %v5999_v36 = vadd.f32 %v13706_v44, %v5998_v22  ;;  %vm6002_vm2 = vmor %vm6000_vm6, %vm6001_vm7 }
0x11cd   :  { %v5993_v29 = vsel %vm5990_vm5, %v5992_v6, %v5988_v45  ;;  %v6004_v34 = vand.u32 2147483647, %v13621_v40  ;;  %7547 = vmatpush.msra.mxu2 %v7355_v53  ;;  %v4065_v11 = vadd.f32 %v13778_v9, %v12065_v55  ;;  %v4068_v42 = vadd.f32 %v13778_v9, %v12130_v23 }
0x11ce   :  { %v5529_v54 = vsel %vm5528_vm14, %v9202_v52, %v5525_v12  ;;  %v6007_v24 = vor.u32 1.1754944e-38, %v6006_v13  ;;  %v6003_v41 = vsel %vm6002_vm2, %v13706_v44, %v5999_v36  ;;  %v13783_v44 = vld [vmem:[#allocation12] ss:$0 sm:$0xff]  ;;  %v4071_v8 = vadd.f32 %v13778_v9, %v12201_v62 }
0x11cf   :  { %v5534_v20 = vsel %vm5531_vm0, %v5533_v46, %v5529_v54  ;;  %v9210_v15 = vpop.eup %9209  ;;  %vm6005_vm8 = vcmp.eq.f32.partialorder %v6004_v34, 8.507059e+37  ;;  %v4128_v25 = vmul.f32 0.01, %v4065_v11  ;;  %vm4112_vm9 = vcmp.gt.f32.partialorder %v4065_v11, 0.0 }
0x11d0   :  { %v6025_v37 = vmul.f32 %v9208_v27, %v5534_v20  ;;  %v6056_v38 = vmul.f32 %v9210_v15, %v5993_v29  ;;  %v6008_v32 = vsel %vm6005_vm8, %v6007_v24, %v6003_v41  ;;  %v4074_v55 = vadd.f32 %v13778_v9, %v12264_v51 }
0x11d1   :  { %8236 = vmatmul.msk.f32.gmra.mxu0 %vm3544_vm15, %v6055_v58  ;;  %8268 = vmatmul.msk.f32.gmra.mxu1 %vm3544_vm15, %v6055_v58  ;;  %v4077_v49 = vadd.f32 %v13778_v9, %v12334_v56  ;;  %v4080_v28 = vadd.f32 %v13778_v9, %v12407_v61  ;;  %v4144_v62 = vsel %vm4112_vm9, %v4065_v11, %v4128_v25  ;;  %v4129_v16 = vmul.f32 0.01, %v4068_v42 }
0x11d2   :  { %8284 = vmatmul.msk.f32.gmra.mxu2 %vm3544_vm15, %v6055_v58  ;;  %9211 = vtanh.f32 %v6025_v37  ;;  %v4130_v46 = vmul.f32 0.01, %v4071_v8  ;;  %v4131_v43 = vmul.f32 0.01, %v4074_v55  ;;  %vm4113_vm10 = vcmp.gt.f32.partialorder %v4068_v42, 0.0 }
0x11d3   :  { %v4132_v56 = vmul.f32 0.01, %v4077_v49  ;;  %vm4114_vm11 = vcmp.gt.f32.partialorder %v4071_v8, 0.0  ;;  %vm4115_vm12 = vcmp.gt.f32.partialorder %v4074_v55, 0.0  ;;  %v4133_v61 = vmul.f32 0.01, %v4080_v28 }
0x11d4   :  { %v4083_v54 = vadd.f32 %v13778_v9, %v12487_v10  ;;  %vm4116_vm13 = vcmp.gt.f32.partialorder %v4077_v49, 0.0  ;;  %v4086_v58 = vadd.f32 %v13778_v9, %v12535_v3  ;;  %vm4117_vm14 = vcmp.gt.f32.partialorder %v4080_v28, 0.0 }
0x11d5   :  { %v4145_v20 = vsel %vm4113_vm10, %v4068_v42, %v4129_v16  ;;  %v4146_v37 = vsel %vm4114_vm11, %v4071_v8, %v4130_v46  ;;  %v13814_v45 = vsel %vm4115_vm12, %v4074_v55, %v4131_v43  ;;  %v13820_v29 = vsel %vm4116_vm13, %v4077_v49, %v4132_v56 }
0x11d6   :  { %v4134_v3 = vmul.f32 0.01, %v4083_v54  ;;  %v13822_v36 = vsel %vm4117_vm14, %v4080_v28, %v4133_v61  ;;  %vm4118_vm0 = vcmp.gt.f32.partialorder %v4083_v54, 0.0  ;;  %v4135_v24 = vmul.f32 0.01, %v4086_v58 }
0x11d7   :  { %vm4119_vm1 = vcmp.gt.f32.partialorder %v4086_v58, 0.0 }
0x11d8   :  { %v9212_v52 = vpop.eup %9211  ;;  %v13856_v8 = vsel %vm4119_vm1, %v4086_v58, %v4135_v24 }
0x11d9   :  { %8237 = vmatmul.msk.f32.gmra.mxu0 %vm3544_vm15, %v6056_v38  ;;  %8269 = vmatmul.msk.f32.gmra.mxu1 %vm3544_vm15, %v6056_v38  ;;  %v6057_v40 = vmul.f32 %v9212_v52, %v6008_v32  ;;  %v13828_v52 = vadd.f32 %v13778_v9, %v12597_v7  ;;  %v13832_v32 = vadd.f32 %v13778_v9, %v12657_v59 }
0x11da   :  { %8285 = vmatmul.msk.f32.gmra.mxu2 %vm3544_vm15, %v6056_v38 }
0x11de   :  { %v6135_v4 = vpop.f32.mrf.mxu0  ;;  %v6516_v2 = vpop.f32.mrf.mxu1 }
0x11df   :  { %v6136_v31 = vadd.f32 %v13774_v57, %v6135_v4  ;;  %v6517_v22 = vadd.f32 %v13807_v63, %v6516_v2 }
0x11e1   :  { %v8239_v48 = vmul.f32 -1.442695, %v6136_v31  ;;  %8238 = vmatmul.msk.f32.gmra.mxu0 %vm3544_vm15, %v6057_v40  ;;  %8270 = vmatmul.msk.f32.gmra.mxu1 %vm3544_vm15, %v6057_v40 }
0x11e2   :  { %8286 = vmatmul.msk.f32.gmra.mxu2 %vm3544_vm15, %v6057_v40  ;;  %v13839_v40 = vadd.f32 %v13778_v9, %v12709_v30 }
0x11e3   :  { %9213 = vpow2.f32 %v8239_v48  ;;  %v13845_v48 = vsel %vm4118_vm0, %v4083_v54, %v4134_v3 }
0x11e5   :  { %v6609_v35 = vpop.f32.mrf.mxu2 }
0x11e6   :  { %v6610_v21 = vadd.f32 %v13783_v44, %v6609_v35  ;;  %v6138_v19 = vpop.f32.mrf.mxu0  ;;  %v6519_v51 = vpop.f32.mrf.mxu1  ;;  %v13849_v35 = vmul.f32 0.01, %v13828_v52 }
0x11e7   :  { %v6139_v18 = vadd.f32 %v13774_v57, %v6138_v19  ;;  %v6520_v59 = vadd.f32 %v13807_v63, %v6519_v51 }
0x11e8   :  { %v8287_v1 = vmul.f32 -1.442695, %v6610_v21  ;;  %v13852_v21 = vmul.f32 0.01, %v13832_v32 }
0x11e9   :  { %v9214_v47 = vpop.eup %9213  ;;  %v8240_v12 = vmul.f32 -1.442695, %v6139_v18 }
0x11ea   :  { %v13803_v23 = vadd.f32 1.0, %v9214_v47  ;;  %9215 = vpow2.f32 %v8287_v1  ;;  %8351 = vmatmul.msk.f32.vlgmr.msra.gmra.mxu2 %vm3544_vm15, %v4144_v62  ;;  %v13861_v1 = vmul.f32 0.01, %v13839_v40  ;;  %v7009_v62 = vld [vmem:[%s15230_s8] sm:$0xff] }
0x11eb   :  { %7084 = vmatpush.msrb.mxu3 %v7009_v62 }
0x11ec   :  { %9217 = vrcp.f32 %v13803_v23  ;;  %v6258_v7 = vand.u32 2147483648, %v13803_v23  ;;  %v6256_v11 = vand.u32 2147483647, %v13803_v23  ;;  %vm6252_vm4 = vweird.f32 %v13803_v23 }
0x11ed   :  { %9219 = vpow2.f32 %v8240_v12  ;;  %v6612_v14 = vpop.f32.mrf.mxu2 }
0x11ee   :  { %v6613_v27 = vadd.f32 %v13783_v44, %v6612_v14  ;;  %v6141_v6 = vpop.f32.mrf.mxu0  ;;  %v6522_v53 = vpop.f32.mrf.mxu1  ;;  %v6259_v18 = vor.u32 1.1754944e-38, %v6258_v7  ;;  %vm6257_vm6 = vcmp.eq.f32.partialorder %v6256_v11, 8.507059e+37 }
0x11ef   :  { %v6142_v10 = vadd.f32 %v13774_v57, %v6141_v6  ;;  %v6523_v61 = vadd.f32 %v13807_v63, %v6522_v53 }
0x11f0   :  { %v9216_v39 = vpop.eup %9215  ;;  %v8288_v38 = vmul.f32 -1.442695, %v6613_v27 }
0x11f1   :  { %v13817_v15 = vadd.f32 1.0, %v9216_v39  ;;  %v8241_v17 = vmul.f32 -1.442695, %v6142_v10 }
0x11f2   :  { %v9218_v13 = vpop.eup %9217  ;;  %8352 = vmatmul.msk.f32.gmra.mxu2 %vm3544_vm15, %v4145_v20 }
0x11f3   :  { %v9220_v34 = vpop.eup %9219  ;;  %v6248_v41 = vmul.f32 %v9218_v13, %v13803_v23  ;;  %9221 = vrcp.f32 %v13817_v15  ;;  %vm6253_vm3 = vweird.f32 %v9218_v13  ;;  %v6730_v14 = vand.u32 2147483647, %v13817_v15 }
0x11f4   :  { %v13834_v4 = vadd.f32 1.0, %v9220_v34  ;;  %9223 = vpow2.f32 %v8288_v38  ;;  %vm6254_vm5 = vmor %vm6252_vm4, %vm6253_vm3  ;;  %v6732_v27 = vand.u32 2147483648, %v13817_v15  ;;  %vm6726_vm7 = vweird.f32 %v13817_v15 }
0x11f5   :  { %v6249_v31 = vsub.f32 1.0, %v6248_v41  ;;  %9225 = vtanh.f32 %v6517_v22  ;;  %v6615_v30 = vpop.f32.mrf.mxu2  ;;  %v13882_v22 = vadd.f32 %v13778_v9, %v12739_v60  ;;  %vm13891_vm9 = vcmp.eq.f32.partialorder %v6730_v14, 8.507059e+37 }
0x11f6   :  { %9227 = vrcp.f32 %v13834_v4  ;;  %v6616_v25 = vadd.f32 %v13783_v44, %v6615_v30  ;;  %v6144_v42 = vpop.f32.mrf.mxu0  ;;  %v6271_v10 = vand.u32 2147483647, %v13834_v4  ;;  %v6273_v34 = vand.u32 2147483648, %v13834_v4 }
0x11f7   :  { %v6250_v2 = vmul.f32 %v9218_v13, %v6249_v31  ;;  %9229 = vpow2.f32 %v8241_v17  ;;  %v6145_v47 = vadd.f32 %v13774_v57, %v6144_v42  ;;  %v6733_v53 = vor.u32 1.1754944e-38, %v6732_v27 }
0x11f8   :  { %9231 = vtanh.f32 %v6520_v59  ;;  %v8289_v28 = vmul.f32 -1.442695, %v6616_v25  ;;  %vm6267_vm10 = vweird.f32 %v13834_v4  ;;  %vm13902_vm12 = vcmp.eq.f32.partialorder %v6271_v10, 8.507059e+37 }
0x11f9   :  { %v13858_v55 = vpop.eup %9221  ;;  %v6251_v19 = vadd.f32 %v9218_v13, %v6250_v2  ;;  %v8242_v46 = vmul.f32 -1.442695, %v6145_v47  ;;  %v6274_v42 = vor.u32 1.1754944e-38, %v6273_v34 }
0x11fa   :  { %v9224_v49 = vpop.eup %9223  ;;  %v6722_v5 = vmul.f32 %v13858_v55, %v13817_v15  ;;  %8353 = vmatmul.msk.f32.gmra.mxu2 %vm3544_vm15, %v4146_v37  ;;  %9233 = vpow2.f32 %v8289_v28  ;;  %vm6727_vm2 = vweird.f32 %v13858_v55 }
0x11fb   :  { %v9226_v16 = vpop.eup %9225  ;;  %v6255_v12 = vsel %vm6254_vm5, %v9218_v13, %v6251_v19  ;;  %v13869_v51 = vadd.f32 1.0, %v9224_v49  ;;  %v6525_v13 = vpop.f32.mrf.mxu1  ;;  %vm13898_vm11 = vmor %vm6726_vm7, %vm6727_vm2 }
0x11fc   :  { %v9228_v23 = vpop.eup %9227  ;;  %v6260_v43 = vsel %vm6257_vm6, %v6259_v18, %v6255_v12  ;;  %v6723_v56 = vsub.f32 1.0, %v6722_v5 }
0x11fd   :  { %v9230_v54 = vpop.eup %9229  ;;  %v6961_v58 = vmul.f32 %v9226_v16, %v6260_v43  ;;  %v6263_v39 = vmul.f32 %v9228_v23, %v13834_v4  ;;  %9235 = vrcp.f32 %v13869_v51  ;;  %v6618_v3 = vpop.f32.mrf.mxu2  ;;  %vm6268_vm8 = vweird.f32 %v9228_v23 }
0x11fe   :  { %v6724_v20 = vmul.f32 %v13858_v55, %v6723_v56  ;;  %v13878_v6 = vadd.f32 1.0, %v9230_v54  ;;  %9237 = vpow2.f32 %v8242_v46  ;;  %v9232_v38 = vpop.eup %9231  ;;  %v6619_v60 = vadd.f32 %v13783_v44, %v6618_v3  ;;  %vm6269_vm13 = vmor %vm6267_vm10, %vm6268_vm8 }
0x11ff   :  { %9239 = vtanh.f32 %v6961_v58  ;;  %v6264_v37 = vsub.f32 1.0, %v6263_v39  ;;  %v6745_v47 = vand.u32 2147483647, %v13869_v51  ;;  %v13928_v54 = vadd.f32 %v13807_v63, %v6525_v13 }
0x1200   :  { %9241 = vrcp.f32 %v13878_v6  ;;  %v6725_v24 = vadd.f32 %v13858_v55, %v6724_v20  ;;  %v9234_v31 = vpop.eup %9233  ;;  %v8290_v30 = vmul.f32 -1.442695, %v6619_v60  ;;  %v6286_v19 = vand.u32 2147483647, %v13878_v6 }
0x1201   :  { %v6265_v41 = vmul.f32 %v9228_v23, %v6264_v37  ;;  %9243 = vtanh.f32 %v6523_v61  ;;  %v13906_v11 = vadd.f32 1.0, %v9234_v31  ;;  %v6288_v61 = vand.u32 2147483648, %v13878_v6 }
0x1202   :  { %8354 = vmatmul.msk.f32.gmra.mxu2 %vm3544_vm15, %v13814_v45  ;;  %v6729_v18 = vsel %vm13898_vm11, %v13858_v55, %v6725_v24  ;;  %v6747_v55 = vand.u32 2147483648, %v13869_v51  ;;  %vm6741_vm14 = vweird.f32 %v13869_v51  ;;  %vm6282_vm0 = vweird.f32 %v13878_v6 }
0x1203   :  { %v13896_v15 = vpop.eup %9235  ;;  %v6266_v59 = vadd.f32 %v9228_v23, %v6265_v41  ;;  %9245 = vrcp.f32 %v13906_v11  ;;  %v6734_v14 = vsel %vm13891_vm9, %v6733_v53, %v6729_v18  ;;  %vm13936_vm1 = vcmp.eq.f32.partialorder %v6286_v19, 8.507059e+37 }
0x1204   :  { %v9238_v25 = vpop.eup %9237  ;;  %v6737_v4 = vmul.f32 %v13896_v15, %v13869_v51  ;;  %v6147_v62 = vpop.f32.mrf.mxu0  ;;  %9247 = vpow2.f32 %v8290_v30  ;;  %vm13944_vm4 = vcmp.eq.f32.partialorder %v6745_v47, 8.507059e+37  ;;  %v6748_v34 = vor.u32 1.1754944e-38, %v6747_v55 }
0x1205   :  { %v9240_v49 = vpop.eup %9239  ;;  %v6270_v5 = vsel %vm6269_vm13, %v9228_v23, %v6266_v59  ;;  %v13918_v28 = vadd.f32 1.0, %v9238_v25  ;;  %v6148_v45 = vadd.f32 %v13774_v57, %v6147_v62  ;;  %v13932_v20 = vpop.f32.mrf.mxu1  ;;  %v6289_v41 = vor.u32 1.1754944e-38, %v6288_v61 }
0x1206   :  { %v9242_v16 = vpop.eup %9241  ;;  %v6275_v12 = vsel %vm13902_vm12, %v6274_v42, %v6270_v5  ;;  %v6738_v46 = vsub.f32 1.0, %v6737_v4  ;;  %v6993_v27 = vmul.f32 %v9240_v49, %v6734_v14  ;;  %vm6742_vm5 = vweird.f32 %v13896_v15 }
0x1207   :  { %v6962_v43 = vmul.f32 %v9232_v38, %v6275_v12  ;;  %v6278_v56 = vmul.f32 %v9242_v16, %v13878_v6  ;;  %9249 = vrcp.f32 %v13918_v28  ;;  %v9244_v23 = vpop.eup %9243  ;;  %v8243_v58 = vmul.f32 -1.442695, %v6148_v45  ;;  %vm6743_vm2 = vmor %vm6741_vm14, %vm6742_vm5 }
0x1208   :  { %v6739_v10 = vmul.f32 %v13896_v15, %v6738_v46  ;;  %vm6283_vm3 = vweird.f32 %v9242_v16  ;;  %8303 = vmatmul.msk.f32.vlgmr.msrb.gmra.mxu3 %vm3544_vm15, %v6993_v27  ;;  %vm6756_vm6 = vweird.f32 %v13906_v11  ;;  %v6301_v42 = vand.u32 2147483647, %v13918_v28 }
0x1209   :  { %9251 = vtanh.f32 %v6962_v43  ;;  %v6279_v39 = vsub.f32 1.0, %v6278_v56  ;;  %v13941_v13 = vpop.eup %9245  ;;  %vm6284_vm7 = vmor %vm6282_vm0, %vm6283_vm3  ;;  %vm4120_vm9 = vcmp.gt.f32.partialorder %v13828_v52, 0.0  ;;  %v13999_v37 = vadd.f32 %v13778_v9, %v12751_v26 }
0x120a   :  { %9253 = vpow2.f32 %v8243_v58  ;;  %v9248_v24 = vpop.eup %9247  ;;  %v6752_v60 = vmul.f32 %v13941_v13, %v13906_v11  ;;  %8355 = vmatmul.msk.f32.gmra.mxu2 %vm3544_vm15, %v13820_v29  ;;  %v6740_v17 = vadd.f32 %v13896_v15, %v6739_v10  ;;  %vm6757_vm8 = vweird.f32 %v13941_v13 }
0x120b   :  { %v6280_v3 = vmul.f32 %v9242_v16, %v6279_v39  ;;  %v6621_v31 = vpop.f32.mrf.mxu2  ;;  %v13956_v59 = vadd.f32 1.0, %v9248_v24  ;;  %v6760_v39 = vand.u32 2147483647, %v13906_v11  ;;  %vm6297_vm11 = vweird.f32 %v13918_v28  ;;  %vm14007_vm12 = vmor %vm6756_vm6, %vm6757_vm8 }
0x120c   :  { %v6622_v2 = vadd.f32 %v13783_v44, %v6621_v31  ;;  %v6753_v29 = vsub.f32 1.0, %v6752_v60  ;;  %v6744_v12 = vsel %vm6743_vm2, %v13896_v15, %v6740_v17  ;;  %v6303_v15 = vand.u32 2147483648, %v13918_v28 }
0x120d   :  { %v13954_v53 = vpop.eup %9249  ;;  %v6281_v7 = vadd.f32 %v9242_v16, %v6280_v3  ;;  %v6150_v30 = vpop.f32.mrf.mxu0  ;;  %9255 = vrcp.f32 %v13956_v59  ;;  %v6749_v51 = vsel %vm13944_vm4, %v6748_v34, %v6744_v12  ;;  %vm4121_vm13 = vcmp.gt.f32.partialorder %v13832_v32, 0.0 }
0x120e   :  { %v6293_v25 = vmul.f32 %v13954_v53, %v13918_v28  ;;  %v6151_v4 = vadd.f32 %v13774_v57, %v6150_v30  ;;  %v8291_v49 = vmul.f32 -1.442695, %v6622_v2  ;;  %v6754_v56 = vmul.f32 %v13941_v13, %v6753_v29  ;;  %v13985_v55 = vpop.f32.mrf.mxu1 }
0x120f   :  { %v9252_v19 = vpop.eup %9251  ;;  %v6285_v47 = vsel %vm6284_vm7, %v9242_v16, %v6281_v7  ;;  %vm6298_vm10 = vweird.f32 %v13954_v53  ;;  %vm4122_vm0 = vcmp.gt.f32.partialorder %v13839_v40, 0.0  ;;  %v6304_v31 = vor.u32 1.1754944e-38, %v6303_v15 }
0x1210   :  { %v9254_v6 = vpop.eup %9253  ;;  %v6290_v18 = vsel %vm13936_vm1, %v6289_v41, %v6285_v47  ;;  %v6294_v5 = vsub.f32 1.0, %v6293_v25  ;;  %v8244_v62 = vmul.f32 -1.442695, %v6151_v4  ;;  %9257 = vpow2.f32 %v8291_v49  ;;  %vm14014_vm14 = vmor %vm6297_vm11, %vm6298_vm10  ;;  %v7189_v25 = vld [vmem:[%s15298_s23 + $0x38] sm:$0xff] }
0x1211   :  { %v6963_v16 = vmul.f32 %v9244_v23, %v6290_v18  ;;  %v13977_v46 = vadd.f32 1.0, %v9254_v6  ;;  %v6994_v43 = vmul.f32 %v9252_v19, %v6749_v51  ;;  %v6762_v23 = vand.u32 2147483648, %v13906_v11  ;;  %7250 = vmatpush.msrb.mxu0 %v7189_v25 }
0x1212   :  { %v6295_v45 = vmul.f32 %v13954_v53, %v6294_v5  ;;  %9259 = vpow2.f32 %v8244_v62  ;;  %8356 = vmatmul.msk.f32.gmra.mxu2 %vm3544_vm15, %v13822_v36  ;;  %v6755_v14 = vadd.f32 %v13941_v13, %v6754_v56  ;;  %vm6302_vm1 = vcmp.eq.f32.partialorder %v6301_v42, 8.507059e+37 }
0x1213   :  { %9261 = vtanh.f32 %v6963_v16  ;;  %8304 = vmatmul.msk.f32.gmra.mxu3 %vm3544_vm15, %v6994_v43  ;;  %v13995_v27 = vpop.eup %9255  ;;  %v6763_v60 = vor.u32 1.1754944e-38, %v6762_v23  ;;  %vm6761_vm3 = vcmp.eq.f32.partialorder %v6760_v39, 8.507059e+37  ;;  %v4139_v19 = vmul.f32 0.01, %v13882_v22 }
0x1214   :  { %v6296_v61 = vadd.f32 %v13954_v53, %v6295_v45  ;;  %9263 = vrcp.f32 %v13977_v46  ;;  %v6624_v58 = vpop.f32.mrf.mxu2  ;;  %v6767_v28 = vmul.f32 %v13995_v27, %v13956_v59  ;;  %v6759_v41 = vsel %vm14007_vm12, %v13941_v13, %v6755_v14 }
0x1215   :  { %v6625_v10 = vadd.f32 %v13783_v44, %v6624_v58  ;;  %v6153_v3 = vpop.f32.mrf.mxu0  ;;  %9265 = vtanh.f32 %v13928_v54  ;;  %v6764_v4 = vsel %vm6761_vm3, %v6763_v60, %v6759_v41  ;;  %v14044_v49 = vsel %vm4120_vm9, %v13828_v52, %v13849_v35 }
0x1216   :  { %v6154_v38 = vadd.f32 %v13774_v57, %v6153_v3  ;;  %v9258_v11 = vpop.eup %9257  ;;  %v6300_v34 = vsel %vm14014_vm14, %v13954_v53, %v6296_v61  ;;  %v6768_v2 = vsub.f32 1.0, %v6767_v28  ;;  %vm4123_vm4 = vcmp.gt.f32.partialorder %v13882_v22, 0.0  ;;  %v14064_v16 = vpop.f32.mrf.mxu1 }
0x1217   :  { %v8292_v24 = vmul.f32 -1.442695, %v6625_v10  ;;  %v14029_v17 = vadd.f32 1.0, %v9258_v11  ;;  %v6305_v47 = vsel %vm6302_vm1, %v6304_v31, %v6300_v34  ;;  %v4140_v18 = vmul.f32 0.01, %v13999_v37  ;;  %v7187_v34 = vld [vmem:[%s15298_s23 + $0x28] sm:$0xff] }
0x1218   :  { %v9260_v54 = vpop.eup %9259  ;;  %v8245_v29 = vmul.f32 -1.442695, %v6154_v38  ;;  %v14056_v62 = vsel %vm4121_vm13, %v13832_v32, %v13852_v21  ;;  %v14062_v52 = vsel %vm4122_vm0, %v13839_v40, %v13861_v1  ;;  %v6769_v51 = vmul.f32 %v13995_v27, %v6768_v2 }
0x1219   :  { %v9262_v7 = vpop.eup %9261  ;;  %v14031_v30 = vadd.f32 1.0, %v9260_v54  ;;  %9267 = vpow2.f32 %v8292_v24  ;;  %v6529_v45 = vadd.f32 %v13807_v63, %v13932_v20  ;;  %v14073_v21 = vsel %vm4123_vm4, %v13882_v22, %v4139_v19 }
0x121a   :  { %v14034_v53 = vpop.eup %9263  ;;  %v6995_v13 = vmul.f32 %v9262_v7, %v6764_v4  ;;  %9269 = vrcp.f32 %v14029_v17  ;;  %8357 = vmatmul.msk.f32.gmra.mxu2 %vm3544_vm15, %v13845_v48  ;;  %vm4124_vm5 = vcmp.gt.f32.partialorder %v13999_v37, 0.0  ;;  %v14078_v40 = vadd.f32 %v13778_v9, %v12759_v50 }
0x121b   :  { %v6308_v42 = vmul.f32 %v14034_v53, %v13977_v46  ;;  %v9266_v6 = vpop.eup %9265  ;;  %9271 = vrcp.f32 %v14031_v30  ;;  %vm6312_vm6 = vweird.f32 %v13977_v46  ;;  %vm6313_vm7 = vweird.f32 %v14034_v53 }
0x121c   :  { %v6627_v5 = vpop.f32.mrf.mxu2  ;;  %8305 = vmatmul.msk.f32.gmra.mxu3 %vm3544_vm15, %v6995_v13  ;;  %v6964_v35 = vmul.f32 %v9266_v6, %v6305_v47  ;;  %9273 = vpow2.f32 %v8245_v29  ;;  %v6316_v43 = vand.u32 2147483647, %v13977_v46  ;;  %v6318_v56 = vand.u32 2147483648, %v13977_v46  ;;  %vm14093_vm8 = vmor %vm6312_vm6, %vm6313_vm7 }
0x121d   :  { %v6309_v12 = vsub.f32 1.0, %v6308_v42  ;;  %v6156_v48 = vpop.f32.mrf.mxu0  ;;  %v6628_v22 = vadd.f32 %v13783_v44, %v6627_v5  ;;  %v6770_v61 = vadd.f32 %v13995_v27, %v6769_v51  ;;  %vm6772_vm2 = vweird.f32 %v13995_v27 }
0x121e   :  { %v6157_v32 = vadd.f32 %v13774_v57, %v6156_v48  ;;  %9275 = vtanh.f32 %v6964_v35  ;;  %vm6771_vm9 = vweird.f32 %v13956_v59  ;;  %v6777_v46 = vand.u32 2147483648, %v13956_v59  ;;  %v6537_v4 = vpop.f32.mrf.mxu1 }
0x121f   :  { %v6310_v1 = vmul.f32 %v14034_v53, %v6309_v12  ;;  %v9268_v20 = vpop.eup %9267  ;;  %9277 = vtanh.f32 %v6529_v45  ;;  %v14102_v39 = vsel %vm4124_vm5, %v13999_v37, %v4140_v18  ;;  %v6319_v28 = vor.u32 1.1754944e-38, %v6318_v56  ;;  %vm14117_vm10 = vmor %vm6771_vm9, %vm6772_vm2 }
0x1220   :  { %v8246_v15 = vmul.f32 -1.442695, %v6157_v32  ;;  %v14086_v23 = vpop.eup %9269  ;;  %v8293_v11 = vmul.f32 -1.442695, %v6628_v22  ;;  %v6775_v24 = vand.u32 2147483647, %v13956_v59  ;;  %v6532_v60 = vadd.f32 %v13807_v63, %v13985_v55 }
0x1221   :  { %v6311_v50 = vadd.f32 %v14034_v53, %v6310_v1  ;;  %v14091_v58 = vpop.eup %9271  ;;  %v6782_v36 = vmul.f32 %v14086_v23, %v14029_v17  ;;  %v4141_v41 = vmul.f32 0.01, %v14078_v40  ;;  %vm6317_vm11 = vcmp.eq.f32.partialorder %v6316_v43, 8.507059e+37  ;;  %v7188_v55 = vld [vmem:[%s15298_s23 + $0x30] sm:$0xff] }
0x1222   :  { %v9274_v10 = vpop.eup %9273  ;;  %v6323_v26 = vmul.f32 %v14091_v58, %v14031_v30  ;;  %9279 = vpow2.f32 %v8246_v15  ;;  %8358 = vmatmul.msk.f32.gmra.mxu2 %vm3544_vm15, %v13856_v8  ;;  %v6774_v8 = vsel %vm14117_vm10, %v13995_v27, %v6770_v61  ;;  %v14128_v7 = vadd.f32 1.0, %v9268_v20  ;;  %7251 = vmatpush.msrb.mxu0 %v7188_v55 }
0x1223   :  { %v6315_v3 = vsel %vm14093_vm8, %v14034_v53, %v6311_v50  ;;  %v14111_v38 = vadd.f32 1.0, %v9274_v10  ;;  %v6778_v2 = vor.u32 1.1754944e-38, %v6777_v46  ;;  %v6783_v59 = vsub.f32 1.0, %v6782_v36 }
0x1224   :  { %v6630_v37 = vpop.f32.mrf.mxu2  ;;  %v6320_v31 = vsel %vm6317_vm11, %v6319_v28, %v6315_v3  ;;  %v9276_v29 = vpop.eup %9275  ;;  %v6324_v25 = vsub.f32 1.0, %v6323_v26  ;;  %v14136_v13 = vadd.f32 %v13778_v9, %v12763_v33  ;;  %v14140_v27 = vadd.f32 %v13778_v9, %v12775_v0  ;;  %7252 = vmatpush.msrb.mxu0 %v7187_v34 }
0x1225   :  { %v6159_v54 = vpop.f32.mrf.mxu0  ;;  %9281 = vrcp.f32 %v14111_v38  ;;  %v6631_v53 = vadd.f32 %v13783_v44, %v6630_v37  ;;  %v9278_v47 = vpop.eup %9277  ;;  %vm6776_vm12 = vcmp.eq.f32.partialorder %v6775_v24, 8.507059e+37  ;;  %vm4125_vm13 = vcmp.gt.f32.partialorder %v14078_v40, 0.0 }
0x1226   :  { %v6160_v19 = vadd.f32 %v13774_v57, %v6159_v54  ;;  %9283 = vpow2.f32 %v8293_v11  ;;  %v6779_v18 = vsel %vm6776_vm12, %v6778_v2, %v6774_v8  ;;  %v6965_v5 = vmul.f32 %v9278_v47, %v6320_v31  ;;  %v6540_v37 = vpop.f32.mrf.mxu1 }
0x1227   :  { %9285 = vtanh.f32 %v6532_v60  ;;  %v6996_v33 = vmul.f32 %v9276_v29, %v6779_v18  ;;  %v6325_v12 = vmul.f32 %v14091_v58, %v6324_v25  ;;  %v8294_v48 = vmul.f32 -1.442695, %v6631_v53 }
0x1228   :  { %v9280_v42 = vpop.eup %9279  ;;  %v8247_v6 = vmul.f32 -1.442695, %v6160_v19  ;;  %9287 = vrcp.f32 %v14128_v7  ;;  %v6784_v0 = vmul.f32 %v14086_v23, %v6783_v59  ;;  %v14151_v51 = vmul.f32 0.01, %v14136_v13 }
0x1229   :  { %v14144_v35 = vadd.f32 1.0, %v9280_v42  ;;  %v14154_v45 = vmul.f32 0.01, %v14140_v27  ;;  %8306 = vmatmul.msk.f32.gmra.mxu3 %vm3544_vm15, %v6996_v33  ;;  %v14163_v1 = vsel %vm4125_vm13, %v14078_v40, %v4141_v41  ;;  %v6331_v20 = vand.u32 2147483647, %v14031_v30 }
0x122a   :  { %9289 = vpow2.f32 %v8247_v6  ;;  %8359 = vmatmul.msk.f32.gmra.mxu2 %vm3544_vm15, %v14044_v49  ;;  %v6333_v43 = vand.u32 2147483648, %v14031_v30  ;;  %v6535_v22 = vadd.f32 %v13807_v63, %v14064_v16  ;;  %vm6327_vm14 = vweird.f32 %v14031_v30 }
0x122b   :  { %v14148_v9 = vpop.eup %9281  ;;  %9291 = vrcp.f32 %v14144_v35  ;;  %vm6328_vm0 = vweird.f32 %v14091_v58  ;;  %vm6787_vm1 = vweird.f32 %v14086_v23  ;;  %v6326_v50 = vadd.f32 %v14091_v58, %v6325_v12 }
0x122c   :  { %v6633_v32 = vpop.f32.mrf.mxu2  ;;  %v6338_v56 = vmul.f32 %v14148_v9, %v14111_v38  ;;  %v9284_v15 = vpop.eup %9283  ;;  %9293 = vtanh.f32 %v6965_v5  ;;  %v6785_v14 = vadd.f32 %v14086_v23, %v6784_v0  ;;  %vm6786_vm3 = vweird.f32 %v14029_v17  ;;  %vm14201_vm6 = vmor %vm6327_vm14, %vm6328_vm0 }
0x122d   :  { %v9286_v40 = vpop.eup %9285  ;;  %9295 = vpow2.f32 %v8294_v48  ;;  %v6634_v10 = vadd.f32 %v13783_v44, %v6633_v32  ;;  %v6792_v3 = vand.u32 2147483648, %v14029_v17  ;;  %vm14182_vm4 = vcmp.eq.f32.partialorder %v6331_v20, 8.507059e+37  ;;  %vm14190_vm5 = vmor %vm6786_vm3, %vm6787_vm1 }
0x122e   :  { %v6162_v49 = vpop.f32.mrf.mxu0  ;;  %v14177_v46 = vpop.eup %9287  ;;  %v6339_v16 = vsub.f32 1.0, %v6338_v56  ;;  %v6334_v28 = vor.u32 1.1754944e-38, %v6333_v43  ;;  %v14186_v11 = vadd.f32 1.0, %v9284_v15  ;;  %v6790_v24 = vand.u32 2147483647, %v14029_v17 }
0x122f   :  { %v6163_v61 = vadd.f32 %v13774_v57, %v6162_v49  ;;  %9297 = vtanh.f32 %v6535_v22  ;;  %v6538_v54 = vadd.f32 %v13807_v63, %v6537_v4  ;;  %v6330_v17 = vsel %vm14201_vm6, %v14091_v58, %v6326_v50 }
0x1230   :  { %v9290_v36 = vpop.eup %9289  ;;  %v6346_v2 = vand.u32 2147483647, %v14111_v38  ;;  %v6789_v30 = vsel %vm14190_vm5, %v14086_v23, %v6785_v14  ;;  %v6340_v25 = vmul.f32 %v14148_v9, %v6339_v16  ;;  %v8295_v4 = vmul.f32 -1.442695, %v6634_v10  ;;  %v6543_v16 = vpop.f32.mrf.mxu1 }
0x1231   :  { %v14195_v41 = vpop.eup %9291  ;;  %v14206_v8 = vadd.f32 1.0, %v9290_v36  ;;  %v8248_v31 = vmul.f32 -1.442695, %v6163_v61  ;;  %v6793_v53 = vor.u32 1.1754944e-38, %v6792_v3  ;;  %v6797_v19 = vmul.f32 %v14177_v46, %v14128_v7 }
0x1232   :  { %v6353_v29 = vmul.f32 %v14195_v41, %v14144_v35  ;;  %v9294_v59 = vpop.eup %9293  ;;  %8360 = vmatmul.msk.f32.gmra.mxu2 %vm3544_vm15, %v14056_v62  ;;  %v6348_v55 = vand.u32 2147483648, %v14111_v38  ;;  %vm6791_vm7 = vcmp.eq.f32.partialorder %v6790_v24, 8.507059e+37  ;;  %v6335_v47 = vsel %vm14182_vm4, %v6334_v28, %v6330_v17 }
0x1233   :  { %9299 = vrcp.f32 %v14206_v8  ;;  %v9296_v58 = vpop.eup %9295  ;;  %v6794_v6 = vsel %vm6791_vm7, %v6793_v53, %v6789_v30  ;;  %vm6343_vm2 = vweird.f32 %v14148_v9  ;;  %v6361_v62 = vand.u32 2147483647, %v14144_v35 }
0x1234   :  { %9301 = vrcp.f32 %v14186_v11  ;;  %v6354_v42 = vsub.f32 1.0, %v6353_v29  ;;  %v6541_v18 = vadd.f32 %v13807_v63, %v6540_v37  ;;  %v6997_v5 = vmul.f32 %v9294_v59, %v6794_v6 }
0x1235   :  { %v6636_v23 = vpop.f32.mrf.mxu2  ;;  %9303 = vpow2.f32 %v8248_v31  ;;  %v14230_v33 = vpop.eup %9297  ;;  %v6341_v12 = vadd.f32 %v14148_v9, %v6340_v25  ;;  %v14233_v48 = vadd.f32 1.0, %v9296_v58  ;;  %v6966_v20 = vmul.f32 %v9286_v40, %v6335_v47 }
0x1236   :  { %9305 = vpow2.f32 %v8295_v4  ;;  %v6637_v0 = vadd.f32 %v13783_v44, %v6636_v23  ;;  %v6165_v32 = vpop.f32.mrf.mxu0  ;;  %vm6342_vm8 = vweird.f32 %v14111_v38  ;;  %8307 = vmatmul.msk.f32.gmra.mxu3 %vm3544_vm15, %v6997_v5  ;;  %v6798_v22 = vsub.f32 1.0, %v6797_v19 }
0x1237   :  { %9307 = vtanh.f32 %v6538_v54  ;;  %v6166_v43 = vadd.f32 %v13774_v57, %v6165_v32  ;;  %vm14241_vm9 = vcmp.eq.f32.partialorder %v6346_v2, 8.507059e+37  ;;  %v6349_v49 = vor.u32 1.1754944e-38, %v6348_v55  ;;  %vm14250_vm10 = vmor %vm6342_vm8, %vm6343_vm2 }
0x1238   :  { %v6355_v50 = vmul.f32 %v14195_v41, %v6354_v42  ;;  %v6363_v40 = vand.u32 2147483648, %v14144_v35  ;;  %9309 = vtanh.f32 %v6541_v18  ;;  %v8296_v10 = vmul.f32 -1.442695, %v6637_v0 }
0x1239   :  { %v14239_v56 = vpop.eup %9299  ;;  %v6345_v36 = vsel %vm14250_vm10, %v14148_v9, %v6341_v12  ;;  %vm6357_vm11 = vweird.f32 %v14144_v35  ;;  %vm14261_vm12 = vcmp.eq.f32.partialorder %v6361_v62, 8.507059e+37  ;;  %9311 = vrcp.f32 %v14233_v48 }
0x123a   :  { %v14246_v61 = vpop.eup %9301  ;;  %v6368_v14 = vmul.f32 %v14239_v56, %v14206_v8  ;;  %8361 = vmatmul.msk.f32.gmra.mxu2 %vm3544_vm15, %v14062_v52  ;;  %9313 = vtanh.f32 %v6966_v20  ;;  %vm6358_vm13 = vweird.f32 %v14195_v41  ;;  %v8249_v37 = vmul.f32 -1.442695, %v6166_v43 }
0x123b   :  { %v9304_v3 = vpop.eup %9303  ;;  %v6356_v9 = vadd.f32 %v14195_v41, %v6355_v50  ;;  %v6799_v54 = vmul.f32 %v14177_v46, %v6798_v22  ;;  %vm6802_vm14 = vweird.f32 %v14177_v46  ;;  %v6350_v52 = vsel %vm14241_vm9, %v6349_v49, %v6345_v36  ;;  %vm14283_vm0 = vmor %vm6357_vm11, %vm6358_vm13 }
0x123c   :  { %v14269_v28 = vadd.f32 1.0, %v9304_v3  ;;  %v9306_v24 = vpop.eup %9305  ;;  %v6369_v60 = vsub.f32 1.0, %v6368_v14  ;;  %v6812_v17 = vmul.f32 %v14246_v61, %v14186_v11  ;;  %v6364_v2 = vor.u32 1.1754944e-38, %v6363_v40 }
0x123d   :  { %v9308_v31 = vpop.eup %9307  ;;  %9315 = vpow2.f32 %v8296_v10  ;;  %v6639_v29 = vpop.f32.mrf.mxu2  ;;  %v6800_v59 = vadd.f32 %v14177_v46, %v6799_v54  ;;  %vm6801_vm1 = vweird.f32 %v14128_v7  ;;  %v6805_v25 = vand.u32 2147483647, %v14128_v7 }
0x123e   :  { %9317 = vrcp.f32 %v14269_v28  ;;  %v6168_v4 = vpop.f32.mrf.mxu0  ;;  %v14291_v53 = vpop.eup %9309  ;;  %v6376_v58 = vand.u32 2147483647, %v14206_v8  ;;  %v14294_v19 = vadd.f32 1.0, %v9306_v24  ;;  %vm14298_vm3 = vmor %vm6801_vm1, %vm6802_vm14  ;;  %v6807_v55 = vand.u32 2147483648, %v14128_v7 }
0x123f   :  { %9319 = vpow2.f32 %v8249_v37  ;;  %v14303_v23 = vpop.eup %9311  ;;  %v6360_v47 = vsel %vm14283_vm0, %v14195_v41, %v6356_v9  ;;  %v6370_v42 = vmul.f32 %v14239_v56, %v6369_v60  ;;  %v6544_v6 = vadd.f32 %v13807_v63, %v6543_v16 }
0x1240   :  { %v6804_v62 = vsel %vm14298_vm3, %v14177_v46, %v6800_v59  ;;  %v9314_v18 = vpop.eup %9313  ;;  %v6967_v5 = vmul.f32 %v14230_v33, %v6350_v52  ;;  %v6378_v12 = vand.u32 2147483648, %v14206_v8  ;;  %v6808_v7 = vor.u32 1.1754944e-38, %v6807_v55 }
0x1241   :  { %v6640_v0 = vadd.f32 %v13783_v44, %v6639_v29  ;;  %v6813_v32 = vsub.f32 1.0, %v6812_v17  ;;  %vm6372_vm4 = vweird.f32 %v14206_v8  ;;  %vm6806_vm5 = vcmp.eq.f32.partialorder %v6805_v25, 8.507059e+37  ;;  %v6546_v44 = vpop.f32.mrf.mxu1  ;;  %v14372_v29 = vld [vmem:[#allocation12] ss:$0 sm:$0xff] }
0x1242   :  { %v6169_v41 = vadd.f32 %v13774_v57, %v6168_v4  ;;  %8362 = vmatmul.msk.f32.gmra.mxu2 %vm3544_vm15, %v14073_v21  ;;  %v6365_v46 = vsel %vm14261_vm12, %v6364_v2, %v6360_v47  ;;  %v14324_v33 = vmul.f32 %v14303_v23, %v14233_v48  ;;  %vm14326_vm6 = vcmp.eq.f32.partialorder %v6376_v58, 8.507059e+37  ;;  %v14381_v4 = vld [vmem:[#allocation9] ss:$0 sm:$0xff] }
0x1243   :  { %v9316_v20 = vpop.eup %9315  ;;  %9321 = vrcp.f32 %v14294_v19  ;;  %v6809_v22 = vsel %vm6806_vm5, %v6808_v7, %v6804_v62  ;;  %v6371_v21 = vadd.f32 %v14239_v56, %v6370_v42  ;;  %vm6373_vm7 = vweird.f32 %v14239_v56 }
0x1244   :  { %v14331_v57 = vpop.eup %9317  ;;  %v6998_v15 = vmul.f32 %v9314_v18, %v6809_v22  ;;  %v8250_v49 = vmul.f32 -1.442695, %v6169_v41  ;;  %vm4126_vm2 = vcmp.gt.f32.partialorder %v14136_v13, 0.0  ;;  %9323 = vtanh.f32 %v6967_v5  ;;  %vm14347_vm8 = vmor %vm6372_vm4, %vm6373_vm7 }
0x1245   :  { %v9320_v50 = vpop.eup %9319  ;;  %v6379_v38 = vor.u32 1.1754944e-38, %v6378_v12  ;;  %v6383_v40 = vmul.f32 %v14331_v57, %v14269_v28  ;;  %v8297_v14 = vmul.f32 -1.442695, %v6640_v0  ;;  %v6968_v16 = vmul.f32 %v9308_v31, %v6365_v46  ;;  %v6642_v34 = vpop.f32.mrf.mxu2 }
0x1246   :  { %9325 = vtanh.f32 %v6544_v6  ;;  %v14338_v10 = vadd.f32 1.0, %v9320_v50  ;;  %8308 = vmatmul.msk.f32.gmra.mxu3 %vm3544_vm15, %v6998_v15  ;;  %v6814_v3 = vmul.f32 %v14246_v61, %v6813_v32  ;;  %v6828_v36 = vsub.f32 1.0, %v14324_v33  ;;  %v6171_v8 = vpop.f32.mrf.mxu0 }
0x1247   :  { %v6384_v37 = vsub.f32 1.0, %v6383_v40  ;;  %9327 = vpow2.f32 %v8250_v49  ;;  %vm6817_vm9 = vweird.f32 %v14246_v61  ;;  %v6375_v24 = vsel %vm14347_vm8, %v14239_v56, %v6371_v21  ;;  %v14413_v21 = vld [vmem:[#allocation10] ss:$0 sm:$0xff] }
0x1248   :  { %v14355_v9 = vadd.f32 1.0, %v9316_v20  ;;  %9329 = vrcp.f32 %v14338_v10  ;;  %v6820_v60 = vand.u32 2147483647, %v14186_v11  ;;  %v6815_v31 = vadd.f32 %v14246_v61, %v6814_v3  ;;  %v7186_v20 = vld [vmem:[%s15298_s23 + $0x20] sm:$0xff] }
0x1249   :  { %v14359_v54 = vpop.eup %9321  ;;  %9331 = vpow2.f32 %v8297_v14  ;;  %vm6816_vm10 = vweird.f32 %v14186_v11  ;;  %v6822_v52 = vand.u32 2147483648, %v14186_v11  ;;  %v6385_v17 = vmul.f32 %v14331_v57, %v6384_v37  ;;  %7253 = vmatpush.msrb.mxu0 %v7186_v20 }
0x124a   :  { %9333 = vtanh.f32 %v6968_v16  ;;  %v6547_v56 = vadd.f32 %v13807_v63, %v6546_v44  ;;  %vm14368_vm11 = vmor %vm6816_vm10, %vm6817_vm9  ;;  %v6643_v30 = vadd.f32 %v14372_v29, %v6642_v34  ;;  %8363 = vmatmul.msk.f32.gmra.mxu2 %vm3544_vm15, %v14102_v39  ;;  %v9324_v59 = vpop.eup %9323  ;;  %v6391_v11 = vand.u32 2147483647, %v14269_v28 }
0x124b   :  { %v6819_v63 = vsel %vm14368_vm11, %v14246_v61, %v6815_v31  ;;  %v6823_v25 = vor.u32 1.1754944e-38, %v6822_v52  ;;  %v6172_v58 = vadd.f32 %v14381_v4, %v6171_v8  ;;  %v6380_v55 = vsel %vm14326_vm6, %v6379_v38, %v6375_v24  ;;  %v6549_v61 = vpop.f32.mrf.mxu1 }
0x124c   :  { %v14384_v35 = vpop.eup %9325  ;;  %v14390_v39 = vmul.f32 %v14359_v54, %v14294_v19  ;;  %v6393_v47 = vand.u32 2147483648, %v14269_v28  ;;  %vm6821_vm12 = vcmp.eq.f32.partialorder %v6820_v60, 8.507059e+37  ;;  %vm6388_vm13 = vweird.f32 %v14331_v57 }
0x124d   :  { %v9328_v42 = vpop.eup %9327  ;;  %9335 = vrcp.f32 %v14355_v9  ;;  %v6824_v6 = vsel %vm6821_vm12, %v6823_v25, %v6819_v63  ;;  %v8298_v62 = vmul.f32 -1.442695, %v6643_v30  ;;  %v6386_v5 = vadd.f32 %v14331_v57, %v6385_v17  ;;  %v6645_v50 = vpop.f32.mrf.mxu2 }
0x124e   :  { %v14395_v18 = vpop.eup %9329  ;;  %v14398_v12 = vadd.f32 1.0, %v9328_v42  ;;  %v6999_v7 = vmul.f32 %v9324_v59, %v6824_v6  ;;  %v8251_v0 = vmul.f32 -1.442695, %v6172_v58  ;;  %vm6387_vm14 = vweird.f32 %v14269_v28  ;;  %v6174_v14 = vpop.f32.mrf.mxu0 }
0x124f   :  { %v9332_v32 = vpop.eup %9331  ;;  %v6398_v41 = vmul.f32 %v14395_v18, %v14338_v10  ;;  %9337 = vtanh.f32 %v6547_v56  ;;  %v4158_v46 = vsel %vm4126_vm2, %v14136_v13, %v14151_v51  ;;  %vm14408_vm0 = vcmp.eq.f32.partialorder %v6391_v11, 8.507059e+37  ;;  %vm14420_vm1 = vmor %vm6387_vm14, %vm6388_vm13 }
0x1250   :  { %v9334_v43 = vpop.eup %9333  ;;  %v6394_v22 = vor.u32 1.1754944e-38, %v6393_v47  ;;  %9339 = vrcp.f32 %v14398_v12  ;;  %v6550_v28 = vadd.f32 %v14413_v21, %v6549_v61  ;;  %8309 = vmatmul.msk.f32.gmra.mxu3 %vm3544_vm15, %v6999_v7  ;;  %v6969_v15 = vmul.f32 %v14291_v53, %v6380_v55 }
0x1251   :  { %v6399_v51 = vsub.f32 1.0, %v6398_v41  ;;  %9341 = vpow2.f32 %v8298_v62  ;;  %v6829_v49 = vmul.f32 %v14303_v23, %v6828_v36  ;;  %v6843_v38 = vsub.f32 1.0, %v14390_v39 }
0x1252   :  { %v6390_v40 = vsel %vm14420_vm1, %v14331_v57, %v6386_v5  ;;  %v14431_v53 = vadd.f32 1.0, %v9332_v32  ;;  %9343 = vpow2.f32 %v8251_v0  ;;  %8364 = vmatmul.msk.f32.gmra.mxu2 %vm3544_vm15, %v14163_v1  ;;  %vm4127_vm3 = vcmp.gt.f32.partialorder %v14140_v27, 0.0 }
0x1253   :  { %v14436_v16 = vpop.eup %9335  ;;  %v6400_v33 = vmul.f32 %v14395_v18, %v6399_v51  ;;  %v6830_v3 = vadd.f32 %v14303_v23, %v6829_v49  ;;  %vm6831_vm4 = vweird.f32 %v14233_v48  ;;  %vm6832_vm5 = vweird.f32 %v14303_v23 }
0x1254   :  { %vm6403_vm6 = vweird.f32 %v14395_v18  ;;  %vm14443_vm7 = vmor %vm6831_vm4, %vm6832_vm5  ;;  %v6835_v1 = vand.u32 2147483647, %v14233_v48  ;;  %v6837_v36 = vand.u32 2147483648, %v14233_v48  ;;  %v6646_v26 = vadd.f32 %v14372_v29, %v6645_v50 }
0x1255   :  { %v9338_v37 = vpop.eup %9337  ;;  %v6401_v34 = vadd.f32 %v14395_v18, %v6400_v33  ;;  %v6406_v24 = vand.u32 2147483647, %v14338_v10  ;;  %v6408_v60 = vand.u32 2147483648, %v14338_v10  ;;  %v6834_v8 = vsel %vm14443_vm7, %v14303_v23, %v6830_v3  ;;  %v7185_v33 = vld [vmem:[%s15298_s23 + $0x18] sm:$0xff] }
0x1256   :  { %v14456_v31 = vpop.eup %9339  ;;  %vm6402_vm2 = vweird.f32 %v14338_v10  ;;  %v6838_v52 = vor.u32 1.1754944e-38, %v6837_v36  ;;  %v8299_v17 = vmul.f32 -1.442695, %v6646_v26  ;;  %v6175_v48 = vadd.f32 %v14381_v4, %v6174_v14  ;;  %v6552_v10 = vpop.f32.mrf.mxu1  ;;  %7254 = vmatpush.msrb.mxu0 %v7185_v33 }
0x1257   :  { %v9342_v56 = vpop.eup %9341  ;;  %v6395_v2 = vsel %vm14408_vm0, %v6394_v22, %v6390_v40  ;;  %v14464_v30 = vmul.f32 %v14436_v16, %v14355_v9  ;;  %vm14468_vm8 = vmor %vm6402_vm2, %vm6403_vm6  ;;  %9345 = vtanh.f32 %v6550_v28  ;;  %vm6836_vm9 = vcmp.eq.f32.partialorder %v6835_v1, 8.507059e+37 }
0x1258   :  { %v9344_v59 = vpop.eup %9343  ;;  %v6405_v11 = vsel %vm14468_vm8, %v14395_v18, %v6401_v34  ;;  %9347 = vrcp.f32 %v14431_v53  ;;  %v6413_v63 = vmul.f32 %v14456_v31, %v14398_v12  ;;  %v6839_v25 = vsel %vm6836_vm9, %v6838_v52, %v6834_v8  ;;  %v6648_v18 = vpop.f32.mrf.mxu2 }
0x1259   :  { %vm6407_vm10 = vcmp.eq.f32.partialorder %v6406_v24, 8.507059e+37  ;;  %v6409_v58 = vor.u32 1.1754944e-38, %v6408_v60  ;;  %v14478_v55 = vadd.f32 1.0, %v9344_v59  ;;  %v7000_v39 = vmul.f32 %v9334_v43, %v6839_v25 }
0x125a   :  { %v6970_v47 = vmul.f32 %v14384_v35, %v6395_v2  ;;  %9349 = vpow2.f32 %v8299_v17  ;;  %v8252_v42 = vmul.f32 -1.442695, %v6175_v48  ;;  %v6844_v61 = vmul.f32 %v14359_v54, %v6843_v38  ;;  %8365 = vmatmul.msk.f32.gmra.mxu2 %vm3544_vm15, %v4158_v46  ;;  %v6177_v35 = vpop.f32.mrf.mxu0 }
0x125b   :  { %9351 = vtanh.f32 %v6969_v15  ;;  %v6410_v6 = vsel %vm6407_vm10, %v6409_v58, %v6405_v11  ;;  %v14483_v62 = vadd.f32 1.0, %v9342_v56  ;;  %8310 = vmatmul.msk.f32.gmra.mxu3 %vm3544_vm15, %v7000_v39  ;;  %v6414_v5 = vsub.f32 1.0, %v6413_v63 }
0x125c   :  { %9353 = vrcp.f32 %v14478_v55  ;;  %v6845_v7 = vadd.f32 %v14359_v54, %v6844_v61  ;;  %vm6847_vm11 = vweird.f32 %v14359_v54  ;;  %v6858_v32 = vsub.f32 1.0, %v14464_v30 }
0x125d   :  { %v14489_v0 = vpop.eup %9345  ;;  %v6553_v41 = vadd.f32 %v14413_v21, %v6552_v10  ;;  %9355 = vpow2.f32 %v8252_v42  ;;  %v4159_v20 = vsel %vm4127_vm3, %v14140_v27, %v14154_v45  ;;  %v6971_v43 = vmul.f32 %v9338_v37, %v6410_v6 }
0x125e   :  { %v14497_v46 = vpop.eup %9347  ;;  %9357 = vtanh.f32 %v6970_v47  ;;  %vm6417_vm12 = vweird.f32 %v14398_v12  ;;  %vm6846_vm13 = vweird.f32 %v14294_v19  ;;  %v6850_v44 = vand.u32 2147483647, %v14294_v19 }
0x125f   :  { %v6421_v22 = vand.u32 2147483647, %v14398_v12  ;;  %v6423_v28 = vand.u32 2147483648, %v14398_v12  ;;  %9359 = vrcp.f32 %v14483_v62  ;;  %vm14507_vm14 = vmor %vm6846_vm13, %vm6847_vm11  ;;  %v6852_v45 = vand.u32 2147483648, %v14294_v19  ;;  %v6555_v19 = vpop.f32.mrf.mxu1 }
0x1260   :  { %v9350_v15 = vpop.eup %9349  ;;  %v6415_v13 = vmul.f32 %v14456_v31, %v6414_v5  ;;  %v6849_v51 = vsel %vm14507_vm14, %v14359_v54, %v6845_v7  ;;  %v6649_v49 = vadd.f32 %v14372_v29, %v6648_v18  ;;  %v6178_v50 = vadd.f32 %v14381_v4, %v6177_v35  ;;  %v6651_v30 = vpop.f32.mrf.mxu2 }
0x1261   :  { %v9352_v38 = vpop.eup %9351  ;;  %v14520_v40 = vmul.f32 %v14497_v46, %v14431_v53  ;;  %vm6418_vm0 = vweird.f32 %v14456_v31  ;;  %9361 = vtanh.f32 %v6553_v41  ;;  %v6853_v14 = vor.u32 1.1754944e-38, %v6852_v45 }
0x1262   :  { %v14524_v3 = vpop.eup %9353  ;;  %9363 = vtanh.f32 %v6971_v43  ;;  %vm6851_vm1 = vcmp.eq.f32.partialorder %v6850_v44, 8.507059e+37  ;;  %v8300_v54 = vmul.f32 -1.442695, %v6649_v49  ;;  %v8253_v57 = vmul.f32 -1.442695, %v6178_v50  ;;  %8366 = vmatmul.msk.f32.gmra.mxu2 %vm3544_vm15, %v4159_v20  ;;  %v6180_v11 = vpop.f32.mrf.mxu0  ;;  %vm14553_vm4 = vmor %vm6417_vm12, %vm6418_vm0 }
0x1263   :  { %v9356_v1 = vpop.eup %9355  ;;  %v6428_v36 = vmul.f32 %v14524_v3, %v14478_v55  ;;  %v14529_v26 = vadd.f32 1.0, %v9350_v15  ;;  %v6854_v37 = vsel %vm6851_vm1, %v6853_v14, %v6849_v51  ;;  %v6859_v34 = vmul.f32 %v14436_v16, %v6858_v32 }
0x1264   :  { %v9358_v24 = vpop.eup %9357  ;;  %v6416_v60 = vadd.f32 %v14456_v31, %v6415_v13  ;;  %v14533_v8 = vadd.f32 1.0, %v9356_v1  ;;  %v7001_v52 = vmul.f32 %v9352_v38, %v6854_v37  ;;  %9365 = vpow2.f32 %v8300_v54 }
0x1265   :  { %v14535_v17 = vpop.eup %9359  ;;  %vm14537_vm3 = vcmp.eq.f32.partialorder %v6421_v22, 8.507059e+37  ;;  %v6424_v56 = vor.u32 1.1754944e-38, %v6423_v28  ;;  %v6429_v2 = vsub.f32 1.0, %v6428_v36  ;;  %9367 = vpow2.f32 %v8253_v57 }
0x1266   :  { %v6436_v23 = vand.u32 2147483647, %v14478_v55  ;;  %v6438_v10 = vand.u32 2147483648, %v14478_v55  ;;  %9369 = vrcp.f32 %v14533_v8  ;;  %v6556_v59 = vadd.f32 %v14413_v21, %v6555_v19  ;;  %8311 = vmatmul.msk.f32.gmra.mxu3 %vm3544_vm15, %v7001_v52  ;;  %v7184_v19 = vld [vmem:[%s15298_s23 + $0x10] sm:$0xff] }
0x1267   :  { %v14546_v63 = vpop.eup %9361  ;;  %v6873_v25 = vsub.f32 1.0, %v14520_v40  ;;  %9371 = vrcp.f32 %v14529_v26  ;;  %v6860_v39 = vadd.f32 %v14436_v16, %v6859_v34  ;;  %vm6862_vm5 = vweird.f32 %v14436_v16  ;;  %v6558_v43 = vpop.f32.mrf.mxu1  ;;  %7255 = vmatpush.msrb.mxu0 %v7184_v19 }
0x1268   :  { %v14560_v47 = vpop.eup %9363  ;;  %v6420_v42 = vsel %vm14553_vm4, %v14456_v31, %v6416_v60  ;;  %v6887_v61 = vmul.f32 %v14535_v17, %v14483_v62  ;;  %v6430_v12 = vmul.f32 %v14524_v3, %v6429_v2  ;;  %v6867_v6 = vand.u32 2147483648, %v14355_v9  ;;  %v6654_v57 = vpop.f32.mrf.mxu2 }
0x1269   :  { %vm6861_vm6 = vweird.f32 %v14355_v9  ;;  %v6865_v18 = vand.u32 2147483647, %v14355_v9  ;;  %v6652_v5 = vadd.f32 %v14372_v29, %v6651_v30  ;;  %v6181_v7 = vadd.f32 %v14381_v4, %v6180_v11 }
0x126a   :  { %v9366_v35 = vpop.eup %9365  ;;  %vm6432_vm7 = vweird.f32 %v14478_v55  ;;  %vm14574_vm2 = vcmp.eq.f32.partialorder %v6436_v23, 8.507059e+37  ;;  %v6439_v32 = vor.u32 1.1754944e-38, %v6438_v10  ;;  %9373 = vtanh.f32 %v6556_v59  ;;  %vm14580_vm8 = vmor %vm6861_vm6, %vm6862_vm5 }
0x126b   :  { %v9368_v9 = vpop.eup %9367  ;;  %v6425_v20 = vsel %vm14537_vm3, %v6424_v56, %v6420_v42  ;;  %vm6433_vm9 = vweird.f32 %v14524_v3  ;;  %v14587_v4 = vadd.f32 1.0, %v9366_v35  ;;  %v6864_v44 = vsel %vm14580_vm8, %v14436_v16, %v6860_v39 }
0x126c   :  { %v14592_v22 = vpop.eup %9369  ;;  %v6431_v28 = vadd.f32 %v14524_v3, %v6430_v12  ;;  %v14595_v27 = vadd.f32 1.0, %v9368_v9  ;;  %v6868_v45 = vor.u32 1.1754944e-38, %v6867_v6  ;;  %v8301_v15 = vmul.f32 -1.442695, %v6652_v5  ;;  %vm14611_vm11 = vmor %vm6432_vm7, %vm6433_vm9 }
0x126d   :  { %v14597_v13 = vpop.eup %9371  ;;  %v6888_v51 = vsub.f32 1.0, %v6887_v61  ;;  %v6443_v49 = vmul.f32 %v14592_v22, %v14533_v8  ;;  %vm6866_vm10 = vcmp.eq.f32.partialorder %v6865_v18, 8.507059e+37  ;;  %v8254_v50 = vmul.f32 -1.442695, %v6181_v7 }
0x126e   :  { %v6972_v38 = vmul.f32 %v14489_v0, %v6425_v20  ;;  %9375 = vrcp.f32 %v14595_v27  ;;  %v14604_v16 = vadd.f32 %v14413_v21, %v6558_v43  ;;  %v6869_v40 = vsel %vm6866_vm10, %v6868_v45, %v6864_v44 }
0x126f   :  { %v6444_v33 = vsub.f32 1.0, %v6443_v49  ;;  %9377 = vrcp.f32 %v14587_v4  ;;  %v7002_v0 = vmul.f32 %v9358_v24, %v6869_v40  ;;  %v6874_v54 = vmul.f32 %v14497_v46, %v6873_v25  ;;  %v7183_v24 = vld [vmem:[%s15298_s23 + $0x8] sm:$0xff] }
0x1270   :  { %v14617_v1 = vpop.eup %9373  ;;  %v6435_v36 = vsel %vm14611_vm11, %v14524_v3, %v6431_v28  ;;  %v6902_v55 = vmul.f32 %v14597_v13, %v14529_v26  ;;  %9379 = vpow2.f32 %v8301_v15  ;;  %vm6876_vm12 = vweird.f32 %v14431_v53  ;;  %7256 = vmatpush.msrb.mxu0 %v7183_v24  ;;  %v7370_v24 = vld [vmem:[%s15351_s6 + $0x38] sm:$0xff] }
0x1271   :  { %v6445_v37 = vmul.f32 %v14592_v22, %v6444_v33  ;;  %8312 = vmatmul.msk.f32.gmra.mxu3 %vm3544_vm15, %v7002_v0  ;;  %9381 = vpow2.f32 %v8254_v50  ;;  %v6875_v34 = vadd.f32 %v14497_v46, %v6874_v54  ;;  %vm6877_vm13 = vweird.f32 %v14497_v46  ;;  %v6561_v33 = vpop.f32.mrf.mxu1  ;;  %7427 = vmatpush.msra.mxu1 %v7370_v24 }
0x1272   :  { %9383 = vtanh.f32 %v6972_v38  ;;  %vm14630_vm14 = vmor %vm6876_vm12, %vm6877_vm13  ;;  %v6880_v3 = vand.u32 2147483647, %v14431_v53  ;;  %v6882_v52 = vand.u32 2147483648, %v14431_v53  ;;  %v6655_v48 = vadd.f32 %v14372_v29, %v6654_v57 }
0x1273   :  { %v6440_v56 = vsel %vm14574_vm2, %v6439_v32, %v6435_v36  ;;  %vm6447_vm0 = vweird.f32 %v14533_v8  ;;  %v6879_v2 = vsel %vm14630_vm14, %v14497_v46, %v6875_v34  ;;  %v6889_v30 = vmul.f32 %v14535_v17, %v6888_v51  ;;  %v7182_v34 = vld [vmem:[%s15298_s23] sm:$0xff] }
0x1274   :  { %v14644_v23 = vpop.eup %9375  ;;  %v6903_v10 = vsub.f32 1.0, %v6902_v55  ;;  %v6451_v59 = vand.u32 2147483647, %v14533_v8  ;;  %v6883_v53 = vor.u32 1.1754944e-38, %v6882_v52  ;;  %v8302_v11 = vmul.f32 -1.442695, %v6655_v48  ;;  %7257 = vmatpush.msrb.mxu0 %v7182_v34 }
0x1275   :  { %v14647_v29 = vpop.eup %9377  ;;  %v6446_v25 = vadd.f32 %v14592_v22, %v6445_v37  ;;  %vm6448_vm1 = vweird.f32 %v14592_v22  ;;  %v6458_v58 = vmul.f32 %v14644_v23, %v14595_v27  ;;  %vm6881_vm3 = vcmp.eq.f32.partialorder %v6880_v3, 8.507059e+37 }
0x1276   :  { %v9380_v46 = vpop.eup %9379  ;;  %v6973_v39 = vmul.f32 %v14546_v63, %v6440_v56  ;;  %v6453_v42 = vand.u32 2147483648, %v14533_v8  ;;  %v6884_v61 = vsel %vm6881_vm3, %v6883_v53, %v6879_v2  ;;  %9385 = vpow2.f32 %v8302_v11  ;;  %vm14661_vm4 = vmor %vm6447_vm0, %vm6448_vm1 }
0x1277   :  { %v9382_v12 = vpop.eup %9381  ;;  %v6459_v6 = vsub.f32 1.0, %v6458_v58  ;;  %v14655_v18 = vadd.f32 1.0, %v9380_v46  ;;  %v7003_v5 = vmul.f32 %v14560_v47, %v6884_v61  ;;  %v6890_v7 = vadd.f32 %v14535_v17, %v6889_v30 }
0x1278   :  { %v9384_v35 = vpop.eup %9383  ;;  %v6917_v63 = vmul.f32 %v14647_v29, %v14587_v4  ;;  %v14667_v32 = vadd.f32 1.0, %v9382_v12  ;;  %vm6892_vm5 = vweird.f32 %v14535_v17  ;;  %v6897_v41 = vand.u32 2147483648, %v14483_v62 }
0x1279   :  { %v6450_v47 = vsel %vm14661_vm4, %v14592_v22, %v6446_v25  ;;  %8313 = vmatmul.msk.f32.gmra.mxu3 %vm3544_vm15, %v7003_v5  ;;  %vm6891_vm6 = vweird.f32 %v14483_v62  ;;  %v6895_v8 = vand.u32 2147483647, %v14483_v62  ;;  %v6904_v9 = vmul.f32 %v14597_v13, %v6903_v10 }
0x127a   :  { %vm6452_vm7 = vcmp.eq.f32.partialorder %v6451_v59, 8.507059e+37  ;;  %v6454_v20 = vor.u32 1.1754944e-38, %v6453_v42  ;;  %v6460_v43 = vmul.f32 %v14644_v23, %v6459_v6  ;;  %9387 = vrcp.f32 %v14655_v18  ;;  %vm14680_vm2 = vmor %vm6891_vm6, %vm6892_vm5 }
0x127b   :  { %v6466_v22 = vand.u32 2147483647, %v14595_v27  ;;  %v6468_v28 = vand.u32 2147483648, %v14595_v27  ;;  %9389 = vrcp.f32 %v14667_v32  ;;  %v6894_v62 = vsel %vm14680_vm2, %v14535_v17, %v6890_v7 }
0x127c   :  { %v9386_v45 = vpop.eup %9385  ;;  %9391 = vtanh.f32 %v6973_v39  ;;  %v6455_v15 = vsel %vm6452_vm7, %v6454_v20, %v6450_v47  ;;  %v6918_v51 = vsub.f32 1.0, %v6917_v63  ;;  %v6898_v49 = vor.u32 1.1754944e-38, %v6897_v41  ;;  %v14752_v63 = vld [vmem:[#allocation13] ss:$0 sm:$0xff] }
0x127d   :  { %v14690_v50 = vadd.f32 1.0, %v9386_v45  ;;  %vm6896_vm8 = vcmp.eq.f32.partialorder %v6895_v8, 8.507059e+37  ;;  %v6905_v38 = vadd.f32 %v14597_v13, %v6904_v9  ;;  %vm6907_vm9 = vweird.f32 %v14597_v13 }
0x127e   :  { %v6461_v40 = vadd.f32 %v14644_v23, %v6460_v43  ;;  %vm6463_vm10 = vweird.f32 %v14644_v23  ;;  %v6899_v19 = vsel %vm6896_vm8, %v6898_v49, %v6894_v62  ;;  %v6912_v14 = vand.u32 2147483648, %v14529_v26 }
0x127f   :  { %v6974_v17 = vmul.f32 %v14617_v1, %v6455_v15  ;;  %v7004_v0 = vmul.f32 %v9384_v35, %v6899_v19  ;;  %vm6906_vm11 = vweird.f32 %v14529_v26  ;;  %v6910_v54 = vand.u32 2147483647, %v14529_v26 }
0x1280   :  { %v14700_v57 = vpop.eup %9387  ;;  %vm6462_vm12 = vweird.f32 %v14595_v27  ;;  %9393 = vrcp.f32 %v14690_v50  ;;  %vm14704_vm13 = vmor %vm6906_vm11, %vm6907_vm9  ;;  %v6919_v1 = vmul.f32 %v14647_v29, %v6918_v51  ;;  %v6913_v48 = vor.u32 1.1754944e-38, %v6912_v14  ;;  %v7369_v51 = vld [vmem:[%s15351_s6 + $0x30] sm:$0xff] }
0x1281   :  { %v9390_v55 = vpop.eup %9389  ;;  %vm14709_vm14 = vmor %vm6462_vm12, %vm6463_vm10  ;;  %9395 = vtanh.f32 %v14604_v16  ;;  %v6932_v26 = vmul.f32 %v14700_v57, %v14655_v18  ;;  %8314 = vmatmul.msk.f32.gmra.mxu3 %vm3544_vm15, %v7004_v0  ;;  %v6909_v27 = vsel %vm14704_vm13, %v14597_v13, %v6905_v38  ;;  %v6562_v16 = vadd.f32 %v14413_v21, %v6561_v33  ;;  %7428 = vmatpush.msra.mxu1 %v7369_v51 }
0x1282   :  { %v9392_v60 = vpop.eup %9391  ;;  %v6465_v3 = vsel %vm14709_vm14, %v14644_v23, %v6461_v40  ;;  %v6473_v52 = vmul.f32 %v9390_v55, %v14667_v32  ;;  %9397 = vtanh.f32 %v6974_v17  ;;  %vm6467_vm0 = vcmp.eq.f32.partialorder %v6466_v22, 8.507059e+37 }
0x1283   :  { %v6469_v56 = vor.u32 1.1754944e-38, %v6468_v28  ;;  %vm6911_vm1 = vcmp.eq.f32.partialorder %v6910_v54, 8.507059e+37  ;;  %v6920_v30 = vadd.f32 %v14647_v29, %v6919_v1  ;;  %vm6922_vm3 = vweird.f32 %v14647_v29 }
0x1284   :  { %v6474_v2 = vsub.f32 1.0, %v6473_v52  ;;  %v6914_v13 = vsel %vm6911_vm1, %v6913_v48, %v6909_v27  ;;  %v6933_v59 = vsub.f32 1.0, %v6932_v26  ;;  %v6927_v53 = vand.u32 2147483648, %v14587_v4 }
0x1285   :  { %v6470_v10 = vsel %vm6467_vm0, %v6469_v56, %v6465_v3  ;;  %v7005_v23 = vmul.f32 %v9392_v60, %v6914_v13  ;;  %vm6478_vm4 = vweird.f32 %v9390_v55  ;;  %vm6921_vm5 = vweird.f32 %v14587_v4 }
0x1286   :  { %v14730_v11 = vpop.eup %9393  ;;  %v6475_v21 = vmul.f32 %v9390_v55, %v6474_v2  ;;  %v6925_v25 = vand.u32 2147483647, %v14587_v4  ;;  %vm6477_vm6 = vweird.f32 %v14667_v32  ;;  %v6483_v46 = vand.u32 2147483648, %v14667_v32  ;;  %vm14736_vm7 = vmor %vm6921_vm5, %vm6922_vm3 }
0x1287   :  { %v9396_v58 = vpop.eup %9395  ;;  %v6481_v12 = vand.u32 2147483647, %v14667_v32  ;;  %v6924_v6 = vsel %vm14736_vm7, %v14647_v29, %v6920_v30  ;;  %vm14744_vm2 = vmor %vm6477_vm6, %vm6478_vm4  ;;  %9399 = vtanh.f32 %v6562_v16  ;;  %v6947_v7 = vmul.f32 %v14730_v11, %v14690_v50  ;;  %v7368_v16 = vld [vmem:[%s15351_s6 + $0x28] sm:$0xff] }
0x1288   :  { %v6975_v42 = vmul.f32 %v9396_v58, %v6470_v10  ;;  %v6476_v61 = vadd.f32 %v9390_v55, %v6475_v21  ;;  %v9398_v5 = vpop.eup %9397  ;;  %v6928_v35 = vor.u32 1.1754944e-38, %v6927_v53  ;;  %v6934_v31 = vmul.f32 %v14700_v57, %v6933_v59  ;;  %7429 = vmatpush.msra.mxu1 %v7368_v16  ;;  %v7367_v53 = vld [vmem:[%s15351_s6 + $0x20] sm:$0xff] }
0x1289   :  { %8315 = vmatmul.msk.f32.gmra.mxu3 %vm3544_vm15, %v7005_v23  ;;  %vm6926_vm8 = vcmp.eq.f32.partialorder %v6925_v25, 8.507059e+37  ;;  %v6484_v29 = vor.u32 1.1754944e-38, %v6483_v46  ;;  %vm6482_vm9 = vcmp.eq.f32.partialorder %v6481_v12, 8.507059e+37  ;;  %vm6937_vm10 = vweird.f32 %v14700_v57 }
0x128a   :  { %v6480_v32 = vsel %vm14744_vm2, %v9390_v55, %v6476_v61  ;;  %v6929_v41 = vsel %vm6926_vm8, %v6928_v35, %v6924_v6  ;;  %9401 = vtanh.f32 %v6975_v42  ;;  %v6948_v20 = vsub.f32 1.0, %v6947_v7  ;;  %7430 = vmatpush.msra.mxu1 %v7367_v53  ;;  %v7366_v61 = vld [vmem:[%s15351_s6 + $0x18] sm:$0xff]  ;;  %v7365_v35 = vld [vmem:[%s15351_s6 + $0x10] sm:$0xff] }
0x128b   :  { %v7006_v47 = vmul.f32 %v9398_v5, %v6929_v41  ;;  %v7086_v8 = vpop.f32.mrf.mxu3  ;;  %v6485_v9 = vsel %vm6482_vm9, %v6484_v29, %v6480_v32  ;;  %v6935_v43 = vadd.f32 %v14700_v57, %v6934_v31  ;;  %v6942_v22 = vand.u32 2147483648, %v14655_v18 }
0x128c   :  { %v7087_v44 = vadd.f32 %v14752_v63, %v7086_v8  ;;  %vm6936_vm11 = vweird.f32 %v14655_v18  ;;  %v6940_v62 = vand.u32 2147483647, %v14655_v18  ;;  %v6949_v38 = vmul.f32 %v14730_v11, %v6948_v20  ;;  %7431 = vmatpush.msra.mxu1 %v7366_v61  ;;  %v7364_v20 = vld [vmem:[%s15351_s6 + $0x8] sm:$0xff] }
0x128d   :  { %v9400_v28 = vpop.eup %9399  ;;  %vm6938_vm13 = vmor %vm6936_vm11, %vm6937_vm10  ;;  %v6943_v14 = vor.u32 1.1754944e-38, %v6942_v22  ;;  %vm6952_vm0 = vweird.f32 %v14730_v11  ;;  %v6957_v54 = vand.u32 2147483648, %v14690_v50  ;;  %vm6951_vm1 = vweird.f32 %v14690_v50 }
0x128e   :  { %vm7134_vm12 = vcmp.gt.f32.partialorder %v7087_v44, 0.0  ;;  %v7150_v45 = vmul.f32 0.01, %v7087_v44  ;;  %v6976_v15 = vmul.f32 %v9400_v28, %v6485_v9  ;;  %v6939_v49 = vsel %vm6938_vm13, %v14700_v57, %v6935_v43  ;;  %vm6953_vm3 = vmor %vm6951_vm1, %vm6952_vm0  ;;  %7432 = vmatpush.msra.mxu1 %v7365_v35 }
0x128f   :  { %vm6941_vm14 = vcmp.eq.f32.partialorder %v6940_v62, 8.507059e+37  ;;  %v6950_v33 = vadd.f32 %v14730_v11, %v6949_v38  ;;  %v6955_v36 = vand.u32 2147483647, %v14690_v50  ;;  %v6958_v26 = vor.u32 1.1754944e-38, %v6957_v54 }
0x1290   :  { %v7166_v40 = vsel %vm7134_vm12, %v7087_v44, %v7150_v45  ;;  %v9402_v19 = vpop.eup %9401  ;;  %9403 = vtanh.f32 %v6976_v15  ;;  %v6944_v18 = vsel %vm6941_vm14, %v6943_v14, %v6939_v49  ;;  %7433 = vmatpush.msra.mxu1 %v7364_v20  ;;  %v7363_v49 = vld [vmem:[%s15351_s6] sm:$0xff]  ;;  %v14804_v14 = vld [vmem:[#allocation15] ss:$0 sm:$0xff] }
0x1291   :  { %8316 = vmatmul.msk.f32.gmra.mxu3 %vm3544_vm15, %v7006_v47  ;;  %8319 = vmatmul.msk.f32.vlgmr.msrb.gmra.mxu0 %vm3544_vm15, %v7166_v40  ;;  %v7007_v17 = vmul.f32 %v9402_v19, %v6944_v18  ;;  %v6954_v55 = vsel %vm6953_vm3, %v14730_v11, %v6950_v33  ;;  %vm6956_vm5 = vcmp.eq.f32.partialorder %v6955_v36, 8.507059e+37  ;;  %v7640_v40 = vld [vmem:[%s15360_s4 + $0x38] sm:$0xff]  ;;  %v7639_v36 = vld [vmem:[%s15360_s4 + $0x30] sm:$0xff] }
0x1292   :  { %v6959_v34 = vsel %vm6956_vm5, %v6958_v26, %v6954_v55  ;;  %7434 = vmatpush.msra.mxu1 %v7363_v49  ;;  %7701 = vmatpush.msra.mxu3 %v7640_v40  ;;  %v7634_v49 = vld [vmem:[%s15360_s4 + $0x8] sm:$0xff] }
0x1294   :  { %7702 = vmatpush.msra.mxu3 %v7639_v36 }
0x1296   :  { %v7089_v0 = vpop.f32.mrf.mxu3  ;;  %v9404_v37 = vpop.eup %9403 }
0x1297   :  { %v7090_v57 = vadd.f32 %v14752_v63, %v7089_v0  ;;  %v7008_v24 = vmul.f32 %v9404_v37, %v6959_v34 }
0x1299   :  { %v7151_v1 = vmul.f32 0.01, %v7090_v57  ;;  %vm7135_vm4 = vcmp.gt.f32.partialorder %v7090_v57, 0.0  ;;  %8317 = vmatmul.msk.f32.gmra.mxu3 %vm3544_vm15, %v7007_v17 }
0x129b   :  { %v7167_v27 = vsel %vm7135_vm4, %v7090_v57, %v7151_v1 }
0x129c   :  { %8320 = vmatmul.msk.f32.gmra.mxu0 %vm3544_vm15, %v7167_v27 }
0x129f   :  { %v7092_v60 = vpop.f32.mrf.mxu3 }
0x12a0   :  { %v7093_v3 = vadd.f32 %v14752_v63, %v7092_v60 }
0x12a1   :  { %8318 = vmatmul.msk.f32.gmra.mxu3 %vm3544_vm15, %v7008_v24 }
0x12a2   :  { %v7152_v50 = vmul.f32 0.01, %v7093_v3  ;;  %vm7136_vm6 = vcmp.gt.f32.partialorder %v7093_v3, 0.0 }
0x12a4   :  { %v7168_v52 = vsel %vm7136_vm6, %v7093_v3, %v7152_v50 }
0x12a5   :  { %8321 = vmatmul.msk.f32.gmra.mxu0 %vm3544_vm15, %v7168_v52 }
0x12ac   :  { %v7095_v48 = vpop.f32.mrf.mxu3 }
0x12ad   :  { %v7096_v56 = vadd.f32 %v14752_v63, %v7095_v48 }
0x12af   :  { %v7153_v2 = vmul.f32 0.01, %v7096_v56  ;;  %vm7137_vm7 = vcmp.gt.f32.partialorder %v7096_v56, 0.0 }
0x12b1   :  { %v7169_v13 = vsel %vm7137_vm7, %v7096_v56, %v7153_v2 }
0x12b2   :  { %8322 = vmatmul.msk.f32.gmra.mxu0 %vm3544_vm15, %v7169_v13 }
0x12b9   :  { %v7098_v30 = vpop.f32.mrf.mxu3 }
0x12ba   :  { %v7099_v10 = vadd.f32 %v14752_v63, %v7098_v30 }
0x12bc   :  { %v7154_v59 = vmul.f32 0.01, %v7099_v10  ;;  %vm7138_vm2 = vcmp.gt.f32.partialorder %v7099_v10, 0.0 }
0x12be   :  { %v7170_v23 = vsel %vm7138_vm2, %v7099_v10, %v7154_v59 }
0x12bf   :  { %8323 = vmatmul.msk.f32.gmra.mxu0 %vm3544_vm15, %v7170_v23 }
0x12c9   :  { %v7101_v11 = vpop.f32.mrf.mxu3 }
0x12ca   :  { %v7102_v21 = vadd.f32 %v14752_v63, %v7101_v11  ;;  %v7638_v11 = vld [vmem:[%s15360_s4 + $0x28] sm:$0xff] }
0x12cb   :  { %7703 = vmatpush.msra.mxu3 %v7638_v11 }
0x12cc   :  { %v7155_v25 = vmul.f32 0.01, %v7102_v21  ;;  %vm7139_vm8 = vcmp.gt.f32.partialorder %v7102_v21, 0.0 }
0x12ce   :  { %v7171_v58 = vsel %vm7139_vm8, %v7102_v21, %v7155_v25 }
0x12cf   :  { %8324 = vmatmul.msk.f32.gmra.mxu0 %vm3544_vm15, %v7171_v58 }
0x12d3   :  { %v7104_v46 = vpop.f32.mrf.mxu3 }
0x12d4   :  { %v7105_v39 = vadd.f32 %v14752_v63, %v7104_v46 }
0x12d6   :  { %v7156_v42 = vmul.f32 0.01, %v7105_v39  ;;  %vm7140_vm9 = vcmp.gt.f32.partialorder %v7105_v39, 0.0 }
0x12d8   :  { %v7172_v12 = vsel %vm7140_vm9, %v7105_v39, %v7156_v42 }
0x12d9   :  { %8325 = vmatmul.msk.f32.gmra.mxu0 %vm3544_vm15, %v7172_v12  ;;  %v7637_v12 = vld [vmem:[%s15360_s4 + $0x20] sm:$0xff] }
0x12da   :  { %7704 = vmatpush.msra.mxu3 %v7637_v12 }
0x12de   :  { %v7107_v6 = vpop.f32.mrf.mxu3 }
0x12df   :  { %v7108_v5 = vadd.f32 %v14752_v63, %v7107_v6 }
0x12e1   :  { %v7157_v4 = vmul.f32 0.01, %v7108_v5  ;;  %vm7141_vm10 = vcmp.gt.f32.partialorder %v7108_v5, 0.0 }
0x12e3   :  { %v7173_v7 = vsel %vm7141_vm10, %v7108_v5, %v7157_v4 }
0x12e4   :  { %8326 = vmatmul.msk.f32.gmra.mxu0 %vm3544_vm15, %v7173_v7 }
0x12e9   :  { %v7110_v31 = vpop.f32.mrf.mxu3 }
0x12ea   :  { %v7111_v32 = vadd.f32 %v14752_v63, %v7110_v31 }
0x12ec   :  { %vm7142_vm11 = vcmp.gt.f32.partialorder %v7111_v32, 0.0  ;;  %v7158_v29 = vmul.f32 0.01, %v7111_v32 }
0x12ee   :  { %v7174_v41 = vsel %vm7142_vm11, %v7111_v32, %v7158_v29  ;;  %v7636_v29 = vld [vmem:[%s15360_s4 + $0x18] sm:$0xff] }
0x12ef   :  { %8327 = vmatmul.msk.f32.gmra.mxu0 %vm3544_vm15, %v7174_v41  ;;  %7705 = vmatpush.msra.mxu3 %v7636_v29  ;;  %v7779_v29 = vld [vmem:[%s10090_s19 + $0x28] sm:$0xff] }
0x12f4   :  { %v7113_v47 = vpop.f32.mrf.mxu3 }
0x12f5   :  { %v7114_v8 = vadd.f32 %v14752_v63, %v7113_v47 }
0x12f7   :  { %vm7143_vm12 = vcmp.gt.f32.partialorder %v7114_v8, 0.0  ;;  %v7159_v9 = vmul.f32 0.01, %v7114_v8 }
0x12f9   :  { %v7175_v43 = vsel %vm7143_vm12, %v7114_v8, %v7159_v9 }
0x12fa   :  { %8328 = vmatmul.msk.f32.gmra.mxu0 %vm3544_vm15, %v7175_v43  ;;  %v7635_v43 = vld [vmem:[%s15360_s4 + $0x10] sm:$0xff] }
0x12fb   :  { %7706 = vmatpush.msra.mxu3 %v7635_v43 }
0x12fc   :  { %v7116_v44 = vpop.f32.mrf.mxu3 }
0x12fd   :  { %v7117_v22 = vadd.f32 %v14752_v63, %v7116_v44  ;;  %7707 = vmatpush.msra.mxu3 %v7634_v49 }
0x12ff   :  { %vm7144_vm13 = vcmp.gt.f32.partialorder %v7117_v22, 0.0  ;;  %v7160_v28 = vmul.f32 0.01, %v7117_v22 }
0x1301   :  { %v7176_v62 = vsel %vm7144_vm13, %v7117_v22, %v7160_v28 }
0x1302   :  { %8329 = vmatmul.msk.f32.gmra.mxu0 %vm3544_vm15, %v7176_v62 }
0x1304   :  { %v7119_v45 = vpop.f32.mrf.mxu3 }
0x1305   :  { %v7120_v15 = vadd.f32 %v14752_v63, %v7119_v45 }
0x1307   :  { %vm7145_vm14 = vcmp.gt.f32.partialorder %v7120_v15, 0.0  ;;  %v7161_v51 = vmul.f32 0.01, %v7120_v15 }
0x1309   :  { %v7177_v38 = vsel %vm7145_vm14, %v7120_v15, %v7161_v51 }
0x130a   :  { %8330 = vmatmul.msk.f32.gmra.mxu0 %vm3544_vm15, %v7177_v38 }
0x130c   :  { %v7122_v19 = vpop.f32.mrf.mxu3 }
0x130d   :  { %v7123_v18 = vadd.f32 %v14752_v63, %v7122_v19 }
0x130e   :  { %v7259_v33 = vpop.f32.mrf.mxu0 }
0x130f   :  { %vm7146_vm0 = vcmp.gt.f32.partialorder %v7123_v18, 0.0  ;;  %v7162_v17 = vmul.f32 0.01, %v7123_v18  ;;  %v7260_v0 = vadd.f32 %v14804_v14, %v7259_v33 }
0x1311   :  { %v7178_v54 = vsel %vm7146_vm0, %v7123_v18, %v7162_v17  ;;  %vm7307_vm1 = vcmp.gt.f32.partialorder %v7260_v0, 0.0  ;;  %v7323_v57 = vmul.f32 0.01, %v7260_v0 }
0x1312   :  { %8331 = vmatmul.msk.f32.gmra.mxu0 %vm3544_vm15, %v7178_v54 }
0x1313   :  { %v7339_v55 = vsel %vm7307_vm1, %v7260_v0, %v7323_v57  ;;  %v7633_v57 = vld [vmem:[%s15360_s4] sm:$0xff] }
0x1314   :  { %v7125_v1 = vpop.f32.mrf.mxu3  ;;  %8335 = vmatmul.msk.f32.vlgmr.msra.gmra.mxu1 %vm3544_vm15, %v7339_v55  ;;  %7708 = vmatpush.msra.mxu3 %v7633_v57  ;;  %v7549_v55 = vpop.f32.mrf.mxu2 }
0x1315   :  { %v7126_v37 = vadd.f32 %v14752_v63, %v7125_v1  ;;  %v7781_v1 = vld [vmem:[%s10090_s19 + $0x38] sm:$0xff] }
0x1316   :  { %7842 = vmatpush.msra.mxu0 %v7781_v1 }
0x1317   :  { %vm7147_vm3 = vcmp.gt.f32.partialorder %v7126_v37, 0.0  ;;  %v7163_v26 = vmul.f32 0.01, %v7126_v37 }
0x1319   :  { %v7262_v27 = vpop.f32.mrf.mxu0  ;;  %v7179_v34 = vsel %vm7147_vm3, %v7126_v37, %v7163_v26 }
0x131a   :  { %v7263_v24 = vadd.f32 %v14804_v14, %v7262_v27  ;;  %8332 = vmatmul.msk.f32.gmra.mxu0 %vm3544_vm15, %v7179_v34  ;;  %v14847_v27 = vld [vmem:[#allocation16] ss:$0 sm:$0xff] }
0x131c   :  { %v7324_v60 = vmul.f32 0.01, %v7263_v24  ;;  %vm7308_vm4 = vcmp.gt.f32.partialorder %v7263_v24, 0.0  ;;  %v7128_v3 = vpop.f32.mrf.mxu3 }
0x131d   :  { %v7129_v50 = vadd.f32 %v14752_v63, %v7128_v3 }
0x131e   :  { %v7340_v52 = vsel %vm7308_vm4, %v7263_v24, %v7324_v60 }
0x131f   :  { %8336 = vmatmul.msk.f32.gmra.mxu1 %vm3544_vm15, %v7340_v52  ;;  %vm7148_vm5 = vcmp.gt.f32.partialorder %v7129_v50, 0.0  ;;  %v7164_v16 = vmul.f32 0.01, %v7129_v50 }
0x1321   :  { %v7180_v56 = vsel %vm7148_vm5, %v7129_v50, %v7164_v16 }
0x1322   :  { %v7265_v48 = vpop.f32.mrf.mxu0  ;;  %8333 = vmatmul.msk.f32.gmra.mxu0 %vm3544_vm15, %v7180_v56  ;;  %v7552_v56 = vpop.f32.mrf.mxu2 }
0x1323   :  { %v7266_v2 = vadd.f32 %v14804_v14, %v7265_v48 }
0x1324   :  { %v7131_v30 = vpop.f32.mrf.mxu3 }
0x1325   :  { %v7325_v13 = vmul.f32 0.01, %v7266_v2  ;;  %vm7309_vm6 = vcmp.gt.f32.partialorder %v7266_v2, 0.0  ;;  %v7132_v10 = vadd.f32 %v14752_v63, %v7131_v30 }
0x1327   :  { %v7341_v59 = vsel %vm7309_vm6, %v7266_v2, %v7325_v13  ;;  %vm7149_vm7 = vcmp.gt.f32.partialorder %v7132_v10, 0.0  ;;  %v7165_v23 = vmul.f32 0.01, %v7132_v10  ;;  %v7780_v13 = vld [vmem:[%s10090_s19 + $0x30] sm:$0xff]  ;;  %vm7899_vm6 = vcmask 31744  }
0x1328   :  { %8337 = vmatmul.msk.f32.gmra.mxu1 %vm3544_vm15, %v7341_v59  ;;  %7843 = vmatpush.msra.mxu0 %v7780_v13 }
0x1329   :  { %v7181_v53 = vsel %vm7149_vm7, %v7132_v10, %v7165_v23 }
0x132a   :  { %8334 = vmatmul.msk.f32.gmra.mxu0 %vm3544_vm15, %v7181_v53 }
0x132b   :  { %7844 = vmatpush.msra.mxu0 %v7779_v29 }
0x132f   :  { %v7268_v21 = vpop.f32.mrf.mxu0 }
0x1330   :  { %v7269_v25 = vadd.f32 %v14804_v14, %v7268_v21 }
0x1332   :  { %v7326_v58 = vmul.f32 0.01, %v7269_v25  ;;  %vm7310_vm2 = vcmp.gt.f32.partialorder %v7269_v25, 0.0 }
0x1334   :  { %v7342_v46 = vsel %vm7310_vm2, %v7269_v25, %v7326_v58  ;;  %v7555_v58 = vpop.f32.mrf.mxu2 }
0x1335   :  { %8338 = vmatmul.msk.f32.gmra.mxu1 %vm3544_vm15, %v7342_v46 }
0x133c   :  { %v7271_v63 = vpop.f32.mrf.mxu0 }
0x133d   :  { %v7272_v39 = vadd.f32 %v14804_v14, %v7271_v63 }
0x133f   :  { %v7327_v42 = vmul.f32 0.01, %v7272_v39  ;;  %vm7311_vm8 = vcmp.gt.f32.partialorder %v7272_v39, 0.0 }
0x1341   :  { %v7343_v61 = vsel %vm7311_vm8, %v7272_v39, %v7327_v42 }
0x1342   :  { %8339 = vmatmul.msk.f32.gmra.mxu1 %vm3544_vm15, %v7343_v61 }
0x134c   :  { %v7274_v6 = vpop.f32.mrf.mxu0 }
0x134d   :  { %v7275_v5 = vadd.f32 %v14804_v14, %v7274_v6 }
0x134f   :  { %v7328_v4 = vmul.f32 0.01, %v7275_v5  ;;  %vm7312_vm9 = vcmp.gt.f32.partialorder %v7275_v5, 0.0 }
0x1351   :  { %v7344_v7 = vsel %vm7312_vm9, %v7275_v5, %v7328_v4 }
0x1352   :  { %8340 = vmatmul.msk.f32.gmra.mxu1 %vm3544_vm15, %v7344_v7  ;;  %v7558_v7 = vpop.f32.mrf.mxu2 }
0x1356   :  { %v7277_v35 = vpop.f32.mrf.mxu0 }
0x1357   :  { %v7278_v31 = vadd.f32 %v14804_v14, %v7277_v35 }
0x1359   :  { %v7329_v32 = vmul.f32 0.01, %v7278_v31  ;;  %vm7313_vm10 = vcmp.gt.f32.partialorder %v7278_v31, 0.0 }
0x135b   :  { %v7345_v41 = vsel %vm7313_vm10, %v7278_v31, %v7329_v32 }
0x135c   :  { %8341 = vmatmul.msk.f32.gmra.mxu1 %vm3544_vm15, %v7345_v41 }
0x1361   :  { %v7280_v47 = vpop.f32.mrf.mxu0 }
0x1362   :  { %v7281_v8 = vadd.f32 %v14804_v14, %v7280_v47 }
0x1364   :  { %v7330_v9 = vmul.f32 0.01, %v7281_v8  ;;  %vm7314_vm11 = vcmp.gt.f32.partialorder %v7281_v8, 0.0 }
0x1366   :  { %v7346_v20 = vsel %vm7314_vm11, %v7281_v8, %v7330_v9 }
0x1367   :  { %8342 = vmatmul.msk.f32.gmra.mxu1 %vm3544_vm15, %v7346_v20 }
0x136c   :  { %v7283_v44 = vpop.f32.mrf.mxu0 }
0x136d   :  { %v7284_v22 = vadd.f32 %v14804_v14, %v7283_v44  ;;  %v7778_v44 = vld [vmem:[%s10090_s19 + $0x20] sm:$0xff] }
0x136e   :  { %7845 = vmatpush.msra.mxu0 %v7778_v44 }
0x136f   :  { %vm7315_vm12 = vcmp.gt.f32.partialorder %v7284_v22, 0.0  ;;  %v7331_v28 = vmul.f32 0.01, %v7284_v22 }
0x1371   :  { %v7347_v62 = vsel %vm7315_vm12, %v7284_v22, %v7331_v28 }
0x1372   :  { %8343 = vmatmul.msk.f32.gmra.mxu1 %vm3544_vm15, %v7347_v62 }
0x1377   :  { %v7286_v45 = vpop.f32.mrf.mxu0 }
0x1378   :  { %v7287_v15 = vadd.f32 %v14804_v14, %v7286_v45 }
0x137a   :  { %vm7316_vm13 = vcmp.gt.f32.partialorder %v7287_v15, 0.0  ;;  %v7332_v51 = vmul.f32 0.01, %v7287_v15 }
0x137c   :  { %v7348_v38 = vsel %vm7316_vm13, %v7287_v15, %v7332_v51 }
0x137d   :  { %8344 = vmatmul.msk.f32.gmra.mxu1 %vm3544_vm15, %v7348_v38 }
0x137f   :  { %v7289_v40 = vpop.f32.mrf.mxu0 }
0x1380   :  { %v7290_v19 = vadd.f32 %v14804_v14, %v7289_v40 }
0x1382   :  { %vm7317_vm14 = vcmp.gt.f32.partialorder %v7290_v19, 0.0  ;;  %v7333_v18 = vmul.f32 0.01, %v7290_v19 }
0x1384   :  { %v7349_v17 = vsel %vm7317_vm14, %v7290_v19, %v7333_v18  ;;  %v7777_v18 = vld [vmem:[%s10090_s19 + $0x18] sm:$0xff] }
0x1385   :  { %8345 = vmatmul.msk.f32.gmra.mxu1 %vm3544_vm15, %v7349_v17  ;;  %7846 = vmatpush.msra.mxu0 %v7777_v18 }
0x1387   :  { %v7292_v33 = vpop.f32.mrf.mxu0 }
0x1388   :  { %v7293_v0 = vadd.f32 %v14804_v14, %v7292_v33 }
0x138a   :  { %vm7318_vm0 = vcmp.gt.f32.partialorder %v7293_v0, 0.0  ;;  %v7334_v54 = vmul.f32 0.01, %v7293_v0 }
0x138c   :  { %v7350_v36 = vsel %vm7318_vm0, %v7293_v0, %v7334_v54 }
0x138d   :  { %8346 = vmatmul.msk.f32.gmra.mxu1 %vm3544_vm15, %v7350_v36 }
0x138f   :  { %v7295_v37 = vpop.f32.mrf.mxu0 }
0x1390   :  { %v7296_v26 = vadd.f32 %v14804_v14, %v7295_v37  ;;  %v7776_v37 = vld [vmem:[%s10090_s19 + $0x10] sm:$0xff] }
0x1391   :  { %v7436_v24 = vpop.f32.mrf.mxu1  ;;  %7847 = vmatpush.msra.mxu0 %v7776_v37 }
0x1392   :  { %vm7319_vm1 = vcmp.gt.f32.partialorder %v7296_v26, 0.0  ;;  %v7335_v34 = vmul.f32 0.01, %v7296_v26  ;;  %v7550_v60 = vadd.f32 %v7549_v55, %v7436_v24 }
0x1394   :  { %v7351_v3 = vsel %vm7319_vm1, %v7296_v26, %v7335_v34  ;;  %v7601_v50 = vadd.f32 %v14847_v27, %v7550_v60 }
0x1395   :  { %8347 = vmatmul.msk.f32.gmra.mxu1 %vm3544_vm15, %v7351_v3 }
0x1396   :  { %v7617_v16 = vmax.f32 %v7601_v50, 0.0 }
0x1397   :  { %v7298_v52 = vpop.f32.mrf.mxu0 }
0x1398   :  { %v7299_v48 = vadd.f32 %v14804_v14, %v7298_v52  ;;  %8367 = vmatmul.msk.f32.vlgmr.msra.gmra.mxu3 %vm3544_vm15, %v7617_v16  ;;  %v7775_v16 = vld [vmem:[%s10090_s19 + $0x8] sm:$0xff] }
0x1399   :  { %7848 = vmatpush.msra.mxu0 %v7775_v16 }
0x139a   :  { %vm7320_vm3 = vcmp.gt.f32.partialorder %v7299_v48, 0.0  ;;  %v7336_v2 = vmul.f32 0.01, %v7299_v48 }
0x139c   :  { %v7439_v30 = vpop.f32.mrf.mxu1  ;;  %v7352_v10 = vsel %vm7320_vm3, %v7299_v48, %v7336_v2 }
0x139d   :  { %v7553_v59 = vadd.f32 %v7552_v56, %v7439_v30  ;;  %8348 = vmatmul.msk.f32.gmra.mxu1 %vm3544_vm15, %v7352_v10 }
0x139f   :  { %v7602_v23 = vadd.f32 %v14847_v27, %v7553_v59  ;;  %v7301_v53 = vpop.f32.mrf.mxu0 }
0x13a0   :  { %v7302_v11 = vadd.f32 %v14804_v14, %v7301_v53 }
0x13a1   :  { %v7618_v21 = vmax.f32 %v7602_v23, 0.0 }
0x13a2   :  { %vm7321_vm4 = vcmp.gt.f32.partialorder %v7302_v11, 0.0  ;;  %v7337_v25 = vmul.f32 0.01, %v7302_v11 }
0x13a3   :  { %8368 = vmatmul.msk.f32.gmra.mxu3 %vm3544_vm15, %v7618_v21  ;;  %v7774_v21 = vld [vmem:[%s10090_s19] sm:$0xff] }
0x13a4   :  { %v7353_v63 = vsel %vm7321_vm4, %v7302_v11, %v7337_v25  ;;  %7849 = vmatpush.msra.mxu0 %v7774_v21 }
0x13a5   :  { %v7442_v46 = vpop.f32.mrf.mxu1  ;;  %8349 = vmatmul.msk.f32.gmra.mxu1 %vm3544_vm15, %v7353_v63 }
0x13a6   :  { %v7556_v39 = vadd.f32 %v7555_v58, %v7442_v46 }
0x13a7   :  { %v7304_v61 = vpop.f32.mrf.mxu0 }
0x13a8   :  { %v7603_v42 = vadd.f32 %v14847_v27, %v7556_v39  ;;  %v7305_v12 = vadd.f32 %v14804_v14, %v7304_v61  ;;  %v7561_v14 = vpop.f32.mrf.mxu2 }
0x13aa   :  { %v7619_v6 = vmax.f32 %v7603_v42, 0.0  ;;  %vm7322_vm5 = vcmp.gt.f32.partialorder %v7305_v12, 0.0  ;;  %v7338_v5 = vmul.f32 0.01, %v7305_v12  ;;  %v14889_v42 = vld [vmem:[#allocation18] ss:$0 sm:$0xff] }
0x13ac   :  { %8369 = vmatmul.msk.f32.gmra.mxu3 %vm3544_vm15, %v7619_v6  ;;  %v7354_v4 = vsel %vm7322_vm5, %v7305_v12, %v7338_v5 }
0x13ad   :  { %8350 = vmatmul.msk.f32.gmra.mxu1 %vm3544_vm15, %v7354_v4 }
0x13b0   :  { %v7564_v43 = vpop.f32.mrf.mxu2 }
0x13b2   :  { %v7445_v35 = vpop.f32.mrf.mxu1 }
0x13b3   :  { %v7559_v31 = vadd.f32 %v7558_v7, %v7445_v35 }
0x13b5   :  { %v7604_v32 = vadd.f32 %v14847_v27, %v7559_v31 }
0x13b7   :  { %v7620_v41 = vmax.f32 %v7604_v32, 0.0 }
0x13b8   :  { %v7567_v28 = vpop.f32.mrf.mxu2 }
0x13b9   :  { %8370 = vmatmul.msk.f32.gmra.mxu3 %vm3544_vm15, %v7620_v41 }
0x13bf   :  { %v7448_v47 = vpop.f32.mrf.mxu1 }
0x13c0   :  { %v7562_v8 = vadd.f32 %v7561_v14, %v7448_v47  ;;  %v7570_v49 = vpop.f32.mrf.mxu2 }
0x13c2   :  { %v7605_v9 = vadd.f32 %v14847_v27, %v7562_v8 }
0x13c4   :  { %v7621_v20 = vmax.f32 %v7605_v9, 0.0 }
0x13c6   :  { %8371 = vmatmul.msk.f32.gmra.mxu3 %vm3544_vm15, %v7621_v20 }
0x13c8   :  { %v7573_v17 = vpop.f32.mrf.mxu2 }
0x13cf   :  { %v7451_v22 = vpop.f32.mrf.mxu1 }
0x13d0   :  { %v7565_v62 = vadd.f32 %v7564_v43, %v7451_v22  ;;  %v7576_v36 = vpop.f32.mrf.mxu2 }
0x13d2   :  { %v7606_v45 = vadd.f32 %v14847_v27, %v7565_v62 }
0x13d4   :  { %v7622_v15 = vmax.f32 %v7606_v45, 0.0 }
0x13d6   :  { %8372 = vmatmul.msk.f32.gmra.mxu3 %vm3544_vm15, %v7622_v15 }
0x13d8   :  { %v7579_v24 = vpop.f32.mrf.mxu2 }
0x13d9   :  { %v7454_v51 = vpop.f32.mrf.mxu1 }
0x13da   :  { %v7568_v38 = vadd.f32 %v7567_v28, %v7454_v51 }
0x13dc   :  { %v7607_v40 = vadd.f32 %v14847_v27, %v7568_v38 }
0x13de   :  { %v7623_v19 = vmax.f32 %v7607_v40, 0.0 }
0x13e0   :  { %8373 = vmatmul.msk.f32.gmra.mxu3 %vm3544_vm15, %v7623_v19  ;;  %v7582_v48 = vpop.f32.mrf.mxu2 }
0x13e4   :  { %v7457_v33 = vpop.f32.mrf.mxu1 }
0x13e5   :  { %v7571_v0 = vadd.f32 %v7570_v49, %v7457_v33 }
0x13e7   :  { %v7608_v54 = vadd.f32 %v14847_v27, %v7571_v0 }
0x13e8   :  { %v7585_v23 = vpop.f32.mrf.mxu2 }
0x13e9   :  { %v7624_v57 = vmax.f32 %v7608_v54, 0.0 }
0x13eb   :  { %8374 = vmatmul.msk.f32.gmra.mxu3 %vm3544_vm15, %v7624_v57 }
0x13ef   :  { %v7460_v1 = vpop.f32.mrf.mxu1 }
0x13f0   :  { %v7574_v55 = vadd.f32 %v7573_v17, %v7460_v1  ;;  %v7588_v63 = vpop.f32.mrf.mxu2 }
0x13f2   :  { %v7609_v26 = vadd.f32 %v14847_v27, %v7574_v55 }
0x13f4   :  { %v7625_v34 = vmax.f32 %v7609_v26, 0.0 }
0x13f6   :  { %8375 = vmatmul.msk.f32.gmra.mxu3 %vm3544_vm15, %v7625_v34 }
0x13f8   :  { %v7591_v31 = vpop.f32.mrf.mxu2 }
0x13fa   :  { %v7463_v60 = vpop.f32.mrf.mxu1 }
0x13fb   :  { %v7577_v3 = vadd.f32 %v7576_v36, %v7463_v60 }
0x13fd   :  { %v7610_v50 = vadd.f32 %v14847_v27, %v7577_v3 }
0x13ff   :  { %v7626_v52 = vmax.f32 %v7610_v50, 0.0 }
0x1400   :  { %v7594_v20 = vpop.f32.mrf.mxu2 }
0x1401   :  { %8376 = vmatmul.msk.f32.gmra.mxu3 %vm3544_vm15, %v7626_v52 }
0x1402   :  { %v7466_v56 = vpop.f32.mrf.mxu1 }
0x1403   :  { %v7580_v2 = vadd.f32 %v7579_v24, %v7466_v56 }
0x1405   :  { %v7611_v13 = vadd.f32 %v14847_v27, %v7580_v2 }
0x1407   :  { %v7627_v30 = vmax.f32 %v7611_v13, 0.0  ;;  %v14921_v13 = vld [vmem:[#allocation19] ss:$0 sm:$0xff] }
0x1409   :  { %8377 = vmatmul.msk.f32.gmra.mxu3 %vm3544_vm15, %v7627_v30 }
0x140a   :  { %v7469_v10 = vpop.f32.mrf.mxu1 }
0x140b   :  { %v7583_v59 = vadd.f32 %v7582_v48, %v7469_v10 }
0x140d   :  { %v7612_v53 = vadd.f32 %v14847_v27, %v7583_v59 }
0x140f   :  { %v7628_v11 = vmax.f32 %v7612_v53, 0.0 }
0x1411   :  { %8378 = vmatmul.msk.f32.gmra.mxu3 %vm3544_vm15, %v7628_v11 }
0x1412   :  { %v7472_v25 = vpop.f32.mrf.mxu1 }
0x1413   :  { %v7586_v58 = vadd.f32 %v7585_v23, %v7472_v25 }
0x1415   :  { %v7613_v46 = vadd.f32 %v14847_v27, %v7586_v58 }
0x1417   :  { %v7629_v39 = vmax.f32 %v7613_v46, 0.0 }
0x1419   :  { %8379 = vmatmul.msk.f32.gmra.mxu3 %vm3544_vm15, %v7629_v39 }
0x141a   :  { %v7475_v61 = vpop.f32.mrf.mxu1 }
0x141b   :  { %v7589_v12 = vadd.f32 %v7588_v63, %v7475_v61  ;;  %v7710_v6 = vpop.f32.mrf.mxu3 }
0x141c   :  { %v7711_v4 = vadd.f32 %v14889_v42, %v7710_v6 }
0x141d   :  { %v7614_v5 = vadd.f32 %v14847_v27, %v7589_v12 }
0x141e   :  { %v7758_v35 = vmax.f32 %v7711_v4, 0.0 }
0x141f   :  { %v7630_v7 = vmax.f32 %v7614_v5, 0.0 }
0x1420   :  { %8383 = vmatmul.msk.f32.vlgmr.msra.gmra.mxu0 %vm3544_vm15, %v7758_v35 }
0x1421   :  { %8380 = vmatmul.msk.f32.gmra.mxu3 %vm3544_vm15, %v7630_v7 }
0x1422   :  { %v7478_v32 = vpop.f32.mrf.mxu1 }
0x1423   :  { %v7592_v29 = vadd.f32 %v7591_v31, %v7478_v32 }
0x1425   :  { %v7615_v41 = vadd.f32 %v14847_v27, %v7592_v29 }
0x1426   :  { %v7713_v14 = vpop.f32.mrf.mxu3 }
0x1427   :  { %v7714_v47 = vadd.f32 %v14889_v42, %v7713_v14  ;;  %v7631_v8 = vmax.f32 %v7615_v41, 0.0 }
0x1429   :  { %v7759_v9 = vmax.f32 %v7714_v47, 0.0  ;;  %8381 = vmatmul.msk.f32.gmra.mxu3 %vm3544_vm15, %v7631_v8 }
0x142a   :  { %v7481_v43 = vpop.f32.mrf.mxu1 }
0x142b   :  { %8384 = vmatmul.msk.f32.gmra.mxu0 %vm3544_vm15, %v7759_v9  ;;  %v7595_v44 = vadd.f32 %v7594_v20, %v7481_v43 }
0x142d   :  { %v7616_v22 = vadd.f32 %v14847_v27, %v7595_v44 }
0x142f   :  { %v7716_v28 = vpop.f32.mrf.mxu3  ;;  %v7632_v45 = vmax.f32 %v7616_v22, 0.0 }
0x1430   :  { %v7717_v62 = vadd.f32 %v14889_v42, %v7716_v28 }
0x1431   :  { %8382 = vmatmul.msk.f32.gmra.mxu3 %vm3544_vm15, %v7632_v45 }
0x1432   :  { %v7760_v15 = vmax.f32 %v7717_v62, 0.0 }
0x1434   :  { %8385 = vmatmul.msk.f32.gmra.mxu0 %vm3544_vm15, %v7760_v15 }
0x143c   :  { %v7719_v51 = vpop.f32.mrf.mxu3 }
0x143d   :  { %v7720_v49 = vadd.f32 %v14889_v42, %v7719_v51 }
0x143f   :  { %v7761_v38 = vmax.f32 %v7720_v49, 0.0 }
0x1441   :  { %8386 = vmatmul.msk.f32.gmra.mxu0 %vm3544_vm15, %v7761_v38 }
0x1449   :  { %v7722_v40 = vpop.f32.mrf.mxu3 }
0x144a   :  { %v7723_v19 = vadd.f32 %v14889_v42, %v7722_v40 }
0x144c   :  { %v7762_v18 = vmax.f32 %v7723_v19, 0.0 }
0x144e   :  { %8387 = vmatmul.msk.f32.gmra.mxu0 %vm3544_vm15, %v7762_v18 }
0x1459   :  { %v7725_v27 = vpop.f32.mrf.mxu3 }
0x145a   :  { %v7726_v17 = vadd.f32 %v14889_v42, %v7725_v27 }
0x145c   :  { %v7763_v33 = vmax.f32 %v7726_v17, 0.0 }
0x145e   :  { %8388 = vmatmul.msk.f32.gmra.mxu0 %vm3544_vm15, %v7763_v33 }
0x1463   :  { %v7728_v0 = vpop.f32.mrf.mxu3 }
0x1464   :  { %v7729_v54 = vadd.f32 %v14889_v42, %v7728_v0 }
0x1466   :  { %v7764_v57 = vmax.f32 %v7729_v54, 0.0 }
0x1468   :  { %8389 = vmatmul.msk.f32.gmra.mxu0 %vm3544_vm15, %v7764_v57 }
0x146e   :  { %v7731_v36 = vpop.f32.mrf.mxu3 }
0x146f   :  { %v7732_v1 = vadd.f32 %v14889_v42, %v7731_v36 }
0x1471   :  { %v7765_v55 = vmax.f32 %v7732_v1, 0.0 }
0x1473   :  { %8390 = vmatmul.msk.f32.gmra.mxu0 %vm3544_vm15, %v7765_v55 }
0x1479   :  { %v7734_v37 = vpop.f32.mrf.mxu3 }
0x147a   :  { %v7735_v26 = vadd.f32 %v14889_v42, %v7734_v37 }
0x147c   :  { %v7766_v34 = vmax.f32 %v7735_v26, 0.0 }
0x147e   :  { %8391 = vmatmul.msk.f32.gmra.mxu0 %vm3544_vm15, %v7766_v34 }
0x1484   :  { %v7737_v24 = vpop.f32.mrf.mxu3 }
0x1485   :  { %v7738_v60 = vadd.f32 %v14889_v42, %v7737_v24 }
0x1487   :  { %v7767_v3 = vmax.f32 %v7738_v60, 0.0 }
0x1489   :  { %8392 = vmatmul.msk.f32.gmra.mxu0 %vm3544_vm15, %v7767_v3 }
0x148c   :  { %v7740_v50 = vpop.f32.mrf.mxu3 }
0x148d   :  { %v7741_v52 = vadd.f32 %v14889_v42, %v7740_v50 }
0x148f   :  { %v7768_v16 = vmax.f32 %v7741_v52, 0.0 }
0x1491   :  { %8393 = vmatmul.msk.f32.gmra.mxu0 %vm3544_vm15, %v7768_v16 }
0x1494   :  { %v7743_v48 = vpop.f32.mrf.mxu3 }
0x1495   :  { %v7744_v56 = vadd.f32 %v14889_v42, %v7743_v48 }
0x1497   :  { %v7769_v2 = vmax.f32 %v7744_v56, 0.0 }
0x1499   :  { %8394 = vmatmul.msk.f32.gmra.mxu0 %vm3544_vm15, %v7769_v2 }
0x149c   :  { %v7746_v30 = vpop.f32.mrf.mxu3 }
0x149d   :  { %v7747_v10 = vadd.f32 %v14889_v42, %v7746_v30  ;;  %v7851_v59 = vpop.f32.mrf.mxu0 }
0x149e   :  { %v7852_v53 = vadd.f32 %v14921_v13, %v7851_v59 }
0x149f   :  { %v7770_v23 = vmax.f32 %v7747_v10, 0.0 }
0x14a0   :  { %7900 = vst.msk [vmem:[%s10100_s25] sm:$0xff] %vm7899_vm6, %v7852_v53 }
0x14a1   :  { %8395 = vmatmul.msk.f32.gmra.mxu0 %vm3544_vm15, %v7770_v23 }
0x14a4   :  { %v7749_v11 = vpop.f32.mrf.mxu3 }
0x14a5   :  { %v7750_v21 = vadd.f32 %v14889_v42, %v7749_v11 }
0x14a7   :  { %v7771_v25 = vmax.f32 %v7750_v21, 0.0 }
0x14a8   :  { %v7854_v58 = vpop.f32.mrf.mxu0 }
0x14a9   :  { %v7855_v46 = vadd.f32 %v14921_v13, %v7854_v58  ;;  %8396 = vmatmul.msk.f32.gmra.mxu0 %vm3544_vm15, %v7771_v25 }
0x14ab   :  { %7901 = vst.msk [vmem:[%s10100_s25 + $0x8] sm:$0xff] %vm7899_vm6, %v7855_v46 }
0x14ac   :  { %v7752_v63 = vpop.f32.mrf.mxu3 }
0x14ad   :  { %v7753_v39 = vadd.f32 %v14889_v42, %v7752_v63 }
0x14af   :  { %v7772_v61 = vmax.f32 %v7753_v39, 0.0 }
0x14b1   :  { %v7857_v12 = vpop.f32.mrf.mxu0  ;;  %8397 = vmatmul.msk.f32.gmra.mxu0 %vm3544_vm15, %v7772_v61 }
0x14b2   :  { %v7858_v6 = vadd.f32 %v14921_v13, %v7857_v12 }
0x14b4   :  { %7902 = vst.msk [vmem:[%s10100_s25 + $0x10] sm:$0xff] %vm7899_vm6, %v7858_v6  ;;  %v7755_v5 = vpop.f32.mrf.mxu3 }
0x14b5   :  { %v7756_v4 = vadd.f32 %v14889_v42, %v7755_v5 }
0x14b7   :  { %v7773_v7 = vmax.f32 %v7756_v4, 0.0 }
0x14b9   :  { %8398 = vmatmul.msk.f32.gmra.mxu0 %vm3544_vm15, %v7773_v7 }
0x14be   :  { %v7860_v35 = vpop.f32.mrf.mxu0 }
0x14bf   :  { %v7861_v31 = vadd.f32 %v14921_v13, %v7860_v35 }
0x14c1   :  { %7903 = vst.msk [vmem:[%s10100_s25 + $0x18] sm:$0xff] %vm7899_vm6, %v7861_v31 }
0x14cb   :  { %v7863_v32 = vpop.f32.mrf.mxu0 }
0x14cc   :  { %v7864_v29 = vadd.f32 %v14921_v13, %v7863_v32 }
0x14ce   :  { %7904 = vst.msk [vmem:[%s10100_s25 + $0x20] sm:$0xff] %vm7899_vm6, %v7864_v29 }
0x14db   :  { %v7866_v41 = vpop.f32.mrf.mxu0 }
0x14dc   :  { %v7867_v14 = vadd.f32 %v14921_v13, %v7866_v41 }
0x14de   :  { %7905 = vst.msk [vmem:[%s10100_s25 + $0x28] sm:$0xff] %vm7899_vm6, %v7867_v14 }
0x14e5   :  { %v7869_v42 = vpop.f32.mrf.mxu0 }
0x14e6   :  { %v7870_v47 = vadd.f32 %v14921_v13, %v7869_v42 }
0x14e8   :  { %7906 = vst.msk [vmem:[%s10100_s25 + $0x30] sm:$0xff] %vm7899_vm6, %v7870_v47 }
0x14f0   :  { %v7872_v8 = vpop.f32.mrf.mxu0 }
0x14f1   :  { %v7873_v9 = vadd.f32 %v14921_v13, %v7872_v8 }
0x14f3   :  { %7907 = vst.msk [vmem:[%s10100_s25 + $0x38] sm:$0xff] %vm7899_vm6, %v7873_v9 }
0x14fb   :  { %v7875_v20 = vpop.f32.mrf.mxu0 }
0x14fc   :  { %v7876_v43 = vadd.f32 %v14921_v13, %v7875_v20 }
0x14fe   :  { %7908 = vst.msk [vmem:[%s10100_s25 + $0x40] sm:$0xff] %vm7899_vm6, %v7876_v43 }
0x1506   :  { %v7878_v44 = vpop.f32.mrf.mxu0 }
0x1507   :  { %v7879_v22 = vadd.f32 %v14921_v13, %v7878_v44 }
0x1509   :  { %7909 = vst.msk [vmem:[%s10100_s25 + $0x48] sm:$0xff] %vm7899_vm6, %v7879_v22 }
0x150e   :  { %v7881_v28 = vpop.f32.mrf.mxu0 }
0x150f   :  { %v7882_v62 = vadd.f32 %v14921_v13, %v7881_v28 }
0x1511   :  { %7910 = vst.msk [vmem:[%s10100_s25 + $0x50] sm:$0xff] %vm7899_vm6, %v7882_v62 }
0x1516   :  { %v7884_v45 = vpop.f32.mrf.mxu0 }
0x1517   :  { %v7885_v15 = vadd.f32 %v14921_v13, %v7884_v45 }
0x1519   :  { %7911 = vst.msk [vmem:[%s10100_s25 + $0x58] sm:$0xff] %vm7899_vm6, %v7885_v15 }
0x151e   :  { %v7887_v51 = vpop.f32.mrf.mxu0 }
0x151f   :  { %v7888_v49 = vadd.f32 %v14921_v13, %v7887_v51 }
0x1521   :  { %7912 = vst.msk [vmem:[%s10100_s25 + $0x60] sm:$0xff] %vm7899_vm6, %v7888_v49 }
0x1526   :  { %v7890_v38 = vpop.f32.mrf.mxu0 }
0x1527   :  { %v7891_v40 = vadd.f32 %v14921_v13, %v7890_v38 }
0x1529   :  { %7913 = vst.msk [vmem:[%s10100_s25 + $0x68] sm:$0xff] %vm7899_vm6, %v7891_v40 }
0x152e   :  { %v7893_v19 = vpop.f32.mrf.mxu0 }
0x152f   :  { %v7894_v18 = vadd.f32 %v14921_v13, %v7893_v19 }
0x1531   :  { %7914 = vst.msk [vmem:[%s10100_s25 + $0x70] sm:$0xff] %vm7899_vm6, %v7894_v18 }
0x1536   :  { %v7896_v27 = vpop.f32.mrf.mxu0 }
0x1537   :  { %v7897_v17 = vadd.f32 %v14921_v13, %v7896_v27 }
0x1539   :  { %7915 = vst.msk [vmem:[%s10100_s25 + $0x78] sm:$0xff] %vm7899_vm6, %v7897_v17 }
0x153a   :  { %7920 = vsyncpa [#allocation3], 1 }
0x153b   :  { %7921 = vsyncpa [#allocation5], 1 }
0x153c   :  { %7922 = vsyncpa [#allocation8], 1 }
0x153d   :  { %7923 = vsyncpa [#allocation11], 1 }
0x153e   :  { %7924 = vsyncpa [#allocation14], 1 }
0x153f   :  { %7925 = vsyncpa [#allocation17], 1 }
0x1540   :  { %7926 = vsyncpa [#allocation20], 1 }

</bundles_post_ra>
